<compile_context>
chip_gen: v7x
topology: tpu7x:2x2x1
jax: 0.10.0
libtpu: 0.0.40
codegen_flags: <defaults>
</compile_context>

<pallas_src>
import math
import jax
import jax.numpy as jnp
from jax.experimental import pallas as pl
from jax.experimental.pallas import tpu as pltpu

# ---------------------------------------------------------------------------
# Model constants (from Regressor.__init__)
# ---------------------------------------------------------------------------
NUM_JOINTS = 22
HIDDEN = 32
POSE_DIM = 6
FEAT_C = 720 + 48                              # 768 per-joint feature channels
FEAT_FLAT = FEAT_C * NUM_JOINTS                # 16896
POSE_INPUT = POSE_DIM + FEAT_C + 3             # 777
SHAPE_INPUT = (FEAT_C + 3) * NUM_JOINTS + 11   # 16973
CAM_INPUT = (FEAT_C + 3) * NUM_JOINTS + 3      # 16965
SC_PACK = 16                                   # packed output lanes: [shape(11) | cam(3) | pad(2)]

DEFAULT_BATCH_TILE = 128                       # sized for v7x; v6e/v5e can raise to 512
VMEM_LIMIT_BYTES = 48 * 1024 * 1024


# ---------------------------------------------------------------------------
# Fused kernel: 22 pose heads + shape + cam, one batch tile per grid step
# ---------------------------------------------------------------------------
def regressor_kernel(
        hpose_ref, hshape_ref, hcam_ref, bbox_ref,
        wp_feat_ref, wp_bbox_ref, bp_ref, wdp_ref, pose_const_ref,
        ws_feat_ref, ws_bbox_ref, bs_ref,
        wc_feat_ref, wc_bbox_ref, bc_ref,
        wds_ref, wdc_ref, bsc_ref,
        pose_out_ref, sc_out_ref):
    f32 = jnp.float32
    bb = bbox_ref[...]                                   # (TB, 3) f32
    b0, b1, b2 = bb[:, 0:1], bb[:, 1:2], bb[:, 2:3]

    def first_layer(x_bf16, w_feat, w_bbox, bias):
        # x: (TB, K) bf16, w_feat: (32, K) bf16  ->  (TB, 32) f32.
        # q.kT dot_general form (contract on both minor dims): MXU-native, no transposes.
        acc = jax.lax.dot_general(x_bf16, w_feat, (((1,), (1,)), ((), ())),
                                  preferred_element_type=f32)
        # bbox contribution + bias in f32 on the VPU (3 broadcast FMAs)
        acc = acc + (b0 * w_bbox[0:1, :] + b1 * w_bbox[1:2, :] + b2 * w_bbox[2:3, :])
        return jnp.maximum(acc + bias, 0.0)

    # ---------------- pose branch: 22 heads, statically unrolled ----------------
    # (Identical MXU work to a batched einsum; per-head form gives whole-plane stores.)
    for k in range(NUM_JOINTS):
        h_k = first_layer(hpose_ref[k], wp_feat_ref[k], wp_bbox_ref[k], bp_ref[k])
        pose_out_ref[k] = (jnp.dot(h_k, wdp_ref[k], preferred_element_type=f32)
                           + pose_const_ref[k])          # (TB, 6)

    # ---------------- shape / cam branches ----------------
    hs = first_layer(hshape_ref[...], ws_feat_ref[...], ws_bbox_ref[...], bs_ref[...])
    hc = first_layer(hcam_ref[...], wc_bbox_ref[...] * 0.0 + hcam_ref[...] @ jnp.zeros((1,), f32)
                     if False else hcam_ref[...], wc_bbox_ref[...], bc_ref[...]) \
        if False else first_layer(hcam_ref[...], wc_feat_ref[...], wc_bbox_ref[...], bc_ref[...])

    # packed [shape(11) | cam(3) | pad(2)] output: one dense (TB, 16) store
    sc_out_ref[...] = (jnp.dot(hs, wds_ref[...], preferred_element_type=f32)
                       + jnp.dot(hc, wdc_ref[...], preferred_element_type=f32)
                       + bsc_ref[...])


def regressor_pallas(params, hpose_hm, hshape_flat, hcam_flat, bbox_info,
                     *, batch_tile=DEFAULT_BATCH_TILE):
    BN = bbox_info.shape[0]
    if BN <= batch_tile:
        TB, BN_pad = BN, BN
    else:
        TB = batch_tile                                  # multiple of 8
        BN_pad = TB * pl.cdiv(BN, TB)
        pad = BN_pad - BN
        if pad:
            hpose_hm = jnp.pad(hpose_hm, ((0, 0), (0, pad), (0, 0)))
            hshape_flat = jnp.pad(hshape_flat, ((0, pad), (0, 0)))
            hcam_flat = jnp.pad(hcam_flat, ((0, pad), (0, 0)))
            bbox_info = jnp.pad(bbox_info, ((0, pad), (0, 0)))
    grid = (BN_pad // TB,)

    batch3 = lambda i: (0, i, 0)      # activations / pose output: tile along batch
    batch2 = lambda i: (i, 0)
    const3 = lambda i: (0, 0, 0)      # weights: constant block -> fetched once, resident
    const2 = lambda i: (0, 0)

    p = params
    pose, sc = pl.pallas_call(
        regressor_kernel,
        grid_spec=pltpu.PrefetchScalarGridSpec(
            num_scalar_prefetch=0,
            grid=grid,
            in_specs=[
                pl.BlockSpec((NUM_JOINTS, TB, FEAT_C), batch3),        # hpose (bf16)
                pl.BlockSpec((TB, FEAT_FLAT), batch2),                 # hshape (bf16)
                pl.BlockSpec((TB, FEAT_FLAT), batch2),                 # hcam (bf16)
                pl.BlockSpec((TB, 3), batch2),                         # bbox (f32)
                pl.BlockSpec((NUM_JOINTS, HIDDEN, FEAT_C), const3),    # wp_feat (bf16)
                pl.BlockSpec((NUM_JOINTS, 3, HIDDEN), const3),         # wp_bbox
                pl.BlockSpec((NUM_JOINTS, 1, HIDDEN), const3),         # bp_eff
                pl.BlockSpec((NUM_JOINTS, HIDDEN, POSE_DIM), const3),  # wdp
                pl.BlockSpec((NUM_JOINTS, 1, POSE_DIM), const3),       # pose_const
                pl.BlockSpec((HIDDEN, FEAT_FLAT), const2),             # ws_feat (bf16)
                pl.BlockSpec((3, HIDDEN), const2),                     # ws_bbox
                pl.BlockSpec((1, HIDDEN), const2),                     # bs_eff
                pl.BlockSpec((HIDDEN, FEAT_FLAT), const2),             # wc_feat (bf16)
                pl.BlockSpec((3, HIDDEN), const2),                     # wc_bbox
                pl.BlockSpec((1, HIDDEN), const2),                     # bc_eff
                pl.BlockSpec((HIDDEN, SC_PACK), const2),               # wds_pad
                pl.BlockSpec((HIDDEN, SC_PACK), const2),               # wdc_pad
                pl.BlockSpec((1, SC_PACK), const2),                    # bsc_const
            ],
            out_specs=[
                pl.BlockSpec((NUM_JOINTS, TB, POSE_DIM), batch3),
                pl.BlockSpec((TB, SC_PACK), batch2),
            ],
        ),
        out_shape=(jax.ShapeDtypeStruct((NUM_JOINTS, BN_pad, POSE_DIM), jnp.float32),
                   jax.ShapeDtypeStruct((BN_pad, SC_PACK), jnp.float32)),
        compiler_params=pltpu.CompilerParams(
            dimension_semantics=("parallel",),
            vmem_limit_bytes=VMEM_LIMIT_BYTES),
    )(hpose_hm, hshape_flat, hcam_flat, bbox_info,
      p['wp_feat'], p['wp_bbox'], p['bp_eff'], p['wdp'], p['pose_const'],
      p['ws_feat'], p['ws_bbox'], p['bs_eff'],
      p['wc_feat'], p['wc_bbox'], p['bc_eff'],
      p['wds_pad'], p['wdc_pad'], p['bsc_const'])
    return pose[:, :BN, :], sc[:BN, :]


# ---------------------------------------------------------------------------
# Plain-JAX glue
# ---------------------------------------------------------------------------
def rot6d_to_rotmat(x):
    """Standard SPIN 6D-rotation -> rotation matrix. x: (BN, 22, 6) -> (BN*22, 3, 3)."""
    x = x.reshape(-1, 3, 2)
    a1, a2 = x[..., 0], x[..., 1]
    b1 = a1 / (jnp.linalg.norm(a1, axis=-1, keepdims=True) + 1e-8)
    proj = jnp.sum(b1 * a2, axis=-1, keepdims=True)
    b2u = a2 - proj * b1
    b2 = b2u / (jnp.linalg.norm(b2u, axis=-1, keepdims=True) + 1e-8)
    b3 = jnp.cross(b1, b2, axis=-1)
    return jnp.stack([b1, b2, b3], axis=-1)


def regressor_forward(params, hpose, hshape, hcam, bbox_info):
    """hpose/hshape/hcam: (BN, 768, 22), bbox_info: (BN, 3)."""
    BN = hpose.shape[0]
    # One-time bf16 cast (ideally the upstream backbone would emit bf16 directly).
    hpose_hm = jnp.transpose(hpose.astype(jnp.bfloat16), (2, 0, 1))    # (22, BN, 768)
    hshape_flat = hshape.astype(jnp.bfloat16).reshape(BN, FEAT_FLAT)   # free reshape, col=c*22+k
    hcam_flat = hcam.astype(jnp.bfloat16).reshape(BN, FEAT_FLAT)
    bbox_f32 = bbox_info.astype(jnp.float32)

    pose_hm, sc = regressor_pallas(params, hpose_hm, hshape_flat, hcam_flat, bbox_f32)

    pred_pose_6d = jnp.transpose(pose_hm, (1, 0, 2))                   # (BN, 22, 6), tiny
    pred_shape = sc[:, :11]
    pred_cam = sc[:, 11:14]
    rotm = rot6d_to_rotmat(pred_pose_6d).reshape(BN, NUM_JOINTS, 3, 3)
    return {'pred_pose': rotm, 'pred_cam': pred_cam,
            'pred_shape': pred_shape, 'pred_pose_6d': pred_pose_6d}


# ---------------------------------------------------------------------------
# Parameter initialization (PyTorch layout) + one-time repacking for the kernel
# ---------------------------------------------------------------------------
def init_raw_params(key):
    """Deterministic params in PyTorch layout (Linear: (out,in); MultiLinear: (head,out,in))."""
    ks = jax.random.split(key, 15)

    def lin(kw, kb, fan_in, fan_out):
        bw = math.sqrt(6.0 / fan_in) / math.sqrt(1.0 + 5.0)            # kaiming_uniform a=sqrt(5)
        bb = 1.0 / math.sqrt(fan_in)
        w = jax.random.uniform(kw, (fan_out, fan_in), jnp.float32, -bw, bw)
        b = jax.random.uniform(kb, (fan_out,), jnp.float32, -bb, bb)
        return w, b

    def mlin(kw, kb, n_head, fan_in, fan_out):
        bw = math.sqrt(6.0 / fan_in) / math.sqrt(1.0 + 5.0)
        bb = 1.0 / math.sqrt(fan_in)
        w = jax.random.uniform(kw, (n_head, fan_out, fan_in), jnp.float32, -bw, bw)
        b = jax.random.uniform(kb, (n_head, fan_out), jnp.float32, -bb, bb)
        return w, b

    p_w, p_b = mlin(ks[0], ks[1], NUM_JOINTS, POSE_INPUT, HIDDEN)       # self.p
    dp_w, dp_b = mlin(ks[2], ks[3], NUM_JOINTS, HIDDEN, POSE_DIM)       # decpose
    s_w, s_b = lin(ks[4], ks[5], SHAPE_INPUT, HIDDEN)                   # self.s
    ds_w, ds_b = lin(ks[6], ks[7], HIDDEN, 11)                          # decshape
    c_w, c_b = lin(ks[8], ks[9], CAM_INPUT, HIDDEN)                     # self.c
    dc_w, dc_b = lin(ks[10], ks[11], HIDDEN, 3)                         # deccam

    # TODO(synk): real SMPL mean params come from SMPL_MEAN_PARAMS .npz; synthetic here.
    init_pose = 0.1 * jax.random.normal(ks[12], (1, NUM_JOINTS * POSE_DIM), jnp.float32)
    init_shape = jnp.concatenate(
        [0.1 * jax.random.normal(ks[13], (1, 10), jnp.float32),
         jnp.zeros((1, 1), jnp.float32)], axis=-1)
    init_cam = 0.1 * jax.random.normal(ks[14], (1, 3), jnp.float32)

    return dict(p_w=p_w, p_b=p_b, dp_w=dp_w, dp_b=dp_b, s_w=s_w, s_b=s_b,
                ds_w=ds_w, ds_b=ds_b, c_w=c_w, c_b=c_b, dc_w=dc_w, dc_b=dc_b,
                init_pose=init_pose, init_shape=init_shape, init_cam=init_cam)


def prepare_params(rp):
    """Repack raw params into lane-dense kernel operands, permuted to the NATIVE
    (feat, joint) flatten order of the inputs, with init_* folded into biases."""
    f32 = jnp.float32
    init_pose = rp['init_pose'].reshape(NUM_JOINTS, POSE_DIM)
    init_shape = rp['init_shape'].reshape(11)
    init_cam = rp['init_cam'].reshape(3)

    # ---- pose (MultiLinear) branch: weight cols = [init(6) | feat(768) | bbox(3)] ----
    pw = rp['p_w']                                                       # (22, 32, 777)
    wp_feat = pw[:, :, POSE_DIM:POSE_DIM + FEAT_C].astype(jnp.bfloat16)  # (22, 32, 768)
    wp_bbox = jnp.transpose(pw[:, :, POSE_DIM + FEAT_C:], (0, 2, 1))     # (22, 3, 32)
    bp_eff = (rp['p_b'] + jnp.einsum('khd,kd->kh', pw[:, :, :POSE_DIM], init_pose))[:, None, :]
    wdp = jnp.transpose(rp['dp_w'], (0, 2, 1))                           # (22, 32, 6)
    pose_const = (rp['dp_b'] + init_pose)[:, None, :]                    # (22, 1, 6)

    # ---- dense (shape / cam) branches: cols = [init | k*771 + (feat(768)|bbox(3))] ----
    def split_dense(w, b, init_vec):
        n_init = init_vec.shape[0]
        rest = w[:, n_init:].reshape(HIDDEN, NUM_JOINTS, FEAT_C + 3)     # (32, 22, 771)
        w_feat = jnp.transpose(rest[:, :, :FEAT_C], (0, 2, 1)).reshape(HIDDEN, FEAT_FLAT)
        w_bbox = rest[:, :, FEAT_C:].sum(axis=1).T                       # (3, 32)
        b_eff = (b + w[:, :n_init] @ init_vec)[None, :]                  # (1, 32)
        return w_feat.astype(jnp.bfloat16), w_bbox.astype(f32), b_eff.astype(f32)

    ws_feat, ws_bbox, bs_eff = split_dense(rp['s_w'], rp['s_b'], init_shape)
    wc_feat, wc_bbox, bc_eff = split_dense(rp['c_w'], rp['c_b'], init_cam)

    # second layers padded into one (32, 16) slab each; init folded into the packed bias
    wds_pad = jnp.zeros((HIDDEN, SC_PACK), f32).at[:, :11].set(rp['ds_w'].T)
    wdc_pad = jnp.zeros((HIDDEN, SC_PACK), f32).at[:, 11:14].set(rp['dc_w'].T)
    bsc_const = (jnp.zeros((1, SC_PACK), f32)
                 .at[0, :11].set(rp['ds_b'] + init_shape)
                 .at[0, 11:14].set(rp['dc_b'] + init_cam))

    return dict(wp_feat=wp_feat, wp_bbox=wp_bbox, bp_eff=bp_eff, wdp=wdp,
                pose_const=pose_const,
                ws_feat=ws_feat, ws_bbox=ws_bbox, bs_eff=bs_eff,
                wc_feat=wc_feat, wc_bbox=wc_bbox, bc_eff=bc_eff,
                wds_pad=wds_pad, wdc_pad=wdc_pad, bsc_const=bsc_const)


# ---------------------------------------------------------------------------
# Pure-JAX f32 reference (mirrors the PyTorch forward) for a correctness check
# ---------------------------------------------------------------------------
def regressor_reference(raw, hpose, hshape, hcam, bbox_info):
    BN = hpose.shape[0]
    bb = jnp.repeat(bbox_info[:, :, None], NUM_JOINTS, axis=2)          # (BN, 3, 22)
    hp = jnp.transpose(jnp.concatenate([hpose, bb], axis=1), (0, 2, 1))  # (BN, 22, 771)
    hs_ = jnp.transpose(jnp.concatenate([hshape, bb], axis=1), (0, 2, 1)).reshape(BN, -1)
    hc_ = jnp.transpose(jnp.concatenate([hcam, bb], axis=1), (0, 2, 1)).reshape(BN, -1)
    init_pose = jnp.tile(raw['init_pose'], (BN, 1)).reshape(BN, NUM_JOINTS, POSE_DIM)
    init_shape = jnp.tile(raw['init_shape'], (BN, 1))
    init_cam = jnp.tile(raw['init_cam'], (BN, 1))
    pose_in = jnp.concatenate([init_pose, hp], axis=2)
    shape_in = jnp.concatenate([init_shape, hs_], axis=1)
    cam_in = jnp.concatenate([init_cam, hc_], axis=1)
    hpz = jnp.maximum(jnp.einsum('kij,bkj->bki', raw['p_w'], pose_in) + raw['p_b'], 0.0)
    pose6d = init_pose + jnp.einsum('kij,bkj->bki', raw['dp_w'], hpz) + raw['dp_b']
    hsz = jnp.maximum(shape_in @ raw['s_w'].T + raw['s_b'], 0.0)
    shape = init_shape + hsz @ raw['ds_w'].T + raw['ds_b']
    hcz = jnp.maximum(cam_in @ raw['c_w'].T + raw['c_b'], 0.0)
    cam = init_cam + hcz @ raw['dc_w'].T + raw['dc_b']
    return pose6d, shape, cam


# ---------------------------------------------------------------------------
if __name__ == "__main__":
    key = jax.random.PRNGKey(0)
    k_param, k_hp, k_hs, k_hc, k_bb = jax.random.split(key, 5)

    BN = 2
    raw = init_raw_params(k_param)
    params = prepare_params(raw)
    hpose = jax.random.normal(k_hp, (BN, FEAT_C, NUM_JOINTS), jnp.float32)
    hshape = jax.random.normal(k_hs, (BN, FEAT_C, NUM_JOINTS), jnp.float32)
    hcam = jax.random.normal(k_hc, (BN, FEAT_C, NUM_JOINTS), jnp.float32)
    bbox_info = jax.random.normal(k_bb, (BN, 3), jnp.float32)

    out = jax.jit(regressor_forward)(params, hpose, hshape, hcam, bbox_info)
    out = jax.block_until_ready(out)

    assert out['pred_pose'].shape == (BN, NUM_JOINTS, 3, 3)
    assert out['pred_pose_6d'].shape == (BN, NUM_JOINTS, POSE_DIM)
    assert out['pred_shape'].shape == (BN, 11)
    assert out['pred_cam'].shape == (BN, 3)

    # bf16 kernel vs f32 reference: expect ~1e-2-scale deviations; use generous atol.
    ref_pose6d, ref_shape, ref_cam = regressor_reference(raw, hpose, hshape, hcam, bbox_info)
    assert float(jnp.max(jnp.abs(out['pred_pose_6d'] - ref_pose6d))) < 5e-2
    assert float(jnp.max(jnp.abs(out['pred_shape'] - ref_shape))) < 5e-2
    assert float(jnp.max(jnp.abs(out['pred_cam'] - ref_cam))) < 5e-2
    print("KERNEL_OK")
</pallas_src>

<mosaic_0001>
module attributes {stable_mosaic.version = 11 : i64} {
  func.func @regressor_kernel(%arg0: i32, %arg1: memref<22x2x768xbf16, #tpu.memory_space<vmem>>, %arg2: memref<2x16896xbf16, #tpu.memory_space<vmem>>, %arg3: memref<2x16896xbf16, #tpu.memory_space<vmem>>, %arg4: memref<2x3xf32, #tpu.memory_space<vmem>>, %arg5: memref<22x32x768xbf16, #tpu.memory_space<vmem>>, %arg6: memref<22x3x32xf32, #tpu.memory_space<vmem>>, %arg7: memref<22x1x32xf32, #tpu.memory_space<vmem>>, %arg8: memref<22x32x6xf32, #tpu.memory_space<vmem>>, %arg9: memref<22x1x6xf32, #tpu.memory_space<vmem>>, %arg10: memref<32x16896xbf16, #tpu.memory_space<vmem>>, %arg11: memref<3x32xf32, #tpu.memory_space<vmem>>, %arg12: memref<1x32xf32, #tpu.memory_space<vmem>>, %arg13: memref<32x16896xbf16, #tpu.memory_space<vmem>>, %arg14: memref<3x32xf32, #tpu.memory_space<vmem>>, %arg15: memref<1x32xf32, #tpu.memory_space<vmem>>, %arg16: memref<32x16xf32, #tpu.memory_space<vmem>>, %arg17: memref<32x16xf32, #tpu.memory_space<vmem>>, %arg18: memref<1x16xf32, #tpu.memory_space<vmem>>, %arg19: memref<22x2x6xf32, #tpu.memory_space<vmem>>, %arg20: memref<2x16xf32, #tpu.memory_space<vmem>>) attributes {dimension_semantics = [#tpu.dimension_semantics<parallel>], iteration_bounds = array<i64: 1>, scalar_prefetch = 0 : i64, scratch_operands = 0 : i64, tpu.core_type = #tpu.core_type<tc>, window_params = [{transform_indices = @transform_0, window_bounds = array<i64: 22, 2, 768>}, {transform_indices = @transform_1, window_bounds = array<i64: 2, 16896>}, {transform_indices = @transform_2, window_bounds = array<i64: 2, 16896>}, {transform_indices = @transform_3, window_bounds = array<i64: 2, 3>}, {pipeline_mode = #tpu.pipeline_mode<synchronous>, transform_indices = @transform_4, window_bounds = array<i64: 22, 32, 768>}, {pipeline_mode = #tpu.pipeline_mode<synchronous>, transform_indices = @transform_5, window_bounds = array<i64: 22, 3, 32>}, {pipeline_mode = #tpu.pipeline_mode<synchronous>, transform_indices = @transform_6, window_bounds = array<i64: 22, 1, 32>}, {pipeline_mode = #tpu.pipeline_mode<synchronous>, transform_indices = @transform_7, window_bounds = array<i64: 22, 32, 6>}, {pipeline_mode = #tpu.pipeline_mode<synchronous>, transform_indices = @transform_8, window_bounds = array<i64: 22, 1, 6>}, {pipeline_mode = #tpu.pipeline_mode<synchronous>, transform_indices = @transform_9, window_bounds = array<i64: 32, 16896>}, {pipeline_mode = #tpu.pipeline_mode<synchronous>, transform_indices = @transform_10, window_bounds = array<i64: 3, 32>}, {pipeline_mode = #tpu.pipeline_mode<synchronous>, transform_indices = @transform_11, window_bounds = array<i64: 1, 32>}, {pipeline_mode = #tpu.pipeline_mode<synchronous>, transform_indices = @transform_12, window_bounds = array<i64: 32, 16896>}, {pipeline_mode = #tpu.pipeline_mode<synchronous>, transform_indices = @transform_13, window_bounds = array<i64: 3, 32>}, {pipeline_mode = #tpu.pipeline_mode<synchronous>, transform_indices = @transform_14, window_bounds = array<i64: 1, 32>}, {pipeline_mode = #tpu.pipeline_mode<synchronous>, transform_indices = @transform_15, window_bounds = array<i64: 32, 16>}, {pipeline_mode = #tpu.pipeline_mode<synchronous>, transform_indices = @transform_16, window_bounds = array<i64: 32, 16>}, {pipeline_mode = #tpu.pipeline_mode<synchronous>, transform_indices = @transform_17, window_bounds = array<i64: 1, 16>}, {transform_indices = @transform_18, window_bounds = array<i64: 22, 2, 6>}, {transform_indices = @transform_19, window_bounds = array<i64: 2, 16>}]} {
    %c0 = arith.constant 0 : index
    %c0_0 = arith.constant 0 : index
    %0 = vector.load %arg4[%c0, %c0_0] : memref<2x3xf32, #tpu.memory_space<vmem>>, vector<2x3xf32>
    %1 = vector.extract_strided_slice %0 {offsets = [0, 0], sizes = [2, 1], strides = [1, 1]} : vector<2x3xf32> to vector<2x1xf32>
    %2 = vector.extract_strided_slice %0 {offsets = [0, 1], sizes = [2, 1], strides = [1, 1]} : vector<2x3xf32> to vector<2x1xf32>
    %3 = vector.extract_strided_slice %0 {offsets = [0, 2], sizes = [2, 1], strides = [1, 1]} : vector<2x3xf32> to vector<2x1xf32>
    %c0_1 = arith.constant 0 : index
    %c0_2 = arith.constant 0 : index
    %c0_3 = arith.constant 0 : index
    %4 = vector.load %arg1[%c0_1, %c0_2, %c0_3] : memref<22x2x768xbf16, #tpu.memory_space<vmem>>, vector<1x2x768xbf16>
    %5 = vector.shape_cast %4 : vector<1x2x768xbf16> to vector<2x768xbf16>
    %c0_4 = arith.constant 0 : index
    %c0_5 = arith.constant 0 : index
    %c0_6 = arith.constant 0 : index
    %6 = vector.load %arg5[%c0_4, %c0_5, %c0_6] : memref<22x32x768xbf16, #tpu.memory_space<vmem>>, vector<1x32x768xbf16>
    %7 = vector.shape_cast %6 : vector<1x32x768xbf16> to vector<32x768xbf16>
    %c0_7 = arith.constant 0 : index
    %c0_8 = arith.constant 0 : index
    %c0_9 = arith.constant 0 : index
    %8 = vector.load %arg6[%c0_7, %c0_8, %c0_9] : memref<22x3x32xf32, #tpu.memory_space<vmem>>, vector<1x3x32xf32>
    %9 = vector.shape_cast %8 : vector<1x3x32xf32> to vector<3x32xf32>
    %c0_10 = arith.constant 0 : index
    %c0_11 = arith.constant 0 : index
    %c0_12 = arith.constant 0 : index
    %10 = vector.load %arg7[%c0_10, %c0_11, %c0_12] : memref<22x1x32xf32, #tpu.memory_space<vmem>>, vector<1x1x32xf32>
    %11 = vector.shape_cast %10 : vector<1x1x32xf32> to vector<1x32xf32>
    %cst = arith.constant dense<0.000000e+00> : vector<2x32xf32>
    %12 = tpu.matmul %5, %7, %cst {dimension_numbers = #tpu.dot_dimension_numbers<[1], [1], [0], [0], [0, 0, 1, 0], [], []>} : vector<2x768xbf16>, vector<32x768xbf16>, vector<2x32xf32> -> vector<2x32xf32>
    %13 = vector.extract_strided_slice %9 {offsets = [0, 0], sizes = [1, 32], strides = [1, 1]} : vector<3x32xf32> to vector<1x32xf32>
    %14 = vector.broadcast %1 : vector<2x1xf32> to vector<2x32xf32>
    %15 = vector.broadcast %13 : vector<1x32xf32> to vector<2x32xf32>
    %16 = arith.mulf %14, %15 : vector<2x32xf32>
    %17 = vector.extract_strided_slice %9 {offsets = [1, 0], sizes = [1, 32], strides = [1, 1]} : vector<3x32xf32> to vector<1x32xf32>
    %18 = vector.broadcast %2 : vector<2x1xf32> to vector<2x32xf32>
    %19 = vector.broadcast %17 : vector<1x32xf32> to vector<2x32xf32>
    %20 = arith.mulf %18, %19 : vector<2x32xf32>
    %21 = arith.addf %16, %20 : vector<2x32xf32>
    %22 = vector.extract_strided_slice %9 {offsets = [2, 0], sizes = [1, 32], strides = [1, 1]} : vector<3x32xf32> to vector<1x32xf32>
    %23 = vector.broadcast %3 : vector<2x1xf32> to vector<2x32xf32>
    %24 = vector.broadcast %22 : vector<1x32xf32> to vector<2x32xf32>
    %25 = arith.mulf %23, %24 : vector<2x32xf32>
    %26 = arith.addf %21, %25 : vector<2x32xf32>
    %27 = arith.addf %12, %26 : vector<2x32xf32>
    %28 = vector.broadcast %11 : vector<1x32xf32> to vector<2x32xf32>
    %29 = arith.addf %27, %28 : vector<2x32xf32>
    %cst_13 = arith.constant 0.000000e+00 : f32
    %30 = vector.broadcast %cst_13 : f32 to vector<2x32xf32>
    %31 = arith.maximumf %29, %30 : vector<2x32xf32>
    %c0_14 = arith.constant 0 : index
    %c0_15 = arith.constant 0 : index
    %c0_16 = arith.constant 0 : index
    %32 = vector.load %arg8[%c0_14, %c0_15, %c0_16] : memref<22x32x6xf32, #tpu.memory_space<vmem>>, vector<1x32x6xf32>
    %33 = vector.shape_cast %32 : vector<1x32x6xf32> to vector<32x6xf32>
    %cst_17 = arith.constant dense<0.000000e+00> : vector<2x6xf32>
    %34 = tpu.matmul %31, %33, %cst_17 {dimension_numbers = #tpu.dot_dimension_numbers<[1], [0], [0], [1], [0, 0, 1, 1], [], []>} : vector<2x32xf32>, vector<32x6xf32>, vector<2x6xf32> -> vector<2x6xf32>
    %c0_18 = arith.constant 0 : index
    %c0_19 = arith.constant 0 : index
    %c0_20 = arith.constant 0 : index
    %35 = vector.load %arg9[%c0_18, %c0_19, %c0_20] : memref<22x1x6xf32, #tpu.memory_space<vmem>>, vector<1x1x6xf32>
    %36 = vector.shape_cast %35 : vector<1x1x6xf32> to vector<1x6xf32>
    %37 = vector.broadcast %36 : vector<1x6xf32> to vector<2x6xf32>
    %38 = arith.addf %34, %37 : vector<2x6xf32>
    %c0_21 = arith.constant 0 : index
    %c0_22 = arith.constant 0 : index
    %c0_23 = arith.constant 0 : index
    %39 = vector.load %arg19[%c0_21, %c0_22, %c0_23] : memref<22x2x6xf32, #tpu.memory_space<vmem>>, vector<1x2x6xf32>
    %40 = vector.shape_cast %39 : vector<1x2x6xf32> to vector<2x6xf32>
    %41 = vector.shape_cast %38 : vector<2x6xf32> to vector<1x2x6xf32>
    tpu.vector_store %arg19[%c0_21, %c0_22, %c0_23], %41 {strides = array<i32>} : memref<22x2x6xf32, #tpu.memory_space<vmem>>, vector<1x2x6xf32>,
    %c1 = arith.constant 1 : index
    %c0_24 = arith.constant 0 : index
    %c0_25 = arith.constant 0 : index
    %42 = vector.load %arg1[%c1, %c0_24, %c0_25] : memref<22x2x768xbf16, #tpu.memory_space<vmem>>, vector<1x2x768xbf16>
    %43 = vector.shape_cast %42 : vector<1x2x768xbf16> to vector<2x768xbf16>
    %c1_26 = arith.constant 1 : index
    %c0_27 = arith.constant 0 : index
    %c0_28 = arith.constant 0 : index
    %44 = vector.load %arg5[%c1_26, %c0_27, %c0_28] : memref<22x32x768xbf16, #tpu.memory_space<vmem>>, vector<1x32x768xbf16>
    %45 = vector.shape_cast %44 : vector<1x32x768xbf16> to vector<32x768xbf16>
    %c1_29 = arith.constant 1 : index
    %c0_30 = arith.constant 0 : index
    %c0_31 = arith.constant 0 : index
    %46 = vector.load %arg6[%c1_29, %c0_30, %c0_31] : memref<22x3x32xf32, #tpu.memory_space<vmem>>, vector<1x3x32xf32>
    %47 = vector.shape_cast %46 : vector<1x3x32xf32> to vector<3x32xf32>
    %c1_32 = arith.constant 1 : index
    %c0_33 = arith.constant 0 : index
    %c0_34 = arith.constant 0 : index
    %48 = vector.load %arg7[%c1_32, %c0_33, %c0_34] : memref<22x1x32xf32, #tpu.memory_space<vmem>>, vector<1x1x32xf32>
    %49 = vector.shape_cast %48 : vector<1x1x32xf32> to vector<1x32xf32>
    %cst_35 = arith.constant dense<0.000000e+00> : vector<2x32xf32>
    %50 = tpu.matmul %43, %45, %cst_35 {dimension_numbers = #tpu.dot_dimension_numbers<[1], [1], [0], [0], [0, 0, 1, 0], [], []>} : vector<2x768xbf16>, vector<32x768xbf16>, vector<2x32xf32> -> vector<2x32xf32>
    %51 = vector.extract_strided_slice %47 {offsets = [0, 0], sizes = [1, 32], strides = [1, 1]} : vector<3x32xf32> to vector<1x32xf32>
    %52 = vector.broadcast %1 : vector<2x1xf32> to vector<2x32xf32>
    %53 = vector.broadcast %51 : vector<1x32xf32> to vector<2x32xf32>
    %54 = arith.mulf %52, %53 : vector<2x32xf32>
    %55 = vector.extract_strided_slice %47 {offsets = [1, 0], sizes = [1, 32], strides = [1, 1]} : vector<3x32xf32> to vector<1x32xf32>
    %56 = vector.broadcast %2 : vector<2x1xf32> to vector<2x32xf32>
    %57 = vector.broadcast %55 : vector<1x32xf32> to vector<2x32xf32>
    %58 = arith.mulf %56, %57 : vector<2x32xf32>
    %59 = arith.addf %54, %58 : vector<2x32xf32>
    %60 = vector.extract_strided_slice %47 {offsets = [2, 0], sizes = [1, 32], strides = [1, 1]} : vector<3x32xf32> to vector<1x32xf32>
    %61 = vector.broadcast %3 : vector<2x1xf32> to vector<2x32xf32>
    %62 = vector.broadcast %60 : vector<1x32xf32> to vector<2x32xf32>
    %63 = arith.mulf %61, %62 : vector<2x32xf32>
    %64 = arith.addf %59, %63 : vector<2x32xf32>
    %65 = arith.addf %50, %64 : vector<2x32xf32>
    %66 = vector.broadcast %49 : vector<1x32xf32> to vector<2x32xf32>
    %67 = arith.addf %65, %66 : vector<2x32xf32>
    %cst_36 = arith.constant 0.000000e+00 : f32
    %68 = vector.broadcast %cst_36 : f32 to vector<2x32xf32>
    %69 = arith.maximumf %67, %68 : vector<2x32xf32>
    %c1_37 = arith.constant 1 : index
    %c0_38 = arith.constant 0 : index
    %c0_39 = arith.constant 0 : index
    %70 = vector.load %arg8[%c1_37, %c0_38, %c0_39] : memref<22x32x6xf32, #tpu.memory_space<vmem>>, vector<1x32x6xf32>
    %71 = vector.shape_cast %70 : vector<1x32x6xf32> to vector<32x6xf32>
    %cst_40 = arith.constant dense<0.000000e+00> : vector<2x6xf32>
    %72 = tpu.matmul %69, %71, %cst_40 {dimension_numbers = #tpu.dot_dimension_numbers<[1], [0], [0], [1], [0, 0, 1, 1], [], []>} : vector<2x32xf32>, vector<32x6xf32>, vector<2x6xf32> -> vector<2x6xf32>
    %c1_41 = arith.constant 1 : index
    %c0_42 = arith.constant 0 : index
    %c0_43 = arith.constant 0 : index
    %73 = vector.load %arg9[%c1_41, %c0_42, %c0_43] : memref<22x1x6xf32, #tpu.memory_space<vmem>>, vector<1x1x6xf32>
    %74 = vector.shape_cast %73 : vector<1x1x6xf32> to vector<1x6xf32>
    %75 = vector.broadcast %74 : vector<1x6xf32> to vector<2x6xf32>
    %76 = arith.addf %72, %75 : vector<2x6xf32>
    %c1_44 = arith.constant 1 : index
    %c0_45 = arith.constant 0 : index
    %c0_46 = arith.constant 0 : index
    %77 = vector.load %arg19[%c1_44, %c0_45, %c0_46] : memref<22x2x6xf32, #tpu.memory_space<vmem>>, vector<1x2x6xf32>
    %78 = vector.shape_cast %77 : vector<1x2x6xf32> to vector<2x6xf32>
    %79 = vector.shape_cast %76 : vector<2x6xf32> to vector<1x2x6xf32>
    tpu.vector_store %arg19[%c1_44, %c0_45, %c0_46], %79 {strides = array<i32>} : memref<22x2x6xf32, #tpu.memory_space<vmem>>, vector<1x2x6xf32>,
    %c2 = arith.constant 2 : index
    %c0_47 = arith.constant 0 : index
    %c0_48 = arith.constant 0 : index
    %80 = vector.load %arg1[%c2, %c0_47, %c0_48] : memref<22x2x768xbf16, #tpu.memory_space<vmem>>, vector<1x2x768xbf16>
    %81 = vector.shape_cast %80 : vector<1x2x768xbf16> to vector<2x768xbf16>
    %c2_49 = arith.constant 2 : index
    %c0_50 = arith.constant 0 : index
    %c0_51 = arith.constant 0 : index
    %82 = vector.load %arg5[%c2_49, %c0_50, %c0_51] : memref<22x32x768xbf16, #tpu.memory_space<vmem>>, vector<1x32x768xbf16>
    %83 = vector.shape_cast %82 : vector<1x32x768xbf16> to vector<32x768xbf16>
    %c2_52 = arith.constant 2 : index
    %c0_53 = arith.constant 0 : index
    %c0_54 = arith.constant 0 : index
    %84 = vector.load %arg6[%c2_52, %c0_53, %c0_54] : memref<22x3x32xf32, #tpu.memory_space<vmem>>, vector<1x3x32xf32>
    %85 = vector.shape_cast %84 : vector<1x3x32xf32> to vector<3x32xf32>
    %c2_55 = arith.constant 2 : index
    %c0_56 = arith.constant 0 : index
    %c0_57 = arith.constant 0 : index
    %86 = vector.load %arg7[%c2_55, %c0_56, %c0_57] : memref<22x1x32xf32, #tpu.memory_space<vmem>>, vector<1x1x32xf32>
    %87 = vector.shape_cast %86 : vector<1x1x32xf32> to vector<1x32xf32>
    %cst_58 = arith.constant dense<0.000000e+00> : vector<2x32xf32>
    %88 = tpu.matmul %81, %83, %cst_58 {dimension_numbers = #tpu.dot_dimension_numbers<[1], [1], [0], [0], [0, 0, 1, 0], [], []>} : vector<2x768xbf16>, vector<32x768xbf16>, vector<2x32xf32> -> vector<2x32xf32>
    %89 = vector.extract_strided_slice %85 {offsets = [0, 0], sizes = [1, 32], strides = [1, 1]} : vector<3x32xf32> to vector<1x32xf32>
    %90 = vector.broadcast %1 : vector<2x1xf32> to vector<2x32xf32>
    %91 = vector.broadcast %89 : vector<1x32xf32> to vector<2x32xf32>
    %92 = arith.mulf %90, %91 : vector<2x32xf32>
    %93 = vector.extract_strided_slice %85 {offsets = [1, 0], sizes = [1, 32], strides = [1, 1]} : vector<3x32xf32> to vector<1x32xf32>
    %94 = vector.broadcast %2 : vector<2x1xf32> to vector<2x32xf32>
    %95 = vector.broadcast %93 : vector<1x32xf32> to vector<2x32xf32>
    %96 = arith.mulf %94, %95 : vector<2x32xf32>
    %97 = arith.addf %92, %96 : vector<2x32xf32>
    %98 = vector.extract_strided_slice %85 {offsets = [2, 0], sizes = [1, 32], strides = [1, 1]} : vector<3x32xf32> to vector<1x32xf32>
    %99 = vector.broadcast %3 : vector<2x1xf32> to vector<2x32xf32>
    %100 = vector.broadcast %98 : vector<1x32xf32> to vector<2x32xf32>
    %101 = arith.mulf %99, %100 : vector<2x32xf32>
    %102 = arith.addf %97, %101 : vector<2x32xf32>
    %103 = arith.addf %88, %102 : vector<2x32xf32>
    %104 = vector.broadcast %87 : vector<1x32xf32> to vector<2x32xf32>
    %105 = arith.addf %103, %104 : vector<2x32xf32>
    %cst_59 = arith.constant 0.000000e+00 : f32
    %106 = vector.broadcast %cst_59 : f32 to vector<2x32xf32>
    %107 = arith.maximumf %105, %106 : vector<2x32xf32>
    %c2_60 = arith.constant 2 : index
    %c0_61 = arith.constant 0 : index
    %c0_62 = arith.constant 0 : index
    %108 = vector.load %arg8[%c2_60, %c0_61, %c0_62] : memref<22x32x6xf32, #tpu.memory_space<vmem>>, vector<1x32x6xf32>
    %109 = vector.shape_cast %108 : vector<1x32x6xf32> to vector<32x6xf32>
    %cst_63 = arith.constant dense<0.000000e+00> : vector<2x6xf32>
    %110 = tpu.matmul %107, %109, %cst_63 {dimension_numbers = #tpu.dot_dimension_numbers<[1], [0], [0], [1], [0, 0, 1, 1], [], []>} : vector<2x32xf32>, vector<32x6xf32>, vector<2x6xf32> -> vector<2x6xf32>
    %c2_64 = arith.constant 2 : index
    %c0_65 = arith.constant 0 : index
    %c0_66 = arith.constant 0 : index
    %111 = vector.load %arg9[%c2_64, %c0_65, %c0_66] : memref<22x1x6xf32, #tpu.memory_space<vmem>>, vector<1x1x6xf32>
    %112 = vector.shape_cast %111 : vector<1x1x6xf32> to vector<1x6xf32>
    %113 = vector.broadcast %112 : vector<1x6xf32> to vector<2x6xf32>
    %114 = arith.addf %110, %113 : vector<2x6xf32>
    %c2_67 = arith.constant 2 : index
    %c0_68 = arith.constant 0 : index
    %c0_69 = arith.constant 0 : index
    %115 = vector.load %arg19[%c2_67, %c0_68, %c0_69] : memref<22x2x6xf32, #tpu.memory_space<vmem>>, vector<1x2x6xf32>
    %116 = vector.shape_cast %115 : vector<1x2x6xf32> to vector<2x6xf32>
    %117 = vector.shape_cast %114 : vector<2x6xf32> to vector<1x2x6xf32>
    tpu.vector_store %arg19[%c2_67, %c0_68, %c0_69], %117 {strides = array<i32>} : memref<22x2x6xf32, #tpu.memory_space<vmem>>, vector<1x2x6xf32>,
    %c3 = arith.constant 3 : index
    %c0_70 = arith.constant 0 : index
    %c0_71 = arith.constant 0 : index
    %118 = vector.load %arg1[%c3, %c0_70, %c0_71] : memref<22x2x768xbf16, #tpu.memory_space<vmem>>, vector<1x2x768xbf16>
    %119 = vector.shape_cast %118 : vector<1x2x768xbf16> to vector<2x768xbf16>
    %c3_72 = arith.constant 3 : index
    %c0_73 = arith.constant 0 : index
    %c0_74 = arith.constant 0 : index
    %120 = vector.load %arg5[%c3_72, %c0_73, %c0_74] : memref<22x32x768xbf16, #tpu.memory_space<vmem>>, vector<1x32x768xbf16>
    %121 = vector.shape_cast %120 : vector<1x32x768xbf16> to vector<32x768xbf16>
    %c3_75 = arith.constant 3 : index
    %c0_76 = arith.constant 0 : index
    %c0_77 = arith.constant 0 : index
    %122 = vector.load %arg6[%c3_75, %c0_76, %c0_77] : memref<22x3x32xf32, #tpu.memory_space<vmem>>, vector<1x3x32xf32>
    %123 = vector.shape_cast %122 : vector<1x3x32xf32> to vector<3x32xf32>
    %c3_78 = arith.constant 3 : index
    %c0_79 = arith.constant 0 : index
    %c0_80 = arith.constant 0 : index
    %124 = vector.load %arg7[%c3_78, %c0_79, %c0_80] : memref<22x1x32xf32, #tpu.memory_space<vmem>>, vector<1x1x32xf32>
    %125 = vector.shape_cast %124 : vector<1x1x32xf32> to vector<1x32xf32>
    %cst_81 = arith.constant dense<0.000000e+00> : vector<2x32xf32>
    %126 = tpu.matmul %119, %121, %cst_81 {dimension_numbers = #tpu.dot_dimension_numbers<[1], [1], [0], [0], [0, 0, 1, 0], [], []>} : vector<2x768xbf16>, vector<32x768xbf16>, vector<2x32xf32> -> vector<2x32xf32>
    %127 = vector.extract_strided_slice %123 {offsets = [0, 0], sizes = [1, 32], strides = [1, 1]} : vector<3x32xf32> to vector<1x32xf32>
    %128 = vector.broadcast %1 : vector<2x1xf32> to vector<2x32xf32>
    %129 = vector.broadcast %127 : vector<1x32xf32> to vector<2x32xf32>
    %130 = arith.mulf %128, %129 : vector<2x32xf32>
    %131 = vector.extract_strided_slice %123 {offsets = [1, 0], sizes = [1, 32], strides = [1, 1]} : vector<3x32xf32> to vector<1x32xf32>
    %132 = vector.broadcast %2 : vector<2x1xf32> to vector<2x32xf32>
    %133 = vector.broadcast %131 : vector<1x32xf32> to vector<2x32xf32>
    %134 = arith.mulf %132, %133 : vector<2x32xf32>
    %135 = arith.addf %130, %134 : vector<2x32xf32>
    %136 = vector.extract_strided_slice %123 {offsets = [2, 0], sizes = [1, 32], strides = [1, 1]} : vector<3x32xf32> to vector<1x32xf32>
    %137 = vector.broadcast %3 : vector<2x1xf32> to vector<2x32xf32>
    %138 = vector.broadcast %136 : vector<1x32xf32> to vector<2x32xf32>
    %139 = arith.mulf %137, %138 : vector<2x32xf32>
    %140 = arith.addf %135, %139 : vector<2x32xf32>
    %141 = arith.addf %126, %140 : vector<2x32xf32>
    %142 = vector.broadcast %125 : vector<1x32xf32> to vector<2x32xf32>
    %143 = arith.addf %141, %142 : vector<2x32xf32>
    %cst_82 = arith.constant 0.000000e+00 : f32
    %144 = vector.broadcast %cst_82 : f32 to vector<2x32xf32>
    %145 = arith.maximumf %143, %144 : vector<2x32xf32>
    %c3_83 = arith.constant 3 : index
    %c0_84 = arith.constant 0 : index
    %c0_85 = arith.constant 0 : index
    %146 = vector.load %arg8[%c3_83, %c0_84, %c0_85] : memref<22x32x6xf32, #tpu.memory_space<vmem>>, vector<1x32x6xf32>
    %147 = vector.shape_cast %146 : vector<1x32x6xf32> to vector<32x6xf32>
    %cst_86 = arith.constant dense<0.000000e+00> : vector<2x6xf32>
    %148 = tpu.matmul %145, %147, %cst_86 {dimension_numbers = #tpu.dot_dimension_numbers<[1], [0], [0], [1], [0, 0, 1, 1], [], []>} : vector<2x32xf32>, vector<32x6xf32>, vector<2x6xf32> -> vector<2x6xf32>
    %c3_87 = arith.constant 3 : index
    %c0_88 = arith.constant 0 : index
    %c0_89 = arith.constant 0 : index
    %149 = vector.load %arg9[%c3_87, %c0_88, %c0_89] : memref<22x1x6xf32, #tpu.memory_space<vmem>>, vector<1x1x6xf32>
    %150 = vector.shape_cast %149 : vector<1x1x6xf32> to vector<1x6xf32>
    %151 = vector.broadcast %150 : vector<1x6xf32> to vector<2x6xf32>
    %152 = arith.addf %148, %151 : vector<2x6xf32>
    %c3_90 = arith.constant 3 : index
    %c0_91 = arith.constant 0 : index
    %c0_92 = arith.constant 0 : index
    %153 = vector.load %arg19[%c3_90, %c0_91, %c0_92] : memref<22x2x6xf32, #tpu.memory_space<vmem>>, vector<1x2x6xf32>
    %154 = vector.shape_cast %153 : vector<1x2x6xf32> to vector<2x6xf32>
    %155 = vector.shape_cast %152 : vector<2x6xf32> to vector<1x2x6xf32>
    tpu.vector_store %arg19[%c3_90, %c0_91, %c0_92], %155 {strides = array<i32>} : memref<22x2x6xf32, #tpu.memory_space<vmem>>, vector<1x2x6xf32>,
    %c4 = arith.constant 4 : index
    %c0_93 = arith.constant 0 : index
    %c0_94 = arith.constant 0 : index
    %156 = vector.load %arg1[%c4, %c0_93, %c0_94] : memref<22x2x768xbf16, #tpu.memory_space<vmem>>, vector<1x2x768xbf16>
    %157 = vector.shape_cast %156 : vector<1x2x768xbf16> to vector<2x768xbf16>
    %c4_95 = arith.constant 4 : index
    %c0_96 = arith.constant 0 : index
    %c0_97 = arith.constant 0 : index
    %158 = vector.load %arg5[%c4_95, %c0_96, %c0_97] : memref<22x32x768xbf16, #tpu.memory_space<vmem>>, vector<1x32x768xbf16>
    %159 = vector.shape_cast %158 : vector<1x32x768xbf16> to vector<32x768xbf16>
    %c4_98 = arith.constant 4 : index
    %c0_99 = arith.constant 0 : index
    %c0_100 = arith.constant 0 : index
    %160 = vector.load %arg6[%c4_98, %c0_99, %c0_100] : memref<22x3x32xf32, #tpu.memory_space<vmem>>, vector<1x3x32xf32>
    %161 = vector.shape_cast %160 : vector<1x3x32xf32> to vector<3x32xf32>
    %c4_101 = arith.constant 4 : index
    %c0_102 = arith.constant 0 : index
    %c0_103 = arith.constant 0 : index
    %162 = vector.load %arg7[%c4_101, %c0_102, %c0_103] : memref<22x1x32xf32, #tpu.memory_space<vmem>>, vector<1x1x32xf32>
    %163 = vector.shape_cast %162 : vector<1x1x32xf32> to vector<1x32xf32>
    %cst_104 = arith.constant dense<0.000000e+00> : vector<2x32xf32>
    %164 = tpu.matmul %157, %159, %cst_104 {dimension_numbers = #tpu.dot_dimension_numbers<[1], [1], [0], [0], [0, 0, 1, 0], [], []>} : vector<2x768xbf16>, vector<32x768xbf16>, vector<2x32xf32> -> vector<2x32xf32>
    %165 = vector.extract_strided_slice %161 {offsets = [0, 0], sizes = [1, 32], strides = [1, 1]} : vector<3x32xf32> to vector<1x32xf32>
    %166 = vector.broadcast %1 : vector<2x1xf32> to vector<2x32xf32>
    %167 = vector.broadcast %165 : vector<1x32xf32> to vector<2x32xf32>
    %168 = arith.mulf %166, %167 : vector<2x32xf32>
    %169 = vector.extract_strided_slice %161 {offsets = [1, 0], sizes = [1, 32], strides = [1, 1]} : vector<3x32xf32> to vector<1x32xf32>
    %170 = vector.broadcast %2 : vector<2x1xf32> to vector<2x32xf32>
    %171 = vector.broadcast %169 : vector<1x32xf32> to vector<2x32xf32>
    %172 = arith.mulf %170, %171 : vector<2x32xf32>
    %173 = arith.addf %168, %172 : vector<2x32xf32>
    %174 = vector.extract_strided_slice %161 {offsets = [2, 0], sizes = [1, 32], strides = [1, 1]} : vector<3x32xf32> to vector<1x32xf32>
    %175 = vector.broadcast %3 : vector<2x1xf32> to vector<2x32xf32>
    %176 = vector.broadcast %174 : vector<1x32xf32> to vector<2x32xf32>
    %177 = arith.mulf %175, %176 : vector<2x32xf32>
    %178 = arith.addf %173, %177 : vector<2x32xf32>
    %179 = arith.addf %164, %178 : vector<2x32xf32>
    %180 = vector.broadcast %163 : vector<1x32xf32> to vector<2x32xf32>
    %181 = arith.addf %179, %180 : vector<2x32xf32>
    %cst_105 = arith.constant 0.000000e+00 : f32
    %182 = vector.broadcast %cst_105 : f32 to vector<2x32xf32>
    %183 = arith.maximumf %181, %182 : vector<2x32xf32>
    %c4_106 = arith.constant 4 : index
    %c0_107 = arith.constant 0 : index
    %c0_108 = arith.constant 0 : index
    %184 = vector.load %arg8[%c4_106, %c0_107, %c0_108] : memref<22x32x6xf32, #tpu.memory_space<vmem>>, vector<1x32x6xf32>
    %185 = vector.shape_cast %184 : vector<1x32x6xf32> to vector<32x6xf32>
    %cst_109 = arith.constant dense<0.000000e+00> : vector<2x6xf32>
    %186 = tpu.matmul %183, %185, %cst_109 {dimension_numbers = #tpu.dot_dimension_numbers<[1], [0], [0], [1], [0, 0, 1, 1], [], []>} : vector<2x32xf32>, vector<32x6xf32>, vector<2x6xf32> -> vector<2x6xf32>
    %c4_110 = arith.constant 4 : index
    %c0_111 = arith.constant 0 : index
    %c0_112 = arith.constant 0 : index
    %187 = vector.load %arg9[%c4_110, %c0_111, %c0_112] : memref<22x1x6xf32, #tpu.memory_space<vmem>>, vector<1x1x6xf32>
    %188 = vector.shape_cast %187 : vector<1x1x6xf32> to vector<1x6xf32>
    %189 = vector.broadcast %188 : vector<1x6xf32> to vector<2x6xf32>
    %190 = arith.addf %186, %189 : vector<2x6xf32>
    %c4_113 = arith.constant 4 : index
    %c0_114 = arith.constant 0 : index
    %c0_115 = arith.constant 0 : index
    %191 = vector.load %arg19[%c4_113, %c0_114, %c0_115] : memref<22x2x6xf32, #tpu.memory_space<vmem>>, vector<1x2x6xf32>
    %192 = vector.shape_cast %191 : vector<1x2x6xf32> to vector<2x6xf32>
    %193 = vector.shape_cast %190 : vector<2x6xf32> to vector<1x2x6xf32>
    tpu.vector_store %arg19[%c4_113, %c0_114, %c0_115], %193 {strides = array<i32>} : memref<22x2x6xf32, #tpu.memory_space<vmem>>, vector<1x2x6xf32>,
    %c5 = arith.constant 5 : index
    %c0_116 = arith.constant 0 : index
    %c0_117 = arith.constant 0 : index
    %194 = vector.load %arg1[%c5, %c0_116, %c0_117] : memref<22x2x768xbf16, #tpu.memory_space<vmem>>, vector<1x2x768xbf16>
    %195 = vector.shape_cast %194 : vector<1x2x768xbf16> to vector<2x768xbf16>
    %c5_118 = arith.constant 5 : index
    %c0_119 = arith.constant 0 : index
    %c0_120 = arith.constant 0 : index
    %196 = vector.load %arg5[%c5_118, %c0_119, %c0_120] : memref<22x32x768xbf16, #tpu.memory_space<vmem>>, vector<1x32x768xbf16>
    %197 = vector.shape_cast %196 : vector<1x32x768xbf16> to vector<32x768xbf16>
    %c5_121 = arith.constant 5 : index
    %c0_122 = arith.constant 0 : index
    %c0_123 = arith.constant 0 : index
    %198 = vector.load %arg6[%c5_121, %c0_122, %c0_123] : memref<22x3x32xf32, #tpu.memory_space<vmem>>, vector<1x3x32xf32>
    %199 = vector.shape_cast %198 : vector<1x3x32xf32> to vector<3x32xf32>
    %c5_124 = arith.constant 5 : index
    %c0_125 = arith.constant 0 : index
    %c0_126 = arith.constant 0 : index
    %200 = vector.load %arg7[%c5_124, %c0_125, %c0_126] : memref<22x1x32xf32, #tpu.memory_space<vmem>>, vector<1x1x32xf32>
    %201 = vector.shape_cast %200 : vector<1x1x32xf32> to vector<1x32xf32>
    %cst_127 = arith.constant dense<0.000000e+00> : vector<2x32xf32>
    %202 = tpu.matmul %195, %197, %cst_127 {dimension_numbers = #tpu.dot_dimension_numbers<[1], [1], [0], [0], [0, 0, 1, 0], [], []>} : vector<2x768xbf16>, vector<32x768xbf16>, vector<2x32xf32> -> vector<2x32xf32>
    %203 = vector.extract_strided_slice %199 {offsets = [0, 0], sizes = [1, 32], strides = [1, 1]} : vector<3x32xf32> to vector<1x32xf32>
    %204 = vector.broadcast %1 : vector<2x1xf32> to vector<2x32xf32>
    %205 = vector.broadcast %203 : vector<1x32xf32> to vector<2x32xf32>
    %206 = arith.mulf %204, %205 : vector<2x32xf32>
    %207 = vector.extract_strided_slice %199 {offsets = [1, 0], sizes = [1, 32], strides = [1, 1]} : vector<3x32xf32> to vector<1x32xf32>
    %208 = vector.broadcast %2 : vector<2x1xf32> to vector<2x32xf32>
    %209 = vector.broadcast %207 : vector<1x32xf32> to vector<2x32xf32>
    %210 = arith.mulf %208, %209 : vector<2x32xf32>
    %211 = arith.addf %206, %210 : vector<2x32xf32>
    %212 = vector.extract_strided_slice %199 {offsets = [2, 0], sizes = [1, 32], strides = [1, 1]} : vector<3x32xf32> to vector<1x32xf32>
    %213 = vector.broadcast %3 : vector<2x1xf32> to vector<2x32xf32>
    %214 = vector.broadcast %212 : vector<1x32xf32> to vector<2x32xf32>
    %215 = arith.mulf %213, %214 : vector<2x32xf32>
    %216 = arith.addf %211, %215 : vector<2x32xf32>
    %217 = arith.addf %202, %216 : vector<2x32xf32>
    %218 = vector.broadcast %201 : vector<1x32xf32> to vector<2x32xf32>
    %219 = arith.addf %217, %218 : vector<2x32xf32>
    %cst_128 = arith.constant 0.000000e+00 : f32
    %220 = vector.broadcast %cst_128 : f32 to vector<2x32xf32>
    %221 = arith.maximumf %219, %220 : vector<2x32xf32>
    %c5_129 = arith.constant 5 : index
    %c0_130 = arith.constant 0 : index
    %c0_131 = arith.constant 0 : index
    %222 = vector.load %arg8[%c5_129, %c0_130, %c0_131] : memref<22x32x6xf32, #tpu.memory_space<vmem>>, vector<1x32x6xf32>
    %223 = vector.shape_cast %222 : vector<1x32x6xf32> to vector<32x6xf32>
    %cst_132 = arith.constant dense<0.000000e+00> : vector<2x6xf32>
    %224 = tpu.matmul %221, %223, %cst_132 {dimension_numbers = #tpu.dot_dimension_numbers<[1], [0], [0], [1], [0, 0, 1, 1], [], []>} : vector<2x32xf32>, vector<32x6xf32>, vector<2x6xf32> -> vector<2x6xf32>
    %c5_133 = arith.constant 5 : index
    %c0_134 = arith.constant 0 : index
    %c0_135 = arith.constant 0 : index
    %225 = vector.load %arg9[%c5_133, %c0_134, %c0_135] : memref<22x1x6xf32, #tpu.memory_space<vmem>>, vector<1x1x6xf32>
    %226 = vector.shape_cast %225 : vector<1x1x6xf32> to vector<1x6xf32>
    %227 = vector.broadcast %226 : vector<1x6xf32> to vector<2x6xf32>
    %228 = arith.addf %224, %227 : vector<2x6xf32>
    %c5_136 = arith.constant 5 : index
    %c0_137 = arith.constant 0 : index
    %c0_138 = arith.constant 0 : index
    %229 = vector.load %arg19[%c5_136, %c0_137, %c0_138] : memref<22x2x6xf32, #tpu.memory_space<vmem>>, vector<1x2x6xf32>
    %230 = vector.shape_cast %229 : vector<1x2x6xf32> to vector<2x6xf32>
    %231 = vector.shape_cast %228 : vector<2x6xf32> to vector<1x2x6xf32>
    tpu.vector_store %arg19[%c5_136, %c0_137, %c0_138], %231 {strides = array<i32>} : memref<22x2x6xf32, #tpu.memory_space<vmem>>, vector<1x2x6xf32>,
    %c6 = arith.constant 6 : index
    %c0_139 = arith.constant 0 : index
    %c0_140 = arith.constant 0 : index
    %232 = vector.load %arg1[%c6, %c0_139, %c0_140] : memref<22x2x768xbf16, #tpu.memory_space<vmem>>, vector<1x2x768xbf16>
    %233 = vector.shape_cast %232 : vector<1x2x768xbf16> to vector<2x768xbf16>
    %c6_141 = arith.constant 6 : index
    %c0_142 = arith.constant 0 : index
    %c0_143 = arith.constant 0 : index
    %234 = vector.load %arg5[%c6_141, %c0_142, %c0_143] : memref<22x32x768xbf16, #tpu.memory_space<vmem>>, vector<1x32x768xbf16>
    %235 = vector.shape_cast %234 : vector<1x32x768xbf16> to vector<32x768xbf16>
    %c6_144 = arith.constant 6 : index
    %c0_145 = arith.constant 0 : index
    %c0_146 = arith.constant 0 : index
    %236 = vector.load %arg6[%c6_144, %c0_145, %c0_146] : memref<22x3x32xf32, #tpu.memory_space<vmem>>, vector<1x3x32xf32>
    %237 = vector.shape_cast %236 : vector<1x3x32xf32> to vector<3x32xf32>
    %c6_147 = arith.constant 6 : index
    %c0_148 = arith.constant 0 : index
    %c0_149 = arith.constant 0 : index
    %238 = vector.load %arg7[%c6_147, %c0_148, %c0_149] : memref<22x1x32xf32, #tpu.memory_space<vmem>>, vector<1x1x32xf32>
    %239 = vector.shape_cast %238 : vector<1x1x32xf32> to vector<1x32xf32>
    %cst_150 = arith.constant dense<0.000000e+00> : vector<2x32xf32>
    %240 = tpu.matmul %233, %235, %cst_150 {dimension_numbers = #tpu.dot_dimension_numbers<[1], [1], [0], [0], [0, 0, 1, 0], [], []>} : vector<2x768xbf16>, vector<32x768xbf16>, vector<2x32xf32> -> vector<2x32xf32>
    %241 = vector.extract_strided_slice %237 {offsets = [0, 0], sizes = [1, 32], strides = [1, 1]} : vector<3x32xf32> to vector<1x32xf32>
    %242 = vector.broadcast %1 : vector<2x1xf32> to vector<2x32xf32>
    %243 = vector.broadcast %241 : vector<1x32xf32> to vector<2x32xf32>
    %244 = arith.mulf %242, %243 : vector<2x32xf32>
    %245 = vector.extract_strided_slice %237 {offsets = [1, 0], sizes = [1, 32], strides = [1, 1]} : vector<3x32xf32> to vector<1x32xf32>
    %246 = vector.broadcast %2 : vector<2x1xf32> to vector<2x32xf32>
    %247 = vector.broadcast %245 : vector<1x32xf32> to vector<2x32xf32>
    %248 = arith.mulf %246, %247 : vector<2x32xf32>
    %249 = arith.addf %244, %248 : vector<2x32xf32>
    %250 = vector.extract_strided_slice %237 {offsets = [2, 0], sizes = [1, 32], strides = [1, 1]} : vector<3x32xf32> to vector<1x32xf32>
    %251 = vector.broadcast %3 : vector<2x1xf32> to vector<2x32xf32>
    %252 = vector.broadcast %250 : vector<1x32xf32> to vector<2x32xf32>
    %253 = arith.mulf %251, %252 : vector<2x32xf32>
    %254 = arith.addf %249, %253 : vector<2x32xf32>
    %255 = arith.addf %240, %254 : vector<2x32xf32>
    %256 = vector.broadcast %239 : vector<1x32xf32> to vector<2x32xf32>
    %257 = arith.addf %255, %256 : vector<2x32xf32>
    %cst_151 = arith.constant 0.000000e+00 : f32
    %258 = vector.broadcast %cst_151 : f32 to vector<2x32xf32>
    %259 = arith.maximumf %257, %258 : vector<2x32xf32>
    %c6_152 = arith.constant 6 : index
    %c0_153 = arith.constant 0 : index
    %c0_154 = arith.constant 0 : index
    %260 = vector.load %arg8[%c6_152, %c0_153, %c0_154] : memref<22x32x6xf32, #tpu.memory_space<vmem>>, vector<1x32x6xf32>
    %261 = vector.shape_cast %260 : vector<1x32x6xf32> to vector<32x6xf32>
    %cst_155 = arith.constant dense<0.000000e+00> : vector<2x6xf32>
    %262 = tpu.matmul %259, %261, %cst_155 {dimension_numbers = #tpu.dot_dimension_numbers<[1], [0], [0], [1], [0, 0, 1, 1], [], []>} : vector<2x32xf32>, vector<32x6xf32>, vector<2x6xf32> -> vector<2x6xf32>
    %c6_156 = arith.constant 6 : index
    %c0_157 = arith.constant 0 : index
    %c0_158 = arith.constant 0 : index
    %263 = vector.load %arg9[%c6_156, %c0_157, %c0_158] : memref<22x1x6xf32, #tpu.memory_space<vmem>>, vector<1x1x6xf32>
    %264 = vector.shape_cast %263 : vector<1x1x6xf32> to vector<1x6xf32>
    %265 = vector.broadcast %264 : vector<1x6xf32> to vector<2x6xf32>
    %266 = arith.addf %262, %265 : vector<2x6xf32>
    %c6_159 = arith.constant 6 : index
    %c0_160 = arith.constant 0 : index
    %c0_161 = arith.constant 0 : index
    %267 = vector.load %arg19[%c6_159, %c0_160, %c0_161] : memref<22x2x6xf32, #tpu.memory_space<vmem>>, vector<1x2x6xf32>
    %268 = vector.shape_cast %267 : vector<1x2x6xf32> to vector<2x6xf32>
    %269 = vector.shape_cast %266 : vector<2x6xf32> to vector<1x2x6xf32>
    tpu.vector_store %arg19[%c6_159, %c0_160, %c0_161], %269 {strides = array<i32>} : memref<22x2x6xf32, #tpu.memory_space<vmem>>, vector<1x2x6xf32>,
    %c7 = arith.constant 7 : index
    %c0_162 = arith.constant 0 : index
    %c0_163 = arith.constant 0 : index
    %270 = vector.load %arg1[%c7, %c0_162, %c0_163] : memref<22x2x768xbf16, #tpu.memory_space<vmem>>, vector<1x2x768xbf16>
    %271 = vector.shape_cast %270 : vector<1x2x768xbf16> to vector<2x768xbf16>
    %c7_164 = arith.constant 7 : index
    %c0_165 = arith.constant 0 : index
    %c0_166 = arith.constant 0 : index
    %272 = vector.load %arg5[%c7_164, %c0_165, %c0_166] : memref<22x32x768xbf16, #tpu.memory_space<vmem>>, vector<1x32x768xbf16>
    %273 = vector.shape_cast %272 : vector<1x32x768xbf16> to vector<32x768xbf16>
    %c7_167 = arith.constant 7 : index
    %c0_168 = arith.constant 0 : index
    %c0_169 = arith.constant 0 : index
    %274 = vector.load %arg6[%c7_167, %c0_168, %c0_169] : memref<22x3x32xf32, #tpu.memory_space<vmem>>, vector<1x3x32xf32>
    %275 = vector.shape_cast %274 : vector<1x3x32xf32> to vector<3x32xf32>
    %c7_170 = arith.constant 7 : index
    %c0_171 = arith.constant 0 : index
    %c0_172 = arith.constant 0 : index
    %276 = vector.load %arg7[%c7_170, %c0_171, %c0_172] : memref<22x1x32xf32, #tpu.memory_space<vmem>>, vector<1x1x32xf32>
    %277 = vector.shape_cast %276 : vector<1x1x32xf32> to vector<1x32xf32>
    %cst_173 = arith.constant dense<0.000000e+00> : vector<2x32xf32>
    %278 = tpu.matmul %271, %273, %cst_173 {dimension_numbers = #tpu.dot_dimension_numbers<[1], [1], [0], [0], [0, 0, 1, 0], [], []>} : vector<2x768xbf16>, vector<32x768xbf16>, vector<2x32xf32> -> vector<2x32xf32>
    %279 = vector.extract_strided_slice %275 {offsets = [0, 0], sizes = [1, 32], strides = [1, 1]} : vector<3x32xf32> to vector<1x32xf32>
    %280 = vector.broadcast %1 : vector<2x1xf32> to vector<2x32xf32>
    %281 = vector.broadcast %279 : vector<1x32xf32> to vector<2x32xf32>
    %282 = arith.mulf %280, %281 : vector<2x32xf32>
    %283 = vector.extract_strided_slice %275 {offsets = [1, 0], sizes = [1, 32], strides = [1, 1]} : vector<3x32xf32> to vector<1x32xf32>
    %284 = vector.broadcast %2 : vector<2x1xf32> to vector<2x32xf32>
    %285 = vector.broadcast %283 : vector<1x32xf32> to vector<2x32xf32>
    %286 = arith.mulf %284, %285 : vector<2x32xf32>
    %287 = arith.addf %282, %286 : vector<2x32xf32>
    %288 = vector.extract_strided_slice %275 {offsets = [2, 0], sizes = [1, 32], strides = [1, 1]} : vector<3x32xf32> to vector<1x32xf32>
    %289 = vector.broadcast %3 : vector<2x1xf32> to vector<2x32xf32>
    %290 = vector.broadcast %288 : vector<1x32xf32> to vector<2x32xf32>
    %291 = arith.mulf %289, %290 : vector<2x32xf32>
    %292 = arith.addf %287, %291 : vector<2x32xf32>
    %293 = arith.addf %278, %292 : vector<2x32xf32>
    %294 = vector.broadcast %277 : vector<1x32xf32> to vector<2x32xf32>
    %295 = arith.addf %293, %294 : vector<2x32xf32>
    %cst_174 = arith.constant 0.000000e+00 : f32
    %296 = vector.broadcast %cst_174 : f32 to vector<2x32xf32>
    %297 = arith.maximumf %295, %296 : vector<2x32xf32>
    %c7_175 = arith.constant 7 : index
    %c0_176 = arith.constant 0 : index
    %c0_177 = arith.constant 0 : index
    %298 = vector.load %arg8[%c7_175, %c0_176, %c0_177] : memref<22x32x6xf32, #tpu.memory_space<vmem>>, vector<1x32x6xf32>
    %299 = vector.shape_cast %298 : vector<1x32x6xf32> to vector<32x6xf32>
    %cst_178 = arith.constant dense<0.000000e+00> : vector<2x6xf32>
    %300 = tpu.matmul %297, %299, %cst_178 {dimension_numbers = #tpu.dot_dimension_numbers<[1], [0], [0], [1], [0, 0, 1, 1], [], []>} : vector<2x32xf32>, vector<32x6xf32>, vector<2x6xf32> -> vector<2x6xf32>
    %c7_179 = arith.constant 7 : index
    %c0_180 = arith.constant 0 : index
    %c0_181 = arith.constant 0 : index
    %301 = vector.load %arg9[%c7_179, %c0_180, %c0_181] : memref<22x1x6xf32, #tpu.memory_space<vmem>>, vector<1x1x6xf32>
    %302 = vector.shape_cast %301 : vector<1x1x6xf32> to vector<1x6xf32>
    %303 = vector.broadcast %302 : vector<1x6xf32> to vector<2x6xf32>
    %304 = arith.addf %300, %303 : vector<2x6xf32>
    %c7_182 = arith.constant 7 : index
    %c0_183 = arith.constant 0 : index
    %c0_184 = arith.constant 0 : index
    %305 = vector.load %arg19[%c7_182, %c0_183, %c0_184] : memref<22x2x6xf32, #tpu.memory_space<vmem>>, vector<1x2x6xf32>
    %306 = vector.shape_cast %305 : vector<1x2x6xf32> to vector<2x6xf32>
    %307 = vector.shape_cast %304 : vector<2x6xf32> to vector<1x2x6xf32>
    tpu.vector_store %arg19[%c7_182, %c0_183, %c0_184], %307 {strides = array<i32>} : memref<22x2x6xf32, #tpu.memory_space<vmem>>, vector<1x2x6xf32>,
    %c8 = arith.constant 8 : index
    %c0_185 = arith.constant 0 : index
    %c0_186 = arith.constant 0 : index
    %308 = vector.load %arg1[%c8, %c0_185, %c0_186] : memref<22x2x768xbf16, #tpu.memory_space<vmem>>, vector<1x2x768xbf16>
    %309 = vector.shape_cast %308 : vector<1x2x768xbf16> to vector<2x768xbf16>
    %c8_187 = arith.constant 8 : index
    %c0_188 = arith.constant 0 : index
    %c0_189 = arith.constant 0 : index
    %310 = vector.load %arg5[%c8_187, %c0_188, %c0_189] : memref<22x32x768xbf16, #tpu.memory_space<vmem>>, vector<1x32x768xbf16>
    %311 = vector.shape_cast %310 : vector<1x32x768xbf16> to vector<32x768xbf16>
    %c8_190 = arith.constant 8 : index
    %c0_191 = arith.constant 0 : index
    %c0_192 = arith.constant 0 : index
    %312 = vector.load %arg6[%c8_190, %c0_191, %c0_192] : memref<22x3x32xf32, #tpu.memory_space<vmem>>, vector<1x3x32xf32>
    %313 = vector.shape_cast %312 : vector<1x3x32xf32> to vector<3x32xf32>
    %c8_193 = arith.constant 8 : index
    %c0_194 = arith.constant 0 : index
    %c0_195 = arith.constant 0 : index
    %314 = vector.load %arg7[%c8_193, %c0_194, %c0_195] : memref<22x1x32xf32, #tpu.memory_space<vmem>>, vector<1x1x32xf32>
    %315 = vector.shape_cast %314 : vector<1x1x32xf32> to vector<1x32xf32>
    %cst_196 = arith.constant dense<0.000000e+00> : vector<2x32xf32>
    %316 = tpu.matmul %309, %311, %cst_196 {dimension_numbers = #tpu.dot_dimension_numbers<[1], [1], [0], [0], [0, 0, 1, 0], [], []>} : vector<2x768xbf16>, vector<32x768xbf16>, vector<2x32xf32> -> vector<2x32xf32>
    %317 = vector.extract_strided_slice %313 {offsets = [0, 0], sizes = [1, 32], strides = [1, 1]} : vector<3x32xf32> to vector<1x32xf32>
    %318 = vector.broadcast %1 : vector<2x1xf32> to vector<2x32xf32>
    %319 = vector.broadcast %317 : vector<1x32xf32> to vector<2x32xf32>
    %320 = arith.mulf %318, %319 : vector<2x32xf32>
    %321 = vector.extract_strided_slice %313 {offsets = [1, 0], sizes = [1, 32], strides = [1, 1]} : vector<3x32xf32> to vector<1x32xf32>
    %322 = vector.broadcast %2 : vector<2x1xf32> to vector<2x32xf32>
    %323 = vector.broadcast %321 : vector<1x32xf32> to vector<2x32xf32>
    %324 = arith.mulf %322, %323 : vector<2x32xf32>
    %325 = arith.addf %320, %324 : vector<2x32xf32>
    %326 = vector.extract_strided_slice %313 {offsets = [2, 0], sizes = [1, 32], strides = [1, 1]} : vector<3x32xf32> to vector<1x32xf32>
    %327 = vector.broadcast %3 : vector<2x1xf32> to vector<2x32xf32>
    %328 = vector.broadcast %326 : vector<1x32xf32> to vector<2x32xf32>
    %329 = arith.mulf %327, %328 : vector<2x32xf32>
    %330 = arith.addf %325, %329 : vector<2x32xf32>
    %331 = arith.addf %316, %330 : vector<2x32xf32>
    %332 = vector.broadcast %315 : vector<1x32xf32> to vector<2x32xf32>
    %333 = arith.addf %331, %332 : vector<2x32xf32>
    %cst_197 = arith.constant 0.000000e+00 : f32
    %334 = vector.broadcast %cst_197 : f32 to vector<2x32xf32>
    %335 = arith.maximumf %333, %334 : vector<2x32xf32>
    %c8_198 = arith.constant 8 : index
    %c0_199 = arith.constant 0 : index
    %c0_200 = arith.constant 0 : index
    %336 = vector.load %arg8[%c8_198, %c0_199, %c0_200] : memref<22x32x6xf32, #tpu.memory_space<vmem>>, vector<1x32x6xf32>
    %337 = vector.shape_cast %336 : vector<1x32x6xf32> to vector<32x6xf32>
    %cst_201 = arith.constant dense<0.000000e+00> : vector<2x6xf32>
    %338 = tpu.matmul %335, %337, %cst_201 {dimension_numbers = #tpu.dot_dimension_numbers<[1], [0], [0], [1], [0, 0, 1, 1], [], []>} : vector<2x32xf32>, vector<32x6xf32>, vector<2x6xf32> -> vector<2x6xf32>
    %c8_202 = arith.constant 8 : index
    %c0_203 = arith.constant 0 : index
    %c0_204 = arith.constant 0 : index
    %339 = vector.load %arg9[%c8_202, %c0_203, %c0_204] : memref<22x1x6xf32, #tpu.memory_space<vmem>>, vector<1x1x6xf32>
    %340 = vector.shape_cast %339 : vector<1x1x6xf32> to vector<1x6xf32>
    %341 = vector.broadcast %340 : vector<1x6xf32> to vector<2x6xf32>
    %342 = arith.addf %338, %341 : vector<2x6xf32>
    %c8_205 = arith.constant 8 : index
    %c0_206 = arith.constant 0 : index
    %c0_207 = arith.constant 0 : index
    %343 = vector.load %arg19[%c8_205, %c0_206, %c0_207] : memref<22x2x6xf32, #tpu.memory_space<vmem>>, vector<1x2x6xf32>
    %344 = vector.shape_cast %343 : vector<1x2x6xf32> to vector<2x6xf32>
    %345 = vector.shape_cast %342 : vector<2x6xf32> to vector<1x2x6xf32>
    tpu.vector_store %arg19[%c8_205, %c0_206, %c0_207], %345 {strides = array<i32>} : memref<22x2x6xf32, #tpu.memory_space<vmem>>, vector<1x2x6xf32>,
    %c9 = arith.constant 9 : index
    %c0_208 = arith.constant 0 : index
    %c0_209 = arith.constant 0 : index
    %346 = vector.load %arg1[%c9, %c0_208, %c0_209] : memref<22x2x768xbf16, #tpu.memory_space<vmem>>, vector<1x2x768xbf16>
    %347 = vector.shape_cast %346 : vector<1x2x768xbf16> to vector<2x768xbf16>
    %c9_210 = arith.constant 9 : index
    %c0_211 = arith.constant 0 : index
    %c0_212 = arith.constant 0 : index
    %348 = vector.load %arg5[%c9_210, %c0_211, %c0_212] : memref<22x32x768xbf16, #tpu.memory_space<vmem>>, vector<1x32x768xbf16>
    %349 = vector.shape_cast %348 : vector<1x32x768xbf16> to vector<32x768xbf16>
    %c9_213 = arith.constant 9 : index
    %c0_214 = arith.constant 0 : index
    %c0_215 = arith.constant 0 : index
    %350 = vector.load %arg6[%c9_213, %c0_214, %c0_215] : memref<22x3x32xf32, #tpu.memory_space<vmem>>, vector<1x3x32xf32>
    %351 = vector.shape_cast %350 : vector<1x3x32xf32> to vector<3x32xf32>
    %c9_216 = arith.constant 9 : index
    %c0_217 = arith.constant 0 : index
    %c0_218 = arith.constant 0 : index
    %352 = vector.load %arg7[%c9_216, %c0_217, %c0_218] : memref<22x1x32xf32, #tpu.memory_space<vmem>>, vector<1x1x32xf32>
    %353 = vector.shape_cast %352 : vector<1x1x32xf32> to vector<1x32xf32>
    %cst_219 = arith.constant dense<0.000000e+00> : vector<2x32xf32>
    %354 = tpu.matmul %347, %349, %cst_219 {dimension_numbers = #tpu.dot_dimension_numbers<[1], [1], [0], [0], [0, 0, 1, 0], [], []>} : vector<2x768xbf16>, vector<32x768xbf16>, vector<2x32xf32> -> vector<2x32xf32>
    %355 = vector.extract_strided_slice %351 {offsets = [0, 0], sizes = [1, 32], strides = [1, 1]} : vector<3x32xf32> to vector<1x32xf32>
    %356 = vector.broadcast %1 : vector<2x1xf32> to vector<2x32xf32>
    %357 = vector.broadcast %355 : vector<1x32xf32> to vector<2x32xf32>
    %358 = arith.mulf %356, %357 : vector<2x32xf32>
    %359 = vector.extract_strided_slice %351 {offsets = [1, 0], sizes = [1, 32], strides = [1, 1]} : vector<3x32xf32> to vector<1x32xf32>
    %360 = vector.broadcast %2 : vector<2x1xf32> to vector<2x32xf32>
    %361 = vector.broadcast %359 : vector<1x32xf32> to vector<2x32xf32>
    %362 = arith.mulf %360, %361 : vector<2x32xf32>
    %363 = arith.addf %358, %362 : vector<2x32xf32>
    %364 = vector.extract_strided_slice %351 {offsets = [2, 0], sizes = [1, 32], strides = [1, 1]} : vector<3x32xf32> to vector<1x32xf32>
    %365 = vector.broadcast %3 : vector<2x1xf32> to vector<2x32xf32>
    %366 = vector.broadcast %364 : vector<1x32xf32> to vector<2x32xf32>
    %367 = arith.mulf %365, %366 : vector<2x32xf32>
    %368 = arith.addf %363, %367 : vector<2x32xf32>
    %369 = arith.addf %354, %368 : vector<2x32xf32>
    %370 = vector.broadcast %353 : vector<1x32xf32> to vector<2x32xf32>
    %371 = arith.addf %369, %370 : vector<2x32xf32>
    %cst_220 = arith.constant 0.000000e+00 : f32
    %372 = vector.broadcast %cst_220 : f32 to vector<2x32xf32>
    %373 = arith.maximumf %371, %372 : vector<2x32xf32>
    %c9_221 = arith.constant 9 : index
    %c0_222 = arith.constant 0 : index
    %c0_223 = arith.constant 0 : index
    %374 = vector.load %arg8[%c9_221, %c0_222, %c0_223] : memref<22x32x6xf32, #tpu.memory_space<vmem>>, vector<1x32x6xf32>
    %375 = vector.shape_cast %374 : vector<1x32x6xf32> to vector<32x6xf32>
    %cst_224 = arith.constant dense<0.000000e+00> : vector<2x6xf32>
    %376 = tpu.matmul %373, %375, %cst_224 {dimension_numbers = #tpu.dot_dimension_numbers<[1], [0], [0], [1], [0, 0, 1, 1], [], []>} : vector<2x32xf32>, vector<32x6xf32>, vector<2x6xf32> -> vector<2x6xf32>
    %c9_225 = arith.constant 9 : index
    %c0_226 = arith.constant 0 : index
    %c0_227 = arith.constant 0 : index
    %377 = vector.load %arg9[%c9_225, %c0_226, %c0_227] : memref<22x1x6xf32, #tpu.memory_space<vmem>>, vector<1x1x6xf32>
    %378 = vector.shape_cast %377 : vector<1x1x6xf32> to vector<1x6xf32>
    %379 = vector.broadcast %378 : vector<1x6xf32> to vector<2x6xf32>
    %380 = arith.addf %376, %379 : vector<2x6xf32>
    %c9_228 = arith.constant 9 : index
    %c0_229 = arith.constant 0 : index
    %c0_230 = arith.constant 0 : index
    %381 = vector.load %arg19[%c9_228, %c0_229, %c0_230] : memref<22x2x6xf32, #tpu.memory_space<vmem>>, vector<1x2x6xf32>
    %382 = vector.shape_cast %381 : vector<1x2x6xf32> to vector<2x6xf32>
    %383 = vector.shape_cast %380 : vector<2x6xf32> to vector<1x2x6xf32>
    tpu.vector_store %arg19[%c9_228, %c0_229, %c0_230], %383 {strides = array<i32>} : memref<22x2x6xf32, #tpu.memory_space<vmem>>, vector<1x2x6xf32>,
    %c10 = arith.constant 10 : index
    %c0_231 = arith.constant 0 : index
    %c0_232 = arith.constant 0 : index
    %384 = vector.load %arg1[%c10, %c0_231, %c0_232] : memref<22x2x768xbf16, #tpu.memory_space<vmem>>, vector<1x2x768xbf16>
    %385 = vector.shape_cast %384 : vector<1x2x768xbf16> to vector<2x768xbf16>
    %c10_233 = arith.constant 10 : index
    %c0_234 = arith.constant 0 : index
    %c0_235 = arith.constant 0 : index
    %386 = vector.load %arg5[%c10_233, %c0_234, %c0_235] : memref<22x32x768xbf16, #tpu.memory_space<vmem>>, vector<1x32x768xbf16>
    %387 = vector.shape_cast %386 : vector<1x32x768xbf16> to vector<32x768xbf16>
    %c10_236 = arith.constant 10 : index
    %c0_237 = arith.constant 0 : index
    %c0_238 = arith.constant 0 : index
    %388 = vector.load %arg6[%c10_236, %c0_237, %c0_238] : memref<22x3x32xf32, #tpu.memory_space<vmem>>, vector<1x3x32xf32>
    %389 = vector.shape_cast %388 : vector<1x3x32xf32> to vector<3x32xf32>
    %c10_239 = arith.constant 10 : index
    %c0_240 = arith.constant 0 : index
    %c0_241 = arith.constant 0 : index
    %390 = vector.load %arg7[%c10_239, %c0_240, %c0_241] : memref<22x1x32xf32, #tpu.memory_space<vmem>>, vector<1x1x32xf32>
    %391 = vector.shape_cast %390 : vector<1x1x32xf32> to vector<1x32xf32>
    %cst_242 = arith.constant dense<0.000000e+00> : vector<2x32xf32>
    %392 = tpu.matmul %385, %387, %cst_242 {dimension_numbers = #tpu.dot_dimension_numbers<[1], [1], [0], [0], [0, 0, 1, 0], [], []>} : vector<2x768xbf16>, vector<32x768xbf16>, vector<2x32xf32> -> vector<2x32xf32>
    %393 = vector.extract_strided_slice %389 {offsets = [0, 0], sizes = [1, 32], strides = [1, 1]} : vector<3x32xf32> to vector<1x32xf32>
    %394 = vector.broadcast %1 : vector<2x1xf32> to vector<2x32xf32>
    %395 = vector.broadcast %393 : vector<1x32xf32> to vector<2x32xf32>
    %396 = arith.mulf %394, %395 : vector<2x32xf32>
    %397 = vector.extract_strided_slice %389 {offsets = [1, 0], sizes = [1, 32], strides = [1, 1]} : vector<3x32xf32> to vector<1x32xf32>
    %398 = vector.broadcast %2 : vector<2x1xf32> to vector<2x32xf32>
    %399 = vector.broadcast %397 : vector<1x32xf32> to vector<2x32xf32>
    %400 = arith.mulf %398, %399 : vector<2x32xf32>
    %401 = arith.addf %396, %400 : vector<2x32xf32>
    %402 = vector.extract_strided_slice %389 {offsets = [2, 0], sizes = [1, 32], strides = [1, 1]} : vector<3x32xf32> to vector<1x32xf32>
    %403 = vector.broadcast %3 : vector<2x1xf32> to vector<2x32xf32>
    %404 = vector.broadcast %402 : vector<1x32xf32> to vector<2x32xf32>
    %405 = arith.mulf %403, %404 : vector<2x32xf32>
    %406 = arith.addf %401, %405 : vector<2x32xf32>
    %407 = arith.addf %392, %406 : vector<2x32xf32>
    %408 = vector.broadcast %391 : vector<1x32xf32> to vector<2x32xf32>
    %409 = arith.addf %407, %408 : vector<2x32xf32>
    %cst_243 = arith.constant 0.000000e+00 : f32
    %410 = vector.broadcast %cst_243 : f32 to vector<2x32xf32>
    %411 = arith.maximumf %409, %410 : vector<2x32xf32>
    %c10_244 = arith.constant 10 : index
    %c0_245 = arith.constant 0 : index
    %c0_246 = arith.constant 0 : index
    %412 = vector.load %arg8[%c10_244, %c0_245, %c0_246] : memref<22x32x6xf32, #tpu.memory_space<vmem>>, vector<1x32x6xf32>
    %413 = vector.shape_cast %412 : vector<1x32x6xf32> to vector<32x6xf32>
    %cst_247 = arith.constant dense<0.000000e+00> : vector<2x6xf32>
    %414 = tpu.matmul %411, %413, %cst_247 {dimension_numbers = #tpu.dot_dimension_numbers<[1], [0], [0], [1], [0, 0, 1, 1], [], []>} : vector<2x32xf32>, vector<32x6xf32>, vector<2x6xf32> -> vector<2x6xf32>
    %c10_248 = arith.constant 10 : index
    %c0_249 = arith.constant 0 : index
    %c0_250 = arith.constant 0 : index
    %415 = vector.load %arg9[%c10_248, %c0_249, %c0_250] : memref<22x1x6xf32, #tpu.memory_space<vmem>>, vector<1x1x6xf32>
    %416 = vector.shape_cast %415 : vector<1x1x6xf32> to vector<1x6xf32>
    %417 = vector.broadcast %416 : vector<1x6xf32> to vector<2x6xf32>
    %418 = arith.addf %414, %417 : vector<2x6xf32>
    %c10_251 = arith.constant 10 : index
    %c0_252 = arith.constant 0 : index
    %c0_253 = arith.constant 0 : index
    %419 = vector.load %arg19[%c10_251, %c0_252, %c0_253] : memref<22x2x6xf32, #tpu.memory_space<vmem>>, vector<1x2x6xf32>
    %420 = vector.shape_cast %419 : vector<1x2x6xf32> to vector<2x6xf32>
    %421 = vector.shape_cast %418 : vector<2x6xf32> to vector<1x2x6xf32>
    tpu.vector_store %arg19[%c10_251, %c0_252, %c0_253], %421 {strides = array<i32>} : memref<22x2x6xf32, #tpu.memory_space<vmem>>, vector<1x2x6xf32>,
    %c11 = arith.constant 11 : index
    %c0_254 = arith.constant 0 : index
    %c0_255 = arith.constant 0 : index
    %422 = vector.load %arg1[%c11, %c0_254, %c0_255] : memref<22x2x768xbf16, #tpu.memory_space<vmem>>, vector<1x2x768xbf16>
    %423 = vector.shape_cast %422 : vector<1x2x768xbf16> to vector<2x768xbf16>
    %c11_256 = arith.constant 11 : index
    %c0_257 = arith.constant 0 : index
    %c0_258 = arith.constant 0 : index
    %424 = vector.load %arg5[%c11_256, %c0_257, %c0_258] : memref<22x32x768xbf16, #tpu.memory_space<vmem>>, vector<1x32x768xbf16>
    %425 = vector.shape_cast %424 : vector<1x32x768xbf16> to vector<32x768xbf16>
    %c11_259 = arith.constant 11 : index
    %c0_260 = arith.constant 0 : index
    %c0_261 = arith.constant 0 : index
    %426 = vector.load %arg6[%c11_259, %c0_260, %c0_261] : memref<22x3x32xf32, #tpu.memory_space<vmem>>, vector<1x3x32xf32>
    %427 = vector.shape_cast %426 : vector<1x3x32xf32> to vector<3x32xf32>
    %c11_262 = arith.constant 11 : index
    %c0_263 = arith.constant 0 : index
    %c0_264 = arith.constant 0 : index
    %428 = vector.load %arg7[%c11_262, %c0_263, %c0_264] : memref<22x1x32xf32, #tpu.memory_space<vmem>>, vector<1x1x32xf32>
    %429 = vector.shape_cast %428 : vector<1x1x32xf32> to vector<1x32xf32>
    %cst_265 = arith.constant dense<0.000000e+00> : vector<2x32xf32>
    %430 = tpu.matmul %423, %425, %cst_265 {dimension_numbers = #tpu.dot_dimension_numbers<[1], [1], [0], [0], [0, 0, 1, 0], [], []>} : vector<2x768xbf16>, vector<32x768xbf16>, vector<2x32xf32> -> vector<2x32xf32>
    %431 = vector.extract_strided_slice %427 {offsets = [0, 0], sizes = [1, 32], strides = [1, 1]} : vector<3x32xf32> to vector<1x32xf32>
    %432 = vector.broadcast %1 : vector<2x1xf32> to vector<2x32xf32>
    %433 = vector.broadcast %431 : vector<1x32xf32> to vector<2x32xf32>
    %434 = arith.mulf %432, %433 : vector<2x32xf32>
    %435 = vector.extract_strided_slice %427 {offsets = [1, 0], sizes = [1, 32], strides = [1, 1]} : vector<3x32xf32> to vector<1x32xf32>
    %436 = vector.broadcast %2 : vector<2x1xf32> to vector<2x32xf32>
    %437 = vector.broadcast %435 : vector<1x32xf32> to vector<2x32xf32>
    %438 = arith.mulf %436, %437 : vector<2x32xf32>
    %439 = arith.addf %434, %438 : vector<2x32xf32>
    %440 = vector.extract_strided_slice %427 {offsets = [2, 0], sizes = [1, 32], strides = [1, 1]} : vector<3x32xf32> to vector<1x32xf32>
    %441 = vector.broadcast %3 : vector<2x1xf32> to vector<2x32xf32>
    %442 = vector.broadcast %440 : vector<1x32xf32> to vector<2x32xf32>
    %443 = arith.mulf %441, %442 : vector<2x32xf32>
    %444 = arith.addf %439, %443 : vector<2x32xf32>
    %445 = arith.addf %430, %444 : vector<2x32xf32>
    %446 = vector.broadcast %429 : vector<1x32xf32> to vector<2x32xf32>
    %447 = arith.addf %445, %446 : vector<2x32xf32>
    %cst_266 = arith.constant 0.000000e+00 : f32
    %448 = vector.broadcast %cst_266 : f32 to vector<2x32xf32>
    %449 = arith.maximumf %447, %448 : vector<2x32xf32>
    %c11_267 = arith.constant 11 : index
    %c0_268 = arith.constant 0 : index
    %c0_269 = arith.constant 0 : index
    %450 = vector.load %arg8[%c11_267, %c0_268, %c0_269] : memref<22x32x6xf32, #tpu.memory_space<vmem>>, vector<1x32x6xf32>
    %451 = vector.shape_cast %450 : vector<1x32x6xf32> to vector<32x6xf32>
    %cst_270 = arith.constant dense<0.000000e+00> : vector<2x6xf32>
    %452 = tpu.matmul %449, %451, %cst_270 {dimension_numbers = #tpu.dot_dimension_numbers<[1], [0], [0], [1], [0, 0, 1, 1], [], []>} : vector<2x32xf32>, vector<32x6xf32>, vector<2x6xf32> -> vector<2x6xf32>
    %c11_271 = arith.constant 11 : index
    %c0_272 = arith.constant 0 : index
    %c0_273 = arith.constant 0 : index
    %453 = vector.load %arg9[%c11_271, %c0_272, %c0_273] : memref<22x1x6xf32, #tpu.memory_space<vmem>>, vector<1x1x6xf32>
    %454 = vector.shape_cast %453 : vector<1x1x6xf32> to vector<1x6xf32>
    %455 = vector.broadcast %454 : vector<1x6xf32> to vector<2x6xf32>
    %456 = arith.addf %452, %455 : vector<2x6xf32>
    %c11_274 = arith.constant 11 : index
    %c0_275 = arith.constant 0 : index
    %c0_276 = arith.constant 0 : index
    %457 = vector.load %arg19[%c11_274, %c0_275, %c0_276] : memref<22x2x6xf32, #tpu.memory_space<vmem>>, vector<1x2x6xf32>
    %458 = vector.shape_cast %457 : vector<1x2x6xf32> to vector<2x6xf32>
    %459 = vector.shape_cast %456 : vector<2x6xf32> to vector<1x2x6xf32>
    tpu.vector_store %arg19[%c11_274, %c0_275, %c0_276], %459 {strides = array<i32>} : memref<22x2x6xf32, #tpu.memory_space<vmem>>, vector<1x2x6xf32>,
    %c12 = arith.constant 12 : index
    %c0_277 = arith.constant 0 : index
    %c0_278 = arith.constant 0 : index
    %460 = vector.load %arg1[%c12, %c0_277, %c0_278] : memref<22x2x768xbf16, #tpu.memory_space<vmem>>, vector<1x2x768xbf16>
    %461 = vector.shape_cast %460 : vector<1x2x768xbf16> to vector<2x768xbf16>
    %c12_279 = arith.constant 12 : index
    %c0_280 = arith.constant 0 : index
    %c0_281 = arith.constant 0 : index
    %462 = vector.load %arg5[%c12_279, %c0_280, %c0_281] : memref<22x32x768xbf16, #tpu.memory_space<vmem>>, vector<1x32x768xbf16>
    %463 = vector.shape_cast %462 : vector<1x32x768xbf16> to vector<32x768xbf16>
    %c12_282 = arith.constant 12 : index
    %c0_283 = arith.constant 0 : index
    %c0_284 = arith.constant 0 : index
    %464 = vector.load %arg6[%c12_282, %c0_283, %c0_284] : memref<22x3x32xf32, #tpu.memory_space<vmem>>, vector<1x3x32xf32>
    %465 = vector.shape_cast %464 : vector<1x3x32xf32> to vector<3x32xf32>
    %c12_285 = arith.constant 12 : index
    %c0_286 = arith.constant 0 : index
    %c0_287 = arith.constant 0 : index
    %466 = vector.load %arg7[%c12_285, %c0_286, %c0_287] : memref<22x1x32xf32, #tpu.memory_space<vmem>>, vector<1x1x32xf32>
    %467 = vector.shape_cast %466 : vector<1x1x32xf32> to vector<1x32xf32>
    %cst_288 = arith.constant dense<0.000000e+00> : vector<2x32xf32>
    %468 = tpu.matmul %461, %463, %cst_288 {dimension_numbers = #tpu.dot_dimension_numbers<[1], [1], [0], [0], [0, 0, 1, 0], [], []>} : vector<2x768xbf16>, vector<32x768xbf16>, vector<2x32xf32> -> vector<2x32xf32>
    %469 = vector.extract_strided_slice %465 {offsets = [0, 0], sizes = [1, 32], strides = [1, 1]} : vector<3x32xf32> to vector<1x32xf32>
    %470 = vector.broadcast %1 : vector<2x1xf32> to vector<2x32xf32>
    %471 = vector.broadcast %469 : vector<1x32xf32> to vector<2x32xf32>
    %472 = arith.mulf %470, %471 : vector<2x32xf32>
    %473 = vector.extract_strided_slice %465 {offsets = [1, 0], sizes = [1, 32], strides = [1, 1]} : vector<3x32xf32> to vector<1x32xf32>
    %474 = vector.broadcast %2 : vector<2x1xf32> to vector<2x32xf32>
    %475 = vector.broadcast %473 : vector<1x32xf32> to vector<2x32xf32>
    %476 = arith.mulf %474, %475 : vector<2x32xf32>
    %477 = arith.addf %472, %476 : vector<2x32xf32>
    %478 = vector.extract_strided_slice %465 {offsets = [2, 0], sizes = [1, 32], strides = [1, 1]} : vector<3x32xf32> to vector<1x32xf32>
    %479 = vector.broadcast %3 : vector<2x1xf32> to vector<2x32xf32>
    %480 = vector.broadcast %478 : vector<1x32xf32> to vector<2x32xf32>
    %481 = arith.mulf %479, %480 : vector<2x32xf32>
    %482 = arith.addf %477, %481 : vector<2x32xf32>
    %483 = arith.addf %468, %482 : vector<2x32xf32>
    %484 = vector.broadcast %467 : vector<1x32xf32> to vector<2x32xf32>
    %485 = arith.addf %483, %484 : vector<2x32xf32>
    %cst_289 = arith.constant 0.000000e+00 : f32
    %486 = vector.broadcast %cst_289 : f32 to vector<2x32xf32>
    %487 = arith.maximumf %485, %486 : vector<2x32xf32>
    %c12_290 = arith.constant 12 : index
    %c0_291 = arith.constant 0 : index
    %c0_292 = arith.constant 0 : index
    %488 = vector.load %arg8[%c12_290, %c0_291, %c0_292] : memref<22x32x6xf32, #tpu.memory_space<vmem>>, vector<1x32x6xf32>
    %489 = vector.shape_cast %488 : vector<1x32x6xf32> to vector<32x6xf32>
    %cst_293 = arith.constant dense<0.000000e+00> : vector<2x6xf32>
    %490 = tpu.matmul %487, %489, %cst_293 {dimension_numbers = #tpu.dot_dimension_numbers<[1], [0], [0], [1], [0, 0, 1, 1], [], []>} : vector<2x32xf32>, vector<32x6xf32>, vector<2x6xf32> -> vector<2x6xf32>
    %c12_294 = arith.constant 12 : index
    %c0_295 = arith.constant 0 : index
    %c0_296 = arith.constant 0 : index
    %491 = vector.load %arg9[%c12_294, %c0_295, %c0_296] : memref<22x1x6xf32, #tpu.memory_space<vmem>>, vector<1x1x6xf32>
    %492 = vector.shape_cast %491 : vector<1x1x6xf32> to vector<1x6xf32>
    %493 = vector.broadcast %492 : vector<1x6xf32> to vector<2x6xf32>
    %494 = arith.addf %490, %493 : vector<2x6xf32>
    %c12_297 = arith.constant 12 : index
    %c0_298 = arith.constant 0 : index
    %c0_299 = arith.constant 0 : index
    %495 = vector.load %arg19[%c12_297, %c0_298, %c0_299] : memref<22x2x6xf32, #tpu.memory_space<vmem>>, vector<1x2x6xf32>
    %496 = vector.shape_cast %495 : vector<1x2x6xf32> to vector<2x6xf32>
    %497 = vector.shape_cast %494 : vector<2x6xf32> to vector<1x2x6xf32>
    tpu.vector_store %arg19[%c12_297, %c0_298, %c0_299], %497 {strides = array<i32>} : memref<22x2x6xf32, #tpu.memory_space<vmem>>, vector<1x2x6xf32>,
    %c13 = arith.constant 13 : index
    %c0_300 = arith.constant 0 : index
    %c0_301 = arith.constant 0 : index
    %498 = vector.load %arg1[%c13, %c0_300, %c0_301] : memref<22x2x768xbf16, #tpu.memory_space<vmem>>, vector<1x2x768xbf16>
    %499 = vector.shape_cast %498 : vector<1x2x768xbf16> to vector<2x768xbf16>
    %c13_302 = arith.constant 13 : index
    %c0_303 = arith.constant 0 : index
    %c0_304 = arith.constant 0 : index
    %500 = vector.load %arg5[%c13_302, %c0_303, %c0_304] : memref<22x32x768xbf16, #tpu.memory_space<vmem>>, vector<1x32x768xbf16>
    %501 = vector.shape_cast %500 : vector<1x32x768xbf16> to vector<32x768xbf16>
    %c13_305 = arith.constant 13 : index
    %c0_306 = arith.constant 0 : index
    %c0_307 = arith.constant 0 : index
    %502 = vector.load %arg6[%c13_305, %c0_306, %c0_307] : memref<22x3x32xf32, #tpu.memory_space<vmem>>, vector<1x3x32xf32>
    %503 = vector.shape_cast %502 : vector<1x3x32xf32> to vector<3x32xf32>
    %c13_308 = arith.constant 13 : index
    %c0_309 = arith.constant 0 : index
    %c0_310 = arith.constant 0 : index
    %504 = vector.load %arg7[%c13_308, %c0_309, %c0_310] : memref<22x1x32xf32, #tpu.memory_space<vmem>>, vector<1x1x32xf32>
    %505 = vector.shape_cast %504 : vector<1x1x32xf32> to vector<1x32xf32>
    %cst_311 = arith.constant dense<0.000000e+00> : vector<2x32xf32>
    %506 = tpu.matmul %499, %501, %cst_311 {dimension_numbers = #tpu.dot_dimension_numbers<[1], [1], [0], [0], [0, 0, 1, 0], [], []>} : vector<2x768xbf16>, vector<32x768xbf16>, vector<2x32xf32> -> vector<2x32xf32>
    %507 = vector.extract_strided_slice %503 {offsets = [0, 0], sizes = [1, 32], strides = [1, 1]} : vector<3x32xf32> to vector<1x32xf32>
    %508 = vector.broadcast %1 : vector<2x1xf32> to vector<2x32xf32>
    %509 = vector.broadcast %507 : vector<1x32xf32> to vector<2x32xf32>
    %510 = arith.mulf %508, %509 : vector<2x32xf32>
    %511 = vector.extract_strided_slice %503 {offsets = [1, 0], sizes = [1, 32], strides = [1, 1]} : vector<3x32xf32> to vector<1x32xf32>
    %512 = vector.broadcast %2 : vector<2x1xf32> to vector<2x32xf32>
    %513 = vector.broadcast %511 : vector<1x32xf32> to vector<2x32xf32>
    %514 = arith.mulf %512, %513 : vector<2x32xf32>
    %515 = arith.addf %510, %514 : vector<2x32xf32>
    %516 = vector.extract_strided_slice %503 {offsets = [2, 0], sizes = [1, 32], strides = [1, 1]} : vector<3x32xf32> to vector<1x32xf32>
    %517 = vector.broadcast %3 : vector<2x1xf32> to vector<2x32xf32>
    %518 = vector.broadcast %516 : vector<1x32xf32> to vector<2x32xf32>
    %519 = arith.mulf %517, %518 : vector<2x32xf32>
    %520 = arith.addf %515, %519 : vector<2x32xf32>
    %521 = arith.addf %506, %520 : vector<2x32xf32>
    %522 = vector.broadcast %505 : vector<1x32xf32> to vector<2x32xf32>
    %523 = arith.addf %521, %522 : vector<2x32xf32>
    %cst_312 = arith.constant 0.000000e+00 : f32
    %524 = vector.broadcast %cst_312 : f32 to vector<2x32xf32>
    %525 = arith.maximumf %523, %524 : vector<2x32xf32>
    %c13_313 = arith.constant 13 : index
    %c0_314 = arith.constant 0 : index
    %c0_315 = arith.constant 0 : index
    %526 = vector.load %arg8[%c13_313, %c0_314, %c0_315] : memref<22x32x6xf32, #tpu.memory_space<vmem>>, vector<1x32x6xf32>
    %527 = vector.shape_cast %526 : vector<1x32x6xf32> to vector<32x6xf32>
    %cst_316 = arith.constant dense<0.000000e+00> : vector<2x6xf32>
    %528 = tpu.matmul %525, %527, %cst_316 {dimension_numbers = #tpu.dot_dimension_numbers<[1], [0], [0], [1], [0, 0, 1, 1], [], []>} : vector<2x32xf32>, vector<32x6xf32>, vector<2x6xf32> -> vector<2x6xf32>
    %c13_317 = arith.constant 13 : index
    %c0_318 = arith.constant 0 : index
    %c0_319 = arith.constant 0 : index
    %529 = vector.load %arg9[%c13_317, %c0_318, %c0_319] : memref<22x1x6xf32, #tpu.memory_space<vmem>>, vector<1x1x6xf32>
    %530 = vector.shape_cast %529 : vector<1x1x6xf32> to vector<1x6xf32>
    %531 = vector.broadcast %530 : vector<1x6xf32> to vector<2x6xf32>
    %532 = arith.addf %528, %531 : vector<2x6xf32>
    %c13_320 = arith.constant 13 : index
    %c0_321 = arith.constant 0 : index
    %c0_322 = arith.constant 0 : index
    %533 = vector.load %arg19[%c13_320, %c0_321, %c0_322] : memref<22x2x6xf32, #tpu.memory_space<vmem>>, vector<1x2x6xf32>
    %534 = vector.shape_cast %533 : vector<1x2x6xf32> to vector<2x6xf32>
    %535 = vector.shape_cast %532 : vector<2x6xf32> to vector<1x2x6xf32>
    tpu.vector_store %arg19[%c13_320, %c0_321, %c0_322], %535 {strides = array<i32>} : memref<22x2x6xf32, #tpu.memory_space<vmem>>, vector<1x2x6xf32>,
    %c14 = arith.constant 14 : index
    %c0_323 = arith.constant 0 : index
    %c0_324 = arith.constant 0 : index
    %536 = vector.load %arg1[%c14, %c0_323, %c0_324] : memref<22x2x768xbf16, #tpu.memory_space<vmem>>, vector<1x2x768xbf16>
    %537 = vector.shape_cast %536 : vector<1x2x768xbf16> to vector<2x768xbf16>
    %c14_325 = arith.constant 14 : index
    %c0_326 = arith.constant 0 : index
    %c0_327 = arith.constant 0 : index
    %538 = vector.load %arg5[%c14_325, %c0_326, %c0_327] : memref<22x32x768xbf16, #tpu.memory_space<vmem>>, vector<1x32x768xbf16>
    %539 = vector.shape_cast %538 : vector<1x32x768xbf16> to vector<32x768xbf16>
    %c14_328 = arith.constant 14 : index
    %c0_329 = arith.constant 0 : index
    %c0_330 = arith.constant 0 : index
    %540 = vector.load %arg6[%c14_328, %c0_329, %c0_330] : memref<22x3x32xf32, #tpu.memory_space<vmem>>, vector<1x3x32xf32>
    %541 = vector.shape_cast %540 : vector<1x3x32xf32> to vector<3x32xf32>
    %c14_331 = arith.constant 14 : index
    %c0_332 = arith.constant 0 : index
    %c0_333 = arith.constant 0 : index
    %542 = vector.load %arg7[%c14_331, %c0_332, %c0_333] : memref<22x1x32xf32, #tpu.memory_space<vmem>>, vector<1x1x32xf32>
    %543 = vector.shape_cast %542 : vector<1x1x32xf32> to vector<1x32xf32>
    %cst_334 = arith.constant dense<0.000000e+00> : vector<2x32xf32>
    %544 = tpu.matmul %537, %539, %cst_334 {dimension_numbers = #tpu.dot_dimension_numbers<[1], [1], [0], [0], [0, 0, 1, 0], [], []>} : vector<2x768xbf16>, vector<32x768xbf16>, vector<2x32xf32> -> vector<2x32xf32>
    %545 = vector.extract_strided_slice %541 {offsets = [0, 0], sizes = [1, 32], strides = [1, 1]} : vector<3x32xf32> to vector<1x32xf32>
    %546 = vector.broadcast %1 : vector<2x1xf32> to vector<2x32xf32>
    %547 = vector.broadcast %545 : vector<1x32xf32> to vector<2x32xf32>
    %548 = arith.mulf %546, %547 : vector<2x32xf32>
    %549 = vector.extract_strided_slice %541 {offsets = [1, 0], sizes = [1, 32], strides = [1, 1]} : vector<3x32xf32> to vector<1x32xf32>
    %550 = vector.broadcast %2 : vector<2x1xf32> to vector<2x32xf32>
    %551 = vector.broadcast %549 : vector<1x32xf32> to vector<2x32xf32>
    %552 = arith.mulf %550, %551 : vector<2x32xf32>
    %553 = arith.addf %548, %552 : vector<2x32xf32>
    %554 = vector.extract_strided_slice %541 {offsets = [2, 0], sizes = [1, 32], strides = [1, 1]} : vector<3x32xf32> to vector<1x32xf32>
    %555 = vector.broadcast %3 : vector<2x1xf32> to vector<2x32xf32>
    %556 = vector.broadcast %554 : vector<1x32xf32> to vector<2x32xf32>
    %557 = arith.mulf %555, %556 : vector<2x32xf32>
    %558 = arith.addf %553, %557 : vector<2x32xf32>
    %559 = arith.addf %544, %558 : vector<2x32xf32>
    %560 = vector.broadcast %543 : vector<1x32xf32> to vector<2x32xf32>
    %561 = arith.addf %559, %560 : vector<2x32xf32>
    %cst_335 = arith.constant 0.000000e+00 : f32
    %562 = vector.broadcast %cst_335 : f32 to vector<2x32xf32>
    %563 = arith.maximumf %561, %562 : vector<2x32xf32>
    %c14_336 = arith.constant 14 : index
    %c0_337 = arith.constant 0 : index
    %c0_338 = arith.constant 0 : index
    %564 = vector.load %arg8[%c14_336, %c0_337, %c0_338] : memref<22x32x6xf32, #tpu.memory_space<vmem>>, vector<1x32x6xf32>
    %565 = vector.shape_cast %564 : vector<1x32x6xf32> to vector<32x6xf32>
    %cst_339 = arith.constant dense<0.000000e+00> : vector<2x6xf32>
    %566 = tpu.matmul %563, %565, %cst_339 {dimension_numbers = #tpu.dot_dimension_numbers<[1], [0], [0], [1], [0, 0, 1, 1], [], []>} : vector<2x32xf32>, vector<32x6xf32>, vector<2x6xf32> -> vector<2x6xf32>
    %c14_340 = arith.constant 14 : index
    %c0_341 = arith.constant 0 : index
    %c0_342 = arith.constant 0 : index
    %567 = vector.load %arg9[%c14_340, %c0_341, %c0_342] : memref<22x1x6xf32, #tpu.memory_space<vmem>>, vector<1x1x6xf32>
    %568 = vector.shape_cast %567 : vector<1x1x6xf32> to vector<1x6xf32>
    %569 = vector.broadcast %568 : vector<1x6xf32> to vector<2x6xf32>
    %570 = arith.addf %566, %569 : vector<2x6xf32>
    %c14_343 = arith.constant 14 : index
    %c0_344 = arith.constant 0 : index
    %c0_345 = arith.constant 0 : index
    %571 = vector.load %arg19[%c14_343, %c0_344, %c0_345] : memref<22x2x6xf32, #tpu.memory_space<vmem>>, vector<1x2x6xf32>
    %572 = vector.shape_cast %571 : vector<1x2x6xf32> to vector<2x6xf32>
    %573 = vector.shape_cast %570 : vector<2x6xf32> to vector<1x2x6xf32>
    tpu.vector_store %arg19[%c14_343, %c0_344, %c0_345], %573 {strides = array<i32>} : memref<22x2x6xf32, #tpu.memory_space<vmem>>, vector<1x2x6xf32>,
    %c15 = arith.constant 15 : index
    %c0_346 = arith.constant 0 : index
    %c0_347 = arith.constant 0 : index
    %574 = vector.load %arg1[%c15, %c0_346, %c0_347] : memref<22x2x768xbf16, #tpu.memory_space<vmem>>, vector<1x2x768xbf16>
    %575 = vector.shape_cast %574 : vector<1x2x768xbf16> to vector<2x768xbf16>
    %c15_348 = arith.constant 15 : index
    %c0_349 = arith.constant 0 : index
    %c0_350 = arith.constant 0 : index
    %576 = vector.load %arg5[%c15_348, %c0_349, %c0_350] : memref<22x32x768xbf16, #tpu.memory_space<vmem>>, vector<1x32x768xbf16>
    %577 = vector.shape_cast %576 : vector<1x32x768xbf16> to vector<32x768xbf16>
    %c15_351 = arith.constant 15 : index
    %c0_352 = arith.constant 0 : index
    %c0_353 = arith.constant 0 : index
    %578 = vector.load %arg6[%c15_351, %c0_352, %c0_353] : memref<22x3x32xf32, #tpu.memory_space<vmem>>, vector<1x3x32xf32>
    %579 = vector.shape_cast %578 : vector<1x3x32xf32> to vector<3x32xf32>
    %c15_354 = arith.constant 15 : index
    %c0_355 = arith.constant 0 : index
    %c0_356 = arith.constant 0 : index
    %580 = vector.load %arg7[%c15_354, %c0_355, %c0_356] : memref<22x1x32xf32, #tpu.memory_space<vmem>>, vector<1x1x32xf32>
    %581 = vector.shape_cast %580 : vector<1x1x32xf32> to vector<1x32xf32>
    %cst_357 = arith.constant dense<0.000000e+00> : vector<2x32xf32>
    %582 = tpu.matmul %575, %577, %cst_357 {dimension_numbers = #tpu.dot_dimension_numbers<[1], [1], [0], [0], [0, 0, 1, 0], [], []>} : vector<2x768xbf16>, vector<32x768xbf16>, vector<2x32xf32> -> vector<2x32xf32>
    %583 = vector.extract_strided_slice %579 {offsets = [0, 0], sizes = [1, 32], strides = [1, 1]} : vector<3x32xf32> to vector<1x32xf32>
    %584 = vector.broadcast %1 : vector<2x1xf32> to vector<2x32xf32>
    %585 = vector.broadcast %583 : vector<1x32xf32> to vector<2x32xf32>
    %586 = arith.mulf %584, %585 : vector<2x32xf32>
    %587 = vector.extract_strided_slice %579 {offsets = [1, 0], sizes = [1, 32], strides = [1, 1]} : vector<3x32xf32> to vector<1x32xf32>
    %588 = vector.broadcast %2 : vector<2x1xf32> to vector<2x32xf32>
    %589 = vector.broadcast %587 : vector<1x32xf32> to vector<2x32xf32>
    %590 = arith.mulf %588, %589 : vector<2x32xf32>
    %591 = arith.addf %586, %590 : vector<2x32xf32>
    %592 = vector.extract_strided_slice %579 {offsets = [2, 0], sizes = [1, 32], strides = [1, 1]} : vector<3x32xf32> to vector<1x32xf32>
    %593 = vector.broadcast %3 : vector<2x1xf32> to vector<2x32xf32>
    %594 = vector.broadcast %592 : vector<1x32xf32> to vector<2x32xf32>
    %595 = arith.mulf %593, %594 : vector<2x32xf32>
    %596 = arith.addf %591, %595 : vector<2x32xf32>
    %597 = arith.addf %582, %596 : vector<2x32xf32>
    %598 = vector.broadcast %581 : vector<1x32xf32> to vector<2x32xf32>
    %599 = arith.addf %597, %598 : vector<2x32xf32>
    %cst_358 = arith.constant 0.000000e+00 : f32
    %600 = vector.broadcast %cst_358 : f32 to vector<2x32xf32>
    %601 = arith.maximumf %599, %600 : vector<2x32xf32>
    %c15_359 = arith.constant 15 : index
    %c0_360 = arith.constant 0 : index
    %c0_361 = arith.constant 0 : index
    %602 = vector.load %arg8[%c15_359, %c0_360, %c0_361] : memref<22x32x6xf32, #tpu.memory_space<vmem>>, vector<1x32x6xf32>
    %603 = vector.shape_cast %602 : vector<1x32x6xf32> to vector<32x6xf32>
    %cst_362 = arith.constant dense<0.000000e+00> : vector<2x6xf32>
    %604 = tpu.matmul %601, %603, %cst_362 {dimension_numbers = #tpu.dot_dimension_numbers<[1], [0], [0], [1], [0, 0, 1, 1], [], []>} : vector<2x32xf32>, vector<32x6xf32>, vector<2x6xf32> -> vector<2x6xf32>
    %c15_363 = arith.constant 15 : index
    %c0_364 = arith.constant 0 : index
    %c0_365 = arith.constant 0 : index
    %605 = vector.load %arg9[%c15_363, %c0_364, %c0_365] : memref<22x1x6xf32, #tpu.memory_space<vmem>>, vector<1x1x6xf32>
    %606 = vector.shape_cast %605 : vector<1x1x6xf32> to vector<1x6xf32>
    %607 = vector.broadcast %606 : vector<1x6xf32> to vector<2x6xf32>
    %608 = arith.addf %604, %607 : vector<2x6xf32>
    %c15_366 = arith.constant 15 : index
    %c0_367 = arith.constant 0 : index
    %c0_368 = arith.constant 0 : index
    %609 = vector.load %arg19[%c15_366, %c0_367, %c0_368] : memref<22x2x6xf32, #tpu.memory_space<vmem>>, vector<1x2x6xf32>
    %610 = vector.shape_cast %609 : vector<1x2x6xf32> to vector<2x6xf32>
    %611 = vector.shape_cast %608 : vector<2x6xf32> to vector<1x2x6xf32>
    tpu.vector_store %arg19[%c15_366, %c0_367, %c0_368], %611 {strides = array<i32>} : memref<22x2x6xf32, #tpu.memory_space<vmem>>, vector<1x2x6xf32>,
    %c16 = arith.constant 16 : index
    %c0_369 = arith.constant 0 : index
    %c0_370 = arith.constant 0 : index
    %612 = vector.load %arg1[%c16, %c0_369, %c0_370] : memref<22x2x768xbf16, #tpu.memory_space<vmem>>, vector<1x2x768xbf16>
    %613 = vector.shape_cast %612 : vector<1x2x768xbf16> to vector<2x768xbf16>
    %c16_371 = arith.constant 16 : index
    %c0_372 = arith.constant 0 : index
    %c0_373 = arith.constant 0 : index
    %614 = vector.load %arg5[%c16_371, %c0_372, %c0_373] : memref<22x32x768xbf16, #tpu.memory_space<vmem>>, vector<1x32x768xbf16>
    %615 = vector.shape_cast %614 : vector<1x32x768xbf16> to vector<32x768xbf16>
    %c16_374 = arith.constant 16 : index
    %c0_375 = arith.constant 0 : index
    %c0_376 = arith.constant 0 : index
    %616 = vector.load %arg6[%c16_374, %c0_375, %c0_376] : memref<22x3x32xf32, #tpu.memory_space<vmem>>, vector<1x3x32xf32>
    %617 = vector.shape_cast %616 : vector<1x3x32xf32> to vector<3x32xf32>
    %c16_377 = arith.constant 16 : index
    %c0_378 = arith.constant 0 : index
    %c0_379 = arith.constant 0 : index
    %618 = vector.load %arg7[%c16_377, %c0_378, %c0_379] : memref<22x1x32xf32, #tpu.memory_space<vmem>>, vector<1x1x32xf32>
    %619 = vector.shape_cast %618 : vector<1x1x32xf32> to vector<1x32xf32>
    %cst_380 = arith.constant dense<0.000000e+00> : vector<2x32xf32>
    %620 = tpu.matmul %613, %615, %cst_380 {dimension_numbers = #tpu.dot_dimension_numbers<[1], [1], [0], [0], [0, 0, 1, 0], [], []>} : vector<2x768xbf16>, vector<32x768xbf16>, vector<2x32xf32> -> vector<2x32xf32>
    %621 = vector.extract_strided_slice %617 {offsets = [0, 0], sizes = [1, 32], strides = [1, 1]} : vector<3x32xf32> to vector<1x32xf32>
    %622 = vector.broadcast %1 : vector<2x1xf32> to vector<2x32xf32>
    %623 = vector.broadcast %621 : vector<1x32xf32> to vector<2x32xf32>
    %624 = arith.mulf %622, %623 : vector<2x32xf32>
    %625 = vector.extract_strided_slice %617 {offsets = [1, 0], sizes = [1, 32], strides = [1, 1]} : vector<3x32xf32> to vector<1x32xf32>
    %626 = vector.broadcast %2 : vector<2x1xf32> to vector<2x32xf32>
    %627 = vector.broadcast %625 : vector<1x32xf32> to vector<2x32xf32>
    %628 = arith.mulf %626, %627 : vector<2x32xf32>
    %629 = arith.addf %624, %628 : vector<2x32xf32>
    %630 = vector.extract_strided_slice %617 {offsets = [2, 0], sizes = [1, 32], strides = [1, 1]} : vector<3x32xf32> to vector<1x32xf32>
    %631 = vector.broadcast %3 : vector<2x1xf32> to vector<2x32xf32>
    %632 = vector.broadcast %630 : vector<1x32xf32> to vector<2x32xf32>
    %633 = arith.mulf %631, %632 : vector<2x32xf32>
    %634 = arith.addf %629, %633 : vector<2x32xf32>
    %635 = arith.addf %620, %634 : vector<2x32xf32>
    %636 = vector.broadcast %619 : vector<1x32xf32> to vector<2x32xf32>
    %637 = arith.addf %635, %636 : vector<2x32xf32>
    %cst_381 = arith.constant 0.000000e+00 : f32
    %638 = vector.broadcast %cst_381 : f32 to vector<2x32xf32>
    %639 = arith.maximumf %637, %638 : vector<2x32xf32>
    %c16_382 = arith.constant 16 : index
    %c0_383 = arith.constant 0 : index
    %c0_384 = arith.constant 0 : index
    %640 = vector.load %arg8[%c16_382, %c0_383, %c0_384] : memref<22x32x6xf32, #tpu.memory_space<vmem>>, vector<1x32x6xf32>
    %641 = vector.shape_cast %640 : vector<1x32x6xf32> to vector<32x6xf32>
    %cst_385 = arith.constant dense<0.000000e+00> : vector<2x6xf32>
    %642 = tpu.matmul %639, %641, %cst_385 {dimension_numbers = #tpu.dot_dimension_numbers<[1], [0], [0], [1], [0, 0, 1, 1], [], []>} : vector<2x32xf32>, vector<32x6xf32>, vector<2x6xf32> -> vector<2x6xf32>
    %c16_386 = arith.constant 16 : index
    %c0_387 = arith.constant 0 : index
    %c0_388 = arith.constant 0 : index
    %643 = vector.load %arg9[%c16_386, %c0_387, %c0_388] : memref<22x1x6xf32, #tpu.memory_space<vmem>>, vector<1x1x6xf32>
    %644 = vector.shape_cast %643 : vector<1x1x6xf32> to vector<1x6xf32>
    %645 = vector.broadcast %644 : vector<1x6xf32> to vector<2x6xf32>
    %646 = arith.addf %642, %645 : vector<2x6xf32>
    %c16_389 = arith.constant 16 : index
    %c0_390 = arith.constant 0 : index
    %c0_391 = arith.constant 0 : index
    %647 = vector.load %arg19[%c16_389, %c0_390, %c0_391] : memref<22x2x6xf32, #tpu.memory_space<vmem>>, vector<1x2x6xf32>
    %648 = vector.shape_cast %647 : vector<1x2x6xf32> to vector<2x6xf32>
    %649 = vector.shape_cast %646 : vector<2x6xf32> to vector<1x2x6xf32>
    tpu.vector_store %arg19[%c16_389, %c0_390, %c0_391], %649 {strides = array<i32>} : memref<22x2x6xf32, #tpu.memory_space<vmem>>, vector<1x2x6xf32>,
    %c17 = arith.constant 17 : index
    %c0_392 = arith.constant 0 : index
    %c0_393 = arith.constant 0 : index
    %650 = vector.load %arg1[%c17, %c0_392, %c0_393] : memref<22x2x768xbf16, #tpu.memory_space<vmem>>, vector<1x2x768xbf16>
    %651 = vector.shape_cast %650 : vector<1x2x768xbf16> to vector<2x768xbf16>
    %c17_394 = arith.constant 17 : index
    %c0_395 = arith.constant 0 : index
    %c0_396 = arith.constant 0 : index
    %652 = vector.load %arg5[%c17_394, %c0_395, %c0_396] : memref<22x32x768xbf16, #tpu.memory_space<vmem>>, vector<1x32x768xbf16>
    %653 = vector.shape_cast %652 : vector<1x32x768xbf16> to vector<32x768xbf16>
    %c17_397 = arith.constant 17 : index
    %c0_398 = arith.constant 0 : index
    %c0_399 = arith.constant 0 : index
    %654 = vector.load %arg6[%c17_397, %c0_398, %c0_399] : memref<22x3x32xf32, #tpu.memory_space<vmem>>, vector<1x3x32xf32>
    %655 = vector.shape_cast %654 : vector<1x3x32xf32> to vector<3x32xf32>
    %c17_400 = arith.constant 17 : index
    %c0_401 = arith.constant 0 : index
    %c0_402 = arith.constant 0 : index
    %656 = vector.load %arg7[%c17_400, %c0_401, %c0_402] : memref<22x1x32xf32, #tpu.memory_space<vmem>>, vector<1x1x32xf32>
    %657 = vector.shape_cast %656 : vector<1x1x32xf32> to vector<1x32xf32>
    %cst_403 = arith.constant dense<0.000000e+00> : vector<2x32xf32>
    %658 = tpu.matmul %651, %653, %cst_403 {dimension_numbers = #tpu.dot_dimension_numbers<[1], [1], [0], [0], [0, 0, 1, 0], [], []>} : vector<2x768xbf16>, vector<32x768xbf16>, vector<2x32xf32> -> vector<2x32xf32>
    %659 = vector.extract_strided_slice %655 {offsets = [0, 0], sizes = [1, 32], strides = [1, 1]} : vector<3x32xf32> to vector<1x32xf32>
    %660 = vector.broadcast %1 : vector<2x1xf32> to vector<2x32xf32>
    %661 = vector.broadcast %659 : vector<1x32xf32> to vector<2x32xf32>
    %662 = arith.mulf %660, %661 : vector<2x32xf32>
    %663 = vector.extract_strided_slice %655 {offsets = [1, 0], sizes = [1, 32], strides = [1, 1]} : vector<3x32xf32> to vector<1x32xf32>
    %664 = vector.broadcast %2 : vector<2x1xf32> to vector<2x32xf32>
    %665 = vector.broadcast %663 : vector<1x32xf32> to vector<2x32xf32>
    %666 = arith.mulf %664, %665 : vector<2x32xf32>
    %667 = arith.addf %662, %666 : vector<2x32xf32>
    %668 = vector.extract_strided_slice %655 {offsets = [2, 0], sizes = [1, 32], strides = [1, 1]} : vector<3x32xf32> to vector<1x32xf32>
    %669 = vector.broadcast %3 : vector<2x1xf32> to vector<2x32xf32>
    %670 = vector.broadcast %668 : vector<1x32xf32> to vector<2x32xf32>
    %671 = arith.mulf %669, %670 : vector<2x32xf32>
    %672 = arith.addf %667, %671 : vector<2x32xf32>
    %673 = arith.addf %658, %672 : vector<2x32xf32>
    %674 = vector.broadcast %657 : vector<1x32xf32> to vector<2x32xf32>
    %675 = arith.addf %673, %674 : vector<2x32xf32>
    %cst_404 = arith.constant 0.000000e+00 : f32
    %676 = vector.broadcast %cst_404 : f32 to vector<2x32xf32>
    %677 = arith.maximumf %675, %676 : vector<2x32xf32>
    %c17_405 = arith.constant 17 : index
    %c0_406 = arith.constant 0 : index
    %c0_407 = arith.constant 0 : index
    %678 = vector.load %arg8[%c17_405, %c0_406, %c0_407] : memref<22x32x6xf32, #tpu.memory_space<vmem>>, vector<1x32x6xf32>
    %679 = vector.shape_cast %678 : vector<1x32x6xf32> to vector<32x6xf32>
    %cst_408 = arith.constant dense<0.000000e+00> : vector<2x6xf32>
    %680 = tpu.matmul %677, %679, %cst_408 {dimension_numbers = #tpu.dot_dimension_numbers<[1], [0], [0], [1], [0, 0, 1, 1], [], []>} : vector<2x32xf32>, vector<32x6xf32>, vector<2x6xf32> -> vector<2x6xf32>
    %c17_409 = arith.constant 17 : index
    %c0_410 = arith.constant 0 : index
    %c0_411 = arith.constant 0 : index
    %681 = vector.load %arg9[%c17_409, %c0_410, %c0_411] : memref<22x1x6xf32, #tpu.memory_space<vmem>>, vector<1x1x6xf32>
    %682 = vector.shape_cast %681 : vector<1x1x6xf32> to vector<1x6xf32>
    %683 = vector.broadcast %682 : vector<1x6xf32> to vector<2x6xf32>
    %684 = arith.addf %680, %683 : vector<2x6xf32>
    %c17_412 = arith.constant 17 : index
    %c0_413 = arith.constant 0 : index
    %c0_414 = arith.constant 0 : index
    %685 = vector.load %arg19[%c17_412, %c0_413, %c0_414] : memref<22x2x6xf32, #tpu.memory_space<vmem>>, vector<1x2x6xf32>
    %686 = vector.shape_cast %685 : vector<1x2x6xf32> to vector<2x6xf32>
    %687 = vector.shape_cast %684 : vector<2x6xf32> to vector<1x2x6xf32>
    tpu.vector_store %arg19[%c17_412, %c0_413, %c0_414], %687 {strides = array<i32>} : memref<22x2x6xf32, #tpu.memory_space<vmem>>, vector<1x2x6xf32>,
    %c18 = arith.constant 18 : index
    %c0_415 = arith.constant 0 : index
    %c0_416 = arith.constant 0 : index
    %688 = vector.load %arg1[%c18, %c0_415, %c0_416] : memref<22x2x768xbf16, #tpu.memory_space<vmem>>, vector<1x2x768xbf16>
    %689 = vector.shape_cast %688 : vector<1x2x768xbf16> to vector<2x768xbf16>
    %c18_417 = arith.constant 18 : index
    %c0_418 = arith.constant 0 : index
    %c0_419 = arith.constant 0 : index
    %690 = vector.load %arg5[%c18_417, %c0_418, %c0_419] : memref<22x32x768xbf16, #tpu.memory_space<vmem>>, vector<1x32x768xbf16>
    %691 = vector.shape_cast %690 : vector<1x32x768xbf16> to vector<32x768xbf16>
    %c18_420 = arith.constant 18 : index
    %c0_421 = arith.constant 0 : index
    %c0_422 = arith.constant 0 : index
    %692 = vector.load %arg6[%c18_420, %c0_421, %c0_422] : memref<22x3x32xf32, #tpu.memory_space<vmem>>, vector<1x3x32xf32>
    %693 = vector.shape_cast %692 : vector<1x3x32xf32> to vector<3x32xf32>
    %c18_423 = arith.constant 18 : index
    %c0_424 = arith.constant 0 : index
    %c0_425 = arith.constant 0 : index
    %694 = vector.load %arg7[%c18_423, %c0_424, %c0_425] : memref<22x1x32xf32, #tpu.memory_space<vmem>>, vector<1x1x32xf32>
    %695 = vector.shape_cast %694 : vector<1x1x32xf32> to vector<1x32xf32>
    %cst_426 = arith.constant dense<0.000000e+00> : vector<2x32xf32>
    %696 = tpu.matmul %689, %691, %cst_426 {dimension_numbers = #tpu.dot_dimension_numbers<[1], [1], [0], [0], [0, 0, 1, 0], [], []>} : vector<2x768xbf16>, vector<32x768xbf16>, vector<2x32xf32> -> vector<2x32xf32>
    %697 = vector.extract_strided_slice %693 {offsets = [0, 0], sizes = [1, 32], strides = [1, 1]} : vector<3x32xf32> to vector<1x32xf32>
    %698 = vector.broadcast %1 : vector<2x1xf32> to vector<2x32xf32>
    %699 = vector.broadcast %697 : vector<1x32xf32> to vector<2x32xf32>
    %700 = arith.mulf %698, %699 : vector<2x32xf32>
    %701 = vector.extract_strided_slice %693 {offsets = [1, 0], sizes = [1, 32], strides = [1, 1]} : vector<3x32xf32> to vector<1x32xf32>
    %702 = vector.broadcast %2 : vector<2x1xf32> to vector<2x32xf32>
    %703 = vector.broadcast %701 : vector<1x32xf32> to vector<2x32xf32>
    %704 = arith.mulf %702, %703 : vector<2x32xf32>
    %705 = arith.addf %700, %704 : vector<2x32xf32>
    %706 = vector.extract_strided_slice %693 {offsets = [2, 0], sizes = [1, 32], strides = [1, 1]} : vector<3x32xf32> to vector<1x32xf32>
    %707 = vector.broadcast %3 : vector<2x1xf32> to vector<2x32xf32>
    %708 = vector.broadcast %706 : vector<1x32xf32> to vector<2x32xf32>
    %709 = arith.mulf %707, %708 : vector<2x32xf32>
    %710 = arith.addf %705, %709 : vector<2x32xf32>
    %711 = arith.addf %696, %710 : vector<2x32xf32>
    %712 = vector.broadcast %695 : vector<1x32xf32> to vector<2x32xf32>
    %713 = arith.addf %711, %712 : vector<2x32xf32>
    %cst_427 = arith.constant 0.000000e+00 : f32
    %714 = vector.broadcast %cst_427 : f32 to vector<2x32xf32>
    %715 = arith.maximumf %713, %714 : vector<2x32xf32>
    %c18_428 = arith.constant 18 : index
    %c0_429 = arith.constant 0 : index
    %c0_430 = arith.constant 0 : index
    %716 = vector.load %arg8[%c18_428, %c0_429, %c0_430] : memref<22x32x6xf32, #tpu.memory_space<vmem>>, vector<1x32x6xf32>
    %717 = vector.shape_cast %716 : vector<1x32x6xf32> to vector<32x6xf32>
    %cst_431 = arith.constant dense<0.000000e+00> : vector<2x6xf32>
    %718 = tpu.matmul %715, %717, %cst_431 {dimension_numbers = #tpu.dot_dimension_numbers<[1], [0], [0], [1], [0, 0, 1, 1], [], []>} : vector<2x32xf32>, vector<32x6xf32>, vector<2x6xf32> -> vector<2x6xf32>
    %c18_432 = arith.constant 18 : index
    %c0_433 = arith.constant 0 : index
    %c0_434 = arith.constant 0 : index
    %719 = vector.load %arg9[%c18_432, %c0_433, %c0_434] : memref<22x1x6xf32, #tpu.memory_space<vmem>>, vector<1x1x6xf32>
    %720 = vector.shape_cast %719 : vector<1x1x6xf32> to vector<1x6xf32>
    %721 = vector.broadcast %720 : vector<1x6xf32> to vector<2x6xf32>
    %722 = arith.addf %718, %721 : vector<2x6xf32>
    %c18_435 = arith.constant 18 : index
    %c0_436 = arith.constant 0 : index
    %c0_437 = arith.constant 0 : index
    %723 = vector.load %arg19[%c18_435, %c0_436, %c0_437] : memref<22x2x6xf32, #tpu.memory_space<vmem>>, vector<1x2x6xf32>
    %724 = vector.shape_cast %723 : vector<1x2x6xf32> to vector<2x6xf32>
    %725 = vector.shape_cast %722 : vector<2x6xf32> to vector<1x2x6xf32>
    tpu.vector_store %arg19[%c18_435, %c0_436, %c0_437], %725 {strides = array<i32>} : memref<22x2x6xf32, #tpu.memory_space<vmem>>, vector<1x2x6xf32>,
    %c19 = arith.constant 19 : index
    %c0_438 = arith.constant 0 : index
    %c0_439 = arith.constant 0 : index
    %726 = vector.load %arg1[%c19, %c0_438, %c0_439] : memref<22x2x768xbf16, #tpu.memory_space<vmem>>, vector<1x2x768xbf16>
    %727 = vector.shape_cast %726 : vector<1x2x768xbf16> to vector<2x768xbf16>
    %c19_440 = arith.constant 19 : index
    %c0_441 = arith.constant 0 : index
    %c0_442 = arith.constant 0 : index
    %728 = vector.load %arg5[%c19_440, %c0_441, %c0_442] : memref<22x32x768xbf16, #tpu.memory_space<vmem>>, vector<1x32x768xbf16>
    %729 = vector.shape_cast %728 : vector<1x32x768xbf16> to vector<32x768xbf16>
    %c19_443 = arith.constant 19 : index
    %c0_444 = arith.constant 0 : index
    %c0_445 = arith.constant 0 : index
    %730 = vector.load %arg6[%c19_443, %c0_444, %c0_445] : memref<22x3x32xf32, #tpu.memory_space<vmem>>, vector<1x3x32xf32>
    %731 = vector.shape_cast %730 : vector<1x3x32xf32> to vector<3x32xf32>
    %c19_446 = arith.constant 19 : index
    %c0_447 = arith.constant 0 : index
    %c0_448 = arith.constant 0 : index
    %732 = vector.load %arg7[%c19_446, %c0_447, %c0_448] : memref<22x1x32xf32, #tpu.memory_space<vmem>>, vector<1x1x32xf32>
    %733 = vector.shape_cast %732 : vector<1x1x32xf32> to vector<1x32xf32>
    %cst_449 = arith.constant dense<0.000000e+00> : vector<2x32xf32>
    %734 = tpu.matmul %727, %729, %cst_449 {dimension_numbers = #tpu.dot_dimension_numbers<[1], [1], [0], [0], [0, 0, 1, 0], [], []>} : vector<2x768xbf16>, vector<32x768xbf16>, vector<2x32xf32> -> vector<2x32xf32>
    %735 = vector.extract_strided_slice %731 {offsets = [0, 0], sizes = [1, 32], strides = [1, 1]} : vector<3x32xf32> to vector<1x32xf32>
    %736 = vector.broadcast %1 : vector<2x1xf32> to vector<2x32xf32>
    %737 = vector.broadcast %735 : vector<1x32xf32> to vector<2x32xf32>
    %738 = arith.mulf %736, %737 : vector<2x32xf32>
    %739 = vector.extract_strided_slice %731 {offsets = [1, 0], sizes = [1, 32], strides = [1, 1]} : vector<3x32xf32> to vector<1x32xf32>
    %740 = vector.broadcast %2 : vector<2x1xf32> to vector<2x32xf32>
    %741 = vector.broadcast %739 : vector<1x32xf32> to vector<2x32xf32>
    %742 = arith.mulf %740, %741 : vector<2x32xf32>
    %743 = arith.addf %738, %742 : vector<2x32xf32>
    %744 = vector.extract_strided_slice %731 {offsets = [2, 0], sizes = [1, 32], strides = [1, 1]} : vector<3x32xf32> to vector<1x32xf32>
    %745 = vector.broadcast %3 : vector<2x1xf32> to vector<2x32xf32>
    %746 = vector.broadcast %744 : vector<1x32xf32> to vector<2x32xf32>
    %747 = arith.mulf %745, %746 : vector<2x32xf32>
    %748 = arith.addf %743, %747 : vector<2x32xf32>
    %749 = arith.addf %734, %748 : vector<2x32xf32>
    %750 = vector.broadcast %733 : vector<1x32xf32> to vector<2x32xf32>
    %751 = arith.addf %749, %750 : vector<2x32xf32>
    %cst_450 = arith.constant 0.000000e+00 : f32
    %752 = vector.broadcast %cst_450 : f32 to vector<2x32xf32>
    %753 = arith.maximumf %751, %752 : vector<2x32xf32>
    %c19_451 = arith.constant 19 : index
    %c0_452 = arith.constant 0 : index
    %c0_453 = arith.constant 0 : index
    %754 = vector.load %arg8[%c19_451, %c0_452, %c0_453] : memref<22x32x6xf32, #tpu.memory_space<vmem>>, vector<1x32x6xf32>
    %755 = vector.shape_cast %754 : vector<1x32x6xf32> to vector<32x6xf32>
    %cst_454 = arith.constant dense<0.000000e+00> : vector<2x6xf32>
    %756 = tpu.matmul %753, %755, %cst_454 {dimension_numbers = #tpu.dot_dimension_numbers<[1], [0], [0], [1], [0, 0, 1, 1], [], []>} : vector<2x32xf32>, vector<32x6xf32>, vector<2x6xf32> -> vector<2x6xf32>
    %c19_455 = arith.constant 19 : index
    %c0_456 = arith.constant 0 : index
    %c0_457 = arith.constant 0 : index
    %757 = vector.load %arg9[%c19_455, %c0_456, %c0_457] : memref<22x1x6xf32, #tpu.memory_space<vmem>>, vector<1x1x6xf32>
    %758 = vector.shape_cast %757 : vector<1x1x6xf32> to vector<1x6xf32>
    %759 = vector.broadcast %758 : vector<1x6xf32> to vector<2x6xf32>
    %760 = arith.addf %756, %759 : vector<2x6xf32>
    %c19_458 = arith.constant 19 : index
    %c0_459 = arith.constant 0 : index
    %c0_460 = arith.constant 0 : index
    %761 = vector.load %arg19[%c19_458, %c0_459, %c0_460] : memref<22x2x6xf32, #tpu.memory_space<vmem>>, vector<1x2x6xf32>
    %762 = vector.shape_cast %761 : vector<1x2x6xf32> to vector<2x6xf32>
    %763 = vector.shape_cast %760 : vector<2x6xf32> to vector<1x2x6xf32>
    tpu.vector_store %arg19[%c19_458, %c0_459, %c0_460], %763 {strides = array<i32>} : memref<22x2x6xf32, #tpu.memory_space<vmem>>, vector<1x2x6xf32>,
    %c20 = arith.constant 20 : index
    %c0_461 = arith.constant 0 : index
    %c0_462 = arith.constant 0 : index
    %764 = vector.load %arg1[%c20, %c0_461, %c0_462] : memref<22x2x768xbf16, #tpu.memory_space<vmem>>, vector<1x2x768xbf16>
    %765 = vector.shape_cast %764 : vector<1x2x768xbf16> to vector<2x768xbf16>
    %c20_463 = arith.constant 20 : index
    %c0_464 = arith.constant 0 : index
    %c0_465 = arith.constant 0 : index
    %766 = vector.load %arg5[%c20_463, %c0_464, %c0_465] : memref<22x32x768xbf16, #tpu.memory_space<vmem>>, vector<1x32x768xbf16>
    %767 = vector.shape_cast %766 : vector<1x32x768xbf16> to vector<32x768xbf16>
    %c20_466 = arith.constant 20 : index
    %c0_467 = arith.constant 0 : index
    %c0_468 = arith.constant 0 : index
    %768 = vector.load %arg6[%c20_466, %c0_467, %c0_468] : memref<22x3x32xf32, #tpu.memory_space<vmem>>, vector<1x3x32xf32>
    %769 = vector.shape_cast %768 : vector<1x3x32xf32> to vector<3x32xf32>
    %c20_469 = arith.constant 20 : index
    %c0_470 = arith.constant 0 : index
    %c0_471 = arith.constant 0 : index
    %770 = vector.load %arg7[%c20_469, %c0_470, %c0_471] : memref<22x1x32xf32, #tpu.memory_space<vmem>>, vector<1x1x32xf32>
    %771 = vector.shape_cast %770 : vector<1x1x32xf32> to vector<1x32xf32>
    %cst_472 = arith.constant dense<0.000000e+00> : vector<2x32xf32>
    %772 = tpu.matmul %765, %767, %cst_472 {dimension_numbers = #tpu.dot_dimension_numbers<[1], [1], [0], [0], [0, 0, 1, 0], [], []>} : vector<2x768xbf16>, vector<32x768xbf16>, vector<2x32xf32> -> vector<2x32xf32>
    %773 = vector.extract_strided_slice %769 {offsets = [0, 0], sizes = [1, 32], strides = [1, 1]} : vector<3x32xf32> to vector<1x32xf32>
    %774 = vector.broadcast %1 : vector<2x1xf32> to vector<2x32xf32>
    %775 = vector.broadcast %773 : vector<1x32xf32> to vector<2x32xf32>
    %776 = arith.mulf %774, %775 : vector<2x32xf32>
    %777 = vector.extract_strided_slice %769 {offsets = [1, 0], sizes = [1, 32], strides = [1, 1]} : vector<3x32xf32> to vector<1x32xf32>
    %778 = vector.broadcast %2 : vector<2x1xf32> to vector<2x32xf32>
    %779 = vector.broadcast %777 : vector<1x32xf32> to vector<2x32xf32>
    %780 = arith.mulf %778, %779 : vector<2x32xf32>
    %781 = arith.addf %776, %780 : vector<2x32xf32>
    %782 = vector.extract_strided_slice %769 {offsets = [2, 0], sizes = [1, 32], strides = [1, 1]} : vector<3x32xf32> to vector<1x32xf32>
    %783 = vector.broadcast %3 : vector<2x1xf32> to vector<2x32xf32>
    %784 = vector.broadcast %782 : vector<1x32xf32> to vector<2x32xf32>
    %785 = arith.mulf %783, %784 : vector<2x32xf32>
    %786 = arith.addf %781, %785 : vector<2x32xf32>
    %787 = arith.addf %772, %786 : vector<2x32xf32>
    %788 = vector.broadcast %771 : vector<1x32xf32> to vector<2x32xf32>
    %789 = arith.addf %787, %788 : vector<2x32xf32>
    %cst_473 = arith.constant 0.000000e+00 : f32
    %790 = vector.broadcast %cst_473 : f32 to vector<2x32xf32>
    %791 = arith.maximumf %789, %790 : vector<2x32xf32>
    %c20_474 = arith.constant 20 : index
    %c0_475 = arith.constant 0 : index
    %c0_476 = arith.constant 0 : index
    %792 = vector.load %arg8[%c20_474, %c0_475, %c0_476] : memref<22x32x6xf32, #tpu.memory_space<vmem>>, vector<1x32x6xf32>
    %793 = vector.shape_cast %792 : vector<1x32x6xf32> to vector<32x6xf32>
    %cst_477 = arith.constant dense<0.000000e+00> : vector<2x6xf32>
    %794 = tpu.matmul %791, %793, %cst_477 {dimension_numbers = #tpu.dot_dimension_numbers<[1], [0], [0], [1], [0, 0, 1, 1], [], []>} : vector<2x32xf32>, vector<32x6xf32>, vector<2x6xf32> -> vector<2x6xf32>
    %c20_478 = arith.constant 20 : index
    %c0_479 = arith.constant 0 : index
    %c0_480 = arith.constant 0 : index
    %795 = vector.load %arg9[%c20_478, %c0_479, %c0_480] : memref<22x1x6xf32, #tpu.memory_space<vmem>>, vector<1x1x6xf32>
    %796 = vector.shape_cast %795 : vector<1x1x6xf32> to vector<1x6xf32>
    %797 = vector.broadcast %796 : vector<1x6xf32> to vector<2x6xf32>
    %798 = arith.addf %794, %797 : vector<2x6xf32>
    %c20_481 = arith.constant 20 : index
    %c0_482 = arith.constant 0 : index
    %c0_483 = arith.constant 0 : index
    %799 = vector.load %arg19[%c20_481, %c0_482, %c0_483] : memref<22x2x6xf32, #tpu.memory_space<vmem>>, vector<1x2x6xf32>
    %800 = vector.shape_cast %799 : vector<1x2x6xf32> to vector<2x6xf32>
    %801 = vector.shape_cast %798 : vector<2x6xf32> to vector<1x2x6xf32>
    tpu.vector_store %arg19[%c20_481, %c0_482, %c0_483], %801 {strides = array<i32>} : memref<22x2x6xf32, #tpu.memory_space<vmem>>, vector<1x2x6xf32>,
    %c21 = arith.constant 21 : index
    %c0_484 = arith.constant 0 : index
    %c0_485 = arith.constant 0 : index
    %802 = vector.load %arg1[%c21, %c0_484, %c0_485] : memref<22x2x768xbf16, #tpu.memory_space<vmem>>, vector<1x2x768xbf16>
    %803 = vector.shape_cast %802 : vector<1x2x768xbf16> to vector<2x768xbf16>
    %c21_486 = arith.constant 21 : index
    %c0_487 = arith.constant 0 : index
    %c0_488 = arith.constant 0 : index
    %804 = vector.load %arg5[%c21_486, %c0_487, %c0_488] : memref<22x32x768xbf16, #tpu.memory_space<vmem>>, vector<1x32x768xbf16>
    %805 = vector.shape_cast %804 : vector<1x32x768xbf16> to vector<32x768xbf16>
    %c21_489 = arith.constant 21 : index
    %c0_490 = arith.constant 0 : index
    %c0_491 = arith.constant 0 : index
    %806 = vector.load %arg6[%c21_489, %c0_490, %c0_491] : memref<22x3x32xf32, #tpu.memory_space<vmem>>, vector<1x3x32xf32>
    %807 = vector.shape_cast %806 : vector<1x3x32xf32> to vector<3x32xf32>
    %c21_492 = arith.constant 21 : index
    %c0_493 = arith.constant 0 : index
    %c0_494 = arith.constant 0 : index
    %808 = vector.load %arg7[%c21_492, %c0_493, %c0_494] : memref<22x1x32xf32, #tpu.memory_space<vmem>>, vector<1x1x32xf32>
    %809 = vector.shape_cast %808 : vector<1x1x32xf32> to vector<1x32xf32>
    %cst_495 = arith.constant dense<0.000000e+00> : vector<2x32xf32>
    %810 = tpu.matmul %803, %805, %cst_495 {dimension_numbers = #tpu.dot_dimension_numbers<[1], [1], [0], [0], [0, 0, 1, 0], [], []>} : vector<2x768xbf16>, vector<32x768xbf16>, vector<2x32xf32> -> vector<2x32xf32>
    %811 = vector.extract_strided_slice %807 {offsets = [0, 0], sizes = [1, 32], strides = [1, 1]} : vector<3x32xf32> to vector<1x32xf32>
    %812 = vector.broadcast %1 : vector<2x1xf32> to vector<2x32xf32>
    %813 = vector.broadcast %811 : vector<1x32xf32> to vector<2x32xf32>
    %814 = arith.mulf %812, %813 : vector<2x32xf32>
    %815 = vector.extract_strided_slice %807 {offsets = [1, 0], sizes = [1, 32], strides = [1, 1]} : vector<3x32xf32> to vector<1x32xf32>
    %816 = vector.broadcast %2 : vector<2x1xf32> to vector<2x32xf32>
    %817 = vector.broadcast %815 : vector<1x32xf32> to vector<2x32xf32>
    %818 = arith.mulf %816, %817 : vector<2x32xf32>
    %819 = arith.addf %814, %818 : vector<2x32xf32>
    %820 = vector.extract_strided_slice %807 {offsets = [2, 0], sizes = [1, 32], strides = [1, 1]} : vector<3x32xf32> to vector<1x32xf32>
    %821 = vector.broadcast %3 : vector<2x1xf32> to vector<2x32xf32>
    %822 = vector.broadcast %820 : vector<1x32xf32> to vector<2x32xf32>
    %823 = arith.mulf %821, %822 : vector<2x32xf32>
    %824 = arith.addf %819, %823 : vector<2x32xf32>
    %825 = arith.addf %810, %824 : vector<2x32xf32>
    %826 = vector.broadcast %809 : vector<1x32xf32> to vector<2x32xf32>
    %827 = arith.addf %825, %826 : vector<2x32xf32>
    %cst_496 = arith.constant 0.000000e+00 : f32
    %828 = vector.broadcast %cst_496 : f32 to vector<2x32xf32>
    %829 = arith.maximumf %827, %828 : vector<2x32xf32>
    %c21_497 = arith.constant 21 : index
    %c0_498 = arith.constant 0 : index
    %c0_499 = arith.constant 0 : index
    %830 = vector.load %arg8[%c21_497, %c0_498, %c0_499] : memref<22x32x6xf32, #tpu.memory_space<vmem>>, vector<1x32x6xf32>
    %831 = vector.shape_cast %830 : vector<1x32x6xf32> to vector<32x6xf32>
    %cst_500 = arith.constant dense<0.000000e+00> : vector<2x6xf32>
    %832 = tpu.matmul %829, %831, %cst_500 {dimension_numbers = #tpu.dot_dimension_numbers<[1], [0], [0], [1], [0, 0, 1, 1], [], []>} : vector<2x32xf32>, vector<32x6xf32>, vector<2x6xf32> -> vector<2x6xf32>
    %c21_501 = arith.constant 21 : index
    %c0_502 = arith.constant 0 : index
    %c0_503 = arith.constant 0 : index
    %833 = vector.load %arg9[%c21_501, %c0_502, %c0_503] : memref<22x1x6xf32, #tpu.memory_space<vmem>>, vector<1x1x6xf32>
    %834 = vector.shape_cast %833 : vector<1x1x6xf32> to vector<1x6xf32>
    %835 = vector.broadcast %834 : vector<1x6xf32> to vector<2x6xf32>
    %836 = arith.addf %832, %835 : vector<2x6xf32>
    %c21_504 = arith.constant 21 : index
    %c0_505 = arith.constant 0 : index
    %c0_506 = arith.constant 0 : index
    %837 = vector.load %arg19[%c21_504, %c0_505, %c0_506] : memref<22x2x6xf32, #tpu.memory_space<vmem>>, vector<1x2x6xf32>
    %838 = vector.shape_cast %837 : vector<1x2x6xf32> to vector<2x6xf32>
    %839 = vector.shape_cast %836 : vector<2x6xf32> to vector<1x2x6xf32>
    tpu.vector_store %arg19[%c21_504, %c0_505, %c0_506], %839 {strides = array<i32>} : memref<22x2x6xf32, #tpu.memory_space<vmem>>, vector<1x2x6xf32>,
    %c0_507 = arith.constant 0 : index
    %c0_508 = arith.constant 0 : index
    %840 = vector.load %arg2[%c0_507, %c0_508] : memref<2x16896xbf16, #tpu.memory_space<vmem>>, vector<2x16896xbf16>
    %c0_509 = arith.constant 0 : index
    %c0_510 = arith.constant 0 : index
    %841 = vector.load %arg10[%c0_509, %c0_510] : memref<32x16896xbf16, #tpu.memory_space<vmem>>, vector<32x16896xbf16>
    %c0_511 = arith.constant 0 : index
    %c0_512 = arith.constant 0 : index
    %842 = vector.load %arg11[%c0_511, %c0_512] : memref<3x32xf32, #tpu.memory_space<vmem>>, vector<3x32xf32>
    %c0_513 = arith.constant 0 : index
    %c0_514 = arith.constant 0 : index
    %843 = vector.load %arg12[%c0_513, %c0_514] : memref<1x32xf32, #tpu.memory_space<vmem>>, vector<1x32xf32>
    %cst_515 = arith.constant dense<0.000000e+00> : vector<2x32xf32>
    %844 = tpu.matmul %840, %841, %cst_515 {dimension_numbers = #tpu.dot_dimension_numbers<[1], [1], [0], [0], [0, 0, 1, 0], [], []>} : vector<2x16896xbf16>, vector<32x16896xbf16>, vector<2x32xf32> -> vector<2x32xf32>
    %845 = vector.extract_strided_slice %842 {offsets = [0, 0], sizes = [1, 32], strides = [1, 1]} : vector<3x32xf32> to vector<1x32xf32>
    %846 = vector.broadcast %1 : vector<2x1xf32> to vector<2x32xf32>
    %847 = vector.broadcast %845 : vector<1x32xf32> to vector<2x32xf32>
    %848 = arith.mulf %846, %847 : vector<2x32xf32>
    %849 = vector.extract_strided_slice %842 {offsets = [1, 0], sizes = [1, 32], strides = [1, 1]} : vector<3x32xf32> to vector<1x32xf32>
    %850 = vector.broadcast %2 : vector<2x1xf32> to vector<2x32xf32>
    %851 = vector.broadcast %849 : vector<1x32xf32> to vector<2x32xf32>
    %852 = arith.mulf %850, %851 : vector<2x32xf32>
    %853 = arith.addf %848, %852 : vector<2x32xf32>
    %854 = vector.extract_strided_slice %842 {offsets = [2, 0], sizes = [1, 32], strides = [1, 1]} : vector<3x32xf32> to vector<1x32xf32>
    %855 = vector.broadcast %3 : vector<2x1xf32> to vector<2x32xf32>
    %856 = vector.broadcast %854 : vector<1x32xf32> to vector<2x32xf32>
    %857 = arith.mulf %855, %856 : vector<2x32xf32>
    %858 = arith.addf %853, %857 : vector<2x32xf32>
    %859 = arith.addf %844, %858 : vector<2x32xf32>
    %860 = vector.broadcast %843 : vector<1x32xf32> to vector<2x32xf32>
    %861 = arith.addf %859, %860 : vector<2x32xf32>
    %cst_516 = arith.constant 0.000000e+00 : f32
    %862 = vector.broadcast %cst_516 : f32 to vector<2x32xf32>
    %863 = arith.maximumf %861, %862 : vector<2x32xf32>
    %c0_517 = arith.constant 0 : index
    %c0_518 = arith.constant 0 : index
    %864 = vector.load %arg3[%c0_517, %c0_518] : memref<2x16896xbf16, #tpu.memory_space<vmem>>, vector<2x16896xbf16>
    %c0_519 = arith.constant 0 : index
    %c0_520 = arith.constant 0 : index
    %865 = vector.load %arg13[%c0_519, %c0_520] : memref<32x16896xbf16, #tpu.memory_space<vmem>>, vector<32x16896xbf16>
    %c0_521 = arith.constant 0 : index
    %c0_522 = arith.constant 0 : index
    %866 = vector.load %arg14[%c0_521, %c0_522] : memref<3x32xf32, #tpu.memory_space<vmem>>, vector<3x32xf32>
    %c0_523 = arith.constant 0 : index
    %c0_524 = arith.constant 0 : index
    %867 = vector.load %arg15[%c0_523, %c0_524] : memref<1x32xf32, #tpu.memory_space<vmem>>, vector<1x32xf32>
    %cst_525 = arith.constant dense<0.000000e+00> : vector<2x32xf32>
    %868 = tpu.matmul %864, %865, %cst_525 {dimension_numbers = #tpu.dot_dimension_numbers<[1], [1], [0], [0], [0, 0, 1, 0], [], []>} : vector<2x16896xbf16>, vector<32x16896xbf16>, vector<2x32xf32> -> vector<2x32xf32>
    %869 = vector.extract_strided_slice %866 {offsets = [0, 0], sizes = [1, 32], strides = [1, 1]} : vector<3x32xf32> to vector<1x32xf32>
    %870 = vector.broadcast %1 : vector<2x1xf32> to vector<2x32xf32>
    %871 = vector.broadcast %869 : vector<1x32xf32> to vector<2x32xf32>
    %872 = arith.mulf %870, %871 : vector<2x32xf32>
    %873 = vector.extract_strided_slice %866 {offsets = [1, 0], sizes = [1, 32], strides = [1, 1]} : vector<3x32xf32> to vector<1x32xf32>
    %874 = vector.broadcast %2 : vector<2x1xf32> to vector<2x32xf32>
    %875 = vector.broadcast %873 : vector<1x32xf32> to vector<2x32xf32>
    %876 = arith.mulf %874, %875 : vector<2x32xf32>
    %877 = arith.addf %872, %876 : vector<2x32xf32>
    %878 = vector.extract_strided_slice %866 {offsets = [2, 0], sizes = [1, 32], strides = [1, 1]} : vector<3x32xf32> to vector<1x32xf32>
    %879 = vector.broadcast %3 : vector<2x1xf32> to vector<2x32xf32>
    %880 = vector.broadcast %878 : vector<1x32xf32> to vector<2x32xf32>
    %881 = arith.mulf %879, %880 : vector<2x32xf32>
    %882 = arith.addf %877, %881 : vector<2x32xf32>
    %883 = arith.addf %868, %882 : vector<2x32xf32>
    %884 = vector.broadcast %867 : vector<1x32xf32> to vector<2x32xf32>
    %885 = arith.addf %883, %884 : vector<2x32xf32>
    %cst_526 = arith.constant 0.000000e+00 : f32
    %886 = vector.broadcast %cst_526 : f32 to vector<2x32xf32>
    %887 = arith.maximumf %885, %886 : vector<2x32xf32>
    %c0_527 = arith.constant 0 : index
    %c0_528 = arith.constant 0 : index
    %888 = vector.load %arg16[%c0_527, %c0_528] : memref<32x16xf32, #tpu.memory_space<vmem>>, vector<32x16xf32>
    %cst_529 = arith.constant dense<0.000000e+00> : vector<2x16xf32>
    %889 = tpu.matmul %863, %888, %cst_529 {dimension_numbers = #tpu.dot_dimension_numbers<[1], [0], [0], [1], [0, 0, 1, 1], [], []>} : vector<2x32xf32>, vector<32x16xf32>, vector<2x16xf32> -> vector<2x16xf32>
    %c0_530 = arith.constant 0 : index
    %c0_531 = arith.constant 0 : index
    %890 = vector.load %arg17[%c0_530, %c0_531] : memref<32x16xf32, #tpu.memory_space<vmem>>, vector<32x16xf32>
    %cst_532 = arith.constant dense<0.000000e+00> : vector<2x16xf32>
    %891 = tpu.matmul %887, %890, %cst_532 {dimension_numbers = #tpu.dot_dimension_numbers<[1], [0], [0], [1], [0, 0, 1, 1], [], []>} : vector<2x32xf32>, vector<32x16xf32>, vector<2x16xf32> -> vector<2x16xf32>
    %892 = arith.addf %889, %891 : vector<2x16xf32>
    %c0_533 = arith.constant 0 : index
    %c0_534 = arith.constant 0 : index
    %893 = vector.load %arg18[%c0_533, %c0_534] : memref<1x16xf32, #tpu.memory_space<vmem>>, vector<1x16xf32>
    %894 = vector.broadcast %893 : vector<1x16xf32> to vector<2x16xf32>
    %895 = arith.addf %892, %894 : vector<2x16xf32>
    %c0_535 = arith.constant 0 : index
    %c0_536 = arith.constant 0 : index
    %896 = vector.load %arg20[%c0_535, %c0_536] : memref<2x16xf32, #tpu.memory_space<vmem>>, vector<2x16xf32>
    tpu.vector_store %arg20[%c0_535, %c0_536], %895 {strides = array<i32>} : memref<2x16xf32, #tpu.memory_space<vmem>>, vector<2x16xf32>,
    return
  }
  func.func @transform_0(%arg0: i32) -> (i32, i32, i32) {
    %c0_i32 = arith.constant 0 : i32
    %c0_i32_0 = arith.constant 0 : i32
    %c0_i32_1 = arith.constant 0 : i32
    return %c0_i32, %arg0, %c0_i32_0 : i32, i32, i32
  }
  func.func @transform_1(%arg0: i32) -> (i32, i32) {
    %c0_i32 = arith.constant 0 : i32
    %c0_i32_0 = arith.constant 0 : i32
    return %arg0, %c0_i32 : i32, i32
  }
  func.func @transform_2(%arg0: i32) -> (i32, i32) {
    %c0_i32 = arith.constant 0 : i32
    %c0_i32_0 = arith.constant 0 : i32
    return %arg0, %c0_i32 : i32, i32
  }
  func.func @transform_3(%arg0: i32) -> (i32, i32) {
    %c0_i32 = arith.constant 0 : i32
    %c0_i32_0 = arith.constant 0 : i32
    return %arg0, %c0_i32 : i32, i32
  }
  func.func @transform_4(%arg0: i32) -> (i32, i32, i32) {
    %c0_i32 = arith.constant 0 : i32
    %c0_i32_0 = arith.constant 0 : i32
    %c0_i32_1 = arith.constant 0 : i32
    %c0_i32_2 = arith.constant 0 : i32
    return %c0_i32, %c0_i32_0, %c0_i32_1 : i32, i32, i32
  }
  func.func @transform_5(%arg0: i32) -> (i32, i32, i32) {
    %c0_i32 = arith.constant 0 : i32
    %c0_i32_0 = arith.constant 0 : i32
    %c0_i32_1 = arith.constant 0 : i32
    %c0_i32_2 = arith.constant 0 : i32
    return %c0_i32, %c0_i32_0, %c0_i32_1 : i32, i32, i32
  }
  func.func @transform_6(%arg0: i32) -> (i32, i32, i32) {
    %c0_i32 = arith.constant 0 : i32
    %c0_i32_0 = arith.constant 0 : i32
    %c0_i32_1 = arith.constant 0 : i32
    %c0_i32_2 = arith.constant 0 : i32
    return %c0_i32, %c0_i32_0, %c0_i32_1 : i32, i32, i32
  }
  func.func @transform_7(%arg0: i32) -> (i32, i32, i32) {
    %c0_i32 = arith.constant 0 : i32
    %c0_i32_0 = arith.constant 0 : i32
    %c0_i32_1 = arith.constant 0 : i32
    %c0_i32_2 = arith.constant 0 : i32
    return %c0_i32, %c0_i32_0, %c0_i32_1 : i32, i32, i32
  }
  func.func @transform_8(%arg0: i32) -> (i32, i32, i32) {
    %c0_i32 = arith.constant 0 : i32
    %c0_i32_0 = arith.constant 0 : i32
    %c0_i32_1 = arith.constant 0 : i32
    %c0_i32_2 = arith.constant 0 : i32
    return %c0_i32, %c0_i32_0, %c0_i32_1 : i32, i32, i32
  }
  func.func @transform_9(%arg0: i32) -> (i32, i32) {
    %c0_i32 = arith.constant 0 : i32
    %c0_i32_0 = arith.constant 0 : i32
    %c0_i32_1 = arith.constant 0 : i32
    return %c0_i32, %c0_i32_0 : i32, i32
  }
  func.func @transform_10(%arg0: i32) -> (i32, i32) {
    %c0_i32 = arith.constant 0 : i32
    %c0_i32_0 = arith.constant 0 : i32
    %c0_i32_1 = arith.constant 0 : i32
    return %c0_i32, %c0_i32_0 : i32, i32
  }
  func.func @transform_11(%arg0: i32) -> (i32, i32) {
    %c0_i32 = arith.constant 0 : i32
    %c0_i32_0 = arith.constant 0 : i32
    %c0_i32_1 = arith.constant 0 : i32
    return %c0_i32, %c0_i32_0 : i32, i32
  }
  func.func @transform_12(%arg0: i32) -> (i32, i32) {
    %c0_i32 = arith.constant 0 : i32
    %c0_i32_0 = arith.constant 0 : i32
    %c0_i32_1 = arith.constant 0 : i32
    return %c0_i32, %c0_i32_0 : i32, i32
  }
  func.func @transform_13(%arg0: i32) -> (i32, i32) {
    %c0_i32 = arith.constant 0 : i32
    %c0_i32_0 = arith.constant 0 : i32
    %c0_i32_1 = arith.constant 0 : i32
    return %c0_i32, %c0_i32_0 : i32, i32
  }
  func.func @transform_14(%arg0: i32) -> (i32, i32) {
    %c0_i32 = arith.constant 0 : i32
    %c0_i32_0 = arith.constant 0 : i32
    %c0_i32_1 = arith.constant 0 : i32
    return %c0_i32, %c0_i32_0 : i32, i32
  }
  func.func @transform_15(%arg0: i32) -> (i32, i32) {
    %c0_i32 = arith.constant 0 : i32
    %c0_i32_0 = arith.constant 0 : i32
    %c0_i32_1 = arith.constant 0 : i32
    return %c0_i32, %c0_i32_0 : i32, i32
  }
  func.func @transform_16(%arg0: i32) -> (i32, i32) {
    %c0_i32 = arith.constant 0 : i32
    %c0_i32_0 = arith.constant 0 : i32
    %c0_i32_1 = arith.constant 0 : i32
    return %c0_i32, %c0_i32_0 : i32, i32
  }
  func.func @transform_17(%arg0: i32) -> (i32, i32) {
    %c0_i32 = arith.constant 0 : i32
    %c0_i32_0 = arith.constant 0 : i32
    %c0_i32_1 = arith.constant 0 : i32
    return %c0_i32, %c0_i32_0 : i32, i32
  }
  func.func @transform_18(%arg0: i32) -> (i32, i32, i32) {
    %c0_i32 = arith.constant 0 : i32
    %c0_i32_0 = arith.constant 0 : i32
    %c0_i32_1 = arith.constant 0 : i32
    return %c0_i32, %arg0, %c0_i32_0 : i32, i32, i32
  }
  func.func @transform_19(%arg0: i32) -> (i32, i32) {
    %c0_i32 = arith.constant 0 : i32
    %c0_i32_0 = arith.constant 0 : i32
    return %arg0, %c0_i32 : i32, i32
  }
}

</mosaic_0001>

<bundles_post_ra>
// kernel: regressor_forward.1
= control target key start
LH: loop header
LB: loop body
LE: loop exit
PB: predicated region body
PF: predicated region fallthrough
CT: control target
= control target key end

     0   :  { %s25821_s0 = inlined_call_operand.vmem [shape: bf16[22,2,768], index: 0, kind: input, shape index: {}]   ;;  %s25822_s1 = inlined_call_operand.vmem [shape: bf16[2,16896], index: 1, kind: input, shape index: {}]   ;;  %s25823_s2 = inlined_call_operand.vmem [shape: bf16[2,16896], index: 2, kind: input, shape index: {}]   ;;  %s25824_s3 = inlined_call_operand.vmem [shape: f32[2,3], index: 3, kind: input, shape index: {}]   ;;  %s25825_s4 = inlined_call_operand.vmem [shape: bf16[22,32,768], index: 4, kind: input, shape index: {}]   ;;  %s25826_s5 = inlined_call_operand.vmem [shape: f32[22,3,32], index: 5, kind: input, shape index: {}]   ;;  %s25827_s6 = inlined_call_operand.vmem [shape: f32[22,1,32], index: 6, kind: input, shape index: {}]   ;;  %s25828_s7 = inlined_call_operand.vmem [shape: f32[22,32,6], index: 7, kind: input, shape index: {}]   ;;  %s25829_s8 = inlined_call_operand.vmem [shape: f32[22,1,6], index: 8, kind: input, shape index: {}]   ;;  %s25830_s9 = inlined_call_operand.vmem [shape: bf16[32,16896], index: 9, kind: input, shape index: {}]   ;;  %s25831_s10 = inlined_call_operand.vmem [shape: f32[3,32], index: 10, kind: input, shape index: {}]   ;;  %s25832_s11 = inlined_call_operand.vmem [shape: f32[1,32], index: 11, kind: input, shape index: {}]   ;;  %s25833_s12 = inlined_call_operand.hbm [shape: bf16[32,16896], index: 12, kind: input, shape index: {}]   ;;  %s25834_s13 = inlined_call_operand.vmem [shape: f32[3,32], index: 13, kind: input, shape index: {}]   ;;  %s25835_s14 = inlined_call_operand.vmem [shape: f32[1,32], index: 14, kind: input, shape index: {}]   ;;  %s25836_s15 = inlined_call_operand.vmem [shape: f32[32,16], index: 15, kind: input, shape index: {}]   ;;  %s25837_s16 = inlined_call_operand.vmem [shape: f32[32,16], index: 16, kind: input, shape index: {}]   ;;  %s25838_s17 = inlined_call_operand.vmem [shape: f32[1,16], index: 17, kind: input, shape index: {}]   ;;  %s25839_s18 = inlined_call_operand.vmem [shape: f32[22,2,6], index: 18, kind: output, shape index: {0}]   ;;  %s25840_s19 = inlined_call_operand.vmem [shape: f32[2,16], index: 19, kind: output, shape index: {1}]  }
   0x1   :  { %25848 = sst [smem:[#allocation5_spill]] %s25821_s0 }
   0x2   :  { %25849 = sst [smem:[#allocation6_spill]] %s25822_s1 }
   0x3   :  { %25850 = sst [smem:[#allocation7_spill]] %s25823_s2 }
   0x4   :  { %25851 = sst [smem:[#allocation8_spill]] %s25824_s3 }
   0x5   :  { %25 = vsyncpa [#allocation3], 0  ;;  %s21873_s0 = smov [#allocation2]   ;;  %s21849_s1 = scalar_lea.hbm %s25833_s12, 33792 }
   0x6   :  { %s55_s30 = sshll.u32 %s21873_s0, 4  ;;  %p21850_p0 = scmp.ne.s32.totalorder %s25833_s12, %s21849_s1  ;;  %s56_s30 = int_to_ptr.vmem [resolvable:$true] %s55_s30 }
   0x7   :  { %p21853_p1 = scmp.lt.u32.totalorder %s21849_s1, %s25833_s12 }
   0x9   :  { %p21855_p2 = pnand %p21853_p1, %p21850_p0 }
   0xb   :  { %21858 = shalt.err (!%p21855_p2)
}
   0xc   :  { %s21859_s25 = scalar_lea.vmem %s56_s30, 33792  ;;  %p21864_p4 = scmp.lt.s32.totalorder %s56_s30, %s56_s30 }
   0xd   :  { %p21860_p3 = scmp.ne.s32.totalorder %s56_s30, %s21859_s25  ;;  %p21865_p5 = scmp.lt.s32.totalorder %s21859_s25, %s21859_s25 }
   0xf   :  { %p21866_p6 = por %p21865_p5, %p21864_p4 }
  0x11   :  { %p21867_p7 = pnand %p21866_p6, %p21860_p3 }
  0x13   :  { %21870 = shalt.err (!%p21867_p7)
}
  0x14   :  { %s21874_s3 = smov 8448   ;;  %s21875_s26 = smov 528  }
  0x15   :  { %61 = dma.hbm_to_vmem [thread:$0]  %s25833_s12, 33792, %s56_s30, [#allocation3], %s21874_s3, %s21874_s3, %s21875_s26  }
  0x16   :  { %21871 = dma.done.wait [#allocation3], 33792  }
  0x17   :  { %21872 = vsyncadd [#allocation3], 4294933504  ;;  %v97_v0 = vlaneseq  ;;  %v21876_v1 = vmov 1966171168   ;;  %v21877_v3 = vmov 0   ;;  %v21878_v4 = vmov 2  }
  0x18   :  { %v125_v2 = vunpack.c.l.s4 %v21876_v1  ;;  %20604 = vset.pattern.permute.xlu0 %v21877_v3  ;;  %20606 = vset.pattern.permute.xlu1 %v21878_v4  ;;  %v20608_v7 = vld [vmem:[%s25825_s4 + $0x4] ss:$24 sps:$4 sm:$0xff]   ;;  %v20610_v8 = vld [vmem:[%s25825_s4] ss:$24 sps:$4 sm:$0xff]   ;;  %v20614_v12 = vld [vmem:[%s25825_s4 + $0x34] ss:$24 sps:$4 sm:$0xff]  }
  0x19   :  { %v21995_v5 = vshrl.u32 %v97_v0, 7  ;;  %236 = vmatprep.subr.bf16.mxu0 %v20608_v7  ;;  %v20611_v9 = vld [vmem:[%s25825_s4 + $0xc] ss:$24 sps:$4 sm:$0xff]   ;;  %v20613_v10 = vld [vmem:[%s25825_s4 + $0x8] ss:$24 sps:$4 sm:$0xff]   ;;  %s25852_s27 = sld [smem:[#allocation5_spill]] }
  0x1a   :  { %v126_v6 = vunpack.c.0.s8 %v125_v2  ;;  %237 = vmatpush1.bf16.xpose.msra.mxu0 %v20610_v8  ;;  %276 = vmatprep.subr.bf16.mxu1 %v20611_v9  ;;  %v20617_v13 = vld [vmem:[%s25825_s4 + $0x3c] ss:$24 sps:$4 sm:$0xff]   ;;  %v20616_v15 = vld [vmem:[%s25825_s4 + $0x30] ss:$24 sps:$4 sm:$0xff]   ;;  %s25853_s22 = sld [smem:[#allocation8_spill]]  ;;  %v21879_v28 = vmov 1  }
  0x1b   :  { %277 = vmatpush1.bf16.xpose.msra.mxu1 %v20613_v10  ;;  %238 = vmatprep.subr.bf16.mxu0 %v20614_v12  ;;  %v20619_v18 = vld [vmem:[%s25825_s4 + $0x38] ss:$24 sps:$4 sm:$0xff]   ;;  %v20623_v20 = vld [vmem:[%s25825_s4 + $0x14] ss:$24 sps:$4 sm:$0xff]   ;;  %v20626_v29 = vld [vmem:[%s25825_s4 + $0x44] ss:$24 sps:$4 sm:$0xff]  }
  0x1c   :  { %v22010_v11 = vsub.s32 %v126_v6, %v21995_v5  ;;  %278 = vmatprep.subr.bf16.mxu1 %v20617_v13  ;;  %v20621_v27 = vld [vmem:[%s25825_s4 + $0x10] ss:$24 sps:$4 sm:$0xff]   ;;  %v20624_v32 = vld [vmem:[%s25825_s4 + $0x40] ss:$24 sps:$4 sm:$0xff]   ;;  %v25846_v36 = vmov 0.0|0.0   ;;  %vm21881_vm0 = vmmov 0  }
  0x1d   :  { %v364_v34 = vld [vmem:[%s25828_s7] sm:$0xff]  ;;  %v365_v35 = vld [vmem:[%s25828_s7 + $0x8] sm:$0xff]  ;;  %v366_v38 = vld [vmem:[%s25828_s7 + $0x10] sm:$0xff]  ;;  %v25844_v42 = vmov 0.0   ;;  %v22094_v56 = vsub.s32 0, %v21995_v5  ;;  %v22097_v57 = vsub.s32 1, %v21995_v5 }
  0x1e   :  { %v20451_v37 = vpack.c.bf16 %v365_v35, %v364_v34  ;;  %v367_v39 = vld [vmem:[%s25828_s7 + $0x18] sm:$0xff]  ;;  %v20632_v43 = vld [vmem:[%s25825_s4 + $0x6c] ss:$24 sps:$4 sm:$0xff]   ;;  %v20630_v44 = vld [vmem:[%s25825_s4 + $0x68] ss:$24 sps:$4 sm:$0xff]   ;;  %v22102_v60 = vsub.s32 2, %v21995_v5 }
  0x1f   :  { %v77_v14 = vld [vmem:[%s25852_s27] sm:$0x3f]  ;;  %v20454_v40 = vpack.c.bf16 %v367_v39, %v366_v38  ;;  %v20638_v45 = vld [vmem:[%s25825_s4 + $0x9c] ss:$24 sps:$4 sm:$0xff]   ;;  %v18775_v46 = vld [vmem:[%s25852_s27 + $0x6] sm:$0x3f] }
  0x20   :  { %v123_v16 = vcombine.high %v77_v14, %v77_v14  ;;  %v130_v17 = vrot.slane %v77_v14, %v22010_v11  ;;  %v76_v22 = vld [vmem:[%s25853_s22] sm:$0x3]  ;;  %v20629_v41 = vld [vmem:[%s25825_s4 + $0x64] ss:$24 sps:$4 sm:$0xff]   ;;  %v20636_v47 = vld [vmem:[%s25825_s4 + $0x98] ss:$24 sps:$4 sm:$0xff]   ;;  %v495_v48 = vrot.slane %v18775_v46, %v22010_v11 }
  0x21   :  { %94 = vperm.xlu0 %20604, %v76_v22   ;;  %113 = vperm.xlu1 %20606, %v76_v22   ;;  %v90_v55 = vld [vmem:[%s25826_s5] sm:$0x7]  ;;  %vm375_vm1 = vcmask 261120   ;;  %v18804_v39 = vld [vmem:[%s25828_s7 + $0x28] sm:$0xff]  ;;  %vm449_vm2 = vcmask 41984   ;;  %s25854_s30 = sld [smem:[#allocation6_spill]] }
  0x22   :  { %v138_v19 = vcombine.high %v130_v17, %v130_v17  ;;  %v137_v21 = vrot.slane %v123_v16, %v22010_v11  ;;  %239 = vmatpush1.bf16.xpose.msra.mxu0 %v20616_v15  ;;  %v146_v25 = vrot.slane %v130_v17, %v22010_v11  ;;  %v503_v49 = vcombine.high %v495_v48, %v495_v48  ;;  %v18772_v16 = vld [vmem:[%s25827_s6] ss:$0 sm:$0xff]  ;;  %s25855_s12 = sld [smem:[#allocation7_spill]] }
  0x23   :  { %316 = vmatprep.subr.bf16.mxu0 %v20623_v20  ;;  %279 = vmatpush1.bf16.xpose.msra.mxu1 %v20619_v18  ;;  %v511_v50 = vrot.slane %v495_v48, %v22010_v11  ;;  %v100_v58 = vrot.slane %v90_v55, %v22094_v56  ;;  %v109_v59 = vrot.slane %v90_v55, %v22097_v57  ;;  %v20642_v34 = vld [vmem:[%s25825_s4 + $0xa0] ss:$24 sps:$4 sm:$0xff]   ;;  %v20648_v48 = vld [vmem:[%s25825_s4 + $0xc4] ss:$24 sps:$4 sm:$0xff]   ;;  %vm18749_vm3 = vcmask 123904  }
  0x24   :  { %v160_v23 = vrot.slane %v138_v19, %v22010_v11  ;;  %v139_v24 = vcombine.high %v137_v21, %v137_v21  ;;  %v168_v31 = vcombine.high %v146_v25, %v146_v25  ;;  %v153_v33 = vrot.slane %v137_v21, %v22010_v11  ;;  %20450 = vmatprep.subr.bf16.mxu1 %v25846_v36  ;;  %v20627_v21 = vld [vmem:[%s25825_s4 + $0x60] ss:$24 sps:$4 sm:$0xff]  }
  0x25   :  { %20605 = vset.pattern.permute.xlu0 %v21879_v28  ;;  %v525_v51 = vrot.slane %v503_v49, %v22010_v11  ;;  %v533_v53 = vcombine.high %v511_v50, %v511_v50  ;;  %v119_v0 = vrot.slane %v90_v55, %v22102_v60  ;;  %v20641_v28 = vld [vmem:[%s25825_s4 + $0x74] ss:$24 sps:$4 sm:$0xff]   ;;  %v18803_v38 = vld [vmem:[%s25828_s7 + $0x20] sm:$0xff] }
  0x26   :  { %268 = vmatprep.mubr.bf16.mxu0 %v160_v23  ;;  %v169_v26 = vcombine.high %v160_v23, %v160_v23  ;;  %103 = vperm.xlu0 %20605, %v76_v22   ;;  %v167_v30 = vrot.slane %v139_v24, %v22010_v11  ;;  %v20635_v24 = vld [vmem:[%s25825_s4 + $0x94] ss:$24 sps:$4 sm:$0xff]  }
  0x27   :  { %v534_v52 = vcombine.high %v525_v51, %v525_v51  ;;  %v20651_v49 = vld [vmem:[%s25825_s4 + $0xcc] ss:$24 sps:$4 sm:$0xff]  }
  0x28   :  { %308 = vmatprep.mubr.bf16.mxu1 %v169_v26  ;;  %v488_v26 = vcombine.high %v18775_v46, %v18775_v46 }
  0x29   :  { %269 = vmatmul.mubr.bf16.vlgmr.msra.gmra.mrb[0].mxu0 %v146_v25 }
  0x2a   :  { %20607 = vset.pattern.permute.xlu0 %v21878_v4  ;;  %317 = vmatpush1.bf16.xpose.msra.mxu0 %v20621_v27  ;;  %v20633_v27 = vld [vmem:[%s25825_s4 + $0x90] ss:$24 sps:$4 sm:$0xff]  }
  0x2b   :  { %348 = vmatprep.mubr.bf16.mxu0 %v167_v30  ;;  %309 = vmatmul.mubr.bf16.vlgmr.msra.gmra.mrb[0].mxu1 %v168_v31  ;;  %v20639_v31 = vld [vmem:[%s25825_s4 + $0x70] ss:$24 sps:$4 sm:$0xff]  }
  0x2c   :  { %318 = vmatprep.subr.bf16.mxu0 %v20626_v29  ;;  %20452 = vmatpush3.bf16.msra.mxu1 %v20451_v37  ;;  %v502_v29 = vrot.slane %v488_v26, %v22010_v11 }
  0x2d   :  { %20453 = vmatprep.subr.bf16.mxu1 %v25846_v36  ;;  %20194 = vmatprep.mubr.msk.f32.mxu1 %vm21881_vm0, %v25844_v42 }
  0x2e   :  { %v504_v30 = vcombine.high %v502_v29, %v502_v29  ;;  %v518_v35 = vrot.slane %v502_v29, %v22010_v11  ;;  %v20646_v29 = vld [vmem:[%s25825_s4 + $0xc0] ss:$24 sps:$4 sm:$0xff]  }
  0x30   :  { %20455 = vmatpush3.bf16.msra.mxu1 %v20454_v40 }
  0x31   :  { %601 = vmatprep.subr.bf16.mxu1 %v20629_v41  ;;  %v18805_v41 = vld [vmem:[%s25828_s7 + $0x30] sm:$0xff] }
  0x32   :  { %319 = vmatpush1.bf16.xpose.msra.mxu0 %v20624_v32  ;;  %v20644_v32 = vld [vmem:[%s25825_s4 + $0xa4] ss:$24 sps:$4 sm:$0xff]  }
  0x33   :  { %641 = vmatprep.subr.bf16.mxu0 %v20632_v43  ;;  %v20457_v43 = vpack.c.bf16 %v18804_v39, %v18803_v38  ;;  %v20658_v38 = vld [vmem:[%s25825_s4 + $0xd0] ss:$24 sps:$4 sm:$0xff]  }
  0x39   :  { %349 = vmatmul.mubr.bf16.vlgmr.msra.gmra.mrb[4].mxu0 %v153_v33  ;;  %v532_v33 = vrot.slane %v504_v30, %v22010_v11 }
  0x3a   :  { %642 = vmatpush1.bf16.xpose.msra.mxu0 %v20630_v44  ;;  %673 = vmatprep.mubr.bf16.mxu0 %v534_v52  ;;  %v18811_v52 = vld [vmem:[%s25852_s27 + $0xc] sm:$0x3f] }
  0x3b   :  { %643 = vmatprep.subr.bf16.mxu0 %v20638_v45  ;;  %v18806_v45 = vld [vmem:[%s25828_s7 + $0x38] sm:$0xff]  ;;  %v861_v55 = vrot.slane %v18811_v52, %v22010_v11 }
  0x42   :  { %644 = vmatpush1.bf16.xpose.msra.mxu0 %v20636_v47  ;;  %v20460_v47 = vpack.c.bf16 %v18806_v45, %v18805_v41  ;;  %v20661_v41 = vld [vmem:[%s25825_s4 + $0x100] ss:$24 sps:$4 sm:$0xff]  }
  0x43   :  { %20456 = vmatprep.subr.bf16.mxu0 %v25846_v36  ;;  %v18839_v45 = vld [vmem:[%s25828_s7 + $0x40] sm:$0xff] }
  0x49   :  { %674 = vmatmul.mubr.bf16.vlgmr.msra.gmra.mrb[8].mxu0 %v533_v53  ;;  %v20655_v53 = vld [vmem:[%s25825_s4 + $0xf8] ss:$24 sps:$4 sm:$0xff]  }
  0x4a   :  { %20205 = vmatprep.mubr.msk.f32.mxu0 %vm21881_vm0, %v25844_v42  ;;  %20458 = vmatpush3.bf16.msra.mxu0 %v20457_v43 }
  0x4b   :  { %20459 = vmatprep.subr.bf16.mxu0 %v25846_v36 }
  0x4e   :  { %20461 = vmatpush3.bf16.msra.mxu0 %v20460_v47 }
  0x4f   :  { %967 = vmatprep.subr.bf16.mxu0 %v20648_v48  ;;  %v18841_v48 = vld [vmem:[%s25828_s7 + $0x50] sm:$0xff] }
  0xa0   :  { %v22088_v54 = vpop.permute.xlu0 %94  ;;  %v22109_v1 = vpop.permute.xlu1 %113 }
  0xa1   :  { %v101_v62 = vmul.f32 %v100_v58, %v22088_v54  ;;  %v120_v3 = vmul.f32 %v119_v0, %v22109_v1  ;;  %v869_v58 = vcombine.high %v861_v55, %v861_v55 }
  0xa5   :  { %v22104_v61 = vpop.permute.xlu0 %103 }
  0xa6   :  { %v110_v63 = vmul.f32 %v109_v59, %v22104_v61  ;;  %v877_v59 = vrot.slane %v861_v55, %v22010_v11  ;;  %v20667_v55 = vld [vmem:[%s25825_s4 + $0x124] ss:$24 sps:$4 sm:$0xff]  }
  0xa8   :  { %v111_v2 = vadd.f32 %v110_v63, %v101_v62  ;;  %v891_v62 = vrot.slane %v869_v58, %v22010_v11  ;;  %v899_v0 = vcombine.high %v877_v59, %v877_v59  ;;  %v20670_v58 = vld [vmem:[%s25825_s4 + $0x12c] ss:$24 sps:$4 sm:$0xff]  }
  0xaa   :  { %v121_v4 = vadd.f32 %v120_v3, %v111_v2  ;;  %v900_v63 = vcombine.high %v891_v62, %v891_v62  ;;  %v18773_v2 = vld [vmem:[%s25829_s8] ss:$0 sm:$0xff] }
  0xfc   :  { %v270_v6 = vpop.f32.mrb[0].mxu0 }
  0xfd   :  { %v271_v7 = vadd.f32 %v270_v6, %v121_v4  ;;  %v272_v8 = vpop.f32.mrb[1].mxu0  ;;  %v18788_v4 = vld [vmem:[%s25826_s5 + $0x4] sm:$0x7] }
  0xfe   :  { %v273_v9 = vpop.f32.mrb[2].mxu0  ;;  %v310_v5 = vpop.f32.mrb[0].mxu1  ;;  %v473_v8 = vrot.slane %v18788_v4, %v22094_v56 }
  0xff   :  { %v274_v10 = vpop.f32.mrb[3].mxu0  ;;  %v311_v12 = vadd.f32 %v310_v5, %v271_v7  ;;  %v312_v13 = vpop.f32.mrb[1].mxu1  ;;  %v478_v9 = vrot.slane %v18788_v4, %v22097_v57 }
 0x100   :  { %v313_v14 = vpop.f32.mrb[2].mxu1  ;;  %v474_v5 = vmul.f32 %v473_v8, %v22088_v54 }
 0x101   :  { %v314_v15 = vpop.f32.mrb[3].mxu1  ;;  %v479_v10 = vmul.f32 %v478_v9, %v22104_v61  ;;  %v18808_v9 = vld [vmem:[%s25829_s8 + $0x1] ss:$0 sm:$0xff] }
 0x103   :  { %v480_v13 = vadd.f32 %v479_v10, %v474_v5  ;;  %v18824_v10 = vld [vmem:[%s25826_s5 + $0x8] sm:$0x7] }
 0x10c   :  { %v350_v17 = vpop.f32.mrb[4].mxu0 }
 0x10d   :  { %v351_v18 = vadd.f32 %v350_v17, %v311_v12  ;;  %v352_v19 = vpop.f32.mrb[5].mxu0  ;;  %v484_v12 = vrot.slane %v18788_v4, %v22102_v60 }
 0x10e   :  { %v353_v20 = vpop.f32.mrb[6].mxu0 }
 0x10f   :  { %v362_v22 = vadd.f32 %v18772_v16, %v351_v18  ;;  %v354_v23 = vpop.f32.mrb[7].mxu0  ;;  %v485_v14 = vmul.f32 %v484_v12, %v22109_v1 }
 0x111   :  { %v363_v25 = vmax.f32 %v362_v22, 0.0  ;;  %v486_v15 = vadd.f32 %v485_v14, %v480_v13  ;;  %v18802_v22 = vld [vmem:[%s25827_s6 + $0x1] ss:$0 sm:$0xff]  ;;  %v839_v14 = vrot.slane %v18824_v10, %v22094_v56 }
 0x113   :  { %20195 = vmatmul.mubr.msk.f32.vlgmr.msra.gmra.mrb[4].mxu1 %vm375_vm1, %v363_v25 }
 0x114   :  { %602 = vmatpush1.bf16.xpose.msra.mxu1 %v20627_v21  ;;  %633 = vmatprep.mubr.bf16.mxu1 %v525_v51  ;;  %v20657_v51 = vld [vmem:[%s25825_s4 + $0xfc] ss:$24 sps:$4 sm:$0xff]  }
 0x115   :  { %603 = vmatprep.subr.bf16.mxu1 %v20635_v24 }
 0x11c   :  { %604 = vmatpush1.bf16.xpose.msra.mxu1 %v20633_v27  ;;  %v675_v37 = vpop.f32.mrb[8].mxu0 }
 0x11d   :  { %681 = vmatprep.subr.bf16.mxu1 %v20641_v28  ;;  %v677_v40 = vpop.f32.mrb[9].mxu0 }
 0x11e   :  { %v678_v44 = vpop.f32.mrb[10].mxu0  ;;  %v20663_v40 = vld [vmem:[%s25825_s4 + $0x104] ss:$24 sps:$4 sm:$0xff]  }
 0x11f   :  { %v679_v46 = vpop.f32.mrb[11].mxu0 }
 0x120   :  { %v18840_v46 = vld [vmem:[%s25828_s7 + $0x48] sm:$0xff] }
 0x123   :  { %634 = vmatmul.mubr.bf16.vlgmr.msra.gmra.mrb[8].mxu1 %v511_v50  ;;  %v20649_v50 = vld [vmem:[%s25825_s4 + $0xc8] ss:$24 sps:$4 sm:$0xff]  }
 0x124   :  { %682 = vmatpush1.bf16.xpose.msra.mxu1 %v20639_v31  ;;  %713 = vmatprep.mubr.bf16.mxu1 %v532_v33  ;;  %v20654_v31 = vld [vmem:[%s25825_s4 + $0xf4] ss:$24 sps:$4 sm:$0xff]   ;;  %v20652_v33 = vld [vmem:[%s25825_s4 + $0xf0] ss:$24 sps:$4 sm:$0xff]  }
 0x125   :  { %683 = vmatprep.subr.bf16.mxu1 %v20644_v32  ;;  %v854_v32 = vcombine.high %v18811_v52, %v18811_v52 }
 0x12c   :  { %684 = vmatpush1.bf16.xpose.msra.mxu1 %v20642_v34  ;;  %v868_v34 = vrot.slane %v854_v32, %v22010_v11 }
 0x12d   :  { %1007 = vmatprep.subr.bf16.mxu1 %v20651_v49  ;;  %v20463_v49 = vpack.c.bf16 %v18840_v46, %v18839_v45  ;;  %v20677_v45 = vld [vmem:[%s25825_s4 + $0x130] ss:$24 sps:$4 sm:$0xff]  }
 0x12e   :  { %v884_v43 = vrot.slane %v868_v34, %v22010_v11 }
 0x133   :  { %714 = vmatmul.mubr.bf16.vlgmr.msra.gmra.mrb[12].mxu1 %v518_v35  ;;  %v20660_v35 = vld [vmem:[%s25825_s4 + $0xd4] ss:$24 sps:$4 sm:$0xff]  }
 0x134   :  { %1008 = vmatpush1.bf16.xpose.msra.mxu1 %v20649_v50  ;;  %1039 = vmatprep.mubr.bf16.mxu1 %v900_v63  ;;  %v18847_v63 = vld [vmem:[%s25852_s27 + $0x12] sm:$0x3f] }
 0x135   :  { %1009 = vmatprep.subr.bf16.mxu1 %v20657_v51  ;;  %v18842_v51 = vld [vmem:[%s25828_s7 + $0x58] sm:$0xff] }
 0x13c   :  { %1010 = vmatpush1.bf16.xpose.msra.mxu1 %v20655_v53  ;;  %v20466_v53 = vpack.c.bf16 %v18842_v51, %v18841_v48  ;;  %v20680_v48 = vld [vmem:[%s25825_s4 + $0x160] ss:$24 sps:$4 sm:$0xff]  }
 0x13d   :  { %20462 = vmatprep.subr.bf16.mxu1 %v25846_v36  ;;  %v18875_v51 = vld [vmem:[%s25828_s7 + $0x60] sm:$0xff] }
 0x143   :  { %1040 = vmatmul.mubr.bf16.vlgmr.msra.gmra.mrb[16].mxu1 %v899_v0  ;;  %v20674_v0 = vld [vmem:[%s25825_s4 + $0x158] ss:$24 sps:$4 sm:$0xff]  }
 0x144   :  { %20216 = vmatprep.mubr.msk.f32.mxu1 %vm21881_vm0, %v25844_v42  ;;  %20464 = vmatpush3.bf16.msra.mxu1 %v20463_v49 }
 0x145   :  { %20465 = vmatprep.subr.bf16.mxu1 %v25846_v36 }
 0x148   :  { %20467 = vmatpush3.bf16.msra.mxu1 %v20466_v53 }
 0x149   :  { %1333 = vmatprep.subr.bf16.mxu1 %v20667_v55  ;;  %v18877_v55 = vld [vmem:[%s25828_s7 + $0x70] sm:$0xff] }
 0x1e6   :  { %v445_v3 = vpop.f32.mrb[4].mxu1 }
 0x1e7   :  { %v446_v6 = vadd.f32 %v18773_v2, %v445_v3  ;;  %v20196_v7 = vpop.f32.mrb[5].mxu1  ;;  %v1227_v2 = vrot.slane %v18847_v63, %v22010_v11 }
 0x1e9   :  { %450 = vst.msk [vmem:[%s25839_s18] sm:$0x3] %vm449_vm2, %v446_v6  ;;  %v1235_v3 = vcombine.high %v1227_v2, %v1227_v2  ;;  %v1243_v4 = vrot.slane %v1227_v2, %v22010_v11  ;;  %v20686_v2 = vld [vmem:[%s25825_s4 + $0x184] ss:$24 sps:$4 sm:$0xff]  }
 0x1eb   :  { %v1257_v6 = vrot.slane %v1235_v3, %v22010_v11  ;;  %v1265_v8 = vcombine.high %v1243_v4, %v1243_v4  ;;  %v20689_v3 = vld [vmem:[%s25825_s4 + $0x18c] ss:$24 sps:$4 sm:$0xff]  }
 0x1ed   :  { %v1266_v7 = vcombine.high %v1257_v6, %v1257_v6 }
 0x1f6   :  { %v635_v16 = vpop.f32.mrb[8].mxu1 }
 0x1f7   :  { %v636_v17 = vadd.f32 %v635_v16, %v486_v15  ;;  %v637_v18 = vpop.f32.mrb[9].mxu1  ;;  %v844_v15 = vrot.slane %v18824_v10, %v22097_v57  ;;  %v840_v16 = vmul.f32 %v839_v14, %v22088_v54 }
 0x1f8   :  { %v638_v19 = vpop.f32.mrb[10].mxu1  ;;  %v850_v18 = vrot.slane %v18824_v10, %v22102_v60 }
 0x1f9   :  { %v676_v20 = vadd.f32 %v675_v37, %v636_v17  ;;  %v639_v21 = vpop.f32.mrb[11].mxu1  ;;  %v870_v37 = vcombine.high %v868_v34, %v868_v34  ;;  %v845_v17 = vmul.f32 %v844_v15, %v22104_v61  ;;  %v18844_v15 = vld [vmem:[%s25829_s8 + $0x2] ss:$0 sm:$0xff] }
 0x1fb   :  { %v898_v39 = vrot.slane %v870_v37, %v22010_v11  ;;  %v846_v19 = vadd.f32 %v845_v17, %v840_v16  ;;  %v18860_v17 = vld [vmem:[%s25826_s5 + $0xc] sm:$0x7] }
 0x206   :  { %v715_v23 = vpop.f32.mrb[12].mxu1 }
 0x207   :  { %v716_v24 = vadd.f32 %v715_v23, %v676_v20  ;;  %v717_v25 = vpop.f32.mrb[13].mxu1  ;;  %v851_v20 = vmul.f32 %v850_v18, %v22109_v1 }
 0x208   :  { %v718_v26 = vpop.f32.mrb[14].mxu1 }
 0x209   :  { %v727_v27 = vadd.f32 %v18802_v22, %v716_v24  ;;  %v719_v28 = vpop.f32.mrb[15].mxu1  ;;  %v852_v21 = vadd.f32 %v851_v20, %v846_v19  ;;  %v1205_v20 = vrot.slane %v18860_v17, %v22094_v56 }
 0x20a   :  { %v18838_v28 = vld [vmem:[%s25827_s6 + $0x2] ss:$0 sm:$0xff] }
 0x20b   :  { %v728_v30 = vmax.f32 %v727_v27, 0.0 }
 0x20d   :  { %20206 = vmatmul.mubr.msk.f32.vlgmr.msra.gmra.mrb[12].mxu0 %vm375_vm1, %v728_v30 }
 0x20e   :  { %968 = vmatpush1.bf16.xpose.msra.mxu0 %v20646_v29  ;;  %999 = vmatprep.mubr.bf16.mxu0 %v891_v62  ;;  %v20676_v62 = vld [vmem:[%s25825_s4 + $0x15c] ss:$24 sps:$4 sm:$0xff]  }
 0x20f   :  { %969 = vmatprep.subr.bf16.mxu0 %v20654_v31 }
 0x216   :  { %970 = vmatpush1.bf16.xpose.msra.mxu0 %v20652_v33  ;;  %v1041_v44 = vpop.f32.mrb[16].mxu1 }
 0x217   :  { %1047 = vmatprep.subr.bf16.mxu0 %v20660_v35  ;;  %v1043_v47 = vpop.f32.mrb[17].mxu1  ;;  %v20665_v35 = vld [vmem:[%s25825_s4 + $0x120] ss:$24 sps:$4 sm:$0xff]  }
 0x218   :  { %v1044_v50 = vpop.f32.mrb[18].mxu1  ;;  %v20682_v47 = vld [vmem:[%s25825_s4 + $0x164] ss:$24 sps:$4 sm:$0xff]  }
 0x219   :  { %v1045_v52 = vpop.f32.mrb[19].mxu1 }
 0x21a   :  { %v18876_v52 = vld [vmem:[%s25828_s7 + $0x68] sm:$0xff] }
 0x21d   :  { %1000 = vmatmul.mubr.bf16.vlgmr.msra.gmra.mrb[16].mxu0 %v877_v59  ;;  %v20668_v59 = vld [vmem:[%s25825_s4 + $0x128] ss:$24 sps:$4 sm:$0xff]  }
 0x21e   :  { %1048 = vmatpush1.bf16.xpose.msra.mxu0 %v20658_v38  ;;  %1079 = vmatprep.mubr.bf16.mxu0 %v898_v39  ;;  %v20673_v38 = vld [vmem:[%s25825_s4 + $0x154] ss:$24 sps:$4 sm:$0xff]   ;;  %v1220_v39 = vcombine.high %v18847_v63, %v18847_v63 }
 0x21f   :  { %1049 = vmatprep.subr.bf16.mxu0 %v20663_v40  ;;  %v20671_v40 = vld [vmem:[%s25825_s4 + $0x150] ss:$24 sps:$4 sm:$0xff]  }
 0x226   :  { %1050 = vmatpush1.bf16.xpose.msra.mxu0 %v20661_v41  ;;  %v1234_v41 = vrot.slane %v1220_v39, %v22010_v11 }
 0x227   :  { %1373 = vmatprep.subr.bf16.mxu0 %v20670_v58  ;;  %v20469_v58 = vpack.c.bf16 %v18876_v52, %v18875_v51  ;;  %v20696_v51 = vld [vmem:[%s25825_s4 + $0x190] ss:$24 sps:$4 sm:$0xff]  }
 0x228   :  { %v1250_v49 = vrot.slane %v1234_v41, %v22010_v11 }
 0x22d   :  { %1080 = vmatmul.mubr.bf16.vlgmr.msra.gmra.mrb[20].mxu0 %v884_v43  ;;  %v20679_v43 = vld [vmem:[%s25825_s4 + $0x134] ss:$24 sps:$4 sm:$0xff]  }
 0x22e   :  { %1374 = vmatpush1.bf16.xpose.msra.mxu0 %v20668_v59  ;;  %1405 = vmatprep.mubr.bf16.mxu0 %v1266_v7  ;;  %v18883_v7 = vld [vmem:[%s25852_s27 + $0x18] sm:$0x3f] }
 0x22f   :  { %1375 = vmatprep.subr.bf16.mxu0 %v20676_v62  ;;  %v18878_v62 = vld [vmem:[%s25828_s7 + $0x78] sm:$0xff] }
 0x236   :  { %1376 = vmatpush1.bf16.xpose.msra.mxu0 %v20674_v0  ;;  %v20472_v0 = vpack.c.bf16 %v18878_v62, %v18877_v55  ;;  %v20699_v55 = vld [vmem:[%s25825_s4 + $0x1c0] ss:$24 sps:$4 sm:$0xff]  }
 0x237   :  { %20468 = vmatprep.subr.bf16.mxu0 %v25846_v36  ;;  %v18911_v62 = vld [vmem:[%s25828_s7 + $0x80] sm:$0xff] }
 0x23d   :  { %1406 = vmatmul.mubr.bf16.vlgmr.msra.gmra.mrb[24].mxu0 %v1265_v8  ;;  %v20693_v8 = vld [vmem:[%s25825_s4 + $0x1b8] ss:$24 sps:$4 sm:$0xff]  }
 0x23e   :  { %20227 = vmatprep.mubr.msk.f32.mxu0 %vm21881_vm0, %v25844_v42  ;;  %20470 = vmatpush3.bf16.msra.mxu0 %v20469_v58 }
 0x23f   :  { %20471 = vmatprep.subr.bf16.mxu0 %v25846_v36 }
 0x242   :  { %20473 = vmatpush3.bf16.msra.mxu0 %v20472_v0 }
 0x243   :  { %1699 = vmatprep.subr.bf16.mxu0 %v20686_v2  ;;  %v18913_v2 = vld [vmem:[%s25828_s7 + $0x90] sm:$0xff] }
 0x2e0   :  { %v811_v5 = vpop.f32.mrb[12].mxu0 }
 0x2e1   :  { %v812_v12 = vadd.f32 %v18808_v9, %v811_v5  ;;  %v20207_v13 = vpop.f32.mrb[13].mxu0  ;;  %v1593_v9 = vrot.slane %v18883_v7, %v22010_v11 }
 0x2e3   :  { %18810 = vst.msk [vmem:[%s25839_s18 + $0x2] sm:$0x3] %vm449_vm2, %v812_v12  ;;  %v1601_v5 = vcombine.high %v1593_v9, %v1593_v9  ;;  %v1609_v10 = vrot.slane %v1593_v9, %v22010_v11  ;;  %v20705_v9 = vld [vmem:[%s25825_s4 + $0x1e4] ss:$24 sps:$4 sm:$0xff]  }
 0x2e5   :  { %v1623_v12 = vrot.slane %v1601_v5, %v22010_v11  ;;  %v1631_v14 = vcombine.high %v1609_v10, %v1609_v10  ;;  %v20708_v5 = vld [vmem:[%s25825_s4 + $0x1ec] ss:$24 sps:$4 sm:$0xff]  }
 0x2e7   :  { %v1632_v13 = vcombine.high %v1623_v12, %v1623_v12 }
 0x2f0   :  { %v1001_v22 = vpop.f32.mrb[16].mxu0 }
 0x2f1   :  { %v1002_v23 = vadd.f32 %v1001_v22, %v852_v21  ;;  %v1003_v24 = vpop.f32.mrb[17].mxu0  ;;  %v1210_v21 = vrot.slane %v18860_v17, %v22097_v57  ;;  %v1206_v22 = vmul.f32 %v1205_v20, %v22088_v54 }
 0x2f2   :  { %v1004_v25 = vpop.f32.mrb[18].mxu0  ;;  %v1216_v24 = vrot.slane %v18860_v17, %v22102_v60 }
 0x2f3   :  { %v1042_v26 = vadd.f32 %v1041_v44, %v1002_v23  ;;  %v1005_v27 = vpop.f32.mrb[19].mxu0  ;;  %v1236_v44 = vcombine.high %v1234_v41, %v1234_v41  ;;  %v1211_v23 = vmul.f32 %v1210_v21, %v22104_v61  ;;  %v18880_v21 = vld [vmem:[%s25829_s8 + $0x3] ss:$0 sm:$0xff] }
 0x2f5   :  { %v1264_v46 = vrot.slane %v1236_v44, %v22010_v11  ;;  %v1212_v25 = vadd.f32 %v1211_v23, %v1206_v22  ;;  %v18896_v23 = vld [vmem:[%s25826_s5 + $0x10] sm:$0x7] }
 0x300   :  { %v1081_v29 = vpop.f32.mrb[20].mxu0 }
 0x301   :  { %v1082_v30 = vadd.f32 %v1081_v29, %v1042_v26  ;;  %v1083_v31 = vpop.f32.mrb[21].mxu0  ;;  %v1217_v26 = vmul.f32 %v1216_v24, %v22109_v1 }
 0x302   :  { %v1084_v32 = vpop.f32.mrb[22].mxu0 }
 0x303   :  { %v1093_v33 = vadd.f32 %v18838_v28, %v1082_v30  ;;  %v1085_v34 = vpop.f32.mrb[23].mxu0  ;;  %v1218_v27 = vadd.f32 %v1217_v26, %v1212_v25  ;;  %v1571_v26 = vrot.slane %v18896_v23, %v22094_v56 }
 0x304   :  { %v18874_v34 = vld [vmem:[%s25827_s6 + $0x3] ss:$0 sm:$0xff] }
 0x305   :  { %v1094_v37 = vmax.f32 %v1093_v33, 0.0 }
 0x307   :  { %20217 = vmatmul.mubr.msk.f32.vlgmr.msra.gmra.mrb[6].mxu1 %vm375_vm1, %v1094_v37 }
 0x308   :  { %1334 = vmatpush1.bf16.xpose.msra.mxu1 %v20665_v35  ;;  %1365 = vmatprep.mubr.bf16.mxu1 %v1257_v6  ;;  %v20695_v6 = vld [vmem:[%s25825_s4 + $0x1bc] ss:$24 sps:$4 sm:$0xff]  }
 0x309   :  { %1335 = vmatprep.subr.bf16.mxu1 %v20673_v38 }
 0x310   :  { %1336 = vmatpush1.bf16.xpose.msra.mxu1 %v20671_v40  ;;  %v1407_v50 = vpop.f32.mrb[24].mxu0 }
 0x311   :  { %1413 = vmatprep.subr.bf16.mxu1 %v20679_v43  ;;  %v1409_v53 = vpop.f32.mrb[25].mxu0  ;;  %v20684_v43 = vld [vmem:[%s25825_s4 + $0x180] ss:$24 sps:$4 sm:$0xff]  }
 0x312   :  { %v1410_v59 = vpop.f32.mrb[26].mxu0  ;;  %v20701_v53 = vld [vmem:[%s25825_s4 + $0x1c4] ss:$24 sps:$4 sm:$0xff]  }
 0x313   :  { %v1411_v63 = vpop.f32.mrb[27].mxu0 }
 0x314   :  { %v18912_v63 = vld [vmem:[%s25828_s7 + $0x88] sm:$0xff] }
 0x317   :  { %1366 = vmatmul.mubr.bf16.vlgmr.msra.gmra.mrb[20].mxu1 %v1243_v4  ;;  %v20687_v4 = vld [vmem:[%s25825_s4 + $0x188] ss:$24 sps:$4 sm:$0xff]  }
 0x318   :  { %1414 = vmatpush1.bf16.xpose.msra.mxu1 %v20677_v45  ;;  %1445 = vmatprep.mubr.bf16.mxu1 %v1264_v46  ;;  %v20692_v45 = vld [vmem:[%s25825_s4 + $0x1b4] ss:$24 sps:$4 sm:$0xff]   ;;  %v1586_v46 = vcombine.high %v18883_v7, %v18883_v7 }
 0x319   :  { %1415 = vmatprep.subr.bf16.mxu1 %v20682_v47  ;;  %v20690_v47 = vld [vmem:[%s25825_s4 + $0x1b0] ss:$24 sps:$4 sm:$0xff]  }
 0x320   :  { %1416 = vmatpush1.bf16.xpose.msra.mxu1 %v20680_v48  ;;  %v1600_v48 = vrot.slane %v1586_v46, %v22010_v11 }
 0x321   :  { %1739 = vmatprep.subr.bf16.mxu1 %v20689_v3  ;;  %v20475_v3 = vpack.c.bf16 %v18912_v63, %v18911_v62  ;;  %v20715_v62 = vld [vmem:[%s25825_s4 + $0x1f0] ss:$24 sps:$4 sm:$0xff]  }
 0x322   :  { %v1616_v58 = vrot.slane %v1600_v48, %v22010_v11 }
 0x327   :  { %1446 = vmatmul.mubr.bf16.vlgmr.msra.gmra.mrb[24].mxu1 %v1250_v49  ;;  %v20698_v49 = vld [vmem:[%s25825_s4 + $0x194] ss:$24 sps:$4 sm:$0xff]  }
 0x328   :  { %1740 = vmatpush1.bf16.xpose.msra.mxu1 %v20687_v4  ;;  %1771 = vmatprep.mubr.bf16.mxu1 %v1632_v13  ;;  %v18919_v13 = vld [vmem:[%s25852_s27 + $0x1e] sm:$0x3f] }
 0x329   :  { %1741 = vmatprep.subr.bf16.mxu1 %v20695_v6  ;;  %v18914_v6 = vld [vmem:[%s25828_s7 + $0x98] sm:$0xff] }
 0x330   :  { %1742 = vmatpush1.bf16.xpose.msra.mxu1 %v20693_v8  ;;  %v20478_v8 = vpack.c.bf16 %v18914_v6, %v18913_v2  ;;  %v20718_v2 = vld [vmem:[%s25825_s4 + $0x220] ss:$24 sps:$4 sm:$0xff]  }
 0x331   :  { %20474 = vmatprep.subr.bf16.mxu1 %v25846_v36  ;;  %v18947_v6 = vld [vmem:[%s25828_s7 + $0xa0] sm:$0xff] }
 0x337   :  { %1772 = vmatmul.mubr.bf16.vlgmr.msra.gmra.mrb[28].mxu1 %v1631_v14  ;;  %v20712_v14 = vld [vmem:[%s25825_s4 + $0x218] ss:$24 sps:$4 sm:$0xff]  }
 0x338   :  { %20238 = vmatprep.mubr.msk.f32.mxu1 %vm21881_vm0, %v25844_v42  ;;  %20476 = vmatpush3.bf16.msra.mxu1 %v20475_v3 }
 0x339   :  { %20477 = vmatprep.subr.bf16.mxu1 %v25846_v36 }
 0x33c   :  { %20479 = vmatpush3.bf16.msra.mxu1 %v20478_v8 }
 0x33d   :  { %2065 = vmatprep.subr.bf16.mxu1 %v20705_v9  ;;  %v18949_v9 = vld [vmem:[%s25828_s7 + $0xb0] sm:$0xff] }
 0x3da   :  { %v1177_v16 = vpop.f32.mrb[6].mxu1 }
 0x3db   :  { %v1178_v18 = vadd.f32 %v18844_v15, %v1177_v16  ;;  %v20218_v19 = vpop.f32.mrb[7].mxu1  ;;  %v1959_v15 = vrot.slane %v18919_v13, %v22010_v11 }
 0x3dd   :  { %18846 = vst.msk [vmem:[%s25839_s18 + $0x4] sm:$0x3] %vm449_vm2, %v1178_v18  ;;  %v1967_v16 = vcombine.high %v1959_v15, %v1959_v15  ;;  %v1975_v17 = vrot.slane %v1959_v15, %v22010_v11  ;;  %v20724_v15 = vld [vmem:[%s25825_s4 + $0x244] ss:$24 sps:$4 sm:$0xff]  }
 0x3df   :  { %v1989_v18 = vrot.slane %v1967_v16, %v22010_v11  ;;  %v1997_v20 = vcombine.high %v1975_v17, %v1975_v17  ;;  %v20727_v16 = vld [vmem:[%s25825_s4 + $0x24c] ss:$24 sps:$4 sm:$0xff]  }
 0x3e1   :  { %v1998_v19 = vcombine.high %v1989_v18, %v1989_v18 }
 0x3ea   :  { %v1367_v28 = vpop.f32.mrb[20].mxu1 }
 0x3eb   :  { %v1368_v29 = vadd.f32 %v1367_v28, %v1218_v27  ;;  %v1369_v30 = vpop.f32.mrb[21].mxu1  ;;  %v1576_v27 = vrot.slane %v18896_v23, %v22097_v57  ;;  %v1572_v28 = vmul.f32 %v1571_v26, %v22088_v54 }
 0x3ec   :  { %v1370_v31 = vpop.f32.mrb[22].mxu1  ;;  %v1582_v30 = vrot.slane %v18896_v23, %v22102_v60 }
 0x3ed   :  { %v1408_v32 = vadd.f32 %v1407_v50, %v1368_v29  ;;  %v1371_v33 = vpop.f32.mrb[23].mxu1  ;;  %v1602_v50 = vcombine.high %v1600_v48, %v1600_v48  ;;  %v1577_v29 = vmul.f32 %v1576_v27, %v22104_v61  ;;  %v18916_v27 = vld [vmem:[%s25829_s8 + $0x4] ss:$0 sm:$0xff] }
 0x3ef   :  { %v1630_v52 = vrot.slane %v1602_v50, %v22010_v11  ;;  %v1578_v31 = vadd.f32 %v1577_v29, %v1572_v28  ;;  %v18932_v29 = vld [vmem:[%s25826_s5 + $0x14] sm:$0x7] }
 0x3fa   :  { %v1447_v35 = vpop.f32.mrb[24].mxu1 }
 0x3fb   :  { %v1448_v37 = vadd.f32 %v1447_v35, %v1408_v32  ;;  %v1449_v38 = vpop.f32.mrb[25].mxu1  ;;  %v1583_v32 = vmul.f32 %v1582_v30, %v22109_v1 }
 0x3fc   :  { %v1450_v39 = vpop.f32.mrb[26].mxu1 }
 0x3fd   :  { %v1459_v40 = vadd.f32 %v18874_v34, %v1448_v37  ;;  %v1451_v41 = vpop.f32.mrb[27].mxu1  ;;  %v1584_v33 = vadd.f32 %v1583_v32, %v1578_v31  ;;  %v1937_v32 = vrot.slane %v18932_v29, %v22094_v56 }
 0x3fe   :  { %v18910_v41 = vld [vmem:[%s25827_s6 + $0x4] ss:$0 sm:$0xff] }
 0x3ff   :  { %v1460_v44 = vmax.f32 %v1459_v40, 0.0 }
 0x401   :  { %20228 = vmatmul.mubr.msk.f32.vlgmr.msra.gmra.mrb[14].mxu0 %vm375_vm1, %v1460_v44 }
 0x402   :  { %1700 = vmatpush1.bf16.xpose.msra.mxu0 %v20684_v43  ;;  %1731 = vmatprep.mubr.bf16.mxu0 %v1623_v12  ;;  %v20714_v12 = vld [vmem:[%s25825_s4 + $0x21c] ss:$24 sps:$4 sm:$0xff]  }
 0x403   :  { %1701 = vmatprep.subr.bf16.mxu0 %v20692_v45 }
 0x40a   :  { %1702 = vmatpush1.bf16.xpose.msra.mxu0 %v20690_v47  ;;  %v1773_v59 = vpop.f32.mrb[28].mxu1 }
 0x40b   :  { %1779 = vmatprep.subr.bf16.mxu0 %v20698_v49  ;;  %v1775_v0 = vpop.f32.mrb[29].mxu1  ;;  %v20703_v49 = vld [vmem:[%s25825_s4 + $0x1e0] ss:$24 sps:$4 sm:$0xff]  }
 0x40c   :  { %v1776_v4 = vpop.f32.mrb[30].mxu1  ;;  %v20720_v0 = vld [vmem:[%s25825_s4 + $0x224] ss:$24 sps:$4 sm:$0xff]  }
 0x40d   :  { %v1777_v7 = vpop.f32.mrb[31].mxu1 }
 0x40e   :  { %v18948_v7 = vld [vmem:[%s25828_s7 + $0xa8] sm:$0xff] }
 0x411   :  { %1732 = vmatmul.mubr.bf16.vlgmr.msra.gmra.mrb[28].mxu0 %v1609_v10  ;;  %v20706_v10 = vld [vmem:[%s25825_s4 + $0x1e8] ss:$24 sps:$4 sm:$0xff]  }
 0x412   :  { %1780 = vmatpush1.bf16.xpose.msra.mxu0 %v20696_v51  ;;  %1811 = vmatprep.mubr.bf16.mxu0 %v1630_v52  ;;  %v20711_v51 = vld [vmem:[%s25825_s4 + $0x214] ss:$24 sps:$4 sm:$0xff]   ;;  %v1952_v52 = vcombine.high %v18919_v13, %v18919_v13 }
 0x413   :  { %1781 = vmatprep.subr.bf16.mxu0 %v20701_v53  ;;  %v20709_v53 = vld [vmem:[%s25825_s4 + $0x210] ss:$24 sps:$4 sm:$0xff]  }
 0x41a   :  { %1782 = vmatpush1.bf16.xpose.msra.mxu0 %v20699_v55  ;;  %v1966_v55 = vrot.slane %v1952_v52, %v22010_v11 }
 0x41b   :  { %2105 = vmatprep.subr.bf16.mxu0 %v20708_v5  ;;  %v20481_v5 = vpack.c.bf16 %v18948_v7, %v18947_v6  ;;  %v20734_v6 = vld [vmem:[%s25825_s4 + $0x250] ss:$24 sps:$4 sm:$0xff]  }
 0x41c   :  { %v1982_v3 = vrot.slane %v1966_v55, %v22010_v11 }
 0x421   :  { %1812 = vmatmul.mubr.bf16.vlgmr.msra.gmra.mrb[32].mxu0 %v1616_v58  ;;  %v20717_v58 = vld [vmem:[%s25825_s4 + $0x1f4] ss:$24 sps:$4 sm:$0xff]  }
 0x422   :  { %2106 = vmatpush1.bf16.xpose.msra.mxu0 %v20706_v10  ;;  %2137 = vmatprep.mubr.bf16.mxu0 %v1998_v19  ;;  %v18955_v19 = vld [vmem:[%s25852_s27 + $0x24] sm:$0x3f] }
 0x423   :  { %2107 = vmatprep.subr.bf16.mxu0 %v20714_v12  ;;  %v18950_v12 = vld [vmem:[%s25828_s7 + $0xb8] sm:$0xff] }
 0x42a   :  { %2108 = vmatpush1.bf16.xpose.msra.mxu0 %v20712_v14  ;;  %v20484_v14 = vpack.c.bf16 %v18950_v12, %v18949_v9  ;;  %v20737_v9 = vld [vmem:[%s25825_s4 + $0x280] ss:$24 sps:$4 sm:$0xff]  }
 0x42b   :  { %20480 = vmatprep.subr.bf16.mxu0 %v25846_v36  ;;  %v18983_v12 = vld [vmem:[%s25828_s7 + $0xc0] sm:$0xff] }
 0x431   :  { %2138 = vmatmul.mubr.bf16.vlgmr.msra.gmra.mrb[36].mxu0 %v1997_v20  ;;  %v20731_v20 = vld [vmem:[%s25825_s4 + $0x278] ss:$24 sps:$4 sm:$0xff]  }
 0x432   :  { %20249 = vmatprep.mubr.msk.f32.mxu0 %vm21881_vm0, %v25844_v42  ;;  %20482 = vmatpush3.bf16.msra.mxu0 %v20481_v5 }
 0x433   :  { %20483 = vmatprep.subr.bf16.mxu0 %v25846_v36 }
 0x436   :  { %20485 = vmatpush3.bf16.msra.mxu0 %v20484_v14 }
 0x437   :  { %2431 = vmatprep.subr.bf16.mxu0 %v20724_v15  ;;  %v18985_v15 = vld [vmem:[%s25828_s7 + $0xd0] sm:$0xff] }
 0x4d4   :  { %v1543_v22 = vpop.f32.mrb[14].mxu0 }
 0x4d5   :  { %v1544_v24 = vadd.f32 %v18880_v21, %v1543_v22  ;;  %v20229_v25 = vpop.f32.mrb[15].mxu0  ;;  %v2325_v21 = vrot.slane %v18955_v19, %v22010_v11 }
 0x4d7   :  { %18882 = vst.msk [vmem:[%s25839_s18 + $0x6] sm:$0x3] %vm449_vm2, %v1544_v24  ;;  %v2333_v22 = vcombine.high %v2325_v21, %v2325_v21  ;;  %v2341_v23 = vrot.slane %v2325_v21, %v22010_v11  ;;  %v20743_v21 = vld [vmem:[%s25825_s4 + $0x2a4] ss:$24 sps:$4 sm:$0xff]  }
 0x4d9   :  { %v2355_v24 = vrot.slane %v2333_v22, %v22010_v11  ;;  %v2363_v26 = vcombine.high %v2341_v23, %v2341_v23  ;;  %v20746_v22 = vld [vmem:[%s25825_s4 + $0x2ac] ss:$24 sps:$4 sm:$0xff]  }
 0x4db   :  { %v2364_v25 = vcombine.high %v2355_v24, %v2355_v24 }
 0x4e4   :  { %v1733_v34 = vpop.f32.mrb[28].mxu0 }
 0x4e5   :  { %v1734_v35 = vadd.f32 %v1733_v34, %v1584_v33  ;;  %v1735_v37 = vpop.f32.mrb[29].mxu0  ;;  %v1942_v33 = vrot.slane %v18932_v29, %v22097_v57  ;;  %v1938_v34 = vmul.f32 %v1937_v32, %v22088_v54 }
 0x4e6   :  { %v1736_v38 = vpop.f32.mrb[30].mxu0  ;;  %v1948_v37 = vrot.slane %v18932_v29, %v22102_v60 }
 0x4e7   :  { %v1774_v39 = vadd.f32 %v1773_v59, %v1734_v35  ;;  %v1737_v40 = vpop.f32.mrb[31].mxu0  ;;  %v1968_v59 = vcombine.high %v1966_v55, %v1966_v55  ;;  %v1943_v35 = vmul.f32 %v1942_v33, %v22104_v61  ;;  %v18952_v33 = vld [vmem:[%s25829_s8 + $0x5] ss:$0 sm:$0xff] }
 0x4e9   :  { %v1996_v63 = vrot.slane %v1968_v59, %v22010_v11  ;;  %v1944_v38 = vadd.f32 %v1943_v35, %v1938_v34  ;;  %v18968_v35 = vld [vmem:[%s25826_s5 + $0x18] sm:$0x7] }
 0x4f4   :  { %v1813_v43 = vpop.f32.mrb[32].mxu0 }
 0x4f5   :  { %v1814_v44 = vadd.f32 %v1813_v43, %v1774_v39  ;;  %v1815_v45 = vpop.f32.mrb[33].mxu0  ;;  %v1949_v39 = vmul.f32 %v1948_v37, %v22109_v1 }
 0x4f6   :  { %v1816_v46 = vpop.f32.mrb[34].mxu0 }
 0x4f7   :  { %v1825_v47 = vadd.f32 %v18910_v41, %v1814_v44  ;;  %v1817_v48 = vpop.f32.mrb[35].mxu0  ;;  %v1950_v40 = vadd.f32 %v1949_v39, %v1944_v38  ;;  %v2303_v39 = vrot.slane %v18968_v35, %v22094_v56 }
 0x4f8   :  { %v18946_v48 = vld [vmem:[%s25827_s6 + $0x5] ss:$0 sm:$0xff] }
 0x4f9   :  { %v1826_v50 = vmax.f32 %v1825_v47, 0.0 }
 0x4fb   :  { %20239 = vmatmul.mubr.msk.f32.vlgmr.msra.gmra.mrb[32].mxu1 %vm375_vm1, %v1826_v50 }
 0x4fc   :  { %2066 = vmatpush1.bf16.xpose.msra.mxu1 %v20703_v49  ;;  %2097 = vmatprep.mubr.bf16.mxu1 %v1989_v18  ;;  %v20733_v18 = vld [vmem:[%s25825_s4 + $0x27c] ss:$24 sps:$4 sm:$0xff]  }
 0x4fd   :  { %2067 = vmatprep.subr.bf16.mxu1 %v20711_v51 }
 0x504   :  { %2068 = vmatpush1.bf16.xpose.msra.mxu1 %v20709_v53  ;;  %v2139_v4 = vpop.f32.mrb[36].mxu0 }
 0x505   :  { %2145 = vmatprep.subr.bf16.mxu1 %v20717_v58  ;;  %v2141_v8 = vpop.f32.mrb[37].mxu0  ;;  %v20722_v58 = vld [vmem:[%s25825_s4 + $0x240] ss:$24 sps:$4 sm:$0xff]  }
 0x506   :  { %v2142_v10 = vpop.f32.mrb[38].mxu0  ;;  %v20739_v8 = vld [vmem:[%s25825_s4 + $0x284] ss:$24 sps:$4 sm:$0xff]  }
 0x507   :  { %v2143_v13 = vpop.f32.mrb[39].mxu0 }
 0x508   :  { %v18984_v13 = vld [vmem:[%s25828_s7 + $0xc8] sm:$0xff] }
 0x50b   :  { %2098 = vmatmul.mubr.bf16.vlgmr.msra.gmra.mrb[36].mxu1 %v1975_v17  ;;  %v20725_v17 = vld [vmem:[%s25825_s4 + $0x248] ss:$24 sps:$4 sm:$0xff]  }
 0x50c   :  { %2146 = vmatpush1.bf16.xpose.msra.mxu1 %v20715_v62  ;;  %2177 = vmatprep.mubr.bf16.mxu1 %v1996_v63  ;;  %v20730_v62 = vld [vmem:[%s25825_s4 + $0x274] ss:$24 sps:$4 sm:$0xff]   ;;  %v2318_v63 = vcombine.high %v18955_v19, %v18955_v19 }
 0x50d   :  { %2147 = vmatprep.subr.bf16.mxu1 %v20720_v0  ;;  %v20728_v0 = vld [vmem:[%s25825_s4 + $0x270] ss:$24 sps:$4 sm:$0xff]  }
 0x514   :  { %2148 = vmatpush1.bf16.xpose.msra.mxu1 %v20718_v2  ;;  %v2332_v2 = vrot.slane %v2318_v63, %v22010_v11 }
 0x515   :  { %2471 = vmatprep.subr.bf16.mxu1 %v20727_v16  ;;  %v20487_v16 = vpack.c.bf16 %v18984_v13, %v18983_v12  ;;  %v20753_v12 = vld [vmem:[%s25825_s4 + $0x2b0] ss:$24 sps:$4 sm:$0xff]  }
 0x516   :  { %v2348_v5 = vrot.slane %v2332_v2, %v22010_v11 }
 0x51b   :  { %2178 = vmatmul.mubr.bf16.vlgmr.msra.gmra.mrb[40].mxu1 %v1982_v3  ;;  %v20736_v3 = vld [vmem:[%s25825_s4 + $0x254] ss:$24 sps:$4 sm:$0xff]  }
 0x51c   :  { %2472 = vmatpush1.bf16.xpose.msra.mxu1 %v20725_v17  ;;  %2503 = vmatprep.mubr.bf16.mxu1 %v2364_v25  ;;  %v18991_v25 = vld [vmem:[%s25852_s27 + $0x2a] sm:$0x3f] }
 0x51d   :  { %2473 = vmatprep.subr.bf16.mxu1 %v20733_v18  ;;  %v18986_v18 = vld [vmem:[%s25828_s7 + $0xd8] sm:$0xff] }
 0x524   :  { %2474 = vmatpush1.bf16.xpose.msra.mxu1 %v20731_v20  ;;  %v20490_v20 = vpack.c.bf16 %v18986_v18, %v18985_v15  ;;  %v20756_v15 = vld [vmem:[%s25825_s4 + $0x2e0] ss:$24 sps:$4 sm:$0xff]  }
 0x525   :  { %20486 = vmatprep.subr.bf16.mxu1 %v25846_v36  ;;  %v19019_v18 = vld [vmem:[%s25828_s7 + $0xe0] sm:$0xff] }
 0x52b   :  { %2504 = vmatmul.mubr.bf16.vlgmr.msra.gmra.mrb[44].mxu1 %v2363_v26  ;;  %v20750_v26 = vld [vmem:[%s25825_s4 + $0x2d8] ss:$24 sps:$4 sm:$0xff]  }
 0x52c   :  { %20260 = vmatprep.mubr.msk.f32.mxu1 %vm21881_vm0, %v25844_v42  ;;  %20488 = vmatpush3.bf16.msra.mxu1 %v20487_v16 }
 0x52d   :  { %20489 = vmatprep.subr.bf16.mxu1 %v25846_v36 }
 0x530   :  { %20491 = vmatpush3.bf16.msra.mxu1 %v20490_v20 }
 0x531   :  { %2797 = vmatprep.subr.bf16.mxu1 %v20743_v21  ;;  %v19021_v21 = vld [vmem:[%s25828_s7 + $0xf0] sm:$0xff] }
 0x5ce   :  { %v1909_v28 = vpop.f32.mrb[32].mxu1 }
 0x5cf   :  { %v1910_v30 = vadd.f32 %v18916_v27, %v1909_v28  ;;  %v20240_v31 = vpop.f32.mrb[33].mxu1  ;;  %v2691_v27 = vrot.slane %v18991_v25, %v22010_v11 }
 0x5d1   :  { %18918 = vst.msk [vmem:[%s25839_s18 + $0x8] sm:$0x3] %vm449_vm2, %v1910_v30  ;;  %v2699_v28 = vcombine.high %v2691_v27, %v2691_v27  ;;  %v2707_v29 = vrot.slane %v2691_v27, %v22010_v11  ;;  %v20762_v27 = vld [vmem:[%s25825_s4 + $0x304] ss:$24 sps:$4 sm:$0xff]  }
 0x5d3   :  { %v2721_v30 = vrot.slane %v2699_v28, %v22010_v11  ;;  %v2729_v32 = vcombine.high %v2707_v29, %v2707_v29  ;;  %v20765_v28 = vld [vmem:[%s25825_s4 + $0x30c] ss:$24 sps:$4 sm:$0xff]  }
 0x5d5   :  { %v2730_v31 = vcombine.high %v2721_v30, %v2721_v30 }
 0x5de   :  { %v2099_v41 = vpop.f32.mrb[36].mxu1 }
 0x5df   :  { %v2100_v43 = vadd.f32 %v2099_v41, %v1950_v40  ;;  %v2101_v44 = vpop.f32.mrb[37].mxu1  ;;  %v2308_v40 = vrot.slane %v18968_v35, %v22097_v57  ;;  %v2304_v41 = vmul.f32 %v2303_v39, %v22088_v54 }
 0x5e0   :  { %v2102_v45 = vpop.f32.mrb[38].mxu1  ;;  %v2314_v44 = vrot.slane %v18968_v35, %v22102_v60 }
 0x5e1   :  { %v2140_v46 = vadd.f32 %v2139_v4, %v2100_v43  ;;  %v2103_v47 = vpop.f32.mrb[39].mxu1  ;;  %v2334_v4 = vcombine.high %v2332_v2, %v2332_v2  ;;  %v2309_v43 = vmul.f32 %v2308_v40, %v22104_v61  ;;  %v18988_v40 = vld [vmem:[%s25829_s8 + $0x6] ss:$0 sm:$0xff] }
 0x5e3   :  { %v2362_v7 = vrot.slane %v2334_v4, %v22010_v11  ;;  %v2310_v45 = vadd.f32 %v2309_v43, %v2304_v41  ;;  %v19004_v43 = vld [vmem:[%s25826_s5 + $0x1c] sm:$0x7] }
 0x5ee   :  { %v2179_v49 = vpop.f32.mrb[40].mxu1 }
 0x5ef   :  { %v2180_v50 = vadd.f32 %v2179_v49, %v2140_v46  ;;  %v2181_v51 = vpop.f32.mrb[41].mxu1  ;;  %v2315_v46 = vmul.f32 %v2314_v44, %v22109_v1 }
 0x5f0   :  { %v2182_v52 = vpop.f32.mrb[42].mxu1 }
 0x5f1   :  { %v2191_v53 = vadd.f32 %v18946_v48, %v2180_v50  ;;  %v2183_v55 = vpop.f32.mrb[43].mxu1  ;;  %v2316_v47 = vadd.f32 %v2315_v46, %v2310_v45  ;;  %v2669_v46 = vrot.slane %v19004_v43, %v22094_v56 }
 0x5f2   :  { %v18982_v55 = vld [vmem:[%s25827_s6 + $0x6] ss:$0 sm:$0xff] }
 0x5f3   :  { %v2192_v59 = vmax.f32 %v2191_v53, 0.0 }
 0x5f5   :  { %20250 = vmatmul.mubr.msk.f32.vlgmr.msra.gmra.mrb[40].mxu0 %vm375_vm1, %v2192_v59 }
 0x5f6   :  { %2432 = vmatpush1.bf16.xpose.msra.mxu0 %v20722_v58  ;;  %2463 = vmatprep.mubr.bf16.mxu0 %v2355_v24  ;;  %v20752_v24 = vld [vmem:[%s25825_s4 + $0x2dc] ss:$24 sps:$4 sm:$0xff]  }
 0x5f7   :  { %2433 = vmatprep.subr.bf16.mxu0 %v20730_v62 }
 0x5fe   :  { %2434 = vmatpush1.bf16.xpose.msra.mxu0 %v20728_v0  ;;  %v2505_v10 = vpop.f32.mrb[44].mxu1 }
 0x5ff   :  { %2511 = vmatprep.subr.bf16.mxu0 %v20736_v3  ;;  %v2507_v14 = vpop.f32.mrb[45].mxu1  ;;  %v20741_v3 = vld [vmem:[%s25825_s4 + $0x2a0] ss:$24 sps:$4 sm:$0xff]  }
 0x600   :  { %v2508_v17 = vpop.f32.mrb[46].mxu1  ;;  %v20758_v14 = vld [vmem:[%s25825_s4 + $0x2e4] ss:$24 sps:$4 sm:$0xff]  }
 0x601   :  { %v2509_v19 = vpop.f32.mrb[47].mxu1 }
 0x602   :  { %v19020_v19 = vld [vmem:[%s25828_s7 + $0xe8] sm:$0xff] }
 0x605   :  { %2464 = vmatmul.mubr.bf16.vlgmr.msra.gmra.mrb[44].mxu0 %v2341_v23  ;;  %v20744_v23 = vld [vmem:[%s25825_s4 + $0x2a8] ss:$24 sps:$4 sm:$0xff]  }
 0x606   :  { %2512 = vmatpush1.bf16.xpose.msra.mxu0 %v20734_v6  ;;  %2543 = vmatprep.mubr.bf16.mxu0 %v2362_v7  ;;  %v20749_v6 = vld [vmem:[%s25825_s4 + $0x2d4] ss:$24 sps:$4 sm:$0xff]   ;;  %v2684_v7 = vcombine.high %v18991_v25, %v18991_v25 }
 0x607   :  { %2513 = vmatprep.subr.bf16.mxu0 %v20739_v8  ;;  %v20747_v8 = vld [vmem:[%s25825_s4 + $0x2d0] ss:$24 sps:$4 sm:$0xff]  }
 0x60e   :  { %2514 = vmatpush1.bf16.xpose.msra.mxu0 %v20737_v9  ;;  %v2698_v9 = vrot.slane %v2684_v7, %v22010_v11 }
 0x60f   :  { %2837 = vmatprep.subr.bf16.mxu0 %v20746_v22  ;;  %v20493_v22 = vpack.c.bf16 %v19020_v19, %v19019_v18  ;;  %v20772_v18 = vld [vmem:[%s25825_s4 + $0x310] ss:$24 sps:$4 sm:$0xff]  }
 0x610   :  { %v2714_v16 = vrot.slane %v2698_v9, %v22010_v11 }
 0x615   :  { %2544 = vmatmul.mubr.bf16.vlgmr.msra.gmra.mrb[48].mxu0 %v2348_v5  ;;  %v20755_v5 = vld [vmem:[%s25825_s4 + $0x2b4] ss:$24 sps:$4 sm:$0xff]  }
 0x616   :  { %2838 = vmatpush1.bf16.xpose.msra.mxu0 %v20744_v23  ;;  %2869 = vmatprep.mubr.bf16.mxu0 %v2730_v31  ;;  %v19027_v31 = vld [vmem:[%s25852_s27 + $0x30] sm:$0x3f] }
 0x617   :  { %2839 = vmatprep.subr.bf16.mxu0 %v20752_v24  ;;  %v19022_v24 = vld [vmem:[%s25828_s7 + $0xf8] sm:$0xff] }
 0x61e   :  { %2840 = vmatpush1.bf16.xpose.msra.mxu0 %v20750_v26  ;;  %v20496_v26 = vpack.c.bf16 %v19022_v24, %v19021_v21  ;;  %v20775_v21 = vld [vmem:[%s25825_s4 + $0x340] ss:$24 sps:$4 sm:$0xff]  }
 0x61f   :  { %20492 = vmatprep.subr.bf16.mxu0 %v25846_v36  ;;  %v19055_v24 = vld [vmem:[%s25828_s7 + $0x100] sm:$0xff] }
 0x625   :  { %2870 = vmatmul.mubr.bf16.vlgmr.msra.gmra.mrb[52].mxu0 %v2729_v32  ;;  %v20769_v32 = vld [vmem:[%s25825_s4 + $0x338] ss:$24 sps:$4 sm:$0xff]  }
 0x626   :  { %20271 = vmatprep.mubr.msk.f32.mxu0 %vm21881_vm0, %v25844_v42  ;;  %20494 = vmatpush3.bf16.msra.mxu0 %v20493_v22 }
 0x627   :  { %20495 = vmatprep.subr.bf16.mxu0 %v25846_v36 }
 0x62a   :  { %20497 = vmatpush3.bf16.msra.mxu0 %v20496_v26 }
 0x62b   :  { %3163 = vmatprep.subr.bf16.mxu0 %v20762_v27  ;;  %v19057_v27 = vld [vmem:[%s25828_s7 + $0x110] sm:$0xff] }
 0x6c8   :  { %v2275_v34 = vpop.f32.mrb[40].mxu0 }
 0x6c9   :  { %v2276_v37 = vadd.f32 %v18952_v33, %v2275_v34  ;;  %v20251_v38 = vpop.f32.mrb[41].mxu0  ;;  %v3057_v33 = vrot.slane %v19027_v31, %v22010_v11 }
 0x6cb   :  { %18954 = vst.msk [vmem:[%s25839_s18 + $0xa] sm:$0x3] %vm449_vm2, %v2276_v37  ;;  %v3065_v34 = vcombine.high %v3057_v33, %v3057_v33  ;;  %v3073_v35 = vrot.slane %v3057_v33, %v22010_v11  ;;  %v20781_v33 = vld [vmem:[%s25825_s4 + $0x364] ss:$24 sps:$4 sm:$0xff]  }
 0x6cd   :  { %v3087_v37 = vrot.slane %v3065_v34, %v22010_v11  ;;  %v3095_v39 = vcombine.high %v3073_v35, %v3073_v35  ;;  %v20784_v34 = vld [vmem:[%s25825_s4 + $0x36c] ss:$24 sps:$4 sm:$0xff]  }
 0x6cf   :  { %v3096_v38 = vcombine.high %v3087_v37, %v3087_v37 }
 0x6d8   :  { %v2465_v48 = vpop.f32.mrb[44].mxu0 }
 0x6d9   :  { %v2466_v49 = vadd.f32 %v2465_v48, %v2316_v47  ;;  %v2467_v50 = vpop.f32.mrb[45].mxu0  ;;  %v2674_v47 = vrot.slane %v19004_v43, %v22097_v57  ;;  %v2670_v48 = vmul.f32 %v2669_v46, %v22088_v54 }
 0x6da   :  { %v2468_v51 = vpop.f32.mrb[46].mxu0  ;;  %v2680_v50 = vrot.slane %v19004_v43, %v22102_v60 }
 0x6db   :  { %v2506_v52 = vadd.f32 %v2505_v10, %v2466_v49  ;;  %v2469_v53 = vpop.f32.mrb[47].mxu0  ;;  %v2700_v10 = vcombine.high %v2698_v9, %v2698_v9  ;;  %v2675_v49 = vmul.f32 %v2674_v47, %v22104_v61  ;;  %v19024_v47 = vld [vmem:[%s25829_s8 + $0x7] ss:$0 sm:$0xff] }
 0x6dd   :  { %v2728_v13 = vrot.slane %v2700_v10, %v22010_v11  ;;  %v2676_v51 = vadd.f32 %v2675_v49, %v2670_v48  ;;  %v19040_v49 = vld [vmem:[%s25826_s5 + $0x20] sm:$0x7] }
 0x6e8   :  { %v2545_v58 = vpop.f32.mrb[48].mxu0 }
 0x6e9   :  { %v2546_v59 = vadd.f32 %v2545_v58, %v2506_v52  ;;  %v2547_v62 = vpop.f32.mrb[49].mxu0  ;;  %v2681_v52 = vmul.f32 %v2680_v50, %v22109_v1 }
 0x6ea   :  { %v2548_v63 = vpop.f32.mrb[50].mxu0 }
 0x6eb   :  { %v2557_v0 = vadd.f32 %v18982_v55, %v2546_v59  ;;  %v2549_v2 = vpop.f32.mrb[51].mxu0  ;;  %v2682_v53 = vadd.f32 %v2681_v52, %v2676_v51  ;;  %v3035_v52 = vrot.slane %v19040_v49, %v22094_v56 }
 0x6ec   :  { %v19018_v2 = vld [vmem:[%s25827_s6 + $0x7] ss:$0 sm:$0xff] }
 0x6ed   :  { %v2558_v4 = vmax.f32 %v2557_v0, 0.0 }
 0x6ef   :  { %20261 = vmatmul.mubr.msk.f32.vlgmr.msra.gmra.mrb[34].mxu1 %vm375_vm1, %v2558_v4 }
 0x6f0   :  { %2798 = vmatpush1.bf16.xpose.msra.mxu1 %v20741_v3  ;;  %2829 = vmatprep.mubr.bf16.mxu1 %v2721_v30  ;;  %v20771_v30 = vld [vmem:[%s25825_s4 + $0x33c] ss:$24 sps:$4 sm:$0xff]  }
 0x6f1   :  { %2799 = vmatprep.subr.bf16.mxu1 %v20749_v6 }
 0x6f8   :  { %2800 = vmatpush1.bf16.xpose.msra.mxu1 %v20747_v8  ;;  %v2871_v17 = vpop.f32.mrb[52].mxu0 }
 0x6f9   :  { %2877 = vmatprep.subr.bf16.mxu1 %v20755_v5  ;;  %v2873_v20 = vpop.f32.mrb[53].mxu0  ;;  %v20760_v5 = vld [vmem:[%s25825_s4 + $0x300] ss:$24 sps:$4 sm:$0xff]  }
 0x6fa   :  { %v2874_v23 = vpop.f32.mrb[54].mxu0  ;;  %v20777_v20 = vld [vmem:[%s25825_s4 + $0x344] ss:$24 sps:$4 sm:$0xff]  }
 0x6fb   :  { %v2875_v25 = vpop.f32.mrb[55].mxu0 }
 0x6fc   :  { %v19056_v25 = vld [vmem:[%s25828_s7 + $0x108] sm:$0xff] }
 0x6ff   :  { %2830 = vmatmul.mubr.bf16.vlgmr.msra.gmra.mrb[48].mxu1 %v2707_v29  ;;  %v20763_v29 = vld [vmem:[%s25825_s4 + $0x308] ss:$24 sps:$4 sm:$0xff]  }
 0x700   :  { %2878 = vmatpush1.bf16.xpose.msra.mxu1 %v20753_v12  ;;  %2909 = vmatprep.mubr.bf16.mxu1 %v2728_v13  ;;  %v20768_v12 = vld [vmem:[%s25825_s4 + $0x334] ss:$24 sps:$4 sm:$0xff]   ;;  %v3050_v13 = vcombine.high %v19027_v31, %v19027_v31 }
 0x701   :  { %2879 = vmatprep.subr.bf16.mxu1 %v20758_v14  ;;  %v20766_v14 = vld [vmem:[%s25825_s4 + $0x330] ss:$24 sps:$4 sm:$0xff]  }
 0x708   :  { %2880 = vmatpush1.bf16.xpose.msra.mxu1 %v20756_v15  ;;  %v3064_v15 = vrot.slane %v3050_v13, %v22010_v11 }
 0x709   :  { %3203 = vmatprep.subr.bf16.mxu1 %v20765_v28  ;;  %v20499_v28 = vpack.c.bf16 %v19056_v25, %v19055_v24  ;;  %v20791_v24 = vld [vmem:[%s25825_s4 + $0x370] ss:$24 sps:$4 sm:$0xff]  }
 0x70a   :  { %v3080_v22 = vrot.slane %v3064_v15, %v22010_v11 }
 0x70f   :  { %2910 = vmatmul.mubr.bf16.vlgmr.msra.gmra.mrb[52].mxu1 %v2714_v16  ;;  %v20774_v16 = vld [vmem:[%s25825_s4 + $0x314] ss:$24 sps:$4 sm:$0xff]  }
 0x710   :  { %3204 = vmatpush1.bf16.xpose.msra.mxu1 %v20763_v29  ;;  %3235 = vmatprep.mubr.bf16.mxu1 %v3096_v38  ;;  %v19063_v38 = vld [vmem:[%s25852_s27 + $0x36] sm:$0x3f] }
 0x711   :  { %3205 = vmatprep.subr.bf16.mxu1 %v20771_v30  ;;  %v19058_v30 = vld [vmem:[%s25828_s7 + $0x118] sm:$0xff] }
 0x718   :  { %3206 = vmatpush1.bf16.xpose.msra.mxu1 %v20769_v32  ;;  %v20502_v32 = vpack.c.bf16 %v19058_v30, %v19057_v27  ;;  %v20794_v27 = vld [vmem:[%s25825_s4 + $0x3a0] ss:$24 sps:$4 sm:$0xff]  }
 0x719   :  { %20498 = vmatprep.subr.bf16.mxu1 %v25846_v36  ;;  %v19091_v30 = vld [vmem:[%s25828_s7 + $0x120] sm:$0xff] }
 0x71f   :  { %3236 = vmatmul.mubr.bf16.vlgmr.msra.gmra.mrb[56].mxu1 %v3095_v39  ;;  %v20788_v39 = vld [vmem:[%s25825_s4 + $0x398] ss:$24 sps:$4 sm:$0xff]  }
 0x720   :  { %20282 = vmatprep.mubr.msk.f32.mxu1 %vm21881_vm0, %v25844_v42  ;;  %20500 = vmatpush3.bf16.msra.mxu1 %v20499_v28 }
 0x721   :  { %20501 = vmatprep.subr.bf16.mxu1 %v25846_v36 }
 0x724   :  { %20503 = vmatpush3.bf16.msra.mxu1 %v20502_v32 }
 0x725   :  { %3529 = vmatprep.subr.bf16.mxu1 %v20781_v33  ;;  %v19093_v33 = vld [vmem:[%s25828_s7 + $0x130] sm:$0xff] }
 0x7c2   :  { %v2641_v41 = vpop.f32.mrb[34].mxu1 }
 0x7c3   :  { %v2642_v44 = vadd.f32 %v18988_v40, %v2641_v41  ;;  %v20262_v45 = vpop.f32.mrb[35].mxu1  ;;  %v3423_v40 = vrot.slane %v19063_v38, %v22010_v11 }
 0x7c5   :  { %18990 = vst.msk [vmem:[%s25839_s18 + $0xc] sm:$0x3] %vm449_vm2, %v2642_v44  ;;  %v3431_v41 = vcombine.high %v3423_v40, %v3423_v40  ;;  %v3439_v43 = vrot.slane %v3423_v40, %v22010_v11  ;;  %v20800_v40 = vld [vmem:[%s25825_s4 + $0x3c4] ss:$24 sps:$4 sm:$0xff]  }
 0x7c7   :  { %v3453_v44 = vrot.slane %v3431_v41, %v22010_v11  ;;  %v3461_v46 = vcombine.high %v3439_v43, %v3439_v43  ;;  %v20803_v41 = vld [vmem:[%s25825_s4 + $0x3cc] ss:$24 sps:$4 sm:$0xff]  }
 0x7c9   :  { %v3462_v45 = vcombine.high %v3453_v44, %v3453_v44 }
 0x7d2   :  { %v2831_v55 = vpop.f32.mrb[48].mxu1 }
 0x7d3   :  { %v2832_v58 = vadd.f32 %v2831_v55, %v2682_v53  ;;  %v2833_v59 = vpop.f32.mrb[49].mxu1  ;;  %v3040_v53 = vrot.slane %v19040_v49, %v22097_v57  ;;  %v3036_v55 = vmul.f32 %v3035_v52, %v22088_v54 }
 0x7d4   :  { %v2834_v62 = vpop.f32.mrb[50].mxu1  ;;  %v3046_v59 = vrot.slane %v19040_v49, %v22102_v60 }
 0x7d5   :  { %v2872_v63 = vadd.f32 %v2871_v17, %v2832_v58  ;;  %v2835_v0 = vpop.f32.mrb[51].mxu1  ;;  %v3066_v17 = vcombine.high %v3064_v15, %v3064_v15  ;;  %v3041_v58 = vmul.f32 %v3040_v53, %v22104_v61  ;;  %v19060_v53 = vld [vmem:[%s25829_s8 + $0x8] ss:$0 sm:$0xff] }
 0x7d7   :  { %v3094_v19 = vrot.slane %v3066_v17, %v22010_v11  ;;  %v3042_v62 = vadd.f32 %v3041_v58, %v3036_v55  ;;  %v19076_v58 = vld [vmem:[%s25826_s5 + $0x24] sm:$0x7] }
 0x7e2   :  { %v2911_v3 = vpop.f32.mrb[52].mxu1 }
 0x7e3   :  { %v2912_v4 = vadd.f32 %v2911_v3, %v2872_v63  ;;  %v2913_v6 = vpop.f32.mrb[53].mxu1  ;;  %v3047_v63 = vmul.f32 %v3046_v59, %v22109_v1 }
 0x7e4   :  { %v2914_v7 = vpop.f32.mrb[54].mxu1 }
 0x7e5   :  { %v2923_v8 = vadd.f32 %v19018_v2, %v2912_v4  ;;  %v2915_v9 = vpop.f32.mrb[55].mxu1  ;;  %v3048_v0 = vadd.f32 %v3047_v63, %v3042_v62  ;;  %v3401_v63 = vrot.slane %v19076_v58, %v22094_v56 }
 0x7e6   :  { %v19054_v9 = vld [vmem:[%s25827_s6 + $0x8] ss:$0 sm:$0xff] }
 0x7e7   :  { %v2924_v10 = vmax.f32 %v2923_v8, 0.0 }
 0x7e9   :  { %20272 = vmatmul.mubr.msk.f32.vlgmr.msra.gmra.mrb[42].mxu0 %vm375_vm1, %v2924_v10 }
 0x7ea   :  { %3164 = vmatpush1.bf16.xpose.msra.mxu0 %v20760_v5  ;;  %3195 = vmatprep.mubr.bf16.mxu0 %v3087_v37  ;;  %v20790_v37 = vld [vmem:[%s25825_s4 + $0x39c] ss:$24 sps:$4 sm:$0xff]  }
 0x7eb   :  { %3165 = vmatprep.subr.bf16.mxu0 %v20768_v12 }
 0x7f2   :  { %3166 = vmatpush1.bf16.xpose.msra.mxu0 %v20766_v14  ;;  %v3237_v23 = vpop.f32.mrb[56].mxu1 }
 0x7f3   :  { %3243 = vmatprep.subr.bf16.mxu0 %v20774_v16  ;;  %v3239_v26 = vpop.f32.mrb[57].mxu1  ;;  %v20779_v16 = vld [vmem:[%s25825_s4 + $0x360] ss:$24 sps:$4 sm:$0xff]  }
 0x7f4   :  { %v3240_v29 = vpop.f32.mrb[58].mxu1  ;;  %v20796_v26 = vld [vmem:[%s25825_s4 + $0x3a4] ss:$24 sps:$4 sm:$0xff]  }
 0x7f5   :  { %v3241_v31 = vpop.f32.mrb[59].mxu1 }
 0x7f6   :  { %v19092_v31 = vld [vmem:[%s25828_s7 + $0x128] sm:$0xff] }
 0x7f9   :  { %3196 = vmatmul.mubr.bf16.vlgmr.msra.gmra.mrb[56].mxu0 %v3073_v35  ;;  %v20782_v35 = vld [vmem:[%s25825_s4 + $0x368] ss:$24 sps:$4 sm:$0xff]  }
 0x7fa   :  { %3244 = vmatpush1.bf16.xpose.msra.mxu0 %v20772_v18  ;;  %3275 = vmatprep.mubr.bf16.mxu0 %v3094_v19  ;;  %v20787_v18 = vld [vmem:[%s25825_s4 + $0x394] ss:$24 sps:$4 sm:$0xff]   ;;  %v3416_v19 = vcombine.high %v19063_v38, %v19063_v38 }
 0x7fb   :  { %3245 = vmatprep.subr.bf16.mxu0 %v20777_v20  ;;  %v20785_v20 = vld [vmem:[%s25825_s4 + $0x390] ss:$24 sps:$4 sm:$0xff]  }
 0x802   :  { %3246 = vmatpush1.bf16.xpose.msra.mxu0 %v20775_v21  ;;  %v3430_v21 = vrot.slane %v3416_v19, %v22010_v11 }
 0x803   :  { %3569 = vmatprep.subr.bf16.mxu0 %v20784_v34  ;;  %v20505_v34 = vpack.c.bf16 %v19092_v31, %v19091_v30  ;;  %v20810_v30 = vld [vmem:[%s25825_s4 + $0x3d0] ss:$24 sps:$4 sm:$0xff]  }
 0x804   :  { %v3446_v28 = vrot.slane %v3430_v21, %v22010_v11 }
 0x809   :  { %3276 = vmatmul.mubr.bf16.vlgmr.msra.gmra.mrb[60].mxu0 %v3080_v22  ;;  %v20793_v22 = vld [vmem:[%s25825_s4 + $0x374] ss:$24 sps:$4 sm:$0xff]  }
 0x80a   :  { %3570 = vmatpush1.bf16.xpose.msra.mxu0 %v20782_v35  ;;  %3601 = vmatprep.mubr.bf16.mxu0 %v3462_v45  ;;  %v19099_v45 = vld [vmem:[%s25852_s27 + $0x3c] sm:$0x3f] }
 0x80b   :  { %3571 = vmatprep.subr.bf16.mxu0 %v20790_v37  ;;  %v19094_v37 = vld [vmem:[%s25828_s7 + $0x138] sm:$0xff] }
 0x812   :  { %3572 = vmatpush1.bf16.xpose.msra.mxu0 %v20788_v39  ;;  %v20508_v39 = vpack.c.bf16 %v19094_v37, %v19093_v33  ;;  %v20813_v33 = vld [vmem:[%s25825_s4 + $0x400] ss:$24 sps:$4 sm:$0xff]  }
 0x813   :  { %20504 = vmatprep.subr.bf16.mxu0 %v25846_v36  ;;  %v19127_v37 = vld [vmem:[%s25828_s7 + $0x140] sm:$0xff] }
 0x819   :  { %3602 = vmatmul.mubr.bf16.vlgmr.msra.gmra.mrb[64].mxu0 %v3461_v46  ;;  %v20807_v46 = vld [vmem:[%s25825_s4 + $0x3f8] ss:$24 sps:$4 sm:$0xff]  }
 0x81a   :  { %20293 = vmatprep.mubr.msk.f32.mxu0 %vm21881_vm0, %v25844_v42  ;;  %20506 = vmatpush3.bf16.msra.mxu0 %v20505_v34 }
 0x81b   :  { %20507 = vmatprep.subr.bf16.mxu0 %v25846_v36 }
 0x81e   :  { %20509 = vmatpush3.bf16.msra.mxu0 %v20508_v39 }
 0x81f   :  { %3895 = vmatprep.subr.bf16.mxu0 %v20800_v40  ;;  %v19129_v40 = vld [vmem:[%s25828_s7 + $0x150] sm:$0xff] }
 0x8bc   :  { %v3007_v48 = vpop.f32.mrb[42].mxu0 }
 0x8bd   :  { %v3008_v50 = vadd.f32 %v19024_v47, %v3007_v48  ;;  %v20273_v51 = vpop.f32.mrb[43].mxu0  ;;  %v3789_v47 = vrot.slane %v19099_v45, %v22010_v11 }
 0x8bf   :  { %19026 = vst.msk [vmem:[%s25839_s18 + $0xe] sm:$0x3] %vm449_vm2, %v3008_v50  ;;  %v3797_v48 = vcombine.high %v3789_v47, %v3789_v47  ;;  %v3805_v49 = vrot.slane %v3789_v47, %v22010_v11  ;;  %v20819_v47 = vld [vmem:[%s25825_s4 + $0x424] ss:$24 sps:$4 sm:$0xff]  }
 0x8c1   :  { %v3819_v50 = vrot.slane %v3797_v48, %v22010_v11  ;;  %v3827_v52 = vcombine.high %v3805_v49, %v3805_v49  ;;  %v20822_v48 = vld [vmem:[%s25825_s4 + $0x42c] ss:$24 sps:$4 sm:$0xff]  }
 0x8c3   :  { %v3828_v51 = vcombine.high %v3819_v50, %v3819_v50 }
 0x8cc   :  { %v3197_v2 = vpop.f32.mrb[56].mxu0 }
 0x8cd   :  { %v3198_v3 = vadd.f32 %v3197_v2, %v3048_v0  ;;  %v3199_v4 = vpop.f32.mrb[57].mxu0  ;;  %v3406_v0 = vrot.slane %v19076_v58, %v22097_v57  ;;  %v3402_v2 = vmul.f32 %v3401_v63, %v22088_v54 }
 0x8ce   :  { %v3200_v6 = vpop.f32.mrb[58].mxu0  ;;  %v3412_v4 = vrot.slane %v19076_v58, %v22102_v60 }
 0x8cf   :  { %v3238_v7 = vadd.f32 %v3237_v23, %v3198_v3  ;;  %v3201_v8 = vpop.f32.mrb[59].mxu0  ;;  %v3432_v23 = vcombine.high %v3430_v21, %v3430_v21  ;;  %v3407_v3 = vmul.f32 %v3406_v0, %v22104_v61  ;;  %v19096_v0 = vld [vmem:[%s25829_s8 + $0x9] ss:$0 sm:$0xff] }
 0x8d1   :  { %v3460_v25 = vrot.slane %v3432_v23, %v22010_v11  ;;  %v3408_v6 = vadd.f32 %v3407_v3, %v3402_v2  ;;  %v19112_v3 = vld [vmem:[%s25826_s5 + $0x28] sm:$0x7] }
 0x8dc   :  { %v3277_v5 = vpop.f32.mrb[60].mxu0 }
 0x8dd   :  { %v3278_v10 = vadd.f32 %v3277_v5, %v3238_v7  ;;  %v3279_v12 = vpop.f32.mrb[61].mxu0  ;;  %v3413_v7 = vmul.f32 %v3412_v4, %v22109_v1 }
 0x8de   :  { %v3280_v13 = vpop.f32.mrb[62].mxu0 }
 0x8df   :  { %v3289_v14 = vadd.f32 %v19054_v9, %v3278_v10  ;;  %v3281_v15 = vpop.f32.mrb[63].mxu0  ;;  %v3414_v8 = vadd.f32 %v3413_v7, %v3408_v6  ;;  %v3767_v7 = vrot.slane %v19112_v3, %v22094_v56 }
 0x8e0   :  { %v19090_v15 = vld [vmem:[%s25827_s6 + $0x9] ss:$0 sm:$0xff] }
 0x8e1   :  { %v3290_v17 = vmax.f32 %v3289_v14, 0.0 }
 0x8e3   :  { %20283 = vmatmul.mubr.msk.f32.vlgmr.msra.gmra.mrb[60].mxu1 %vm375_vm1, %v3290_v17 }
 0x8e4   :  { %3530 = vmatpush1.bf16.xpose.msra.mxu1 %v20779_v16  ;;  %3561 = vmatprep.mubr.bf16.mxu1 %v3453_v44  ;;  %v20809_v44 = vld [vmem:[%s25825_s4 + $0x3fc] ss:$24 sps:$4 sm:$0xff]  }
 0x8e5   :  { %3531 = vmatprep.subr.bf16.mxu1 %v20787_v18 }
 0x8ec   :  { %3532 = vmatpush1.bf16.xpose.msra.mxu1 %v20785_v20  ;;  %v3603_v29 = vpop.f32.mrb[64].mxu0 }
 0x8ed   :  { %3609 = vmatprep.subr.bf16.mxu1 %v20793_v22  ;;  %v3605_v32 = vpop.f32.mrb[65].mxu0  ;;  %v20798_v22 = vld [vmem:[%s25825_s4 + $0x3c0] ss:$24 sps:$4 sm:$0xff]  }
 0x8ee   :  { %v3606_v35 = vpop.f32.mrb[66].mxu0  ;;  %v20815_v32 = vld [vmem:[%s25825_s4 + $0x404] ss:$24 sps:$4 sm:$0xff]  }
 0x8ef   :  { %v3607_v38 = vpop.f32.mrb[67].mxu0 }
 0x8f0   :  { %v19128_v38 = vld [vmem:[%s25828_s7 + $0x148] sm:$0xff] }
 0x8f3   :  { %3562 = vmatmul.mubr.bf16.vlgmr.msra.gmra.mrb[64].mxu1 %v3439_v43  ;;  %v20801_v43 = vld [vmem:[%s25825_s4 + $0x3c8] ss:$24 sps:$4 sm:$0xff]  }
 0x8f4   :  { %3610 = vmatpush1.bf16.xpose.msra.mxu1 %v20791_v24  ;;  %3641 = vmatprep.mubr.bf16.mxu1 %v3460_v25  ;;  %v20806_v24 = vld [vmem:[%s25825_s4 + $0x3f4] ss:$24 sps:$4 sm:$0xff]   ;;  %v3782_v25 = vcombine.high %v19099_v45, %v19099_v45 }
 0x8f5   :  { %3611 = vmatprep.subr.bf16.mxu1 %v20796_v26  ;;  %v20804_v26 = vld [vmem:[%s25825_s4 + $0x3f0] ss:$24 sps:$4 sm:$0xff]  }
 0x8fc   :  { %3612 = vmatpush1.bf16.xpose.msra.mxu1 %v20794_v27  ;;  %v3796_v27 = vrot.slane %v3782_v25, %v22010_v11 }
 0x8fd   :  { %3935 = vmatprep.subr.bf16.mxu1 %v20803_v41  ;;  %v20511_v41 = vpack.c.bf16 %v19128_v38, %v19127_v37  ;;  %v20829_v37 = vld [vmem:[%s25825_s4 + $0x430] ss:$24 sps:$4 sm:$0xff]  }
 0x8fe   :  { %v3812_v34 = vrot.slane %v3796_v27, %v22010_v11 }
 0x903   :  { %3642 = vmatmul.mubr.bf16.vlgmr.msra.gmra.mrb[68].mxu1 %v3446_v28  ;;  %v20812_v28 = vld [vmem:[%s25825_s4 + $0x3d4] ss:$24 sps:$4 sm:$0xff]  }
 0x904   :  { %3936 = vmatpush1.bf16.xpose.msra.mxu1 %v20801_v43  ;;  %3967 = vmatprep.mubr.bf16.mxu1 %v3828_v51  ;;  %v19135_v51 = vld [vmem:[%s25852_s27 + $0x42] sm:$0x3f] }
 0x905   :  { %3937 = vmatprep.subr.bf16.mxu1 %v20809_v44  ;;  %v19130_v44 = vld [vmem:[%s25828_s7 + $0x158] sm:$0xff] }
 0x90c   :  { %3938 = vmatpush1.bf16.xpose.msra.mxu1 %v20807_v46  ;;  %v20514_v46 = vpack.c.bf16 %v19130_v44, %v19129_v40  ;;  %v20832_v40 = vld [vmem:[%s25825_s4 + $0x460] ss:$24 sps:$4 sm:$0xff]  }
 0x90d   :  { %20510 = vmatprep.subr.bf16.mxu1 %v25846_v36  ;;  %v19163_v44 = vld [vmem:[%s25828_s7 + $0x160] sm:$0xff] }
 0x913   :  { %3968 = vmatmul.mubr.bf16.vlgmr.msra.gmra.mrb[72].mxu1 %v3827_v52  ;;  %v20826_v52 = vld [vmem:[%s25825_s4 + $0x458] ss:$24 sps:$4 sm:$0xff]  }
 0x914   :  { %20304 = vmatprep.mubr.msk.f32.mxu1 %vm21881_vm0, %v25844_v42  ;;  %20512 = vmatpush3.bf16.msra.mxu1 %v20511_v41 }
 0x915   :  { %20513 = vmatprep.subr.bf16.mxu1 %v25846_v36 }
 0x918   :  { %20515 = vmatpush3.bf16.msra.mxu1 %v20514_v46 }
 0x919   :  { %4261 = vmatprep.subr.bf16.mxu1 %v20819_v47  ;;  %v19165_v47 = vld [vmem:[%s25828_s7 + $0x170] sm:$0xff] }
 0x9b6   :  { %v3373_v55 = vpop.f32.mrb[60].mxu1 }
 0x9b7   :  { %v3374_v59 = vadd.f32 %v19060_v53, %v3373_v55  ;;  %v20284_v62 = vpop.f32.mrb[61].mxu1  ;;  %v4155_v53 = vrot.slane %v19135_v51, %v22010_v11 }
 0x9b9   :  { %19062 = vst.msk [vmem:[%s25839_s18 + $0x10] sm:$0x3] %vm449_vm2, %v3374_v59  ;;  %v4163_v55 = vcombine.high %v4155_v53, %v4155_v53  ;;  %v4171_v58 = vrot.slane %v4155_v53, %v22010_v11  ;;  %v20838_v53 = vld [vmem:[%s25825_s4 + $0x484] ss:$24 sps:$4 sm:$0xff]  }
 0x9bb   :  { %v4185_v59 = vrot.slane %v4163_v55, %v22010_v11  ;;  %v4193_v63 = vcombine.high %v4171_v58, %v4171_v58  ;;  %v20841_v55 = vld [vmem:[%s25825_s4 + $0x48c] ss:$24 sps:$4 sm:$0xff]  }
 0x9bd   :  { %v4194_v62 = vcombine.high %v4185_v59, %v4185_v59 }
 0x9c6   :  { %v3563_v9 = vpop.f32.mrb[64].mxu1 }
 0x9c7   :  { %v3564_v5 = vadd.f32 %v3563_v9, %v3414_v8  ;;  %v3565_v10 = vpop.f32.mrb[65].mxu1  ;;  %v3772_v8 = vrot.slane %v19112_v3, %v22097_v57  ;;  %v3768_v9 = vmul.f32 %v3767_v7, %v22088_v54 }
 0x9c8   :  { %v3566_v12 = vpop.f32.mrb[66].mxu1  ;;  %v3778_v10 = vrot.slane %v19112_v3, %v22102_v60 }
 0x9c9   :  { %v3604_v13 = vadd.f32 %v3603_v29, %v3564_v5  ;;  %v3567_v14 = vpop.f32.mrb[67].mxu1  ;;  %v3798_v29 = vcombine.high %v3796_v27, %v3796_v27  ;;  %v3773_v5 = vmul.f32 %v3772_v8, %v22104_v61  ;;  %v19132_v8 = vld [vmem:[%s25829_s8 + $0xa] ss:$0 sm:$0xff] }
 0x9cb   :  { %v3826_v31 = vrot.slane %v3798_v29, %v22010_v11  ;;  %v3774_v12 = vadd.f32 %v3773_v5, %v3768_v9  ;;  %v19148_v5 = vld [vmem:[%s25826_s5 + $0x2c] sm:$0x7] }
 0x9d6   :  { %v3643_v16 = vpop.f32.mrb[68].mxu1 }
 0x9d7   :  { %v3644_v17 = vadd.f32 %v3643_v16, %v3604_v13  ;;  %v3645_v18 = vpop.f32.mrb[69].mxu1  ;;  %v3779_v13 = vmul.f32 %v3778_v10, %v22109_v1 }
 0x9d8   :  { %v3646_v19 = vpop.f32.mrb[70].mxu1 }
 0x9d9   :  { %v3655_v20 = vadd.f32 %v19090_v15, %v3644_v17  ;;  %v3647_v21 = vpop.f32.mrb[71].mxu1  ;;  %v3780_v14 = vadd.f32 %v3779_v13, %v3774_v12  ;;  %v4133_v13 = vrot.slane %v19148_v5, %v22094_v56 }
 0x9da   :  { %v19126_v21 = vld [vmem:[%s25827_s6 + $0xa] ss:$0 sm:$0xff] }
 0x9db   :  { %v3656_v23 = vmax.f32 %v3655_v20, 0.0 }
 0x9dd   :  { %20294 = vmatmul.mubr.msk.f32.vlgmr.msra.gmra.mrb[68].mxu0 %vm375_vm1, %v3656_v23 }
 0x9de   :  { %3896 = vmatpush1.bf16.xpose.msra.mxu0 %v20798_v22  ;;  %3927 = vmatprep.mubr.bf16.mxu0 %v3819_v50  ;;  %v20828_v50 = vld [vmem:[%s25825_s4 + $0x45c] ss:$24 sps:$4 sm:$0xff]  }
 0x9df   :  { %3897 = vmatprep.subr.bf16.mxu0 %v20806_v24 }
 0x9e6   :  { %3898 = vmatpush1.bf16.xpose.msra.mxu0 %v20804_v26  ;;  %v3969_v35 = vpop.f32.mrb[72].mxu1 }
 0x9e7   :  { %3975 = vmatprep.subr.bf16.mxu0 %v20812_v28  ;;  %v3971_v39 = vpop.f32.mrb[73].mxu1  ;;  %v20817_v28 = vld [vmem:[%s25825_s4 + $0x420] ss:$24 sps:$4 sm:$0xff]  }
 0x9e8   :  { %v3972_v43 = vpop.f32.mrb[74].mxu1  ;;  %v20834_v39 = vld [vmem:[%s25825_s4 + $0x464] ss:$24 sps:$4 sm:$0xff]  }
 0x9e9   :  { %v3973_v45 = vpop.f32.mrb[75].mxu1 }
 0x9ea   :  { %v19164_v45 = vld [vmem:[%s25828_s7 + $0x168] sm:$0xff] }
 0x9ed   :  { %3928 = vmatmul.mubr.bf16.vlgmr.msra.gmra.mrb[72].mxu0 %v3805_v49  ;;  %v20820_v49 = vld [vmem:[%s25825_s4 + $0x428] ss:$24 sps:$4 sm:$0xff]  }
 0x9ee   :  { %3976 = vmatpush1.bf16.xpose.msra.mxu0 %v20810_v30  ;;  %4007 = vmatprep.mubr.bf16.mxu0 %v3826_v31  ;;  %v20825_v30 = vld [vmem:[%s25825_s4 + $0x454] ss:$24 sps:$4 sm:$0xff]   ;;  %v4148_v31 = vcombine.high %v19135_v51, %v19135_v51 }
 0x9ef   :  { %3977 = vmatprep.subr.bf16.mxu0 %v20815_v32  ;;  %v20823_v32 = vld [vmem:[%s25825_s4 + $0x450] ss:$24 sps:$4 sm:$0xff]  }
 0x9f6   :  { %3978 = vmatpush1.bf16.xpose.msra.mxu0 %v20813_v33  ;;  %v4162_v33 = vrot.slane %v4148_v31, %v22010_v11 }
 0x9f7   :  { %4301 = vmatprep.subr.bf16.mxu0 %v20822_v48  ;;  %v20517_v48 = vpack.c.bf16 %v19164_v45, %v19163_v44  ;;  %v20848_v44 = vld [vmem:[%s25825_s4 + $0x490] ss:$24 sps:$4 sm:$0xff]  }
 0x9f8   :  { %v4178_v41 = vrot.slane %v4162_v33, %v22010_v11 }
 0x9fd   :  { %4008 = vmatmul.mubr.bf16.vlgmr.msra.gmra.mrb[76].mxu0 %v3812_v34  ;;  %v20831_v34 = vld [vmem:[%s25825_s4 + $0x434] ss:$24 sps:$4 sm:$0xff]  }
 0x9fe   :  { %4302 = vmatpush1.bf16.xpose.msra.mxu0 %v20820_v49  ;;  %4333 = vmatprep.mubr.bf16.mxu0 %v4194_v62  ;;  %v19171_v62 = vld [vmem:[%s25852_s27 + $0x48] sm:$0x3f] }
 0x9ff   :  { %4303 = vmatprep.subr.bf16.mxu0 %v20828_v50  ;;  %v19166_v50 = vld [vmem:[%s25828_s7 + $0x178] sm:$0xff] }
 0xa06   :  { %4304 = vmatpush1.bf16.xpose.msra.mxu0 %v20826_v52  ;;  %v20520_v52 = vpack.c.bf16 %v19166_v50, %v19165_v47  ;;  %v20851_v47 = vld [vmem:[%s25825_s4 + $0x4c0] ss:$24 sps:$4 sm:$0xff]  }
 0xa07   :  { %20516 = vmatprep.subr.bf16.mxu0 %v25846_v36  ;;  %v19199_v50 = vld [vmem:[%s25828_s7 + $0x180] sm:$0xff] }
 0xa0d   :  { %4334 = vmatmul.mubr.bf16.vlgmr.msra.gmra.mrb[80].mxu0 %v4193_v63  ;;  %v20845_v63 = vld [vmem:[%s25825_s4 + $0x4b8] ss:$24 sps:$4 sm:$0xff]  }
 0xa0e   :  { %20315 = vmatprep.mubr.msk.f32.mxu0 %vm21881_vm0, %v25844_v42  ;;  %20518 = vmatpush3.bf16.msra.mxu0 %v20517_v48 }
 0xa0f   :  { %20519 = vmatprep.subr.bf16.mxu0 %v25846_v36 }
 0xa12   :  { %20521 = vmatpush3.bf16.msra.mxu0 %v20520_v52 }
 0xa13   :  { %4627 = vmatprep.subr.bf16.mxu0 %v20838_v53  ;;  %v19201_v53 = vld [vmem:[%s25828_s7 + $0x190] sm:$0xff] }
 0xab0   :  { %v3739_v2 = vpop.f32.mrb[68].mxu0 }
 0xab1   :  { %v3740_v4 = vadd.f32 %v19096_v0, %v3739_v2  ;;  %v20295_v6 = vpop.f32.mrb[69].mxu0  ;;  %v4521_v0 = vrot.slane %v19171_v62, %v22010_v11 }
 0xab3   :  { %19098 = vst.msk [vmem:[%s25839_s18 + $0x12] sm:$0x3] %vm449_vm2, %v3740_v4  ;;  %v4529_v2 = vcombine.high %v4521_v0, %v4521_v0  ;;  %v4537_v3 = vrot.slane %v4521_v0, %v22010_v11  ;;  %v20857_v0 = vld [vmem:[%s25825_s4 + $0x4e4] ss:$24 sps:$4 sm:$0xff]  }
 0xab5   :  { %v4551_v4 = vrot.slane %v4529_v2, %v22010_v11  ;;  %v4559_v7 = vcombine.high %v4537_v3, %v4537_v3  ;;  %v20860_v2 = vld [vmem:[%s25825_s4 + $0x4ec] ss:$24 sps:$4 sm:$0xff]  }
 0xab7   :  { %v4560_v6 = vcombine.high %v4551_v4, %v4551_v4 }
 0xac0   :  { %v3929_v15 = vpop.f32.mrb[72].mxu0 }
 0xac1   :  { %v3930_v16 = vadd.f32 %v3929_v15, %v3780_v14  ;;  %v3931_v17 = vpop.f32.mrb[73].mxu0  ;;  %v4138_v14 = vrot.slane %v19148_v5, %v22097_v57  ;;  %v4134_v15 = vmul.f32 %v4133_v13, %v22088_v54 }
 0xac2   :  { %v3932_v18 = vpop.f32.mrb[74].mxu0  ;;  %v4144_v17 = vrot.slane %v19148_v5, %v22102_v60 }
 0xac3   :  { %v3970_v19 = vadd.f32 %v3969_v35, %v3930_v16  ;;  %v3933_v20 = vpop.f32.mrb[75].mxu0  ;;  %v4164_v35 = vcombine.high %v4162_v33, %v4162_v33  ;;  %v4139_v16 = vmul.f32 %v4138_v14, %v22104_v61  ;;  %v19168_v14 = vld [vmem:[%s25829_s8 + $0xb] ss:$0 sm:$0xff] }
 0xac5   :  { %v4192_v38 = vrot.slane %v4164_v35, %v22010_v11  ;;  %v4140_v18 = vadd.f32 %v4139_v16, %v4134_v15  ;;  %v19184_v16 = vld [vmem:[%s25826_s5 + $0x30] sm:$0x7] }
 0xad0   :  { %v4009_v22 = vpop.f32.mrb[76].mxu0 }
 0xad1   :  { %v4010_v23 = vadd.f32 %v4009_v22, %v3970_v19  ;;  %v4011_v24 = vpop.f32.mrb[77].mxu0  ;;  %v4145_v19 = vmul.f32 %v4144_v17, %v22109_v1 }
 0xad2   :  { %v4012_v25 = vpop.f32.mrb[78].mxu0 }
 0xad3   :  { %v4021_v26 = vadd.f32 %v19126_v21, %v4010_v23  ;;  %v4013_v27 = vpop.f32.mrb[79].mxu0  ;;  %v4146_v20 = vadd.f32 %v4145_v19, %v4140_v18  ;;  %v4499_v19 = vrot.slane %v19184_v16, %v22094_v56 }
 0xad4   :  { %v19162_v27 = vld [vmem:[%s25827_s6 + $0xb] ss:$0 sm:$0xff] }
 0xad5   :  { %v4022_v29 = vmax.f32 %v4021_v26, 0.0 }
 0xad7   :  { %20305 = vmatmul.mubr.msk.f32.vlgmr.msra.gmra.mrb[62].mxu1 %vm375_vm1, %v4022_v29 }
 0xad8   :  { %4262 = vmatpush1.bf16.xpose.msra.mxu1 %v20817_v28  ;;  %4293 = vmatprep.mubr.bf16.mxu1 %v4185_v59  ;;  %v20847_v59 = vld [vmem:[%s25825_s4 + $0x4bc] ss:$24 sps:$4 sm:$0xff]  }
 0xad9   :  { %4263 = vmatprep.subr.bf16.mxu1 %v20825_v30 }
 0xae0   :  { %4264 = vmatpush1.bf16.xpose.msra.mxu1 %v20823_v32  ;;  %v4335_v43 = vpop.f32.mrb[80].mxu0 }
 0xae1   :  { %4341 = vmatprep.subr.bf16.mxu1 %v20831_v34  ;;  %v4337_v46 = vpop.f32.mrb[81].mxu0  ;;  %v20836_v34 = vld [vmem:[%s25825_s4 + $0x480] ss:$24 sps:$4 sm:$0xff]  }
 0xae2   :  { %v4338_v49 = vpop.f32.mrb[82].mxu0  ;;  %v20853_v46 = vld [vmem:[%s25825_s4 + $0x4c4] ss:$24 sps:$4 sm:$0xff]  }
 0xae3   :  { %v4339_v51 = vpop.f32.mrb[83].mxu0 }
 0xae4   :  { %v19200_v51 = vld [vmem:[%s25828_s7 + $0x188] sm:$0xff] }
 0xae7   :  { %4294 = vmatmul.mubr.bf16.vlgmr.msra.gmra.mrb[76].mxu1 %v4171_v58  ;;  %v20839_v58 = vld [vmem:[%s25825_s4 + $0x488] ss:$24 sps:$4 sm:$0xff]  }
 0xae8   :  { %4342 = vmatpush1.bf16.xpose.msra.mxu1 %v20829_v37  ;;  %4373 = vmatprep.mubr.bf16.mxu1 %v4192_v38  ;;  %v20844_v37 = vld [vmem:[%s25825_s4 + $0x4b4] ss:$24 sps:$4 sm:$0xff]   ;;  %v4514_v38 = vcombine.high %v19171_v62, %v19171_v62 }
 0xae9   :  { %4343 = vmatprep.subr.bf16.mxu1 %v20834_v39  ;;  %v20842_v39 = vld [vmem:[%s25825_s4 + $0x4b0] ss:$24 sps:$4 sm:$0xff]  }
 0xaf0   :  { %4344 = vmatpush1.bf16.xpose.msra.mxu1 %v20832_v40  ;;  %v4528_v40 = vrot.slane %v4514_v38, %v22010_v11 }
 0xaf1   :  { %4667 = vmatprep.subr.bf16.mxu1 %v20841_v55  ;;  %v20523_v55 = vpack.c.bf16 %v19200_v51, %v19199_v50  ;;  %v20867_v50 = vld [vmem:[%s25825_s4 + $0x4f0] ss:$24 sps:$4 sm:$0xff]  }
 0xaf2   :  { %v4544_v48 = vrot.slane %v4528_v40, %v22010_v11 }
 0xaf7   :  { %4374 = vmatmul.mubr.bf16.vlgmr.msra.gmra.mrb[80].mxu1 %v4178_v41  ;;  %v20850_v41 = vld [vmem:[%s25825_s4 + $0x494] ss:$24 sps:$4 sm:$0xff]  }
 0xaf8   :  { %4668 = vmatpush1.bf16.xpose.msra.mxu1 %v20839_v58  ;;  %4699 = vmatprep.mubr.bf16.mxu1 %v4560_v6  ;;  %v19207_v6 = vld [vmem:[%s25852_s27 + $0x4e] sm:$0x3f] }
 0xaf9   :  { %4669 = vmatprep.subr.bf16.mxu1 %v20847_v59  ;;  %v19202_v59 = vld [vmem:[%s25828_s7 + $0x198] sm:$0xff] }
 0xb00   :  { %4670 = vmatpush1.bf16.xpose.msra.mxu1 %v20845_v63  ;;  %v20526_v63 = vpack.c.bf16 %v19202_v59, %v19201_v53  ;;  %v20870_v53 = vld [vmem:[%s25825_s4 + $0x520] ss:$24 sps:$4 sm:$0xff]  }
 0xb01   :  { %20522 = vmatprep.subr.bf16.mxu1 %v25846_v36  ;;  %v19235_v59 = vld [vmem:[%s25828_s7 + $0x1a0] sm:$0xff] }
 0xb07   :  { %4700 = vmatmul.mubr.bf16.vlgmr.msra.gmra.mrb[84].mxu1 %v4559_v7  ;;  %v20864_v7 = vld [vmem:[%s25825_s4 + $0x518] ss:$24 sps:$4 sm:$0xff]  }
 0xb08   :  { %20326 = vmatprep.mubr.msk.f32.mxu1 %vm21881_vm0, %v25844_v42  ;;  %20524 = vmatpush3.bf16.msra.mxu1 %v20523_v55 }
 0xb09   :  { %20525 = vmatprep.subr.bf16.mxu1 %v25846_v36 }
 0xb0c   :  { %20527 = vmatpush3.bf16.msra.mxu1 %v20526_v63 }
 0xb0d   :  { %4993 = vmatprep.subr.bf16.mxu1 %v20857_v0  ;;  %v19237_v0 = vld [vmem:[%s25828_s7 + $0x1b0] sm:$0xff] }
 0xbaa   :  { %v4105_v9 = vpop.f32.mrb[62].mxu1 }
 0xbab   :  { %v4106_v10 = vadd.f32 %v19132_v8, %v4105_v9  ;;  %v20306_v12 = vpop.f32.mrb[63].mxu1  ;;  %v4887_v8 = vrot.slane %v19207_v6, %v22010_v11 }
 0xbad   :  { %19134 = vst.msk [vmem:[%s25839_s18 + $0x14] sm:$0x3] %vm449_vm2, %v4106_v10  ;;  %v4895_v9 = vcombine.high %v4887_v8, %v4887_v8  ;;  %v4903_v5 = vrot.slane %v4887_v8, %v22010_v11  ;;  %v20876_v8 = vld [vmem:[%s25825_s4 + $0x544] ss:$24 sps:$4 sm:$0xff]  }
 0xbaf   :  { %v4917_v10 = vrot.slane %v4895_v9, %v22010_v11  ;;  %v4925_v13 = vcombine.high %v4903_v5, %v4903_v5  ;;  %v20879_v9 = vld [vmem:[%s25825_s4 + $0x54c] ss:$24 sps:$4 sm:$0xff]  }
 0xbb1   :  { %v4926_v12 = vcombine.high %v4917_v10, %v4917_v10 }
 0xbba   :  { %v4295_v21 = vpop.f32.mrb[76].mxu1 }
 0xbbb   :  { %v4296_v22 = vadd.f32 %v4295_v21, %v4146_v20  ;;  %v4297_v23 = vpop.f32.mrb[77].mxu1  ;;  %v4504_v20 = vrot.slane %v19184_v16, %v22097_v57  ;;  %v4500_v21 = vmul.f32 %v4499_v19, %v22088_v54 }
 0xbbc   :  { %v4298_v24 = vpop.f32.mrb[78].mxu1  ;;  %v4510_v23 = vrot.slane %v19184_v16, %v22102_v60 }
 0xbbd   :  { %v4336_v25 = vadd.f32 %v4335_v43, %v4296_v22  ;;  %v4299_v26 = vpop.f32.mrb[79].mxu1  ;;  %v4530_v43 = vcombine.high %v4528_v40, %v4528_v40  ;;  %v4505_v22 = vmul.f32 %v4504_v20, %v22104_v61  ;;  %v19204_v20 = vld [vmem:[%s25829_s8 + $0xc] ss:$0 sm:$0xff] }
 0xbbf   :  { %v4558_v45 = vrot.slane %v4530_v43, %v22010_v11  ;;  %v4506_v24 = vadd.f32 %v4505_v22, %v4500_v21  ;;  %v19220_v22 = vld [vmem:[%s25826_s5 + $0x34] sm:$0x7] }
 0xbca   :  { %v4375_v28 = vpop.f32.mrb[80].mxu1 }
 0xbcb   :  { %v4376_v29 = vadd.f32 %v4375_v28, %v4336_v25  ;;  %v4377_v30 = vpop.f32.mrb[81].mxu1  ;;  %v4511_v25 = vmul.f32 %v4510_v23, %v22109_v1 }
 0xbcc   :  { %v4378_v31 = vpop.f32.mrb[82].mxu1 }
 0xbcd   :  { %v4387_v32 = vadd.f32 %v19162_v27, %v4376_v29  ;;  %v4379_v33 = vpop.f32.mrb[83].mxu1  ;;  %v4512_v26 = vadd.f32 %v4511_v25, %v4506_v24  ;;  %v4865_v25 = vrot.slane %v19220_v22, %v22094_v56 }
 0xbce   :  { %v19198_v33 = vld [vmem:[%s25827_s6 + $0xc] ss:$0 sm:$0xff] }
 0xbcf   :  { %v4388_v35 = vmax.f32 %v4387_v32, 0.0 }
 0xbd1   :  { %20316 = vmatmul.mubr.msk.f32.vlgmr.msra.gmra.mrb[70].mxu0 %vm375_vm1, %v4388_v35 }
 0xbd2   :  { %4628 = vmatpush1.bf16.xpose.msra.mxu0 %v20836_v34  ;;  %4659 = vmatprep.mubr.bf16.mxu0 %v4551_v4  ;;  %v20866_v4 = vld [vmem:[%s25825_s4 + $0x51c] ss:$24 sps:$4 sm:$0xff]  }
 0xbd3   :  { %4629 = vmatprep.subr.bf16.mxu0 %v20844_v37 }
 0xbda   :  { %4630 = vmatpush1.bf16.xpose.msra.mxu0 %v20842_v39  ;;  %v4701_v49 = vpop.f32.mrb[84].mxu1 }
 0xbdb   :  { %4707 = vmatprep.subr.bf16.mxu0 %v20850_v41  ;;  %v4703_v52 = vpop.f32.mrb[85].mxu1  ;;  %v20855_v41 = vld [vmem:[%s25825_s4 + $0x4e0] ss:$24 sps:$4 sm:$0xff]  }
 0xbdc   :  { %v4704_v58 = vpop.f32.mrb[86].mxu1  ;;  %v20872_v52 = vld [vmem:[%s25825_s4 + $0x524] ss:$24 sps:$4 sm:$0xff]  }
 0xbdd   :  { %v4705_v62 = vpop.f32.mrb[87].mxu1 }
 0xbde   :  { %v19236_v62 = vld [vmem:[%s25828_s7 + $0x1a8] sm:$0xff] }
 0xbe1   :  { %4660 = vmatmul.mubr.bf16.vlgmr.msra.gmra.mrb[84].mxu0 %v4537_v3  ;;  %v20858_v3 = vld [vmem:[%s25825_s4 + $0x4e8] ss:$24 sps:$4 sm:$0xff]  }
 0xbe2   :  { %4708 = vmatpush1.bf16.xpose.msra.mxu0 %v20848_v44  ;;  %4739 = vmatprep.mubr.bf16.mxu0 %v4558_v45  ;;  %v20863_v44 = vld [vmem:[%s25825_s4 + $0x514] ss:$24 sps:$4 sm:$0xff]   ;;  %v4880_v45 = vcombine.high %v19207_v6, %v19207_v6 }
 0xbe3   :  { %4709 = vmatprep.subr.bf16.mxu0 %v20853_v46  ;;  %v20861_v46 = vld [vmem:[%s25825_s4 + $0x510] ss:$24 sps:$4 sm:$0xff]  }
 0xbea   :  { %4710 = vmatpush1.bf16.xpose.msra.mxu0 %v20851_v47  ;;  %v4894_v47 = vrot.slane %v4880_v45, %v22010_v11 }
 0xbeb   :  { %5033 = vmatprep.subr.bf16.mxu0 %v20860_v2  ;;  %v20529_v2 = vpack.c.bf16 %v19236_v62, %v19235_v59  ;;  %v20886_v59 = vld [vmem:[%s25825_s4 + $0x550] ss:$24 sps:$4 sm:$0xff]  }
 0xbec   :  { %v4910_v55 = vrot.slane %v4894_v47, %v22010_v11 }
 0xbf1   :  { %4740 = vmatmul.mubr.bf16.vlgmr.msra.gmra.mrb[88].mxu0 %v4544_v48  ;;  %v20869_v48 = vld [vmem:[%s25825_s4 + $0x4f4] ss:$24 sps:$4 sm:$0xff]  }
 0xbf2   :  { %5034 = vmatpush1.bf16.xpose.msra.mxu0 %v20858_v3  ;;  %5065 = vmatprep.mubr.bf16.mxu0 %v4926_v12  ;;  %v19243_v12 = vld [vmem:[%s25852_s27 + $0x54] sm:$0x3f] }
 0xbf3   :  { %5035 = vmatprep.subr.bf16.mxu0 %v20866_v4  ;;  %v19238_v4 = vld [vmem:[%s25828_s7 + $0x1b8] sm:$0xff] }
 0xbfa   :  { %5036 = vmatpush1.bf16.xpose.msra.mxu0 %v20864_v7  ;;  %v20532_v7 = vpack.c.bf16 %v19238_v4, %v19237_v0  ;;  %v20889_v0 = vld [vmem:[%s25825_s4 + $0x580] ss:$24 sps:$4 sm:$0xff]  }
 0xbfb   :  { %20528 = vmatprep.subr.bf16.mxu0 %v25846_v36  ;;  %v19271_v4 = vld [vmem:[%s25828_s7 + $0x1c0] sm:$0xff] }
 0xc01   :  { %5066 = vmatmul.mubr.bf16.vlgmr.msra.gmra.mrb[92].mxu0 %v4925_v13  ;;  %v20883_v13 = vld [vmem:[%s25825_s4 + $0x578] ss:$24 sps:$4 sm:$0xff]  }
 0xc02   :  { %20337 = vmatprep.mubr.msk.f32.mxu0 %vm21881_vm0, %v25844_v42  ;;  %20530 = vmatpush3.bf16.msra.mxu0 %v20529_v2 }
 0xc03   :  { %20531 = vmatprep.subr.bf16.mxu0 %v25846_v36 }
 0xc06   :  { %20533 = vmatpush3.bf16.msra.mxu0 %v20532_v7 }
 0xc07   :  { %5359 = vmatprep.subr.bf16.mxu0 %v20876_v8  ;;  %v19273_v8 = vld [vmem:[%s25828_s7 + $0x1d0] sm:$0xff] }
 0xca4   :  { %v4471_v15 = vpop.f32.mrb[70].mxu0 }
 0xca5   :  { %v4472_v17 = vadd.f32 %v19168_v14, %v4471_v15  ;;  %v20317_v18 = vpop.f32.mrb[71].mxu0  ;;  %v5253_v14 = vrot.slane %v19243_v12, %v22010_v11 }
 0xca7   :  { %19170 = vst.msk [vmem:[%s25839_s18 + $0x16] sm:$0x3] %vm449_vm2, %v4472_v17  ;;  %v5261_v15 = vcombine.high %v5253_v14, %v5253_v14  ;;  %v5269_v16 = vrot.slane %v5253_v14, %v22010_v11  ;;  %v20895_v14 = vld [vmem:[%s25825_s4 + $0x5a4] ss:$24 sps:$4 sm:$0xff]  }
 0xca9   :  { %v5283_v17 = vrot.slane %v5261_v15, %v22010_v11  ;;  %v5291_v19 = vcombine.high %v5269_v16, %v5269_v16  ;;  %v20898_v15 = vld [vmem:[%s25825_s4 + $0x5ac] ss:$24 sps:$4 sm:$0xff]  }
 0xcab   :  { %v5292_v18 = vcombine.high %v5283_v17, %v5283_v17 }
 0xcb4   :  { %v4661_v27 = vpop.f32.mrb[84].mxu0 }
 0xcb5   :  { %v4662_v28 = vadd.f32 %v4661_v27, %v4512_v26  ;;  %v4663_v29 = vpop.f32.mrb[85].mxu0  ;;  %v4870_v26 = vrot.slane %v19220_v22, %v22097_v57  ;;  %v4866_v27 = vmul.f32 %v4865_v25, %v22088_v54 }
 0xcb6   :  { %v4664_v30 = vpop.f32.mrb[86].mxu0  ;;  %v4876_v29 = vrot.slane %v19220_v22, %v22102_v60 }
 0xcb7   :  { %v4702_v31 = vadd.f32 %v4701_v49, %v4662_v28  ;;  %v4665_v32 = vpop.f32.mrb[87].mxu0  ;;  %v4896_v49 = vcombine.high %v4894_v47, %v4894_v47  ;;  %v4871_v28 = vmul.f32 %v4870_v26, %v22104_v61  ;;  %v19240_v26 = vld [vmem:[%s25829_s8 + $0xd] ss:$0 sm:$0xff] }
 0xcb9   :  { %v4924_v51 = vrot.slane %v4896_v49, %v22010_v11  ;;  %v4872_v30 = vadd.f32 %v4871_v28, %v4866_v27  ;;  %v19256_v28 = vld [vmem:[%s25826_s5 + $0x38] sm:$0x7] }
 0xcc4   :  { %v4741_v34 = vpop.f32.mrb[88].mxu0 }
 0xcc5   :  { %v4742_v35 = vadd.f32 %v4741_v34, %v4702_v31  ;;  %v4743_v37 = vpop.f32.mrb[89].mxu0  ;;  %v4877_v31 = vmul.f32 %v4876_v29, %v22109_v1 }
 0xcc6   :  { %v4744_v38 = vpop.f32.mrb[90].mxu0 }
 0xcc7   :  { %v4753_v39 = vadd.f32 %v19198_v33, %v4742_v35  ;;  %v4745_v40 = vpop.f32.mrb[91].mxu0  ;;  %v4878_v32 = vadd.f32 %v4877_v31, %v4872_v30  ;;  %v5231_v31 = vrot.slane %v19256_v28, %v22094_v56 }
 0xcc8   :  { %v19234_v40 = vld [vmem:[%s25827_s6 + $0xd] ss:$0 sm:$0xff] }
 0xcc9   :  { %v4754_v43 = vmax.f32 %v4753_v39, 0.0 }
 0xccb   :  { %20327 = vmatmul.mubr.msk.f32.vlgmr.msra.gmra.mrb[88].mxu1 %vm375_vm1, %v4754_v43 }
 0xccc   :  { %4994 = vmatpush1.bf16.xpose.msra.mxu1 %v20855_v41  ;;  %5025 = vmatprep.mubr.bf16.mxu1 %v4917_v10  ;;  %v20885_v10 = vld [vmem:[%s25825_s4 + $0x57c] ss:$24 sps:$4 sm:$0xff]  }
 0xccd   :  { %4995 = vmatprep.subr.bf16.mxu1 %v20863_v44 }
 0xcd4   :  { %4996 = vmatpush1.bf16.xpose.msra.mxu1 %v20861_v46  ;;  %v5067_v58 = vpop.f32.mrb[92].mxu0 }
 0xcd5   :  { %5073 = vmatprep.subr.bf16.mxu1 %v20869_v48  ;;  %v5069_v63 = vpop.f32.mrb[93].mxu0  ;;  %v20874_v48 = vld [vmem:[%s25825_s4 + $0x540] ss:$24 sps:$4 sm:$0xff]  }
 0xcd6   :  { %v5070_v3 = vpop.f32.mrb[94].mxu0  ;;  %v20891_v63 = vld [vmem:[%s25825_s4 + $0x584] ss:$24 sps:$4 sm:$0xff]  }
 0xcd7   :  { %v5071_v6 = vpop.f32.mrb[95].mxu0 }
 0xcd8   :  { %v19272_v6 = vld [vmem:[%s25828_s7 + $0x1c8] sm:$0xff] }
 0xcdb   :  { %5026 = vmatmul.mubr.bf16.vlgmr.msra.gmra.mrb[92].mxu1 %v4903_v5  ;;  %v20877_v5 = vld [vmem:[%s25825_s4 + $0x548] ss:$24 sps:$4 sm:$0xff]  }
 0xcdc   :  { %5074 = vmatpush1.bf16.xpose.msra.mxu1 %v20867_v50  ;;  %5105 = vmatprep.mubr.bf16.mxu1 %v4924_v51  ;;  %v20882_v50 = vld [vmem:[%s25825_s4 + $0x574] ss:$24 sps:$4 sm:$0xff]   ;;  %v5246_v51 = vcombine.high %v19243_v12, %v19243_v12 }
 0xcdd   :  { %5075 = vmatprep.subr.bf16.mxu1 %v20872_v52  ;;  %v20880_v52 = vld [vmem:[%s25825_s4 + $0x570] ss:$24 sps:$4 sm:$0xff]  }
 0xce4   :  { %5076 = vmatpush1.bf16.xpose.msra.mxu1 %v20870_v53  ;;  %v5260_v53 = vrot.slane %v5246_v51, %v22010_v11 }
 0xce5   :  { %5399 = vmatprep.subr.bf16.mxu1 %v20879_v9  ;;  %v20535_v9 = vpack.c.bf16 %v19272_v6, %v19271_v4  ;;  %v20905_v4 = vld [vmem:[%s25825_s4 + $0x5b0] ss:$24 sps:$4 sm:$0xff]  }
 0xce6   :  { %v5276_v2 = vrot.slane %v5260_v53, %v22010_v11 }
 0xceb   :  { %5106 = vmatmul.mubr.bf16.vlgmr.msra.gmra.mrb[96].mxu1 %v4910_v55  ;;  %v20888_v55 = vld [vmem:[%s25825_s4 + $0x554] ss:$24 sps:$4 sm:$0xff]  }
 0xcec   :  { %5400 = vmatpush1.bf16.xpose.msra.mxu1 %v20877_v5  ;;  %5431 = vmatprep.mubr.bf16.mxu1 %v5292_v18  ;;  %v19279_v18 = vld [vmem:[%s25852_s27 + $0x5a] sm:$0x3f] }
 0xced   :  { %5401 = vmatprep.subr.bf16.mxu1 %v20885_v10  ;;  %v19274_v10 = vld [vmem:[%s25828_s7 + $0x1d8] sm:$0xff] }
 0xcf4   :  { %5402 = vmatpush1.bf16.xpose.msra.mxu1 %v20883_v13  ;;  %v20538_v13 = vpack.c.bf16 %v19274_v10, %v19273_v8  ;;  %v20908_v8 = vld [vmem:[%s25825_s4 + $0x5e0] ss:$24 sps:$4 sm:$0xff]  }
 0xcf5   :  { %20534 = vmatprep.subr.bf16.mxu1 %v25846_v36  ;;  %v19307_v10 = vld [vmem:[%s25828_s7 + $0x1e0] sm:$0xff] }
 0xcfb   :  { %5432 = vmatmul.mubr.bf16.vlgmr.msra.gmra.mrb[100].mxu1 %v5291_v19  ;;  %v20902_v19 = vld [vmem:[%s25825_s4 + $0x5d8] ss:$24 sps:$4 sm:$0xff]  }
 0xcfc   :  { %20348 = vmatprep.mubr.msk.f32.mxu1 %vm21881_vm0, %v25844_v42  ;;  %20536 = vmatpush3.bf16.msra.mxu1 %v20535_v9 }
 0xcfd   :  { %20537 = vmatprep.subr.bf16.mxu1 %v25846_v36 }
 0xd00   :  { %20539 = vmatpush3.bf16.msra.mxu1 %v20538_v13 }
 0xd01   :  { %5725 = vmatprep.subr.bf16.mxu1 %v20895_v14  ;;  %v19309_v14 = vld [vmem:[%s25828_s7 + $0x1f0] sm:$0xff] }
 0xd9e   :  { %v4837_v21 = vpop.f32.mrb[88].mxu1 }
 0xd9f   :  { %v4838_v23 = vadd.f32 %v19204_v20, %v4837_v21  ;;  %v20328_v24 = vpop.f32.mrb[89].mxu1  ;;  %v5619_v20 = vrot.slane %v19279_v18, %v22010_v11 }
 0xda1   :  { %19206 = vst.msk [vmem:[%s25839_s18 + $0x18] sm:$0x3] %vm449_vm2, %v4838_v23  ;;  %v5627_v21 = vcombine.high %v5619_v20, %v5619_v20  ;;  %v5635_v22 = vrot.slane %v5619_v20, %v22010_v11  ;;  %v20914_v20 = vld [vmem:[%s25825_s4 + $0x604] ss:$24 sps:$4 sm:$0xff]  }
 0xda3   :  { %v5649_v23 = vrot.slane %v5627_v21, %v22010_v11  ;;  %v5657_v25 = vcombine.high %v5635_v22, %v5635_v22  ;;  %v20917_v21 = vld [vmem:[%s25825_s4 + $0x60c] ss:$24 sps:$4 sm:$0xff]  }
 0xda5   :  { %v5658_v24 = vcombine.high %v5649_v23, %v5649_v23 }
 0xdae   :  { %v5027_v33 = vpop.f32.mrb[92].mxu1 }
 0xdaf   :  { %v5028_v34 = vadd.f32 %v5027_v33, %v4878_v32  ;;  %v5029_v35 = vpop.f32.mrb[93].mxu1  ;;  %v5236_v32 = vrot.slane %v19256_v28, %v22097_v57  ;;  %v5232_v33 = vmul.f32 %v5231_v31, %v22088_v54 }
 0xdb0   :  { %v5030_v37 = vpop.f32.mrb[94].mxu1  ;;  %v5242_v35 = vrot.slane %v19256_v28, %v22102_v60 }
 0xdb1   :  { %v5068_v38 = vadd.f32 %v5067_v58, %v5028_v34  ;;  %v5031_v39 = vpop.f32.mrb[95].mxu1  ;;  %v5262_v58 = vcombine.high %v5260_v53, %v5260_v53  ;;  %v5237_v34 = vmul.f32 %v5236_v32, %v22104_v61  ;;  %v19276_v32 = vld [vmem:[%s25829_s8 + $0xe] ss:$0 sm:$0xff] }
 0xdb3   :  { %v5290_v62 = vrot.slane %v5262_v58, %v22010_v11  ;;  %v5238_v37 = vadd.f32 %v5237_v34, %v5232_v33  ;;  %v19292_v34 = vld [vmem:[%s25826_s5 + $0x3c] sm:$0x7] }
 0xdbe   :  { %v5107_v41 = vpop.f32.mrb[96].mxu1 }
 0xdbf   :  { %v5108_v43 = vadd.f32 %v5107_v41, %v5068_v38  ;;  %v5109_v44 = vpop.f32.mrb[97].mxu1  ;;  %v5243_v38 = vmul.f32 %v5242_v35, %v22109_v1 }
 0xdc0   :  { %v5110_v45 = vpop.f32.mrb[98].mxu1 }
 0xdc1   :  { %v5119_v46 = vadd.f32 %v19234_v40, %v5108_v43  ;;  %v5111_v47 = vpop.f32.mrb[99].mxu1  ;;  %v5244_v39 = vadd.f32 %v5243_v38, %v5238_v37  ;;  %v5597_v38 = vrot.slane %v19292_v34, %v22094_v56 }
 0xdc2   :  { %v19270_v47 = vld [vmem:[%s25827_s6 + $0xe] ss:$0 sm:$0xff] }
 0xdc3   :  { %v5120_v49 = vmax.f32 %v5119_v46, 0.0 }
 0xdc5   :  { %20338 = vmatmul.mubr.msk.f32.vlgmr.msra.gmra.mrb[96].mxu0 %vm375_vm1, %v5120_v49 }
 0xdc6   :  { %5360 = vmatpush1.bf16.xpose.msra.mxu0 %v20874_v48  ;;  %5391 = vmatprep.mubr.bf16.mxu0 %v5283_v17  ;;  %v20904_v17 = vld [vmem:[%s25825_s4 + $0x5dc] ss:$24 sps:$4 sm:$0xff]  }
 0xdc7   :  { %5361 = vmatprep.subr.bf16.mxu0 %v20882_v50 }
 0xdce   :  { %5362 = vmatpush1.bf16.xpose.msra.mxu0 %v20880_v52  ;;  %v5433_v3 = vpop.f32.mrb[100].mxu1 }
 0xdcf   :  { %5439 = vmatprep.subr.bf16.mxu0 %v20888_v55  ;;  %v5435_v7 = vpop.f32.mrb[101].mxu1  ;;  %v20893_v55 = vld [vmem:[%s25825_s4 + $0x5a0] ss:$24 sps:$4 sm:$0xff]  }
 0xdd0   :  { %v5436_v5 = vpop.f32.mrb[102].mxu1  ;;  %v20910_v7 = vld [vmem:[%s25825_s4 + $0x5e4] ss:$24 sps:$4 sm:$0xff]  }
 0xdd1   :  { %v5437_v12 = vpop.f32.mrb[103].mxu1 }
 0xdd2   :  { %v19308_v12 = vld [vmem:[%s25828_s7 + $0x1e8] sm:$0xff] }
 0xdd5   :  { %5392 = vmatmul.mubr.bf16.vlgmr.msra.gmra.mrb[100].mxu0 %v5269_v16  ;;  %v20896_v16 = vld [vmem:[%s25825_s4 + $0x5a8] ss:$24 sps:$4 sm:$0xff]  }
 0xdd6   :  { %5440 = vmatpush1.bf16.xpose.msra.mxu0 %v20886_v59  ;;  %5471 = vmatprep.mubr.bf16.mxu0 %v5290_v62  ;;  %v20901_v59 = vld [vmem:[%s25825_s4 + $0x5d4] ss:$24 sps:$4 sm:$0xff]   ;;  %v5612_v62 = vcombine.high %v19279_v18, %v19279_v18 }
 0xdd7   :  { %5441 = vmatprep.subr.bf16.mxu0 %v20891_v63  ;;  %v20899_v63 = vld [vmem:[%s25825_s4 + $0x5d0] ss:$24 sps:$4 sm:$0xff]  }
 0xdde   :  { %5442 = vmatpush1.bf16.xpose.msra.mxu0 %v20889_v0  ;;  %v5626_v0 = vrot.slane %v5612_v62, %v22010_v11 }
 0xddf   :  { %5765 = vmatprep.subr.bf16.mxu0 %v20898_v15  ;;  %v20541_v15 = vpack.c.bf16 %v19308_v12, %v19307_v10  ;;  %v20924_v10 = vld [vmem:[%s25825_s4 + $0x610] ss:$24 sps:$4 sm:$0xff]  }
 0xde0   :  { %v5642_v9 = vrot.slane %v5626_v0, %v22010_v11 }
 0xde5   :  { %5472 = vmatmul.mubr.bf16.vlgmr.msra.gmra.mrb[104].mxu0 %v5276_v2  ;;  %v20907_v2 = vld [vmem:[%s25825_s4 + $0x5b4] ss:$24 sps:$4 sm:$0xff]  }
 0xde6   :  { %5766 = vmatpush1.bf16.xpose.msra.mxu0 %v20896_v16  ;;  %5797 = vmatprep.mubr.bf16.mxu0 %v5658_v24  ;;  %v19315_v24 = vld [vmem:[%s25852_s27 + $0x60] sm:$0x3f] }
 0xde7   :  { %5767 = vmatprep.subr.bf16.mxu0 %v20904_v17  ;;  %v19310_v17 = vld [vmem:[%s25828_s7 + $0x1f8] sm:$0xff] }
 0xdee   :  { %5768 = vmatpush1.bf16.xpose.msra.mxu0 %v20902_v19  ;;  %v20544_v19 = vpack.c.bf16 %v19310_v17, %v19309_v14  ;;  %v20927_v14 = vld [vmem:[%s25825_s4 + $0x640] ss:$24 sps:$4 sm:$0xff]  }
 0xdef   :  { %20540 = vmatprep.subr.bf16.mxu0 %v25846_v36  ;;  %v19343_v17 = vld [vmem:[%s25828_s7 + $0x200] sm:$0xff] }
 0xdf5   :  { %5798 = vmatmul.mubr.bf16.vlgmr.msra.gmra.mrb[108].mxu0 %v5657_v25  ;;  %v20921_v25 = vld [vmem:[%s25825_s4 + $0x638] ss:$24 sps:$4 sm:$0xff]  }
 0xdf6   :  { %20359 = vmatprep.mubr.msk.f32.mxu0 %vm21881_vm0, %v25844_v42  ;;  %20542 = vmatpush3.bf16.msra.mxu0 %v20541_v15 }
 0xdf7   :  { %20543 = vmatprep.subr.bf16.mxu0 %v25846_v36 }
 0xdfa   :  { %20545 = vmatpush3.bf16.msra.mxu0 %v20544_v19 }
 0xdfb   :  { %6091 = vmatprep.subr.bf16.mxu0 %v20914_v20  ;;  %v19345_v20 = vld [vmem:[%s25828_s7 + $0x210] sm:$0xff] }
 0xe98   :  { %v5203_v27 = vpop.f32.mrb[96].mxu0 }
 0xe99   :  { %v5204_v29 = vadd.f32 %v19240_v26, %v5203_v27  ;;  %v20339_v30 = vpop.f32.mrb[97].mxu0  ;;  %v5985_v26 = vrot.slane %v19315_v24, %v22010_v11 }
 0xe9b   :  { %19242 = vst.msk [vmem:[%s25839_s18 + $0x1a] sm:$0x3] %vm449_vm2, %v5204_v29  ;;  %v5993_v27 = vcombine.high %v5985_v26, %v5985_v26  ;;  %v6001_v28 = vrot.slane %v5985_v26, %v22010_v11  ;;  %v20933_v26 = vld [vmem:[%s25825_s4 + $0x664] ss:$24 sps:$4 sm:$0xff]  }
 0xe9d   :  { %v6015_v29 = vrot.slane %v5993_v27, %v22010_v11  ;;  %v6023_v31 = vcombine.high %v6001_v28, %v6001_v28  ;;  %v20936_v27 = vld [vmem:[%s25825_s4 + $0x66c] ss:$24 sps:$4 sm:$0xff]  }
 0xe9f   :  { %v6024_v30 = vcombine.high %v6015_v29, %v6015_v29 }
 0xea8   :  { %v5393_v40 = vpop.f32.mrb[100].mxu0 }
 0xea9   :  { %v5394_v41 = vadd.f32 %v5393_v40, %v5244_v39  ;;  %v5395_v43 = vpop.f32.mrb[101].mxu0  ;;  %v5602_v39 = vrot.slane %v19292_v34, %v22097_v57  ;;  %v5598_v40 = vmul.f32 %v5597_v38, %v22088_v54 }
 0xeaa   :  { %v5396_v44 = vpop.f32.mrb[102].mxu0  ;;  %v5608_v43 = vrot.slane %v19292_v34, %v22102_v60 }
 0xeab   :  { %v5434_v45 = vadd.f32 %v5433_v3, %v5394_v41  ;;  %v5397_v46 = vpop.f32.mrb[103].mxu0  ;;  %v5628_v3 = vcombine.high %v5626_v0, %v5626_v0  ;;  %v5603_v41 = vmul.f32 %v5602_v39, %v22104_v61  ;;  %v19312_v39 = vld [vmem:[%s25829_s8 + $0xf] ss:$0 sm:$0xff] }
 0xead   :  { %v5656_v6 = vrot.slane %v5628_v3, %v22010_v11  ;;  %v5604_v44 = vadd.f32 %v5603_v41, %v5598_v40  ;;  %v19328_v41 = vld [vmem:[%s25826_s5 + $0x40] sm:$0x7] }
 0xeb8   :  { %v5473_v48 = vpop.f32.mrb[104].mxu0 }
 0xeb9   :  { %v5474_v49 = vadd.f32 %v5473_v48, %v5434_v45  ;;  %v5475_v50 = vpop.f32.mrb[105].mxu0  ;;  %v5609_v45 = vmul.f32 %v5608_v43, %v22109_v1 }
 0xeba   :  { %v5476_v51 = vpop.f32.mrb[106].mxu0 }
 0xebb   :  { %v5485_v52 = vadd.f32 %v19270_v47, %v5474_v49  ;;  %v5477_v53 = vpop.f32.mrb[107].mxu0  ;;  %v5610_v46 = vadd.f32 %v5609_v45, %v5604_v44  ;;  %v5963_v45 = vrot.slane %v19328_v41, %v22094_v56 }
 0xebc   :  { %v19306_v53 = vld [vmem:[%s25827_s6 + $0xf] ss:$0 sm:$0xff] }
 0xebd   :  { %v5486_v58 = vmax.f32 %v5485_v52, 0.0 }
 0xebf   :  { %20349 = vmatmul.mubr.msk.f32.vlgmr.msra.gmra.mrb[90].mxu1 %vm375_vm1, %v5486_v58 }
 0xec0   :  { %5726 = vmatpush1.bf16.xpose.msra.mxu1 %v20893_v55  ;;  %5757 = vmatprep.mubr.bf16.mxu1 %v5649_v23  ;;  %v20923_v23 = vld [vmem:[%s25825_s4 + $0x63c] ss:$24 sps:$4 sm:$0xff]  }
 0xec1   :  { %5727 = vmatprep.subr.bf16.mxu1 %v20901_v59 }
 0xec8   :  { %5728 = vmatpush1.bf16.xpose.msra.mxu1 %v20899_v63  ;;  %v5799_v5 = vpop.f32.mrb[108].mxu0 }
 0xec9   :  { %5805 = vmatprep.subr.bf16.mxu1 %v20907_v2  ;;  %v5801_v13 = vpop.f32.mrb[109].mxu0  ;;  %v20912_v2 = vld [vmem:[%s25825_s4 + $0x600] ss:$24 sps:$4 sm:$0xff]  }
 0xeca   :  { %v5802_v16 = vpop.f32.mrb[110].mxu0  ;;  %v20929_v13 = vld [vmem:[%s25825_s4 + $0x644] ss:$24 sps:$4 sm:$0xff]  }
 0xecb   :  { %v5803_v18 = vpop.f32.mrb[111].mxu0 }
 0xecc   :  { %v19344_v18 = vld [vmem:[%s25828_s7 + $0x208] sm:$0xff] }
 0xecf   :  { %5758 = vmatmul.mubr.bf16.vlgmr.msra.gmra.mrb[104].mxu1 %v5635_v22  ;;  %v20915_v22 = vld [vmem:[%s25825_s4 + $0x608] ss:$24 sps:$4 sm:$0xff]  }
 0xed0   :  { %5806 = vmatpush1.bf16.xpose.msra.mxu1 %v20905_v4  ;;  %5837 = vmatprep.mubr.bf16.mxu1 %v5656_v6  ;;  %v20920_v4 = vld [vmem:[%s25825_s4 + $0x634] ss:$24 sps:$4 sm:$0xff]   ;;  %v5978_v6 = vcombine.high %v19315_v24, %v19315_v24 }
 0xed1   :  { %5807 = vmatprep.subr.bf16.mxu1 %v20910_v7  ;;  %v20918_v7 = vld [vmem:[%s25825_s4 + $0x630] ss:$24 sps:$4 sm:$0xff]  }
 0xed8   :  { %5808 = vmatpush1.bf16.xpose.msra.mxu1 %v20908_v8  ;;  %v5992_v8 = vrot.slane %v5978_v6, %v22010_v11 }
 0xed9   :  { %6131 = vmatprep.subr.bf16.mxu1 %v20917_v21  ;;  %v20547_v21 = vpack.c.bf16 %v19344_v18, %v19343_v17  ;;  %v20943_v17 = vld [vmem:[%s25825_s4 + $0x670] ss:$24 sps:$4 sm:$0xff]  }
 0xeda   :  { %v6008_v15 = vrot.slane %v5992_v8, %v22010_v11 }
 0xedf   :  { %5838 = vmatmul.mubr.bf16.vlgmr.msra.gmra.mrb[108].mxu1 %v5642_v9  ;;  %v20926_v9 = vld [vmem:[%s25825_s4 + $0x614] ss:$24 sps:$4 sm:$0xff]  }
 0xee0   :  { %6132 = vmatpush1.bf16.xpose.msra.mxu1 %v20915_v22  ;;  %6163 = vmatprep.mubr.bf16.mxu1 %v6024_v30  ;;  %v19351_v30 = vld [vmem:[%s25852_s27 + $0x66] sm:$0x3f] }
 0xee1   :  { %6133 = vmatprep.subr.bf16.mxu1 %v20923_v23  ;;  %v19346_v23 = vld [vmem:[%s25828_s7 + $0x218] sm:$0xff] }
 0xee8   :  { %6134 = vmatpush1.bf16.xpose.msra.mxu1 %v20921_v25  ;;  %v20550_v25 = vpack.c.bf16 %v19346_v23, %v19345_v20  ;;  %v20946_v20 = vld [vmem:[%s25825_s4 + $0x6a0] ss:$24 sps:$4 sm:$0xff]  }
 0xee9   :  { %20546 = vmatprep.subr.bf16.mxu1 %v25846_v36  ;;  %v19379_v23 = vld [vmem:[%s25828_s7 + $0x220] sm:$0xff] }
 0xeef   :  { %6164 = vmatmul.mubr.bf16.vlgmr.msra.gmra.mrb[112].mxu1 %v6023_v31  ;;  %v20940_v31 = vld [vmem:[%s25825_s4 + $0x698] ss:$24 sps:$4 sm:$0xff]  }
 0xef0   :  { %20370 = vmatprep.mubr.msk.f32.mxu1 %vm21881_vm0, %v25844_v42  ;;  %20548 = vmatpush3.bf16.msra.mxu1 %v20547_v21 }
 0xef1   :  { %20549 = vmatprep.subr.bf16.mxu1 %v25846_v36 }
 0xef4   :  { %20551 = vmatpush3.bf16.msra.mxu1 %v20550_v25 }
 0xef5   :  { %6457 = vmatprep.subr.bf16.mxu1 %v20933_v26  ;;  %v19381_v26 = vld [vmem:[%s25828_s7 + $0x230] sm:$0xff] }
 0xf92   :  { %v5569_v33 = vpop.f32.mrb[90].mxu1 }
 0xf93   :  { %v5570_v35 = vadd.f32 %v19276_v32, %v5569_v33  ;;  %v20350_v37 = vpop.f32.mrb[91].mxu1  ;;  %v6351_v32 = vrot.slane %v19351_v30, %v22010_v11 }
 0xf95   :  { %19278 = vst.msk [vmem:[%s25839_s18 + $0x1c] sm:$0x3] %vm449_vm2, %v5570_v35  ;;  %v6359_v33 = vcombine.high %v6351_v32, %v6351_v32  ;;  %v6367_v34 = vrot.slane %v6351_v32, %v22010_v11  ;;  %v20952_v32 = vld [vmem:[%s25825_s4 + $0x6c4] ss:$24 sps:$4 sm:$0xff]  }
 0xf97   :  { %v6381_v35 = vrot.slane %v6359_v33, %v22010_v11  ;;  %v6389_v38 = vcombine.high %v6367_v34, %v6367_v34  ;;  %v20955_v33 = vld [vmem:[%s25825_s4 + $0x6cc] ss:$24 sps:$4 sm:$0xff]  }
 0xf99   :  { %v6390_v37 = vcombine.high %v6381_v35, %v6381_v35 }
 0xfa2   :  { %v5759_v47 = vpop.f32.mrb[104].mxu1 }
 0xfa3   :  { %v5760_v48 = vadd.f32 %v5759_v47, %v5610_v46  ;;  %v5761_v49 = vpop.f32.mrb[105].mxu1  ;;  %v5968_v46 = vrot.slane %v19328_v41, %v22097_v57  ;;  %v5964_v47 = vmul.f32 %v5963_v45, %v22088_v54 }
 0xfa4   :  { %v5762_v50 = vpop.f32.mrb[106].mxu1  ;;  %v5974_v49 = vrot.slane %v19328_v41, %v22102_v60 }
 0xfa5   :  { %v5800_v51 = vadd.f32 %v5799_v5, %v5760_v48  ;;  %v5763_v52 = vpop.f32.mrb[107].mxu1  ;;  %v5994_v5 = vcombine.high %v5992_v8, %v5992_v8  ;;  %v5969_v48 = vmul.f32 %v5968_v46, %v22104_v61  ;;  %v19348_v46 = vld [vmem:[%s25829_s8 + $0x10] ss:$0 sm:$0xff] }
 0xfa7   :  { %v6022_v12 = vrot.slane %v5994_v5, %v22010_v11  ;;  %v5970_v50 = vadd.f32 %v5969_v48, %v5964_v47  ;;  %v19364_v48 = vld [vmem:[%s25826_s5 + $0x44] sm:$0x7] }
 0xfb2   :  { %v5839_v55 = vpop.f32.mrb[108].mxu1 }
 0xfb3   :  { %v5840_v58 = vadd.f32 %v5839_v55, %v5800_v51  ;;  %v5841_v59 = vpop.f32.mrb[109].mxu1  ;;  %v5975_v51 = vmul.f32 %v5974_v49, %v22109_v1 }
 0xfb4   :  { %v5842_v62 = vpop.f32.mrb[110].mxu1 }
 0xfb5   :  { %v5851_v63 = vadd.f32 %v19306_v53, %v5840_v58  ;;  %v5843_v0 = vpop.f32.mrb[111].mxu1  ;;  %v5976_v52 = vadd.f32 %v5975_v51, %v5970_v50  ;;  %v6329_v51 = vrot.slane %v19364_v48, %v22094_v56 }
 0xfb6   :  { %v19342_v0 = vld [vmem:[%s25827_s6 + $0x10] ss:$0 sm:$0xff] }
 0xfb7   :  { %v5852_v3 = vmax.f32 %v5851_v63, 0.0 }
 0xfb9   :  { %20360 = vmatmul.mubr.msk.f32.vlgmr.msra.gmra.mrb[98].mxu0 %vm375_vm1, %v5852_v3 }
 0xfba   :  { %6092 = vmatpush1.bf16.xpose.msra.mxu0 %v20912_v2  ;;  %6123 = vmatprep.mubr.bf16.mxu0 %v6015_v29  ;;  %v20942_v29 = vld [vmem:[%s25825_s4 + $0x69c] ss:$24 sps:$4 sm:$0xff]  }
 0xfbb   :  { %6093 = vmatprep.subr.bf16.mxu0 %v20920_v4 }
 0xfc2   :  { %6094 = vmatpush1.bf16.xpose.msra.mxu0 %v20918_v7  ;;  %v6165_v16 = vpop.f32.mrb[112].mxu1 }
 0xfc3   :  { %6171 = vmatprep.subr.bf16.mxu0 %v20926_v9  ;;  %v6167_v19 = vpop.f32.mrb[113].mxu1  ;;  %v20931_v9 = vld [vmem:[%s25825_s4 + $0x660] ss:$24 sps:$4 sm:$0xff]  }
 0xfc4   :  { %v6168_v22 = vpop.f32.mrb[114].mxu1  ;;  %v20948_v19 = vld [vmem:[%s25825_s4 + $0x6a4] ss:$24 sps:$4 sm:$0xff]  }
 0xfc5   :  { %v6169_v24 = vpop.f32.mrb[115].mxu1 }
 0xfc6   :  { %v19380_v24 = vld [vmem:[%s25828_s7 + $0x228] sm:$0xff] }
 0xfc9   :  { %6124 = vmatmul.mubr.bf16.vlgmr.msra.gmra.mrb[112].mxu0 %v6001_v28  ;;  %v20934_v28 = vld [vmem:[%s25825_s4 + $0x668] ss:$24 sps:$4 sm:$0xff]  }
 0xfca   :  { %6172 = vmatpush1.bf16.xpose.msra.mxu0 %v20924_v10  ;;  %6203 = vmatprep.mubr.bf16.mxu0 %v6022_v12  ;;  %v20939_v10 = vld [vmem:[%s25825_s4 + $0x694] ss:$24 sps:$4 sm:$0xff]   ;;  %v6344_v12 = vcombine.high %v19351_v30, %v19351_v30 }
 0xfcb   :  { %6173 = vmatprep.subr.bf16.mxu0 %v20929_v13  ;;  %v20937_v13 = vld [vmem:[%s25825_s4 + $0x690] ss:$24 sps:$4 sm:$0xff]  }
 0xfd2   :  { %6174 = vmatpush1.bf16.xpose.msra.mxu0 %v20927_v14  ;;  %v6358_v14 = vrot.slane %v6344_v12, %v22010_v11 }
 0xfd3   :  { %6497 = vmatprep.subr.bf16.mxu0 %v20936_v27  ;;  %v20553_v27 = vpack.c.bf16 %v19380_v24, %v19379_v23  ;;  %v20962_v23 = vld [vmem:[%s25825_s4 + $0x6d0] ss:$24 sps:$4 sm:$0xff]  }
 0xfd4   :  { %v6374_v21 = vrot.slane %v6358_v14, %v22010_v11 }
 0xfd9   :  { %6204 = vmatmul.mubr.bf16.vlgmr.msra.gmra.mrb[116].mxu0 %v6008_v15  ;;  %v20945_v15 = vld [vmem:[%s25825_s4 + $0x674] ss:$24 sps:$4 sm:$0xff]  }
 0xfda   :  { %6498 = vmatpush1.bf16.xpose.msra.mxu0 %v20934_v28  ;;  %6529 = vmatprep.mubr.bf16.mxu0 %v6390_v37  ;;  %v19387_v37 = vld [vmem:[%s25852_s27 + $0x6c] sm:$0x3f] }
 0xfdb   :  { %6499 = vmatprep.subr.bf16.mxu0 %v20942_v29  ;;  %v19382_v29 = vld [vmem:[%s25828_s7 + $0x238] sm:$0xff] }
 0xfe2   :  { %6500 = vmatpush1.bf16.xpose.msra.mxu0 %v20940_v31  ;;  %v20556_v31 = vpack.c.bf16 %v19382_v29, %v19381_v26  ;;  %v20965_v26 = vld [vmem:[%s25825_s4 + $0x700] ss:$24 sps:$4 sm:$0xff]  }
 0xfe3   :  { %20552 = vmatprep.subr.bf16.mxu0 %v25846_v36  ;;  %v19415_v29 = vld [vmem:[%s25828_s7 + $0x240] sm:$0xff] }
 0xfe9   :  { %6530 = vmatmul.mubr.bf16.vlgmr.msra.gmra.mrb[120].mxu0 %v6389_v38  ;;  %v20959_v38 = vld [vmem:[%s25825_s4 + $0x6f8] ss:$24 sps:$4 sm:$0xff]  }
 0xfea   :  { %20381 = vmatprep.mubr.msk.f32.mxu0 %vm21881_vm0, %v25844_v42  ;;  %20554 = vmatpush3.bf16.msra.mxu0 %v20553_v27 }
 0xfeb   :  { %20555 = vmatprep.subr.bf16.mxu0 %v25846_v36 }
 0xfee   :  { %20557 = vmatpush3.bf16.msra.mxu0 %v20556_v31 }
 0xfef   :  { %6823 = vmatprep.subr.bf16.mxu0 %v20952_v32  ;;  %v19417_v32 = vld [vmem:[%s25828_s7 + $0x250] sm:$0xff] }
0x108c   :  { %v5935_v40 = vpop.f32.mrb[98].mxu0 }
0x108d   :  { %v5936_v43 = vadd.f32 %v19312_v39, %v5935_v40  ;;  %v20361_v44 = vpop.f32.mrb[99].mxu0  ;;  %v6717_v39 = vrot.slane %v19387_v37, %v22010_v11 }
0x108f   :  { %19314 = vst.msk [vmem:[%s25839_s18 + $0x1e] sm:$0x3] %vm449_vm2, %v5936_v43  ;;  %v6725_v40 = vcombine.high %v6717_v39, %v6717_v39  ;;  %v6733_v41 = vrot.slane %v6717_v39, %v22010_v11  ;;  %v20971_v39 = vld [vmem:[%s25825_s4 + $0x724] ss:$24 sps:$4 sm:$0xff]  }
0x1091   :  { %v6747_v43 = vrot.slane %v6725_v40, %v22010_v11  ;;  %v6755_v45 = vcombine.high %v6733_v41, %v6733_v41  ;;  %v20974_v40 = vld [vmem:[%s25825_s4 + $0x72c] ss:$24 sps:$4 sm:$0xff]  }
0x1093   :  { %v6756_v44 = vcombine.high %v6747_v43, %v6747_v43 }
0x109c   :  { %v6125_v53 = vpop.f32.mrb[112].mxu0 }
0x109d   :  { %v6126_v55 = vadd.f32 %v6125_v53, %v5976_v52  ;;  %v6127_v58 = vpop.f32.mrb[113].mxu0  ;;  %v6334_v52 = vrot.slane %v19364_v48, %v22097_v57  ;;  %v6330_v53 = vmul.f32 %v6329_v51, %v22088_v54 }
0x109e   :  { %v6128_v59 = vpop.f32.mrb[114].mxu0  ;;  %v6340_v58 = vrot.slane %v19364_v48, %v22102_v60 }
0x109f   :  { %v6166_v62 = vadd.f32 %v6165_v16, %v6126_v55  ;;  %v6129_v63 = vpop.f32.mrb[115].mxu0  ;;  %v6360_v16 = vcombine.high %v6358_v14, %v6358_v14  ;;  %v6335_v55 = vmul.f32 %v6334_v52, %v22104_v61  ;;  %v19384_v52 = vld [vmem:[%s25829_s8 + $0x11] ss:$0 sm:$0xff] }
0x10a1   :  { %v6388_v18 = vrot.slane %v6360_v16, %v22010_v11  ;;  %v6336_v59 = vadd.f32 %v6335_v55, %v6330_v53  ;;  %v19400_v55 = vld [vmem:[%s25826_s5 + $0x48] sm:$0x7] }
0x10ac   :  { %v6205_v2 = vpop.f32.mrb[116].mxu0 }
0x10ad   :  { %v6206_v3 = vadd.f32 %v6205_v2, %v6166_v62  ;;  %v6207_v4 = vpop.f32.mrb[117].mxu0  ;;  %v6341_v62 = vmul.f32 %v6340_v58, %v22109_v1 }
0x10ae   :  { %v6208_v6 = vpop.f32.mrb[118].mxu0 }
0x10af   :  { %v6217_v7 = vadd.f32 %v19342_v0, %v6206_v3  ;;  %v6209_v8 = vpop.f32.mrb[119].mxu0  ;;  %v6342_v63 = vadd.f32 %v6341_v62, %v6336_v59  ;;  %v6695_v62 = vrot.slane %v19400_v55, %v22094_v56 }
0x10b0   :  { %v19378_v8 = vld [vmem:[%s25827_s6 + $0x11] ss:$0 sm:$0xff] }
0x10b1   :  { %v6218_v5 = vmax.f32 %v6217_v7, 0.0 }
0x10b3   :  { %20371 = vmatmul.mubr.msk.f32.vlgmr.msra.gmra.mrb[116].mxu1 %vm375_vm1, %v6218_v5 }
0x10b4   :  { %6458 = vmatpush1.bf16.xpose.msra.mxu1 %v20931_v9  ;;  %6489 = vmatprep.mubr.bf16.mxu1 %v6381_v35  ;;  %v20961_v35 = vld [vmem:[%s25825_s4 + $0x6fc] ss:$24 sps:$4 sm:$0xff]  }
0x10b5   :  { %6459 = vmatprep.subr.bf16.mxu1 %v20939_v10 }
0x10bc   :  { %6460 = vmatpush1.bf16.xpose.msra.mxu1 %v20937_v13  ;;  %v6531_v22 = vpop.f32.mrb[120].mxu0 }
0x10bd   :  { %6537 = vmatprep.subr.bf16.mxu1 %v20945_v15  ;;  %v6533_v25 = vpop.f32.mrb[121].mxu0  ;;  %v20950_v15 = vld [vmem:[%s25825_s4 + $0x6c0] ss:$24 sps:$4 sm:$0xff]  }
0x10be   :  { %v6534_v28 = vpop.f32.mrb[122].mxu0  ;;  %v20967_v25 = vld [vmem:[%s25825_s4 + $0x704] ss:$24 sps:$4 sm:$0xff]  }
0x10bf   :  { %v6535_v30 = vpop.f32.mrb[123].mxu0 }
0x10c0   :  { %v19416_v30 = vld [vmem:[%s25828_s7 + $0x248] sm:$0xff] }
0x10c3   :  { %6490 = vmatmul.mubr.bf16.vlgmr.msra.gmra.mrb[120].mxu1 %v6367_v34  ;;  %v20953_v34 = vld [vmem:[%s25825_s4 + $0x6c8] ss:$24 sps:$4 sm:$0xff]  }
0x10c4   :  { %6538 = vmatpush1.bf16.xpose.msra.mxu1 %v20943_v17  ;;  %6569 = vmatprep.mubr.bf16.mxu1 %v6388_v18  ;;  %v20958_v17 = vld [vmem:[%s25825_s4 + $0x6f4] ss:$24 sps:$4 sm:$0xff]   ;;  %v6710_v18 = vcombine.high %v19387_v37, %v19387_v37 }
0x10c5   :  { %6539 = vmatprep.subr.bf16.mxu1 %v20948_v19  ;;  %v20956_v19 = vld [vmem:[%s25825_s4 + $0x6f0] ss:$24 sps:$4 sm:$0xff]  }
0x10cc   :  { %6540 = vmatpush1.bf16.xpose.msra.mxu1 %v20946_v20  ;;  %v6724_v20 = vrot.slane %v6710_v18, %v22010_v11 }
0x10cd   :  { %6863 = vmatprep.subr.bf16.mxu1 %v20955_v33  ;;  %v20559_v33 = vpack.c.bf16 %v19416_v30, %v19415_v29  ;;  %v20981_v29 = vld [vmem:[%s25825_s4 + $0x730] ss:$24 sps:$4 sm:$0xff]  }
0x10ce   :  { %v6740_v27 = vrot.slane %v6724_v20, %v22010_v11 }
0x10d3   :  { %6570 = vmatmul.mubr.bf16.vlgmr.msra.gmra.mrb[124].mxu1 %v6374_v21  ;;  %v20964_v21 = vld [vmem:[%s25825_s4 + $0x6d4] ss:$24 sps:$4 sm:$0xff]  }
0x10d4   :  { %6864 = vmatpush1.bf16.xpose.msra.mxu1 %v20953_v34  ;;  %6895 = vmatprep.mubr.bf16.mxu1 %v6756_v44  ;;  %v19423_v44 = vld [vmem:[%s25852_s27 + $0x72] sm:$0x3f] }
0x10d5   :  { %6865 = vmatprep.subr.bf16.mxu1 %v20961_v35  ;;  %v19418_v35 = vld [vmem:[%s25828_s7 + $0x258] sm:$0xff] }
0x10dc   :  { %6866 = vmatpush1.bf16.xpose.msra.mxu1 %v20959_v38  ;;  %v20562_v38 = vpack.c.bf16 %v19418_v35, %v19417_v32  ;;  %v20984_v32 = vld [vmem:[%s25825_s4 + $0x760] ss:$24 sps:$4 sm:$0xff]  }
0x10dd   :  { %20558 = vmatprep.subr.bf16.mxu1 %v25846_v36  ;;  %v19451_v35 = vld [vmem:[%s25828_s7 + $0x260] sm:$0xff] }
0x10e3   :  { %6896 = vmatmul.mubr.bf16.vlgmr.msra.gmra.mrb[128].mxu1 %v6755_v45  ;;  %v20978_v45 = vld [vmem:[%s25825_s4 + $0x758] ss:$24 sps:$4 sm:$0xff]  }
0x10e4   :  { %20392 = vmatprep.mubr.msk.f32.mxu1 %vm21881_vm0, %v25844_v42  ;;  %20560 = vmatpush3.bf16.msra.mxu1 %v20559_v33 }
0x10e5   :  { %20561 = vmatprep.subr.bf16.mxu1 %v25846_v36 }
0x10e8   :  { %20563 = vmatpush3.bf16.msra.mxu1 %v20562_v38 }
0x10e9   :  { %7189 = vmatprep.subr.bf16.mxu1 %v20971_v39  ;;  %v19453_v39 = vld [vmem:[%s25828_s7 + $0x270] sm:$0xff] }
0x1186   :  { %v6301_v47 = vpop.f32.mrb[116].mxu1 }
0x1187   :  { %v6302_v49 = vadd.f32 %v19348_v46, %v6301_v47  ;;  %v20372_v50 = vpop.f32.mrb[117].mxu1  ;;  %v7083_v46 = vrot.slane %v19423_v44, %v22010_v11 }
0x1189   :  { %19350 = vst.msk [vmem:[%s25839_s18 + $0x20] sm:$0x3] %vm449_vm2, %v6302_v49  ;;  %v7091_v47 = vcombine.high %v7083_v46, %v7083_v46  ;;  %v7099_v48 = vrot.slane %v7083_v46, %v22010_v11  ;;  %v20990_v46 = vld [vmem:[%s25825_s4 + $0x784] ss:$24 sps:$4 sm:$0xff]  }
0x118b   :  { %v7113_v49 = vrot.slane %v7091_v47, %v22010_v11  ;;  %v7121_v51 = vcombine.high %v7099_v48, %v7099_v48  ;;  %v20993_v47 = vld [vmem:[%s25825_s4 + $0x78c] ss:$24 sps:$4 sm:$0xff]  }
0x118d   :  { %v7122_v50 = vcombine.high %v7113_v49, %v7113_v49 }
0x1196   :  { %v6491_v0 = vpop.f32.mrb[120].mxu1 }
0x1197   :  { %v6492_v2 = vadd.f32 %v6491_v0, %v6342_v63  ;;  %v6493_v3 = vpop.f32.mrb[121].mxu1  ;;  %v6700_v63 = vrot.slane %v19400_v55, %v22097_v57  ;;  %v6696_v0 = vmul.f32 %v6695_v62, %v22088_v54 }
0x1198   :  { %v6494_v4 = vpop.f32.mrb[122].mxu1  ;;  %v6706_v3 = vrot.slane %v19400_v55, %v22102_v60 }
0x1199   :  { %v6532_v6 = vadd.f32 %v6531_v22, %v6492_v2  ;;  %v6495_v7 = vpop.f32.mrb[123].mxu1  ;;  %v6726_v22 = vcombine.high %v6724_v20, %v6724_v20  ;;  %v6701_v2 = vmul.f32 %v6700_v63, %v22104_v61  ;;  %v19420_v63 = vld [vmem:[%s25829_s8 + $0x12] ss:$0 sm:$0xff] }
0x119b   :  { %v6754_v24 = vrot.slane %v6726_v22, %v22010_v11  ;;  %v6702_v4 = vadd.f32 %v6701_v2, %v6696_v0  ;;  %v19436_v2 = vld [vmem:[%s25826_s5 + $0x4c] sm:$0x7] }
0x11a6   :  { %v6571_v9 = vpop.f32.mrb[124].mxu1 }
0x11a7   :  { %v6572_v5 = vadd.f32 %v6571_v9, %v6532_v6  ;;  %v6573_v10 = vpop.f32.mrb[125].mxu1  ;;  %v6707_v6 = vmul.f32 %v6706_v3, %v22109_v1 }
0x11a8   :  { %v6574_v12 = vpop.f32.mrb[126].mxu1 }
0x11a9   :  { %v6583_v13 = vadd.f32 %v19378_v8, %v6572_v5  ;;  %v6575_v14 = vpop.f32.mrb[127].mxu1  ;;  %v6708_v7 = vadd.f32 %v6707_v6, %v6702_v4  ;;  %v7061_v6 = vrot.slane %v19436_v2, %v22094_v56 }
0x11aa   :  { %v19414_v14 = vld [vmem:[%s25827_s6 + $0x12] ss:$0 sm:$0xff] }
0x11ab   :  { %v6584_v16 = vmax.f32 %v6583_v13, 0.0 }
0x11ad   :  { %20382 = vmatmul.mubr.msk.f32.vlgmr.msra.gmra.mrb[124].mxu0 %vm375_vm1, %v6584_v16 }
0x11ae   :  { %6824 = vmatpush1.bf16.xpose.msra.mxu0 %v20950_v15  ;;  %6855 = vmatprep.mubr.bf16.mxu0 %v6747_v43  ;;  %v20980_v43 = vld [vmem:[%s25825_s4 + $0x75c] ss:$24 sps:$4 sm:$0xff]  }
0x11af   :  { %6825 = vmatprep.subr.bf16.mxu0 %v20958_v17 }
0x11b6   :  { %6826 = vmatpush1.bf16.xpose.msra.mxu0 %v20956_v19  ;;  %v6897_v28 = vpop.f32.mrb[128].mxu1 }
0x11b7   :  { %6903 = vmatprep.subr.bf16.mxu0 %v20964_v21  ;;  %v6899_v31 = vpop.f32.mrb[129].mxu1  ;;  %v20969_v21 = vld [vmem:[%s25825_s4 + $0x720] ss:$24 sps:$4 sm:$0xff]  }
0x11b8   :  { %v6900_v34 = vpop.f32.mrb[130].mxu1  ;;  %v20986_v31 = vld [vmem:[%s25825_s4 + $0x764] ss:$24 sps:$4 sm:$0xff]  }
0x11b9   :  { %v6901_v37 = vpop.f32.mrb[131].mxu1 }
0x11ba   :  { %v19452_v37 = vld [vmem:[%s25828_s7 + $0x268] sm:$0xff] }
0x11bd   :  { %6856 = vmatmul.mubr.bf16.vlgmr.msra.gmra.mrb[128].mxu0 %v6733_v41  ;;  %v20972_v41 = vld [vmem:[%s25825_s4 + $0x728] ss:$24 sps:$4 sm:$0xff]  }
0x11be   :  { %6904 = vmatpush1.bf16.xpose.msra.mxu0 %v20962_v23  ;;  %6935 = vmatprep.mubr.bf16.mxu0 %v6754_v24  ;;  %v20977_v23 = vld [vmem:[%s25825_s4 + $0x754] ss:$24 sps:$4 sm:$0xff]   ;;  %v7076_v24 = vcombine.high %v19423_v44, %v19423_v44 }
0x11bf   :  { %6905 = vmatprep.subr.bf16.mxu0 %v20967_v25  ;;  %v20975_v25 = vld [vmem:[%s25825_s4 + $0x750] ss:$24 sps:$4 sm:$0xff]  }
0x11c6   :  { %6906 = vmatpush1.bf16.xpose.msra.mxu0 %v20965_v26  ;;  %v7090_v26 = vrot.slane %v7076_v24, %v22010_v11 }
0x11c7   :  { %7229 = vmatprep.subr.bf16.mxu0 %v20974_v40  ;;  %v20565_v40 = vpack.c.bf16 %v19452_v37, %v19451_v35  ;;  %v21000_v35 = vld [vmem:[%s25825_s4 + $0x790] ss:$24 sps:$4 sm:$0xff]  }
0x11c8   :  { %v7106_v33 = vrot.slane %v7090_v26, %v22010_v11 }
0x11cd   :  { %6936 = vmatmul.mubr.bf16.vlgmr.msra.gmra.mrb[132].mxu0 %v6740_v27  ;;  %v20983_v27 = vld [vmem:[%s25825_s4 + $0x734] ss:$24 sps:$4 sm:$0xff]  }
0x11ce   :  { %7230 = vmatpush1.bf16.xpose.msra.mxu0 %v20972_v41  ;;  %7261 = vmatprep.mubr.bf16.mxu0 %v7122_v50  ;;  %v19459_v50 = vld [vmem:[%s25852_s27 + $0x78] sm:$0x3f] }
0x11cf   :  { %7231 = vmatprep.subr.bf16.mxu0 %v20980_v43  ;;  %v19454_v43 = vld [vmem:[%s25828_s7 + $0x278] sm:$0xff] }
0x11d6   :  { %7232 = vmatpush1.bf16.xpose.msra.mxu0 %v20978_v45  ;;  %v20568_v45 = vpack.c.bf16 %v19454_v43, %v19453_v39  ;;  %v21003_v39 = vld [vmem:[%s25825_s4 + $0x7c0] ss:$24 sps:$4 sm:$0xff]  }
0x11d7   :  { %20564 = vmatprep.subr.bf16.mxu0 %v25846_v36  ;;  %v19487_v43 = vld [vmem:[%s25828_s7 + $0x280] sm:$0xff] }
0x11dd   :  { %7262 = vmatmul.mubr.bf16.vlgmr.msra.gmra.mrb[136].mxu0 %v7121_v51  ;;  %v20997_v51 = vld [vmem:[%s25825_s4 + $0x7b8] ss:$24 sps:$4 sm:$0xff]  }
0x11de   :  { %20403 = vmatprep.mubr.msk.f32.mxu0 %vm21881_vm0, %v25844_v42  ;;  %20566 = vmatpush3.bf16.msra.mxu0 %v20565_v40 }
0x11df   :  { %20567 = vmatprep.subr.bf16.mxu0 %v25846_v36 }
0x11e2   :  { %20569 = vmatpush3.bf16.msra.mxu0 %v20568_v45 }
0x11e3   :  { %7555 = vmatprep.subr.bf16.mxu0 %v20990_v46  ;;  %v19489_v46 = vld [vmem:[%s25828_s7 + $0x290] sm:$0xff] }
0x1280   :  { %v6667_v53 = vpop.f32.mrb[124].mxu0 }
0x1281   :  { %v6668_v58 = vadd.f32 %v19384_v52, %v6667_v53  ;;  %v20383_v59 = vpop.f32.mrb[125].mxu0  ;;  %v7449_v52 = vrot.slane %v19459_v50, %v22010_v11 }
0x1283   :  { %19386 = vst.msk [vmem:[%s25839_s18 + $0x22] sm:$0x3] %vm449_vm2, %v6668_v58  ;;  %v7457_v53 = vcombine.high %v7449_v52, %v7449_v52  ;;  %v7465_v55 = vrot.slane %v7449_v52, %v22010_v11  ;;  %v21009_v52 = vld [vmem:[%s25825_s4 + $0x7e4] ss:$24 sps:$4 sm:$0xff]  }
0x1285   :  { %v7479_v58 = vrot.slane %v7457_v53, %v22010_v11  ;;  %v7487_v62 = vcombine.high %v7465_v55, %v7465_v55  ;;  %v21012_v53 = vld [vmem:[%s25825_s4 + $0x7ec] ss:$24 sps:$4 sm:$0xff]  }
0x1287   :  { %v7488_v59 = vcombine.high %v7479_v58, %v7479_v58 }
0x1290   :  { %v6857_v8 = vpop.f32.mrb[128].mxu0 }
0x1291   :  { %v6858_v9 = vadd.f32 %v6857_v8, %v6708_v7  ;;  %v6859_v5 = vpop.f32.mrb[129].mxu0  ;;  %v7066_v7 = vrot.slane %v19436_v2, %v22097_v57  ;;  %v7062_v8 = vmul.f32 %v7061_v6, %v22088_v54 }
0x1292   :  { %v6860_v10 = vpop.f32.mrb[130].mxu0  ;;  %v7072_v5 = vrot.slane %v19436_v2, %v22102_v60 }
0x1293   :  { %v6898_v12 = vadd.f32 %v6897_v28, %v6858_v9  ;;  %v6861_v13 = vpop.f32.mrb[131].mxu0  ;;  %v7092_v28 = vcombine.high %v7090_v26, %v7090_v26  ;;  %v7067_v9 = vmul.f32 %v7066_v7, %v22104_v61  ;;  %v19456_v7 = vld [vmem:[%s25829_s8 + $0x13] ss:$0 sm:$0xff] }
0x1295   :  { %v7120_v30 = vrot.slane %v7092_v28, %v22010_v11  ;;  %v7068_v10 = vadd.f32 %v7067_v9, %v7062_v8  ;;  %v19472_v9 = vld [vmem:[%s25826_s5 + $0x50] sm:$0x7] }
0x12a0   :  { %v6937_v15 = vpop.f32.mrb[132].mxu0 }
0x12a1   :  { %v6938_v16 = vadd.f32 %v6937_v15, %v6898_v12  ;;  %v6939_v17 = vpop.f32.mrb[133].mxu0  ;;  %v7073_v12 = vmul.f32 %v7072_v5, %v22109_v1 }
0x12a2   :  { %v6940_v18 = vpop.f32.mrb[134].mxu0 }
0x12a3   :  { %v6949_v19 = vadd.f32 %v19414_v14, %v6938_v16  ;;  %v6941_v20 = vpop.f32.mrb[135].mxu0  ;;  %v7074_v13 = vadd.f32 %v7073_v12, %v7068_v10  ;;  %v7427_v12 = vrot.slane %v19472_v9, %v22094_v56 }
0x12a4   :  { %v19450_v20 = vld [vmem:[%s25827_s6 + $0x13] ss:$0 sm:$0xff] }
0x12a5   :  { %v6950_v22 = vmax.f32 %v6949_v19, 0.0 }
0x12a7   :  { %20393 = vmatmul.mubr.msk.f32.vlgmr.msra.gmra.mrb[118].mxu1 %vm375_vm1, %v6950_v22 }
0x12a8   :  { %7190 = vmatpush1.bf16.xpose.msra.mxu1 %v20969_v21  ;;  %7221 = vmatprep.mubr.bf16.mxu1 %v7113_v49  ;;  %v20999_v49 = vld [vmem:[%s25825_s4 + $0x7bc] ss:$24 sps:$4 sm:$0xff]  }
0x12a9   :  { %7191 = vmatprep.subr.bf16.mxu1 %v20977_v23 }
0x12b0   :  { %7192 = vmatpush1.bf16.xpose.msra.mxu1 %v20975_v25  ;;  %v7263_v34 = vpop.f32.mrb[136].mxu0 }
0x12b1   :  { %7269 = vmatprep.subr.bf16.mxu1 %v20983_v27  ;;  %v7265_v38 = vpop.f32.mrb[137].mxu0  ;;  %v20988_v27 = vld [vmem:[%s25825_s4 + $0x780] ss:$24 sps:$4 sm:$0xff]  }
0x12b2   :  { %v7266_v41 = vpop.f32.mrb[138].mxu0  ;;  %v21005_v38 = vld [vmem:[%s25825_s4 + $0x7c4] ss:$24 sps:$4 sm:$0xff]  }
0x12b3   :  { %v7267_v44 = vpop.f32.mrb[139].mxu0 }
0x12b4   :  { %v19488_v44 = vld [vmem:[%s25828_s7 + $0x288] sm:$0xff] }
0x12b7   :  { %7222 = vmatmul.mubr.bf16.vlgmr.msra.gmra.mrb[132].mxu1 %v7099_v48  ;;  %v20991_v48 = vld [vmem:[%s25825_s4 + $0x788] ss:$24 sps:$4 sm:$0xff]  }
0x12b8   :  { %7270 = vmatpush1.bf16.xpose.msra.mxu1 %v20981_v29  ;;  %7301 = vmatprep.mubr.bf16.mxu1 %v7120_v30  ;;  %v20996_v29 = vld [vmem:[%s25825_s4 + $0x7b4] ss:$24 sps:$4 sm:$0xff]   ;;  %v7442_v30 = vcombine.high %v19459_v50, %v19459_v50 }
0x12b9   :  { %7271 = vmatprep.subr.bf16.mxu1 %v20986_v31  ;;  %v20994_v31 = vld [vmem:[%s25825_s4 + $0x7b0] ss:$24 sps:$4 sm:$0xff]  }
0x12c0   :  { %7272 = vmatpush1.bf16.xpose.msra.mxu1 %v20984_v32  ;;  %v7456_v32 = vrot.slane %v7442_v30, %v22010_v11 }
0x12c1   :  { %7595 = vmatprep.subr.bf16.mxu1 %v20993_v47  ;;  %v20571_v47 = vpack.c.bf16 %v19488_v44, %v19487_v43  ;;  %v21019_v43 = vld [vmem:[%s25825_s4 + $0x7f0] ss:$24 sps:$4 sm:$0xff]  }
0x12c2   :  { %v7472_v40 = vrot.slane %v7456_v32, %v22010_v11 }
0x12c7   :  { %7302 = vmatmul.mubr.bf16.vlgmr.msra.gmra.mrb[136].mxu1 %v7106_v33  ;;  %v21002_v33 = vld [vmem:[%s25825_s4 + $0x794] ss:$24 sps:$4 sm:$0xff]  }
0x12c8   :  { %7596 = vmatpush1.bf16.xpose.msra.mxu1 %v20991_v48  ;;  %7627 = vmatprep.mubr.bf16.mxu1 %v7488_v59  ;;  %v19495_v59 = vld [vmem:[%s25852_s27 + $0x7e] sm:$0x3f] }
0x12c9   :  { %7597 = vmatprep.subr.bf16.mxu1 %v20999_v49  ;;  %v19490_v49 = vld [vmem:[%s25828_s7 + $0x298] sm:$0xff] }
0x12d0   :  { %7598 = vmatpush1.bf16.xpose.msra.mxu1 %v20997_v51  ;;  %v20574_v51 = vpack.c.bf16 %v19490_v49, %v19489_v46  ;;  %v8137_v46 = vld [vmem:[%s25854_s30] sm:$0xff] }
0x12d1   :  { %20570 = vmatprep.subr.bf16.mxu1 %v25846_v36 }
0x12d7   :  { %7628 = vmatmul.mubr.bf16.vlgmr.msra.gmra.mrb[140].mxu1 %v7487_v62  ;;  %v21016_v62 = vld [vmem:[%s25825_s4 + $0x818] ss:$24 sps:$4 sm:$0xff]  }
0x12d8   :  { %20414 = vmatprep.mubr.msk.f32.mxu1 %vm21881_vm0, %v25844_v42  ;;  %20572 = vmatpush3.bf16.msra.mxu1 %v20571_v47  ;;  %v8461_v47 = vrot.slane %v8137_v46, %v22010_v11 }
0x12d9   :  { %20573 = vmatprep.subr.bf16.mxu1 %v25846_v36 }
0x12da   :  { %v8469_v49 = vcombine.high %v8461_v47, %v8461_v47 }
0x12dc   :  { %20575 = vmatpush3.bf16.msra.mxu1 %v20574_v51  ;;  %v23767_v51 = vrot.slane %v8469_v49, %v22010_v11 }
0x12dd   :  { %7921 = vmatprep.subr.bf16.mxu1 %v21009_v52 }
0x137a   :  { %v7033_v0 = vpop.f32.mrb[118].mxu1 }
0x137b   :  { %v7034_v3 = vadd.f32 %v19420_v63, %v7033_v0  ;;  %v20394_v4 = vpop.f32.mrb[119].mxu1  ;;  %v7815_v63 = vrot.slane %v19495_v59, %v22010_v11 }
0x137d   :  { %19422 = vst.msk [vmem:[%s25839_s18 + $0x24] sm:$0x3] %vm449_vm2, %v7034_v3  ;;  %v7823_v0 = vcombine.high %v7815_v63, %v7815_v63  ;;  %v7831_v2 = vrot.slane %v7815_v63, %v22010_v11  ;;  %v21029_v63 = vld [vmem:[%s25830_s9 + $0x428] ss:$528 sps:$4 sm:$0xff]  }
0x137f   :  { %v7845_v3 = vrot.slane %v7823_v0, %v22010_v11  ;;  %v7853_v6 = vcombine.high %v7831_v2, %v7831_v2 }
0x1381   :  { %v7854_v4 = vcombine.high %v7845_v3, %v7845_v3 }
0x138a   :  { %v7223_v14 = vpop.f32.mrb[132].mxu1 }
0x138b   :  { %v7224_v15 = vadd.f32 %v7223_v14, %v7074_v13  ;;  %v7225_v16 = vpop.f32.mrb[133].mxu1  ;;  %v7432_v13 = vrot.slane %v19472_v9, %v22097_v57  ;;  %v7428_v14 = vmul.f32 %v7427_v12, %v22088_v54  ;;  %v21035_v12 = vld [vmem:[%s25830_s9 + $0x438] ss:$528 sps:$4 sm:$0xff]  }
0x138c   :  { %v7226_v17 = vpop.f32.mrb[134].mxu1  ;;  %v7438_v16 = vrot.slane %v19472_v9, %v22102_v60  ;;  %v21037_v9 = vld [vmem:[%s25830_s9 + $0x43c] ss:$528 sps:$4 sm:$0xff]  }
0x138d   :  { %v7264_v18 = vadd.f32 %v7263_v34, %v7224_v15  ;;  %v7227_v19 = vpop.f32.mrb[135].mxu1  ;;  %v7458_v34 = vcombine.high %v7456_v32, %v7456_v32  ;;  %v7433_v15 = vmul.f32 %v7432_v13, %v22104_v61 }
0x138f   :  { %v7486_v37 = vrot.slane %v7458_v34, %v22010_v11  ;;  %v7434_v17 = vadd.f32 %v7433_v15, %v7428_v14  ;;  %v21041_v14 = vld [vmem:[%s25830_s9 + $0x2c] ss:$528 sps:$4 sm:$0xff]  }
0x139a   :  { %v7303_v21 = vpop.f32.mrb[136].mxu1 }
0x139b   :  { %v7304_v22 = vadd.f32 %v7303_v21, %v7264_v18  ;;  %v7305_v23 = vpop.f32.mrb[137].mxu1  ;;  %v7439_v18 = vmul.f32 %v7438_v16, %v22109_v1 }
0x139c   :  { %v7306_v24 = vpop.f32.mrb[138].mxu1 }
0x139d   :  { %v7315_v25 = vadd.f32 %v19450_v20, %v7304_v22  ;;  %v7307_v26 = vpop.f32.mrb[139].mxu1  ;;  %v7440_v19 = vadd.f32 %v7439_v18, %v7434_v17  ;;  %v21039_v18 = vld [vmem:[%s25830_s9 + $0x28] ss:$528 sps:$4 sm:$0xff]  }
0x139e   :  { %v19486_v26 = vld [vmem:[%s25827_s6 + $0x14] ss:$0 sm:$0xff] }
0x139f   :  { %v7316_v28 = vmax.f32 %v7315_v25, 0.0 }
0x13a1   :  { %20404 = vmatmul.mubr.msk.f32.vlgmr.msra.gmra.mrb[126].mxu0 %vm375_vm1, %v7316_v28 }
0x13a2   :  { %7556 = vmatpush1.bf16.xpose.msra.mxu0 %v20988_v27  ;;  %7587 = vmatprep.mubr.bf16.mxu0 %v7479_v58  ;;  %v21018_v58 = vld [vmem:[%s25825_s4 + $0x81c] ss:$24 sps:$4 sm:$0xff]  }
0x13a3   :  { %7557 = vmatprep.subr.bf16.mxu0 %v20996_v29 }
0x13aa   :  { %7558 = vmatpush1.bf16.xpose.msra.mxu0 %v20994_v31  ;;  %v7629_v41 = vpop.f32.mrb[140].mxu1 }
0x13ab   :  { %7635 = vmatprep.subr.bf16.mxu0 %v21002_v33  ;;  %v7631_v45 = vpop.f32.mrb[141].mxu1  ;;  %v21007_v33 = vld [vmem:[%s25825_s4 + $0x7e0] ss:$24 sps:$4 sm:$0xff]  }
0x13ac   :  { %v7632_v48 = vpop.f32.mrb[142].mxu1  ;;  %v21024_v45 = vld [vmem:[%s25825_s4 + $0x824] ss:$24 sps:$4 sm:$0xff]  }
0x13ad   :  { %v7633_v50 = vpop.f32.mrb[143].mxu1  ;;  %v21022_v48 = vld [vmem:[%s25825_s4 + $0x820] ss:$24 sps:$4 sm:$0xff]  }
0x13ae   :  { %v21028_v50 = vld [vmem:[%s25830_s9 + $0xc] ss:$528 sps:$4 sm:$0xff]  }
0x13b1   :  { %7588 = vmatmul.mubr.bf16.vlgmr.msra.gmra.mrb[140].mxu0 %v7465_v55  ;;  %v21010_v55 = vld [vmem:[%s25825_s4 + $0x7e8] ss:$24 sps:$4 sm:$0xff]  }
0x13b2   :  { %7636 = vmatpush1.bf16.xpose.msra.mxu0 %v21000_v35  ;;  %7667 = vmatprep.mubr.bf16.mxu0 %v7486_v37  ;;  %v21015_v35 = vld [vmem:[%s25825_s4 + $0x814] ss:$24 sps:$4 sm:$0xff]   ;;  %v7808_v37 = vcombine.high %v19495_v59, %v19495_v59 }
0x13b3   :  { %7637 = vmatprep.subr.bf16.mxu0 %v21005_v38  ;;  %v21013_v38 = vld [vmem:[%s25825_s4 + $0x810] ss:$24 sps:$4 sm:$0xff]   ;;  %v21031_v59 = vld [vmem:[%s25830_s9 + $0x42c] ss:$528 sps:$4 sm:$0xff]  }
0x13ba   :  { %7638 = vmatpush1.bf16.xpose.msra.mxu0 %v21003_v39  ;;  %v7822_v39 = vrot.slane %v7808_v37, %v22010_v11  ;;  %v21054_v37 = vld [vmem:[%s25830_s9 + $0x4c] ss:$528 sps:$4 sm:$0xff]  }
0x13bb   :  { %7961 = vmatprep.subr.bf16.mxu0 %v21012_v53  ;;  %v21026_v53 = vld [vmem:[%s25830_s9 + $0x8] ss:$528 sps:$4 sm:$0xff]  }
0x13bc   :  { %v7838_v52 = vrot.slane %v7822_v39, %v22010_v11 }
0x13c1   :  { %7668 = vmatmul.mubr.bf16.vlgmr.msra.gmra.mrb[144].mxu0 %v7472_v40  ;;  %v21021_v40 = vld [vmem:[%s25825_s4 + $0x7f4] ss:$24 sps:$4 sm:$0xff]  }
0x13c2   :  { %7962 = vmatpush1.bf16.xpose.msra.mxu0 %v21010_v55  ;;  %7993 = vmatprep.mubr.bf16.mxu0 %v7854_v4  ;;  %v8501_v55 = vcombine.high %v23767_v51, %v23767_v51 }
0x13c3   :  { %7963 = vmatprep.subr.bf16.mxu0 %v21018_v58  ;;  %v8454_v58 = vcombine.high %v8137_v46, %v8137_v46 }
0x13ca   :  { %7964 = vmatpush1.bf16.xpose.msra.mxu0 %v21016_v62  ;;  %v8468_v62 = vrot.slane %v8454_v58, %v22010_v11 }
0x13cb   :  { %20576 = vmatprep.subr.bf16.mxu0 %v25846_v36 }
0x13cc   :  { %v8470_v0 = vcombine.high %v8468_v62, %v8468_v62  ;;  %v23812_v15 = vrot.slane %v8468_v62, %v22010_v11  ;;  %v19523_v62 = vld [vmem:[%s25828_s7 + $0x2a0] sm:$0xff] }
0x13ce   :  { %v23789_v4 = vrot.slane %v8470_v0, %v22010_v11  ;;  %v8500_v17 = vcombine.high %v23812_v15, %v23812_v15 }
0x13d1   :  { %7994 = vmatmul.mubr.bf16.vlgmr.msra.gmra.mrb[148].mxu0 %v7853_v6 }
0x13d2   :  { %20425 = vmatprep.mubr.msk.f32.mxu0 %vm21881_vm0, %v25844_v42 }
0x1474   :  { %v7399_v8 = vpop.f32.mrb[126].mxu0 }
0x1475   :  { %v7400_v5 = vadd.f32 %v19456_v7, %v7399_v8  ;;  %v20405_v10 = vpop.f32.mrb[127].mxu0  ;;  %v21032_v7 = vld [vmem:[%s25830_s9 + $0x18] ss:$528 sps:$4 sm:$0xff]   ;;  %v8502_v8 = vcombine.high %v23789_v4, %v23789_v4 }
0x1477   :  { %19458 = vst.msk [vmem:[%s25839_s18 + $0x26] sm:$0x3] %vm449_vm2, %v7400_v5  ;;  %v8138_v5 = vld [vmem:[%s25854_s30 + $0x8] sm:$0xff] }
0x1478   :  { %v8510_v10 = vrot.slane %v8138_v5, %v22010_v11 }
0x147a   :  { %v8518_v13 = vcombine.high %v8510_v10, %v8510_v10 }
0x147c   :  { %v23815_v16 = vrot.slane %v8518_v13, %v22010_v11 }
0x1484   :  { %v7589_v20 = vpop.f32.mrb[140].mxu0 }
0x1485   :  { %v7590_v21 = vadd.f32 %v7589_v20, %v7440_v19  ;;  %v7591_v22 = vpop.f32.mrb[141].mxu0  ;;  %v8550_v19 = vcombine.high %v23815_v16, %v23815_v16  ;;  %v8503_v20 = vcombine.high %v8138_v5, %v8138_v5 }
0x1486   :  { %v7592_v23 = vpop.f32.mrb[142].mxu0 }
0x1487   :  { %v7630_v24 = vadd.f32 %v7629_v41, %v7590_v21  ;;  %v7593_v25 = vpop.f32.mrb[143].mxu0  ;;  %v7824_v41 = vcombine.high %v7822_v39, %v7822_v39  ;;  %v21044_v21 = vld [vmem:[%s25830_s9 + $0x44c] ss:$528 sps:$4 sm:$0xff]   ;;  %v8517_v22 = vrot.slane %v8503_v20, %v22010_v11  ;;  %v21042_v23 = vld [vmem:[%s25830_s9 + $0x448] ss:$528 sps:$4 sm:$0xff]  }
0x1488   :  { %v21047_v25 = vld [vmem:[%s25830_s9 + $0x3c] ss:$528 sps:$4 sm:$0xff]  }
0x1489   :  { %v7852_v44 = vrot.slane %v7824_v41, %v22010_v11  ;;  %v21052_v41 = vld [vmem:[%s25830_s9 + $0x48] ss:$528 sps:$4 sm:$0xff]  }
0x1494   :  { %v7669_v27 = vpop.f32.mrb[144].mxu0 }
0x1495   :  { %v7670_v28 = vadd.f32 %v7669_v27, %v7630_v24  ;;  %v7671_v29 = vpop.f32.mrb[145].mxu0  ;;  %v8519_v24 = vcombine.high %v8517_v22, %v8517_v22 }
0x1496   :  { %v7672_v30 = vpop.f32.mrb[146].mxu0  ;;  %v21045_v29 = vld [vmem:[%s25830_s9 + $0x38] ss:$528 sps:$4 sm:$0xff]  }
0x1497   :  { %v7681_v31 = vadd.f32 %v19486_v26, %v7670_v28  ;;  %v7673_v32 = vpop.f32.mrb[147].mxu0  ;;  %v23835_v26 = vrot.slane %v8510_v10, %v22010_v11  ;;  %v23838_v27 = vrot.slane %v8519_v24, %v22010_v11  ;;  %v21063_v10 = vld [vmem:[%s25830_s9 + $0x47c] ss:$528 sps:$4 sm:$0xff]  }
0x1498   :  { %v8139_v32 = vld [vmem:[%s25854_s30 + $0x10] sm:$0xff] }
0x1499   :  { %v7682_v34 = vmax.f32 %v7681_v31, 0.0  ;;  %v8548_v28 = vcombine.high %v23835_v26, %v23835_v26  ;;  %v8551_v30 = vcombine.high %v23838_v27, %v23838_v27  ;;  %v21050_v31 = vld [vmem:[%s25830_s9 + $0x45c] ss:$528 sps:$4 sm:$0xff]  }
0x149b   :  { %20415 = vmatmul.mubr.msk.f32.vlgmr.msra.gmra.mrb[144].mxu1 %vm375_vm1, %v7682_v34  ;;  %v21048_v34 = vld [vmem:[%s25830_s9 + $0x458] ss:$528 sps:$4 sm:$0xff]  }
0x149c   :  { %7922 = vmatpush1.bf16.xpose.msra.mxu1 %v21007_v33  ;;  %7953 = vmatprep.mubr.bf16.mxu1 %v7845_v3  ;;  %v23786_v3 = vrot.slane %v8461_v47, %v22010_v11  ;;  %v8559_v33 = vrot.slane %v8139_v32, %v22010_v11  ;;  %v21055_v47 = vld [vmem:[%s25830_s9 + $0x468] ss:$528 sps:$4 sm:$0xff]  }
0x149d   :  { %7923 = vmatprep.subr.bf16.mxu1 %v21015_v35 }
0x149e   :  { %v8499_v6 = vcombine.high %v23786_v3, %v23786_v3  ;;  %v8567_v35 = vcombine.high %v8559_v33, %v8559_v33 }
0x14a0   :  { %v23864_v39 = vrot.slane %v8567_v35, %v22010_v11 }
0x14a4   :  { %7924 = vmatpush1.bf16.xpose.msra.mxu1 %v21013_v38  ;;  %v23861_v38 = vrot.slane %v8517_v22, %v22010_v11  ;;  %v23880_v49 = vpop.f32.mrb[148].mxu0 }
0x14a5   :  { %8001 = vmatprep.subr.bf16.mxu1 %v21021_v40 }
0x14a6   :  { %v8549_v40 = vcombine.high %v23861_v38, %v23861_v38 }
0x14ab   :  { %7954 = vmatmul.mubr.bf16.vlgmr.msra.gmra.mrb[148].mxu1 %v7831_v2  ;;  %v21034_v2 = vld [vmem:[%s25830_s9 + $0x1c] ss:$528 sps:$4 sm:$0xff]  }
0x14ac   :  { %8002 = vmatpush1.bf16.xpose.msra.mxu1 %v21019_v43  ;;  %8033 = vmatprep.mubr.bf16.mxu1 %v7852_v44  ;;  %v8599_v43 = vcombine.high %v23864_v39, %v23864_v39  ;;  %v8552_v44 = vcombine.high %v8139_v32, %v8139_v32  ;;  %v21073_v32 = vld [vmem:[%s25830_s9 + $0x7c] ss:$528 sps:$4 sm:$0xff]  }
0x14ad   :  { %8003 = vmatprep.subr.bf16.mxu1 %v21024_v45  ;;  %v21057_v45 = vld [vmem:[%s25830_s9 + $0x46c] ss:$528 sps:$4 sm:$0xff]  }
0x14ae   :  { %v8566_v46 = vrot.slane %v8552_v44, %v22010_v11 }
0x14b0   :  { %v23928_v20 = vrot.slane %v8566_v46, %v22010_v11 }
0x14b2   :  { %v8598_v22 = vcombine.high %v23928_v20, %v23928_v20 }
0x14b4   :  { %8004 = vmatpush1.bf16.xpose.msra.mxu1 %v21022_v48  ;;  %v8568_v48 = vcombine.high %v8566_v46, %v8566_v46 }
0x14b5   :  { %10754 = vmatprep.subr.bf16.mxu1 %v21028_v50  ;;  %v21060_v50 = vld [vmem:[%s25830_s9 + $0x5c] ss:$528 sps:$4 sm:$0xff]  }
0x14bb   :  { %8034 = vmatmul.mubr.bf16.vlgmr.msra.gmra.mrb[152].mxu1 %v7838_v52  ;;  %v7997_v52 = vpop.f32.mrb[149].mxu0 }
0x14bc   :  { %10755 = vmatpush1.bf16.xpose.msra.mxu1 %v21026_v53  ;;  %10786 = vmatprep.mubr.bf16.mxu1 %v8501_v55  ;;  %v7998_v53 = vpop.f32.mrb[150].mxu0  ;;  %v23886_v55 = vrot.slane %v8559_v33, %v22010_v11 }
0x14bd   :  { %10756 = vmatprep.subr.bf16.mxu1 %v21031_v59  ;;  %v7999_v58 = vpop.f32.mrb[151].mxu0  ;;  %v23889_v59 = vrot.slane %v8568_v48, %v22010_v11  ;;  %v21078_v53 = vld [vmem:[%s25830_s9 + $0x88] ss:$528 sps:$4 sm:$0xff]  }
0x14bf   :  { %v8600_v5 = vcombine.high %v23889_v59, %v23889_v59 }
0x14c4   :  { %10757 = vmatpush1.bf16.xpose.msra.mxu1 %v21029_v63  ;;  %v19524_v63 = vld [vmem:[%s25828_s7 + $0x2a8] sm:$0xff] }
0x14c5   :  { %10834 = vmatprep.subr.bf16.mxu1 %v21034_v2  ;;  %v20577_v0 = vpack.c.bf16 %v19524_v63, %v19523_v62  ;;  %v19525_v2 = vld [vmem:[%s25828_s7 + $0x2b0] sm:$0xff]  ;;  %v21083_v63 = vld [vmem:[%s25830_s9 + $0x4ac] ss:$528 sps:$4 sm:$0xff]  }
0x14c7   :  { %20578 = vmatpush3.bf16.msra.mxu0 %v20577_v0 }
0x14c8   :  { %20579 = vmatprep.subr.bf16.mxu0 %v25846_v36 }
0x14cb   :  { %10787 = vmatmul.mubr.bf16.vlgmr.msra.gmra.mrb[156].mxu1 %v8499_v6  ;;  %v19526_v6 = vld [vmem:[%s25828_s7 + $0x2b8] sm:$0xff] }
0x14cc   :  { %10835 = vmatpush1.bf16.xpose.msra.mxu1 %v21032_v7  ;;  %10866 = vmatprep.mubr.bf16.mxu1 %v8502_v8  ;;  %v8597_v7 = vcombine.high %v23886_v55, %v23886_v55  ;;  %v20580_v8 = vpack.c.bf16 %v19526_v6, %v19525_v2  ;;  %v21081_v2 = vld [vmem:[%s25830_s9 + $0x4a8] ss:$528 sps:$4 sm:$0xff]  }
0x14cd   :  { %10836 = vmatprep.subr.bf16.mxu1 %v21037_v9  ;;  %v21058_v9 = vld [vmem:[%s25830_s9 + $0x58] ss:$528 sps:$4 sm:$0xff]  }
0x14ce   :  { %20581 = vmatpush3.bf16.msra.mxu0 %v20580_v8 }
0x14d4   :  { %10837 = vmatpush1.bf16.xpose.msra.mxu1 %v21035_v12  ;;  %v8140_v12 = vld [vmem:[%s25854_s30 + $0x18] sm:$0xff] }
0x14d5   :  { %10914 = vmatprep.subr.bf16.mxu1 %v21041_v14  ;;  %v8608_v13 = vrot.slane %v8140_v12, %v22010_v11  ;;  %v21061_v14 = vld [vmem:[%s25830_s9 + $0x478] ss:$528 sps:$4 sm:$0xff]  }
0x14d7   :  { %v23951_v33 = vrot.slane %v8608_v13, %v22010_v11 }
0x14d9   :  { %v8646_v35 = vcombine.high %v23951_v33, %v23951_v33 }
0x14db   :  { %10867 = vmatmul.mubr.bf16.vlgmr.msra.gmra.mrb[160].mxu1 %v8500_v17  ;;  %v8616_v17 = vcombine.high %v8608_v13, %v8608_v13  ;;  %v21089_v13 = vld [vmem:[%s25830_s9 + $0x4bc] ss:$528 sps:$4 sm:$0xff]  }
0x14dc   :  { %10915 = vmatpush1.bf16.xpose.msra.mxu1 %v21039_v18  ;;  %10946 = vmatprep.mubr.bf16.mxu1 %v8550_v19  ;;  %v21067_v18 = vld [vmem:[%s25830_s9 + $0x6c] ss:$528 sps:$4 sm:$0xff]   ;;  %v21117_v19 = vld [vmem:[%s25830_s9 + $0x4] ss:$528 sps:$4 sm:$0xff]  }
0x14dd   :  { %10916 = vmatprep.subr.bf16.mxu1 %v21044_v21  ;;  %v23931_v21 = vrot.slane %v8616_v17, %v22010_v11  ;;  %10714 = vmatprep.subr.bf16.mxu0 %v21117_v19 }
0x14df   :  { %v8648_v24 = vcombine.high %v23931_v21, %v23931_v21 }
0x14e4   :  { %10917 = vmatpush1.bf16.xpose.msra.mxu1 %v21042_v23  ;;  %v21065_v23 = vld [vmem:[%s25830_s9 + $0x68] ss:$528 sps:$4 sm:$0xff]  }
0x14e5   :  { %10994 = vmatprep.subr.bf16.mxu1 %v21047_v25  ;;  %v8601_v25 = vcombine.high %v8140_v12, %v8140_v12 }
0x14eb   :  { %10947 = vmatmul.mubr.bf16.vlgmr.msra.gmra.mrb[164].mxu1 %v8548_v28  ;;  %v21070_v28 = vld [vmem:[%s25830_s9 + $0x48c] ss:$528 sps:$4 sm:$0xff]  }
0x14ec   :  { %10995 = vmatpush1.bf16.xpose.msra.mxu1 %v21045_v29  ;;  %11026 = vmatprep.mubr.bf16.mxu1 %v8551_v30  ;;  %v8615_v29 = vrot.slane %v8601_v25, %v22010_v11  ;;  %v21068_v30 = vld [vmem:[%s25830_s9 + $0x488] ss:$528 sps:$4 sm:$0xff]  }
0x14ed   :  { %10996 = vmatprep.subr.bf16.mxu1 %v21050_v31 }
0x14ee   :  { %v8617_v31 = vcombine.high %v8615_v29, %v8615_v29  ;;  %v23977_v48 = vrot.slane %v8615_v29, %v22010_v11 }
0x14f0   :  { %v8647_v52 = vcombine.high %v23977_v48, %v23977_v48 }
0x14f4   :  { %10997 = vmatpush1.bf16.xpose.msra.mxu1 %v21048_v34  ;;  %v23954_v34 = vrot.slane %v8617_v31, %v22010_v11  ;;  %v21096_v31 = vld [vmem:[%s25830_s9 + $0x4cc] ss:$528 sps:$4 sm:$0xff]  }
0x14f5   :  { %11074 = vmatprep.subr.bf16.mxu1 %v21054_v37  ;;  %v21071_v37 = vld [vmem:[%s25830_s9 + $0x78] ss:$528 sps:$4 sm:$0xff]  }
0x14fb   :  { %11027 = vmatmul.mubr.bf16.vlgmr.msra.gmra.mrb[168].mxu1 %v8549_v40  ;;  %v8649_v40 = vcombine.high %v23954_v34, %v23954_v34 }
0x14fc   :  { %11075 = vmatpush1.bf16.xpose.msra.mxu1 %v21052_v41  ;;  %11106 = vmatprep.mubr.bf16.mxu1 %v8599_v43  ;;  %v21076_v41 = vld [vmem:[%s25830_s9 + $0x49c] ss:$528 sps:$4 sm:$0xff]   ;;  %v8141_v43 = vld [vmem:[%s25854_s30 + $0x20] sm:$0xff] }
0x14fd   :  { %11076 = vmatprep.subr.bf16.mxu1 %v21057_v45  ;;  %v8657_v44 = vrot.slane %v8141_v43, %v22010_v11  ;;  %v21074_v45 = vld [vmem:[%s25830_s9 + $0x498] ss:$528 sps:$4 sm:$0xff]   ;;  %v8650_v62 = vcombine.high %v8141_v43, %v8141_v43 }
0x14ff   :  { %v8665_v46 = vcombine.high %v8657_v44, %v8657_v44  ;;  %v8664_v0 = vrot.slane %v8650_v62, %v22010_v11  ;;  %v24000_v8 = vrot.slane %v8657_v44, %v22010_v11 }
0x1501   :  { %v8666_v6 = vcombine.high %v8664_v0, %v8664_v0 }
0x1504   :  { %11077 = vmatpush1.bf16.xpose.msra.mxu1 %v21055_v47  ;;  %v21080_v47 = vld [vmem:[%s25830_s9 + $0x8c] ss:$528 sps:$4 sm:$0xff]  }
0x1505   :  { %11154 = vmatprep.subr.bf16.mxu1 %v21060_v50  ;;  %v23980_v50 = vrot.slane %v8665_v46, %v22010_v11 }
0x1507   :  { %v8697_v58 = vcombine.high %v23980_v50, %v23980_v50 }
0x150b   :  { %11107 = vmatmul.mubr.bf16.vlgmr.msra.gmra.mrb[172].mxu1 %v8597_v7  ;;  %v21086_v7 = vld [vmem:[%s25830_s9 + $0x9c] ss:$528 sps:$4 sm:$0xff]  }
0x150c   :  { %11155 = vmatpush1.bf16.xpose.msra.mxu1 %v21058_v9  ;;  %11186 = vmatprep.mubr.bf16.mxu1 %v8600_v5  ;;  %v24003_v9 = vrot.slane %v8666_v6, %v22010_v11  ;;  %v8695_v5 = vcombine.high %v24000_v8, %v24000_v8  ;;  %v21100_v6 = vld [vmem:[%s25830_s9 + $0x4d8] ss:$528 sps:$4 sm:$0xff]  }
0x150d   :  { %11156 = vmatprep.subr.bf16.mxu1 %v21063_v10  ;;  %v21084_v10 = vld [vmem:[%s25830_s9 + $0x98] ss:$528 sps:$4 sm:$0xff]  }
0x150e   :  { %v8698_v12 = vcombine.high %v24003_v9, %v24003_v9 }
0x1514   :  { %11157 = vmatpush1.bf16.xpose.msra.mxu1 %v21061_v14  ;;  %v8142_v14 = vld [vmem:[%s25854_s30 + $0x28] sm:$0xff] }
0x1515   :  { %11234 = vmatprep.subr.bf16.mxu1 %v21067_v18  ;;  %v8706_v17 = vrot.slane %v8142_v14, %v22010_v11  ;;  %v21087_v18 = vld [vmem:[%s25830_s9 + $0x4b8] ss:$528 sps:$4 sm:$0xff]  }
0x1517   :  { %v8714_v19 = vcombine.high %v8706_v17, %v8706_v17 }
0x151b   :  { %11187 = vmatmul.mubr.bf16.vlgmr.msra.gmra.mrb[176].mxu1 %v8598_v22  ;;  %v21093_v22 = vld [vmem:[%s25830_s9 + $0xac] ss:$528 sps:$4 sm:$0xff]  }
0x151c   :  { %11235 = vmatpush1.bf16.xpose.msra.mxu1 %v21065_v23  ;;  %11266 = vmatprep.mubr.bf16.mxu1 %v8648_v24  ;;  %v24026_v23 = vrot.slane %v8664_v0, %v22010_v11  ;;  %v24029_v24 = vrot.slane %v8714_v19, %v22010_v11 }
0x151d   :  { %11236 = vmatprep.subr.bf16.mxu1 %v21070_v28  ;;  %v21091_v28 = vld [vmem:[%s25830_s9 + $0xa8] ss:$528 sps:$4 sm:$0xff]  }
0x151e   :  { %v8696_v25 = vcombine.high %v24026_v23, %v24026_v23  ;;  %v8746_v29 = vcombine.high %v24029_v24, %v24029_v24 }
0x1524   :  { %11237 = vmatpush1.bf16.xpose.msra.mxu1 %v21068_v30  ;;  %v8699_v30 = vcombine.high %v8142_v14, %v8142_v14 }
0x1525   :  { %11314 = vmatprep.subr.bf16.mxu1 %v21073_v32 }
0x1526   :  { %v8713_v32 = vrot.slane %v8699_v30, %v22010_v11 }
0x152b   :  { %11267 = vmatmul.mubr.bf16.vlgmr.msra.gmra.mrb[180].mxu1 %v8646_v35  ;;  %v21094_v35 = vld [vmem:[%s25830_s9 + $0x4c8] ss:$528 sps:$4 sm:$0xff]  }
0x152c   :  { %11315 = vmatpush1.bf16.xpose.msra.mxu1 %v21071_v37  ;;  %11346 = vmatprep.mubr.bf16.mxu1 %v8649_v40  ;;  %v8715_v37 = vcombine.high %v8713_v32, %v8713_v32  ;;  %v21099_v40 = vld [vmem:[%s25830_s9 + $0xbc] ss:$528 sps:$4 sm:$0xff]  }
0x152d   :  { %11316 = vmatprep.subr.bf16.mxu1 %v21076_v41  ;;  %v24049_v41 = vrot.slane %v8706_v17, %v22010_v11 }
0x152e   :  { %v24052_v43 = vrot.slane %v8715_v37, %v22010_v11 }
0x152f   :  { %v8744_v44 = vcombine.high %v24049_v41, %v24049_v41 }
0x1530   :  { %v8747_v46 = vcombine.high %v24052_v43, %v24052_v43 }
0x1534   :  { %11317 = vmatpush1.bf16.xpose.msra.mxu1 %v21074_v45  ;;  %v21097_v45 = vld [vmem:[%s25830_s9 + $0xb8] ss:$528 sps:$4 sm:$0xff]  }
0x1535   :  { %11394 = vmatprep.subr.bf16.mxu1 %v21080_v47  ;;  %v21102_v47 = vld [vmem:[%s25830_s9 + $0x4dc] ss:$528 sps:$4 sm:$0xff]  }
0x153b   :  { %11347 = vmatmul.mubr.bf16.vlgmr.msra.gmra.mrb[184].mxu1 %v8647_v52  ;;  %v8143_v52 = vld [vmem:[%s25854_s30 + $0x30] sm:$0xff] }
0x153c   :  { %11395 = vmatpush1.bf16.xpose.msra.mxu1 %v21078_v53  ;;  %11426 = vmatprep.mubr.bf16.mxu1 %v8697_v58  ;;  %v19492_v53 = vld [vmem:[%s25829_s8 + $0x14] ss:$0 sm:$0xff]  ;;  %v8755_v58 = vrot.slane %v8143_v52, %v22010_v11 }
0x153d   :  { %11396 = vmatprep.subr.bf16.mxu1 %v21083_v63  ;;  %v19508_v63 = vld [vmem:[%s25826_s5 + $0x54] sm:$0x7] }
0x153e   :  { %v7804_v19 = vrot.slane %v19508_v63, %v22102_v60 }
0x1544   :  { %11397 = vmatpush1.bf16.xpose.msra.mxu1 %v21081_v2 }
0x1545   :  { %11474 = vmatprep.subr.bf16.mxu1 %v21086_v7  ;;  %v8763_v7 = vcombine.high %v8755_v58, %v8755_v58 }
0x1547   :  { %v24090_v14 = vrot.slane %v8763_v7, %v22010_v11 }
0x154b   :  { %11427 = vmatmul.mubr.bf16.vlgmr.msra.gmra.mrb[188].mxu1 %v8695_v5  ;;  %v21105_v5 = vld [vmem:[%s25830_s9 + $0xcc] ss:$528 sps:$4 sm:$0xff]  }
0x154c   :  { %11475 = vmatpush1.bf16.xpose.msra.mxu1 %v21084_v10  ;;  %11506 = vmatprep.mubr.bf16.mxu1 %v8698_v12  ;;  %v7793_v10 = vrot.slane %v19508_v63, %v22094_v56  ;;  %v7798_v12 = vrot.slane %v19508_v63, %v22097_v57  ;;  %v21111_v63 = vld [vmem:[%s25830_s9 + $0xdc] ss:$528 sps:$4 sm:$0xff]  }
0x154d   :  { %11476 = vmatprep.subr.bf16.mxu1 %v21089_v13  ;;  %v24087_v13 = vrot.slane %v8713_v32, %v22010_v11  ;;  %v21108_v32 = vld [vmem:[%s25830_s9 + $0x4ec] ss:$528 sps:$4 sm:$0xff]  }
0x154e   :  { %v7794_v17 = vmul.f32 %v7793_v10, %v22088_v54 }
0x1554   :  { %11477 = vmatpush1.bf16.xpose.msra.mxu1 %v21087_v18  ;;  %v7799_v18 = vmul.f32 %v7798_v12, %v22104_v61  ;;  %v19522_v12 = vld [vmem:[%s25827_s6 + $0x15] ss:$0 sm:$0xff] }
0x1555   :  { %11554 = vmatprep.subr.bf16.mxu1 %v21093_v22  ;;  %v8745_v22 = vcombine.high %v24087_v13, %v24087_v13 }
0x1556   :  { %v7800_v30 = vadd.f32 %v7799_v18, %v7794_v17 }
0x155b   :  { %11507 = vmatmul.mubr.bf16.vlgmr.msra.gmra.mrb[192].mxu1 %v8696_v25  ;;  %v21103_v25 = vld [vmem:[%s25830_s9 + $0xc8] ss:$528 sps:$4 sm:$0xff]  }
0x155c   :  { %11555 = vmatpush1.bf16.xpose.msra.mxu1 %v21091_v28  ;;  %11586 = vmatprep.mubr.bf16.mxu1 %v8746_v29  ;;  %v8795_v28 = vcombine.high %v24090_v14, %v24090_v14  ;;  %v8748_v29 = vcombine.high %v8143_v52, %v8143_v52 }
0x155d   :  { %11556 = vmatprep.subr.bf16.mxu1 %v21096_v31  ;;  %v7805_v31 = vmul.f32 %v7804_v19, %v22109_v1 }
0x155f   :  { %v7806_v37 = vadd.f32 %v7805_v31, %v7800_v30  ;;  %v21121_v31 = vld [vmem:[%s25830_s9 + $0xec] ss:$528 sps:$4 sm:$0xff]  }
0x1564   :  { %11557 = vmatpush1.bf16.xpose.msra.mxu1 %v21094_v35  ;;  %v8762_v35 = vrot.slane %v8748_v29, %v22010_v11 }
0x1565   :  { %11634 = vmatprep.subr.bf16.mxu1 %v21099_v40 }
0x1566   :  { %v8764_v52 = vcombine.high %v8762_v35, %v8762_v35 }
0x156b   :  { %11587 = vmatmul.mubr.bf16.vlgmr.msra.gmra.mrb[196].mxu1 %v8744_v44 }
0x156c   :  { %11635 = vmatpush1.bf16.xpose.msra.mxu1 %v21097_v45  ;;  %11666 = vmatprep.mubr.bf16.mxu1 %v8747_v46 }
0x156d   :  { %11636 = vmatprep.subr.bf16.mxu1 %v21102_v47  ;;  %v21106_v47 = vld [vmem:[%s25830_s9 + $0x4e8] ss:$528 sps:$4 sm:$0xff]  }
0x156e   :  { %v7765_v62 = vpop.f32.mrb[144].mxu1 }
0x156f   :  { %v7766_v0 = vadd.f32 %v19492_v53, %v7765_v62  ;;  %v20416_v2 = vpop.f32.mrb[145].mxu1 }
0x1570   :  { %v24118_v2 = vrot.slane %v8764_v52, %v22010_v11 }
0x1571   :  { %19494 = vst.msk [vmem:[%s25839_s18 + $0x28] sm:$0x3] %vm449_vm2, %v7766_v0  ;;  %v24115_v0 = vrot.slane %v8755_v58, %v22010_v11  ;;  %v21114_v58 = vld [vmem:[%s25830_s9 + $0x4fc] ss:$528 sps:$4 sm:$0xff]  }
0x1572   :  { %v8796_v7 = vcombine.high %v24118_v2, %v24118_v2 }
0x1574   :  { %11637 = vmatpush1.bf16.xpose.msra.mxu1 %v21100_v6  ;;  %v8793_v6 = vcombine.high %v24115_v0, %v24115_v0 }
0x1575   :  { %11714 = vmatprep.subr.bf16.mxu1 %v21105_v5  ;;  %v8144_v5 = vld [vmem:[%s25854_s30 + $0x38] sm:$0xff] }
0x1576   :  { %v8804_v10 = vrot.slane %v8144_v5, %v22010_v11  ;;  %v8797_v52 = vcombine.high %v8144_v5, %v8144_v5  ;;  %v21136_v5 = vld [vmem:[%s25830_s9 + $0x434] ss:$528 sps:$4 sm:$0xff]  }
0x157b   :  { %11667 = vmatmul.mubr.bf16.vlgmr.msra.gmra.mrb[200].mxu1 %v8745_v22 }
0x157c   :  { %11715 = vmatpush1.bf16.xpose.msra.mxu1 %v21103_v25  ;;  %11746 = vmatprep.mubr.bf16.mxu1 %v8795_v28  ;;  %v21112_v25 = vld [vmem:[%s25830_s9 + $0x4f8] ss:$528 sps:$4 sm:$0xff]   ;;  %v8812_v28 = vcombine.high %v8804_v10, %v8804_v10 }
0x157d   :  { %11716 = vmatprep.subr.bf16.mxu1 %v21108_v32  ;;  %v21115_v32 = vld [vmem:[%s25830_s9] ss:$528 sps:$4 sm:$0xff]  }
0x157e   :  { %v7955_v40 = vpop.f32.mrb[148].mxu1 }
0x157f   :  { %v7956_v44 = vadd.f32 %v7955_v40, %v7806_v37  ;;  %v7957_v45 = vpop.f32.mrb[149].mxu1  ;;  %v21124_v40 = vld [vmem:[%s25830_s9 + $0x424] ss:$528 sps:$4 sm:$0xff]  }
0x1580   :  { %v7958_v46 = vpop.f32.mrb[150].mxu1  ;;  %v24153_v45 = vrot.slane %v8812_v28, %v22010_v11 }
0x1581   :  { %v7996_v53 = vadd.f32 %v23880_v49, %v7956_v44  ;;  %v7959_v62 = vpop.f32.mrb[151].mxu1  ;;  %v21109_v49 = vld [vmem:[%s25830_s9 + $0xd8] ss:$528 sps:$4 sm:$0xff]   ;;  %v24150_v44 = vrot.slane %v8762_v35, %v22010_v11 }
0x1582   :  { %v8844_v35 = vcombine.high %v24153_v45, %v24153_v45  ;;  %v21130_v62 = vld [vmem:[%s25830_s9 + $0x14] ss:$528 sps:$4 sm:$0xff]  }
0x1583   :  { %v8794_v46 = vcombine.high %v24150_v44, %v24150_v44 }
0x1584   :  { %11717 = vmatpush1.bf16.xpose.msra.mxu1 %v21106_v47  ;;  %v21119_v47 = vld [vmem:[%s25830_s9 + $0xe8] ss:$528 sps:$4 sm:$0xff]  }
0x1585   :  { %11794 = vmatprep.subr.bf16.mxu1 %v21111_v63  ;;  %v8811_v63 = vrot.slane %v8797_v52, %v22010_v11 }
0x158b   :  { %11747 = vmatmul.mubr.bf16.vlgmr.msra.gmra.mrb[204].mxu1 %v8793_v6  ;;  %v21125_v6 = vld [vmem:[%s25830_s9 + $0x508] ss:$528 sps:$4 sm:$0xff]  }
0x158c   :  { %11795 = vmatpush1.bf16.xpose.msra.mxu1 %v21109_v49  ;;  %11826 = vmatprep.mubr.bf16.mxu1 %v8796_v7  ;;  %v8813_v49 = vcombine.high %v8811_v63, %v8811_v63  ;;  %v21133_v7 = vld [vmem:[%s25830_s9 + $0xfc] ss:$528 sps:$4 sm:$0xff]  }
0x158d   :  { %11796 = vmatprep.subr.bf16.mxu1 %v21114_v58  ;;  %v21128_v58 = vld [vmem:[%s25830_s9 + $0x10] ss:$528 sps:$4 sm:$0xff]  }
0x158e   :  { %v8035_v17 = vpop.f32.mrb[152].mxu1 }
0x158f   :  { %v8036_v18 = vadd.f32 %v8035_v17, %v7996_v53  ;;  %v8037_v19 = vpop.f32.mrb[153].mxu1  ;;  %v21127_v53 = vld [vmem:[%s25830_s9 + $0x50c] ss:$528 sps:$4 sm:$0xff]   ;;  %v24190_v17 = vrot.slane %v8813_v49, %v22010_v11 }
0x1590   :  { %v8038_v22 = vpop.f32.mrb[154].mxu1  ;;  %v21131_v19 = vld [vmem:[%s25830_s9 + $0xf8] ss:$528 sps:$4 sm:$0xff]   ;;  %v21158_v49 = vld [vmem:[%s25830_s9 + $0x11c] ss:$528 sps:$4 sm:$0xff]  }
0x1591   :  { %v8047_v29 = vadd.f32 %v19522_v12, %v8036_v18  ;;  %v8039_v30 = vpop.f32.mrb[155].mxu1  ;;  %v24187_v12 = vrot.slane %v8804_v10, %v22010_v11  ;;  %v8845_v10 = vcombine.high %v24190_v17, %v24190_v17  ;;  %v21139_v22 = vld [vmem:[%s25830_s9 + $0x51c] ss:$528 sps:$4 sm:$0xff]  }
0x1593   :  { %v8048_v37 = vmax.f32 %v8047_v29, 0.0  ;;  %v8842_v18 = vcombine.high %v24187_v12, %v24187_v12  ;;  %v21137_v29 = vld [vmem:[%s25830_s9 + $0x518] ss:$528 sps:$4 sm:$0xff]  }
0x1594   :  { %11797 = vmatpush1.bf16.xpose.msra.mxu1 %v21112_v25  ;;  %v21142_v25 = vld [vmem:[%s25830_s9 + $0x24] ss:$528 sps:$4 sm:$0xff]  }
0x1595   :  { %20426 = vmatmul.mubr.msk.f32.vlgmr.msra.gmra.mrb[152].mxu0 %vm375_vm1, %v8048_v37  ;;  %11874 = vmatprep.subr.bf16.mxu1 %v21121_v31  ;;  %v21146_v31 = vld [vmem:[%s25830_s9 + $0x10c] ss:$528 sps:$4 sm:$0xff]   ;;  %v21149_v37 = vld [vmem:[%s25830_s9 + $0x444] ss:$528 sps:$4 sm:$0xff]  }
0x1596   :  { %10715 = vmatpush1.bf16.xpose.msra.mxu0 %v21115_v32  ;;  %10746 = vmatprep.mubr.bf16.mxu0 %v23767_v51  ;;  %v21122_v51 = vld [vmem:[%s25830_s9 + $0x420] ss:$528 sps:$4 sm:$0xff]  }
0x1597   :  { %10716 = vmatprep.subr.bf16.mxu0 %v21124_v40  ;;  %v21140_v32 = vld [vmem:[%s25830_s9 + $0x20] ss:$528 sps:$4 sm:$0xff]   ;;  %v24227_v40 = vrot.slane %v8811_v63, %v22010_v11  ;;  %v21150_v63 = vld [vmem:[%s25830_s9 + $0x528] ss:$528 sps:$4 sm:$0xff]  }
0x159b   :  { %11827 = vmatmul.mubr.bf16.vlgmr.msra.gmra.mrb[208].mxu1 %v8794_v46 }
0x159c   :  { %11875 = vmatpush1.bf16.xpose.msra.mxu1 %v21119_v47  ;;  %11906 = vmatprep.mubr.bf16.mxu1 %v8844_v35  ;;  %v8843_v47 = vcombine.high %v24227_v40, %v24227_v40  ;;  %v21144_v35 = vld [vmem:[%s25830_s9 + $0x108] ss:$528 sps:$4 sm:$0xff]  }
0x159d   :  { %11876 = vmatprep.subr.bf16.mxu1 %v21127_v53 }
0x159e   :  { %10717 = vmatpush1.bf16.xpose.msra.mxu0 %v21122_v51  ;;  %v21155_v51 = vld [vmem:[%s25830_s9 + $0x34] ss:$528 sps:$4 sm:$0xff]  }
0x159f   :  { %10794 = vmatprep.subr.bf16.mxu0 %v21130_v62 }
0x15a4   :  { %11877 = vmatpush1.bf16.xpose.msra.mxu1 %v21125_v6 }
0x15a5   :  { %10747 = vmatmul.mubr.bf16.vlgmr.msra.gmra.mrb[156].mxu0 %v23786_v3  ;;  %11954 = vmatprep.subr.bf16.mxu1 %v21133_v7  ;;  %v8145_v3 = vld [vmem:[%s25854_s30 + $0x40] sm:$0xff] }
0x15a6   :  { %10795 = vmatpush1.bf16.xpose.msra.mxu0 %v21128_v58  ;;  %10826 = vmatprep.mubr.bf16.mxu0 %v23789_v4  ;;  %v21134_v4 = vld [vmem:[%s25830_s9 + $0x430] ss:$528 sps:$4 sm:$0xff]   ;;  %v8853_v28 = vrot.slane %v8145_v3, %v22010_v11  ;;  %v8846_v53 = vcombine.high %v8145_v3, %v8145_v3  ;;  %v21161_v58 = vld [vmem:[%s25830_s9 + $0x454] ss:$528 sps:$4 sm:$0xff]   ;;  %v21164_v3 = vld [vmem:[%s25830_s9 + $0x53c] ss:$528 sps:$4 sm:$0xff]  }
0x15a7   :  { %10796 = vmatprep.subr.bf16.mxu0 %v21136_v5  ;;  %v21153_v7 = vld [vmem:[%s25830_s9 + $0x30] ss:$528 sps:$4 sm:$0xff]  }
0x15a8   :  { %v8861_v30 = vcombine.high %v8853_v28, %v8853_v28  ;;  %v8860_v62 = vrot.slane %v8846_v53, %v22010_v11  ;;  %v24264_v5 = vrot.slane %v8853_v28, %v22010_v11  ;;  %v21162_v28 = vld [vmem:[%s25830_s9 + $0x538] ss:$528 sps:$4 sm:$0xff]  }
0x15aa   :  { %v24230_v46 = vrot.slane %v8861_v30, %v22010_v11  ;;  %v8862_v6 = vcombine.high %v8860_v62, %v8860_v62  ;;  %v21171_v30 = vld [vmem:[%s25830_s9 + $0x12c] ss:$528 sps:$4 sm:$0xff]  }
0x15ab   :  { %11907 = vmatmul.mubr.bf16.vlgmr.msra.gmra.mrb[212].mxu1 %v8842_v18 }
0x15ac   :  { %11955 = vmatpush1.bf16.xpose.msra.mxu1 %v21131_v19  ;;  %11986 = vmatprep.mubr.bf16.mxu1 %v8845_v10  ;;  %v8893_v52 = vcombine.high %v24230_v46, %v24230_v46  ;;  %v24267_v18 = vrot.slane %v8862_v6, %v22010_v11  ;;  %v8891_v19 = vcombine.high %v24264_v5, %v24264_v5  ;;  %v21156_v10 = vld [vmem:[%s25830_s9 + $0x118] ss:$528 sps:$4 sm:$0xff]   ;;  %v21183_v6 = vld [vmem:[%s25830_s9 + $0x13c] ss:$528 sps:$4 sm:$0xff]  }
0x15ad   :  { %11956 = vmatprep.subr.bf16.mxu1 %v21139_v22 }
0x15ae   :  { %10797 = vmatpush1.bf16.xpose.msra.mxu0 %v21134_v4  ;;  %v8894_v22 = vcombine.high %v24267_v18, %v24267_v18  ;;  %v21167_v4 = vld [vmem:[%s25830_s9 + $0x44] ss:$528 sps:$4 sm:$0xff]  }
0x15af   :  { %10874 = vmatprep.subr.bf16.mxu0 %v21142_v25 }
0x15b4   :  { %11957 = vmatpush1.bf16.xpose.msra.mxu1 %v21137_v29 }
0x15b5   :  { %10827 = vmatmul.mubr.bf16.vlgmr.msra.gmra.mrb[160].mxu0 %v23812_v15  ;;  %12034 = vmatprep.subr.bf16.mxu1 %v21146_v31  ;;  %v21152_v15 = vld [vmem:[%s25830_s9 + $0x52c] ss:$528 sps:$4 sm:$0xff]   ;;  %v21165_v31 = vld [vmem:[%s25830_s9 + $0x40] ss:$528 sps:$4 sm:$0xff]  }
0x15b6   :  { %10875 = vmatpush1.bf16.xpose.msra.mxu0 %v21140_v32  ;;  %10906 = vmatprep.mubr.bf16.mxu0 %v23815_v16  ;;  %v21147_v16 = vld [vmem:[%s25830_s9 + $0x440] ss:$528 sps:$4 sm:$0xff]   ;;  %v21174_v32 = vld [vmem:[%s25830_s9 + $0x464] ss:$528 sps:$4 sm:$0xff]  }
0x15b7   :  { %10876 = vmatprep.subr.bf16.mxu0 %v21149_v37  ;;  %v24304_v37 = vrot.slane %v8860_v62, %v22010_v11  ;;  %v21175_v62 = vld [vmem:[%s25830_s9 + $0x548] ss:$528 sps:$4 sm:$0xff]  }
0x15bb   :  { %11987 = vmatmul.mubr.bf16.vlgmr.msra.gmra.mrb[216].mxu1 %v8843_v47 }
0x15bc   :  { %12035 = vmatpush1.bf16.xpose.msra.mxu1 %v21144_v35  ;;  %12066 = vmatprep.mubr.bf16.mxu1 %v8893_v52  ;;  %v8892_v35 = vcombine.high %v24304_v37, %v24304_v37  ;;  %v21169_v52 = vld [vmem:[%s25830_s9 + $0x128] ss:$528 sps:$4 sm:$0xff]  }
0x15bd   :  { %12036 = vmatprep.subr.bf16.mxu1 %v21152_v15 }
0x15be   :  { %10877 = vmatpush1.bf16.xpose.msra.mxu0 %v21147_v16  ;;  %v21180_v16 = vld [vmem:[%s25830_s9 + $0x54] ss:$528 sps:$4 sm:$0xff]  }
0x15bf   :  { %10954 = vmatprep.subr.bf16.mxu0 %v21155_v51 }
0x15c4   :  { %12037 = vmatpush1.bf16.xpose.msra.mxu1 %v21150_v63 }
0x15c5   :  { %10907 = vmatmul.mubr.bf16.vlgmr.msra.gmra.mrb[164].mxu0 %v23835_v26  ;;  %12114 = vmatprep.subr.bf16.mxu1 %v21158_v49  ;;  %v8146_v26 = vld [vmem:[%s25854_s30 + $0x48] sm:$0xff]  ;;  %v21178_v49 = vld [vmem:[%s25830_s9 + $0x50] ss:$528 sps:$4 sm:$0xff]  }
0x15c6   :  { %10955 = vmatpush1.bf16.xpose.msra.mxu0 %v21153_v7  ;;  %10986 = vmatprep.mubr.bf16.mxu0 %v23838_v27  ;;  %v21159_v27 = vld [vmem:[%s25830_s9 + $0x450] ss:$528 sps:$4 sm:$0xff]   ;;  %v8902_v25 = vrot.slane %v8146_v26, %v22010_v11  ;;  %v8895_v15 = vcombine.high %v8146_v26, %v8146_v26  ;;  %v21186_v7 = vld [vmem:[%s25830_s9 + $0x474] ss:$528 sps:$4 sm:$0xff]   ;;  %v21189_v26 = vld [vmem:[%s25830_s9 + $0x55c] ss:$528 sps:$4 sm:$0xff]  }
0x15c7   :  { %10956 = vmatprep.subr.bf16.mxu0 %v21161_v58 }
0x15c8   :  { %v8910_v29 = vcombine.high %v8902_v25, %v8902_v25  ;;  %v8909_v51 = vrot.slane %v8895_v15, %v22010_v11  ;;  %v24341_v58 = vrot.slane %v8902_v25, %v22010_v11  ;;  %v21187_v25 = vld [vmem:[%s25830_s9 + $0x558] ss:$528 sps:$4 sm:$0xff]  }
0x15ca   :  { %v24307_v47 = vrot.slane %v8910_v29, %v22010_v11  ;;  %v8911_v63 = vcombine.high %v8909_v51, %v8909_v51  ;;  %v21196_v29 = vld [vmem:[%s25830_s9 + $0x14c] ss:$528 sps:$4 sm:$0xff]  }
0x15cb   :  { %12067 = vmatmul.mubr.bf16.vlgmr.msra.gmra.mrb[220].mxu1 %v8891_v19 }
0x15cc   :  { %12115 = vmatpush1.bf16.xpose.msra.mxu1 %v21156_v10  ;;  %12146 = vmatprep.mubr.bf16.mxu1 %v8894_v22  ;;  %v8942_v53 = vcombine.high %v24307_v47, %v24307_v47  ;;  %v24344_v19 = vrot.slane %v8911_v63, %v22010_v11  ;;  %v8940_v10 = vcombine.high %v24341_v58, %v24341_v58  ;;  %v21181_v22 = vld [vmem:[%s25830_s9 + $0x138] ss:$528 sps:$4 sm:$0xff]  }
0x15cd   :  { %12116 = vmatprep.subr.bf16.mxu1 %v21164_v3 }
0x15ce   :  { %10957 = vmatpush1.bf16.xpose.msra.mxu0 %v21159_v27  ;;  %v8943_v3 = vcombine.high %v24344_v19, %v24344_v19  ;;  %v21192_v27 = vld [vmem:[%s25830_s9 + $0x64] ss:$528 sps:$4 sm:$0xff]  }
0x15cf   :  { %11034 = vmatprep.subr.bf16.mxu0 %v21167_v4 }
0x15d4   :  { %12117 = vmatpush1.bf16.xpose.msra.mxu1 %v21162_v28 }
0x15d5   :  { %10987 = vmatmul.mubr.bf16.vlgmr.msra.gmra.mrb[168].mxu0 %v23861_v38  ;;  %12194 = vmatprep.subr.bf16.mxu1 %v21171_v30  ;;  %v21177_v38 = vld [vmem:[%s25830_s9 + $0x54c] ss:$528 sps:$4 sm:$0xff]   ;;  %v21190_v30 = vld [vmem:[%s25830_s9 + $0x60] ss:$528 sps:$4 sm:$0xff]  }
0x15d6   :  { %11035 = vmatpush1.bf16.xpose.msra.mxu0 %v21165_v31  ;;  %11066 = vmatprep.mubr.bf16.mxu0 %v23864_v39  ;;  %v21172_v39 = vld [vmem:[%s25830_s9 + $0x460] ss:$528 sps:$4 sm:$0xff]   ;;  %v21199_v31 = vld [vmem:[%s25830_s9 + $0x484] ss:$528 sps:$4 sm:$0xff]  }
0x15d7   :  { %11036 = vmatprep.subr.bf16.mxu0 %v21174_v32  ;;  %v24381_v32 = vrot.slane %v8909_v51, %v22010_v11 }
0x15db   :  { %12147 = vmatmul.mubr.bf16.vlgmr.msra.gmra.mrb[224].mxu1 %v8892_v35 }
0x15dc   :  { %12195 = vmatpush1.bf16.xpose.msra.mxu1 %v21169_v52  ;;  %12226 = vmatprep.mubr.bf16.mxu1 %v8942_v53  ;;  %v8941_v52 = vcombine.high %v24381_v32, %v24381_v32  ;;  %v21194_v53 = vld [vmem:[%s25830_s9 + $0x148] ss:$528 sps:$4 sm:$0xff]  }
0x15dd   :  { %12196 = vmatprep.subr.bf16.mxu1 %v21177_v38 }
0x15de   :  { %11037 = vmatpush1.bf16.xpose.msra.mxu0 %v21172_v39  ;;  %v24395_v39 = vpop.f32.mrb[156].mxu1 }
0x15df   :  { %11114 = vmatprep.subr.bf16.mxu0 %v21180_v16  ;;  %v10790_v16 = vpop.f32.mrb[157].mxu1 }
0x15e0   :  { %v10791_v51 = vpop.f32.mrb[158].mxu1  ;;  %v21215_v16 = vld [vmem:[%s25830_s9 + $0x80] ss:$528 sps:$4 sm:$0xff]  }
0x15e1   :  { %v10792_v63 = vpop.f32.mrb[159].mxu1 }
0x15e4   :  { %12197 = vmatpush1.bf16.xpose.msra.mxu1 %v21175_v62  ;;  %v21205_v62 = vld [vmem:[%s25830_s9 + $0x74] ss:$528 sps:$4 sm:$0xff]  }
0x15e5   :  { %11067 = vmatmul.mubr.bf16.vlgmr.msra.gmra.mrb[172].mxu0 %v23886_v55  ;;  %12274 = vmatprep.subr.bf16.mxu1 %v21183_v6  ;;  %v8147_v55 = vld [vmem:[%s25854_s30 + $0x50] sm:$0xff] }
0x15e6   :  { %11115 = vmatpush1.bf16.xpose.msra.mxu0 %v21178_v49  ;;  %11146 = vmatprep.mubr.bf16.mxu0 %v23889_v59  ;;  %v21184_v59 = vld [vmem:[%s25830_s9 + $0x470] ss:$528 sps:$4 sm:$0xff]   ;;  %v8951_v4 = vrot.slane %v8147_v55, %v22010_v11  ;;  %v8944_v38 = vcombine.high %v8147_v55, %v8147_v55  ;;  %v21200_v49 = vld [vmem:[%s25830_s9 + $0x568] ss:$528 sps:$4 sm:$0xff]  }
0x15e7   :  { %11116 = vmatprep.subr.bf16.mxu0 %v21186_v7 }
0x15e8   :  { %v8959_v28 = vcombine.high %v8951_v4, %v8951_v4  ;;  %v8958_v6 = vrot.slane %v8944_v38, %v22010_v11 }
0x15ea   :  { %v24384_v35 = vrot.slane %v8959_v28, %v22010_v11  ;;  %v8960_v7 = vcombine.high %v8958_v6, %v8958_v6  ;;  %v24462_v51 = vrot.slane %v8958_v6, %v22010_v11 }
0x15eb   :  { %12227 = vmatmul.mubr.bf16.vlgmr.msra.gmra.mrb[228].mxu1 %v8940_v10  ;;  %v21208_v10 = vld [vmem:[%s25830_s9 + $0x15c] ss:$528 sps:$4 sm:$0xff]  }
0x15ec   :  { %12275 = vmatpush1.bf16.xpose.msra.mxu1 %v21181_v22  ;;  %12306 = vmatprep.mubr.bf16.mxu1 %v8943_v3  ;;  %v8991_v15 = vcombine.high %v24384_v35, %v24384_v35  ;;  %v21203_v22 = vld [vmem:[%s25830_s9 + $0x70] ss:$528 sps:$4 sm:$0xff]   ;;  %v21211_v3 = vld [vmem:[%s25830_s9 + $0x494] ss:$528 sps:$4 sm:$0xff]   ;;  %v24423_v55 = vrot.slane %v8960_v7, %v22010_v11  ;;  %v8990_v63 = vcombine.high %v24462_v51, %v24462_v51 }
0x15ed   :  { %12276 = vmatprep.subr.bf16.mxu1 %v21189_v26  ;;  %v24420_v26 = vrot.slane %v8951_v4, %v22010_v11 }
0x15ee   :  { %11117 = vmatpush1.bf16.xpose.msra.mxu0 %v21184_v59  ;;  %v8992_v4 = vcombine.high %v24423_v55, %v24423_v55 }
0x15ef   :  { %11194 = vmatprep.subr.bf16.mxu0 %v21192_v27  ;;  %v8989_v59 = vcombine.high %v24420_v26, %v24420_v26  ;;  %v21206_v27 = vld [vmem:[%s25830_s9 + $0x158] ss:$528 sps:$4 sm:$0xff]  }
0x15f4   :  { %12277 = vmatpush1.bf16.xpose.msra.mxu1 %v21187_v25  ;;  %v24434_v25 = vpop.f32.mrb[160].mxu1 }
0x15f5   :  { %11147 = vmatmul.mubr.bf16.vlgmr.msra.gmra.mrb[176].mxu0 %v23928_v20  ;;  %12354 = vmatprep.subr.bf16.mxu1 %v21196_v29  ;;  %v21202_v20 = vld [vmem:[%s25830_s9 + $0x56c] ss:$528 sps:$4 sm:$0xff]   ;;  %v10870_v28 = vpop.f32.mrb[161].mxu1  ;;  %v21209_v29 = vld [vmem:[%s25830_s9 + $0x490] ss:$528 sps:$4 sm:$0xff]  }
0x15f6   :  { %11195 = vmatpush1.bf16.xpose.msra.mxu0 %v21190_v30  ;;  %11226 = vmatprep.mubr.bf16.mxu0 %v23931_v21  ;;  %v21197_v21 = vld [vmem:[%s25830_s9 + $0x480] ss:$528 sps:$4 sm:$0xff]   ;;  %v10871_v30 = vpop.f32.mrb[162].mxu1  ;;  %v21233_v28 = vld [vmem:[%s25830_s9 + $0x17c] ss:$528 sps:$4 sm:$0xff]  }
0x15f7   :  { %11196 = vmatprep.subr.bf16.mxu0 %v21199_v31  ;;  %v21217_v31 = vld [vmem:[%s25830_s9 + $0x84] ss:$528 sps:$4 sm:$0xff]  }
0x15f8   :  { %v21236_v30 = vld [vmem:[%s25830_s9 + $0x4b4] ss:$528 sps:$4 sm:$0xff]  }
0x15fb   :  { %12307 = vmatmul.mubr.bf16.vlgmr.msra.gmra.mrb[232].mxu1 %v8941_v52  ;;  %v10872_v52 = vpop.f32.mrb[163].mxu1 }
0x15fc   :  { %12355 = vmatpush1.bf16.xpose.msra.mxu1 %v21194_v53  ;;  %12386 = vmatprep.mubr.bf16.mxu1 %v8991_v15  ;;  %v21212_v15 = vld [vmem:[%s25830_s9 + $0x578] ss:$528 sps:$4 sm:$0xff]  }
0x15fd   :  { %12356 = vmatprep.subr.bf16.mxu1 %v21202_v20  ;;  %v21221_v20 = vld [vmem:[%s25830_s9 + $0x16c] ss:$528 sps:$4 sm:$0xff]  }
0x15fe   :  { %11197 = vmatpush1.bf16.xpose.msra.mxu0 %v21197_v21  ;;  %v21224_v21 = vld [vmem:[%s25830_s9 + $0x4a4] ss:$528 sps:$4 sm:$0xff]  }
0x15ff   :  { %11274 = vmatprep.subr.bf16.mxu0 %v21205_v62 }
0x1604   :  { %12357 = vmatpush1.bf16.xpose.msra.mxu1 %v21200_v49  ;;  %v21219_v49 = vld [vmem:[%s25830_s9 + $0x168] ss:$528 sps:$4 sm:$0xff]  }
0x1605   :  { %11227 = vmatmul.mubr.bf16.vlgmr.msra.gmra.mrb[180].mxu0 %v23951_v33  ;;  %12434 = vmatprep.subr.bf16.mxu1 %v21208_v10  ;;  %v21214_v33 = vld [vmem:[%s25830_s9 + $0x57c] ss:$528 sps:$4 sm:$0xff]   ;;  %v24476_v10 = vpop.f32.mrb[164].mxu1 }
0x1606   :  { %11275 = vmatpush1.bf16.xpose.msra.mxu0 %v21203_v22  ;;  %11306 = vmatprep.mubr.bf16.mxu0 %v23954_v34  ;;  %v8148_v34 = vld [vmem:[%s25854_s30 + $0x58] sm:$0xff]  ;;  %v10950_v22 = vpop.f32.mrb[165].mxu1 }
0x1607   :  { %11276 = vmatprep.subr.bf16.mxu0 %v21211_v3  ;;  %v9000_v53 = vrot.slane %v8148_v34, %v22010_v11  ;;  %v8993_v7 = vcombine.high %v8148_v34, %v8148_v34  ;;  %v10951_v3 = vpop.f32.mrb[166].mxu1 }
0x1608   :  { %v21240_v3 = vld [vmem:[%s25830_s9 + $0xa0] ss:$528 sps:$4 sm:$0xff]  }
0x1609   :  { %v9008_v38 = vcombine.high %v9000_v53, %v9000_v53 }
0x160b   :  { %12387 = vmatmul.mubr.bf16.vlgmr.msra.gmra.mrb[236].mxu1 %v8989_v59  ;;  %v24465_v62 = vrot.slane %v9008_v38, %v22010_v11  ;;  %v21230_v59 = vld [vmem:[%s25830_s9 + $0x94] ss:$528 sps:$4 sm:$0xff]   ;;  %v21231_v38 = vld [vmem:[%s25830_s9 + $0x178] ss:$528 sps:$4 sm:$0xff]  }
0x160c   :  { %12435 = vmatpush1.bf16.xpose.msra.mxu1 %v21206_v27  ;;  %12466 = vmatprep.mubr.bf16.mxu1 %v8992_v4  ;;  %v10952_v27 = vpop.f32.mrb[167].mxu1  ;;  %v9007_v4 = vrot.slane %v8993_v7, %v22010_v11 }
0x160d   :  { %12436 = vmatprep.subr.bf16.mxu1 %v21214_v33  ;;  %v9040_v6 = vcombine.high %v24465_v62, %v24465_v62  ;;  %v21225_v33 = vld [vmem:[%s25830_s9 + $0x588] ss:$528 sps:$4 sm:$0xff]  }
0x160e   :  { %11277 = vmatpush1.bf16.xpose.msra.mxu0 %v21209_v29  ;;  %v9009_v34 = vcombine.high %v9007_v4, %v9007_v4  ;;  %v21228_v29 = vld [vmem:[%s25830_s9 + $0x90] ss:$528 sps:$4 sm:$0xff]   ;;  %v24543_v27 = vrot.slane %v9007_v4, %v22010_v11 }
0x160f   :  { %11354 = vmatprep.subr.bf16.mxu0 %v21217_v31  ;;  %v24501_v31 = vrot.slane %v9000_v53, %v22010_v11 }
0x1610   :  { %v24504_v52 = vrot.slane %v9009_v34, %v22010_v11  ;;  %v9039_v34 = vcombine.high %v24543_v27, %v24543_v27 }
0x1612   :  { %v9041_v53 = vcombine.high %v24504_v52, %v24504_v52 }
0x1614   :  { %12437 = vmatpush1.bf16.xpose.msra.mxu1 %v21212_v15  ;;  %v9038_v15 = vcombine.high %v24501_v31, %v24501_v31 }
0x1615   :  { %11307 = vmatmul.mubr.bf16.vlgmr.msra.gmra.mrb[184].mxu0 %v23977_v48  ;;  %12514 = vmatprep.subr.bf16.mxu1 %v21221_v20  ;;  %v21227_v48 = vld [vmem:[%s25830_s9 + $0x58c] ss:$528 sps:$4 sm:$0xff]   ;;  %v24515_v20 = vpop.f32.mrb[168].mxu1 }
0x1616   :  { %11355 = vmatpush1.bf16.xpose.msra.mxu0 %v21215_v16  ;;  %11386 = vmatprep.mubr.bf16.mxu0 %v23980_v50  ;;  %v21222_v50 = vld [vmem:[%s25830_s9 + $0x4a0] ss:$528 sps:$4 sm:$0xff]   ;;  %v11030_v16 = vpop.f32.mrb[169].mxu1 }
0x1617   :  { %11356 = vmatprep.subr.bf16.mxu0 %v21224_v21  ;;  %v21234_v21 = vld [vmem:[%s25830_s9 + $0x4b0] ss:$528 sps:$4 sm:$0xff]   ;;  %v21250_v16 = vld [vmem:[%s25830_s9 + $0x5a8] ss:$528 sps:$4 sm:$0xff]  }
0x161b   :  { %12467 = vmatmul.mubr.bf16.vlgmr.msra.gmra.mrb[240].mxu1 %v8990_v63  ;;  %v11031_v63 = vpop.f32.mrb[170].mxu1 }
0x161c   :  { %12515 = vmatpush1.bf16.xpose.msra.mxu1 %v21219_v49  ;;  %12546 = vmatprep.mubr.bf16.mxu1 %v9040_v6  ;;  %v21242_v49 = vld [vmem:[%s25830_s9 + $0xa4] ss:$528 sps:$4 sm:$0xff]   ;;  %v11032_v6 = vpop.f32.mrb[171].mxu1  ;;  %v21258_v63 = vld [vmem:[%s25830_s9 + $0x19c] ss:$528 sps:$4 sm:$0xff]  }
0x161d   :  { %12516 = vmatprep.subr.bf16.mxu1 %v21227_v48  ;;  %v21237_v48 = vld [vmem:[%s25830_s9 + $0x598] ss:$528 sps:$4 sm:$0xff]   ;;  %v21261_v6 = vld [vmem:[%s25830_s9 + $0x4d4] ss:$528 sps:$4 sm:$0xff]  }
0x161e   :  { %11357 = vmatpush1.bf16.xpose.msra.mxu0 %v21222_v50  ;;  %v21246_v50 = vld [vmem:[%s25830_s9 + $0x18c] ss:$528 sps:$4 sm:$0xff]  }
0x161f   :  { %11434 = vmatprep.subr.bf16.mxu0 %v21230_v59  ;;  %v21249_v59 = vld [vmem:[%s25830_s9 + $0x4c4] ss:$528 sps:$4 sm:$0xff]  }
0x1624   :  { %12517 = vmatpush1.bf16.xpose.msra.mxu1 %v21225_v33 }
0x1625   :  { %11387 = vmatmul.mubr.bf16.vlgmr.msra.gmra.mrb[188].mxu0 %v24000_v8  ;;  %12594 = vmatprep.subr.bf16.mxu1 %v21233_v28  ;;  %v21239_v8 = vld [vmem:[%s25830_s9 + $0x59c] ss:$528 sps:$4 sm:$0xff]   ;;  %v21244_v28 = vld [vmem:[%s25830_s9 + $0x188] ss:$528 sps:$4 sm:$0xff]  }
0x1626   :  { %11435 = vmatpush1.bf16.xpose.msra.mxu0 %v21228_v29  ;;  %11466 = vmatprep.mubr.bf16.mxu0 %v24003_v9  ;;  %v8149_v9 = vld [vmem:[%s25854_s30 + $0x60] sm:$0xff] }
0x1627   :  { %11436 = vmatprep.subr.bf16.mxu0 %v21236_v30  ;;  %v9049_v7 = vrot.slane %v8149_v9, %v22010_v11  ;;  %v9042_v29 = vcombine.high %v8149_v9, %v8149_v9  ;;  %v24557_v30 = vpop.f32.mrb[172].mxu1 }
0x1629   :  { %v9057_v22 = vcombine.high %v9049_v7, %v9049_v7  ;;  %v9056_v9 = vrot.slane %v9042_v29, %v22010_v11  ;;  %v21267_v29 = vld [vmem:[%s25830_s9 + $0xc4] ss:$528 sps:$4 sm:$0xff]  }
0x162b   :  { %12547 = vmatmul.mubr.bf16.vlgmr.msra.gmra.mrb[244].mxu1 %v9038_v15  ;;  %v24546_v33 = vrot.slane %v9057_v22, %v22010_v11  ;;  %v11110_v15 = vpop.f32.mrb[173].mxu1 }
0x162c   :  { %12595 = vmatpush1.bf16.xpose.msra.mxu1 %v21231_v38  ;;  %12626 = vmatprep.mubr.bf16.mxu1 %v9041_v53  ;;  %v11111_v38 = vpop.f32.mrb[174].mxu1  ;;  %v21255_v53 = vld [vmem:[%s25830_s9 + $0xb4] ss:$528 sps:$4 sm:$0xff]  }
0x162d   :  { %12596 = vmatprep.subr.bf16.mxu1 %v21239_v8  ;;  %v9089_v4 = vcombine.high %v24546_v33, %v24546_v33  ;;  %v11112_v8 = vpop.f32.mrb[175].mxu1 }
0x162e   :  { %11437 = vmatpush1.bf16.xpose.msra.mxu0 %v21234_v21  ;;  %v9058_v21 = vcombine.high %v9056_v9, %v9056_v9  ;;  %v21265_v8 = vld [vmem:[%s25830_s9 + $0xc0] ss:$528 sps:$4 sm:$0xff]  }
0x162f   :  { %11514 = vmatprep.subr.bf16.mxu0 %v21242_v49  ;;  %v21253_v49 = vld [vmem:[%s25830_s9 + $0xb0] ss:$528 sps:$4 sm:$0xff]  }
0x1630   :  { %v24585_v22 = vrot.slane %v9058_v21, %v22010_v11  ;;  %v21274_v21 = vld [vmem:[%s25830_s9 + $0x4e4] ss:$528 sps:$4 sm:$0xff]  }
0x1634   :  { %12597 = vmatpush1.bf16.xpose.msra.mxu1 %v21237_v48  ;;  %v24582_v48 = vrot.slane %v9049_v7, %v22010_v11  ;;  %v9090_v7 = vcombine.high %v24585_v22, %v24585_v22 }
0x1635   :  { %11467 = vmatmul.mubr.bf16.vlgmr.msra.gmra.mrb[192].mxu0 %v24026_v23  ;;  %12674 = vmatprep.subr.bf16.mxu1 %v21246_v50  ;;  %v21252_v23 = vld [vmem:[%s25830_s9 + $0x5ac] ss:$528 sps:$4 sm:$0xff]  }
0x1636   :  { %11515 = vmatpush1.bf16.xpose.msra.mxu0 %v21240_v3  ;;  %11546 = vmatprep.mubr.bf16.mxu0 %v24029_v24  ;;  %v21247_v24 = vld [vmem:[%s25830_s9 + $0x4c0] ss:$528 sps:$4 sm:$0xff]   ;;  %v9087_v50 = vcombine.high %v24582_v48, %v24582_v48  ;;  %v21256_v3 = vld [vmem:[%s25830_s9 + $0x198] ss:$528 sps:$4 sm:$0xff]  }
0x1637   :  { %11516 = vmatprep.subr.bf16.mxu0 %v21249_v59  ;;  %v24596_v59 = vpop.f32.mrb[176].mxu1 }
0x163b   :  { %12627 = vmatmul.mubr.bf16.vlgmr.msra.gmra.mrb[248].mxu1 %v9039_v34  ;;  %v11190_v34 = vpop.f32.mrb[177].mxu1 }
0x163c   :  { %12675 = vmatpush1.bf16.xpose.msra.mxu1 %v21244_v28  ;;  %12706 = vmatprep.mubr.bf16.mxu1 %v9089_v4  ;;  %v21259_v28 = vld [vmem:[%s25830_s9 + $0x4d0] ss:$528 sps:$4 sm:$0xff]   ;;  %v11191_v4 = vpop.f32.mrb[178].mxu1  ;;  %v21280_v34 = vld [vmem:[%s25830_s9 + $0xd4] ss:$528 sps:$4 sm:$0xff]  }
0x163d   :  { %12676 = vmatprep.subr.bf16.mxu1 %v21252_v23  ;;  %v11192_v23 = vpop.f32.mrb[179].mxu1  ;;  %v21275_v4 = vld [vmem:[%s25830_s9 + $0x5c8] ss:$528 sps:$4 sm:$0xff]  }
0x163e   :  { %11517 = vmatpush1.bf16.xpose.msra.mxu0 %v21247_v24  ;;  %v21262_v24 = vld [vmem:[%s25830_s9 + $0x5b8] ss:$528 sps:$4 sm:$0xff]   ;;  %v21283_v23 = vld [vmem:[%s25830_s9 + $0x1bc] ss:$528 sps:$4 sm:$0xff]  }
0x163f   :  { %11594 = vmatprep.subr.bf16.mxu0 %v21255_v53  ;;  %v21271_v53 = vld [vmem:[%s25830_s9 + $0x1ac] ss:$528 sps:$4 sm:$0xff]  }
0x1644   :  { %12677 = vmatpush1.bf16.xpose.msra.mxu1 %v21250_v16  ;;  %v24621_v16 = vrot.slane %v9056_v9, %v22010_v11  ;;  %v21269_v9 = vld [vmem:[%s25830_s9 + $0x1a8] ss:$528 sps:$4 sm:$0xff]  }
0x1645   :  { %11547 = vmatmul.mubr.bf16.vlgmr.msra.gmra.mrb[196].mxu0 %v24049_v41  ;;  %12754 = vmatprep.subr.bf16.mxu1 %v21258_v63  ;;  %v21264_v41 = vld [vmem:[%s25830_s9 + $0x5bc] ss:$528 sps:$4 sm:$0xff]  }
0x1646   :  { %11595 = vmatpush1.bf16.xpose.msra.mxu0 %v21253_v49  ;;  %11626 = vmatprep.mubr.bf16.mxu0 %v24052_v43  ;;  %v8150_v43 = vld [vmem:[%s25854_s30 + $0x68] sm:$0xff]  ;;  %v9088_v49 = vcombine.high %v24621_v16, %v24621_v16 }
0x1647   :  { %11596 = vmatprep.subr.bf16.mxu0 %v21261_v6  ;;  %v9098_v15 = vrot.slane %v8150_v43, %v22010_v11 }
0x1649   :  { %v9106_v38 = vcombine.high %v9098_v15, %v9098_v15 }
0x164b   :  { %12707 = vmatmul.mubr.bf16.vlgmr.msra.gmra.mrb[252].mxu1 %v9087_v50  ;;  %v24627_v63 = vrot.slane %v9106_v38, %v22010_v11  ;;  %v9091_v50 = vcombine.high %v8150_v43, %v8150_v43  ;;  %v24660_v38 = vrot.slane %v9098_v15, %v22010_v11 }
0x164c   :  { %12755 = vmatpush1.bf16.xpose.msra.mxu1 %v21256_v3  ;;  %12786 = vmatprep.mubr.bf16.mxu1 %v9090_v7  ;;  %v24638_v3 = vpop.f32.mrb[180].mxu1 }
0x164d   :  { %12756 = vmatprep.subr.bf16.mxu1 %v21264_v41  ;;  %v9138_v6 = vcombine.high %v24627_v63, %v24627_v63  ;;  %v11270_v7 = vpop.f32.mrb[181].mxu1  ;;  %v9105_v43 = vrot.slane %v9091_v50, %v22010_v11  ;;  %v9136_v15 = vcombine.high %v24660_v38, %v24660_v38 }
0x164e   :  { %11597 = vmatpush1.bf16.xpose.msra.mxu0 %v21259_v28  ;;  %v11271_v41 = vpop.f32.mrb[182].mxu1  ;;  %v21289_v7 = vld [vmem:[%s25830_s9 + $0x5dc] ss:$528 sps:$4 sm:$0xff]  }
0x164f   :  { %11674 = vmatprep.subr.bf16.mxu0 %v21267_v29  ;;  %v11272_v28 = vpop.f32.mrb[183].mxu1  ;;  %v9107_v29 = vcombine.high %v9105_v43, %v9105_v43 }
0x1650   :  { %v24683_v50 = vpop.f32.mrb[184].mxu1 }
0x1651   :  { %v11350_v41 = vpop.f32.mrb[185].mxu1 }
0x1652   :  { %v11351_v28 = vpop.f32.mrb[186].mxu1 }
0x1654   :  { %12757 = vmatpush1.bf16.xpose.msra.mxu1 %v21262_v24  ;;  %v21278_v24 = vld [vmem:[%s25830_s9 + $0xd0] ss:$528 sps:$4 sm:$0xff]  }
0x1655   :  { %11627 = vmatmul.mubr.bf16.vlgmr.msra.gmra.mrb[200].mxu0 %v24087_v13  ;;  %12834 = vmatprep.subr.bf16.mxu1 %v21271_v53  ;;  %v21277_v13 = vld [vmem:[%s25830_s9 + $0x5cc] ss:$528 sps:$4 sm:$0xff]   ;;  %v21286_v53 = vld [vmem:[%s25830_s9 + $0x4f4] ss:$528 sps:$4 sm:$0xff]  }
0x1656   :  { %11675 = vmatpush1.bf16.xpose.msra.mxu0 %v21265_v8  ;;  %11706 = vmatprep.mubr.bf16.mxu0 %v24090_v14  ;;  %v21272_v14 = vld [vmem:[%s25830_s9 + $0x4e0] ss:$528 sps:$4 sm:$0xff]   ;;  %v24666_v8 = vrot.slane %v9107_v29, %v22010_v11 }
0x1657   :  { %11676 = vmatprep.subr.bf16.mxu0 %v21274_v21  ;;  %v19528_v21 = vld [vmem:[%s25829_s8 + $0x15] ss:$0 sm:$0xff] }
0x165b   :  { %12787 = vmatmul.mubr.bf16.vlgmr.msra.gmra.mrb[0].mxu1 %v9088_v49 }
0x165c   :  { %12835 = vmatpush1.bf16.xpose.msra.mxu1 %v21269_v9  ;;  %12866 = vmatprep.mubr.bf16.mxu1 %v9138_v6  ;;  %v21281_v9 = vld [vmem:[%s25830_s9 + $0x1b8] ss:$528 sps:$4 sm:$0xff]   ;;  %v9139_v6 = vcombine.high %v24666_v8, %v24666_v8 }
0x165d   :  { %12836 = vmatprep.subr.bf16.mxu1 %v21277_v13 }
0x165e   :  { %11677 = vmatpush1.bf16.xpose.msra.mxu0 %v21272_v14  ;;  %v8151_v14 = vld [vmem:[%s25854_s30 + $0x70] sm:$0xff] }
0x165f   :  { %11754 = vmatprep.subr.bf16.mxu0 %v21280_v34  ;;  %v21284_v34 = vld [vmem:[%s25830_s9 + $0x4f0] ss:$528 sps:$4 sm:$0xff]  }
0x1664   :  { %12837 = vmatpush1.bf16.xpose.msra.mxu1 %v21275_v4  ;;  %v21292_v4 = vld [vmem:[%s25830_s9 + $0xe4] ss:$528 sps:$4 sm:$0xff]  }
0x1665   :  { %11707 = vmatmul.mubr.bf16.vlgmr.msra.gmra.mrb[204].mxu0 %v24115_v0  ;;  %12914 = vmatprep.subr.bf16.mxu1 %v21283_v23  ;;  %v8418_v0 = vld [vmem:[%s25831_s10] sm:$0x7] }
0x1666   :  { %11755 = vmatpush1.bf16.xpose.msra.mxu0 %v21278_v24  ;;  %11786 = vmatprep.mubr.bf16.mxu0 %v24118_v2  ;;  %v8423_v29 = vrot.slane %v8418_v0, %v22094_v56  ;;  %v8428_v23 = vrot.slane %v8418_v0, %v22097_v57  ;;  %v11352_v24 = vpop.f32.mrb[187].mxu1 }
0x1667   :  { %11756 = vmatprep.subr.bf16.mxu0 %v21286_v53  ;;  %v9147_v53 = vrot.slane %v8151_v14, %v22010_v11 }
0x1668   :  { %v8131_v49 = vpop.f32.mrb[152].mxu0 }
0x1669   :  { %v8132_v13 = vadd.f32 %v19528_v21, %v8131_v49  ;;  %v20427_v2 = vpop.f32.mrb[153].mxu0  ;;  %v8424_v21 = vmul.f32 %v8423_v29, %v22088_v54  ;;  %v8434_v49 = vrot.slane %v8418_v0, %v22102_v60  ;;  %v21299_v0 = vld [vmem:[%s25830_s9 + $0x504] ss:$528 sps:$4 sm:$0xff]  }
0x166a   :  { %v9155_v2 = vcombine.high %v9147_v53, %v9147_v53 }
0x166b   :  { %19530 = vst.msk [vmem:[%s25839_s18 + $0x2a] sm:$0x3] %vm449_vm2, %v8132_v13  ;;  %12867 = vmatmul.mubr.bf16.vlgmr.msra.gmra.mrb[8].mxu1 %v9136_v15  ;;  %v8429_v15 = vmul.f32 %v8428_v23, %v22104_v61  ;;  %v21287_v13 = vld [vmem:[%s25830_s9 + $0x5d8] ss:$528 sps:$4 sm:$0xff]   ;;  %v8435_v41 = vmul.f32 %v8434_v49, %v22109_v1 }
0x166c   :  { %12915 = vmatpush1.bf16.xpose.msra.mxu1 %v21281_v9  ;;  %12946 = vmatprep.mubr.bf16.mxu1 %v9139_v6  ;;  %v21296_v9 = vld [vmem:[%s25830_s9 + $0x1cc] ss:$528 sps:$4 sm:$0xff]   ;;  %v21290_v6 = vld [vmem:[%s25830_s9 + $0xe0] ss:$528 sps:$4 sm:$0xff]   ;;  %v24724_v28 = vrot.slane %v9155_v2, %v22010_v11  ;;  %v21294_v23 = vld [vmem:[%s25830_s9 + $0x1c8] ss:$528 sps:$4 sm:$0xff]  }
0x166d   :  { %12916 = vmatprep.subr.bf16.mxu1 %v21289_v7  ;;  %v8430_v7 = vadd.f32 %v8429_v15, %v8424_v21  ;;  %v9140_v21 = vcombine.high %v8151_v14, %v8151_v14  ;;  %v24735_v15 = vpop.f32.mrb[188].mxu1  ;;  %v21305_v14 = vld [vmem:[%s25830_s9 + $0xf4] ss:$528 sps:$4 sm:$0xff]  }
0x166e   :  { %11757 = vmatpush1.bf16.xpose.msra.mxu0 %v21284_v34  ;;  %v24718_v34 = vrot.slane %v9105_v43, %v22010_v11  ;;  %v9187_v24 = vcombine.high %v24724_v28, %v24724_v28 }
0x166f   :  { %11834 = vmatprep.subr.bf16.mxu0 %v21292_v4  ;;  %v8436_v4 = vadd.f32 %v8435_v41, %v8430_v7 }
0x1670   :  { %v9137_v29 = vcombine.high %v24718_v34, %v24718_v34 }
0x1674   :  { %12917 = vmatpush1.bf16.xpose.msra.mxu1 %v21287_v13  ;;  %v11430_v13 = vpop.f32.mrb[189].mxu1 }
0x1675   :  { %11787 = vmatmul.mubr.bf16.vlgmr.msra.gmra.mrb[208].mxu0 %v24150_v44  ;;  %12994 = vmatprep.subr.bf16.mxu1 %v21296_v9  ;;  %v21297_v9 = vld [vmem:[%s25830_s9 + $0x500] ss:$528 sps:$4 sm:$0xff]  }
0x1676   :  { %11835 = vmatpush1.bf16.xpose.msra.mxu0 %v21290_v6  ;;  %11866 = vmatprep.mubr.bf16.mxu0 %v24153_v45  ;;  %v21302_v45 = vld [vmem:[%s25830_s9 + $0x5ec] ss:$528 sps:$4 sm:$0xff]   ;;  %v11431_v6 = vpop.f32.mrb[190].mxu1 }
0x1677   :  { %11836 = vmatprep.subr.bf16.mxu0 %v21299_v0  ;;  %v11432_v0 = vpop.f32.mrb[191].mxu1  ;;  %v8152_v6 = vld [vmem:[%s25854_s30 + $0x78] sm:$0xff] }
0x1678   :  { %v10748_v43 = vpop.f32.mrb[156].mxu0  ;;  %v21309_v0 = vld [vmem:[%s25830_s9 + $0x510] ss:$528 sps:$4 sm:$0xff]  }
0x1679   :  { %v10749_v44 = vadd.f32 %v10748_v43, %v8436_v4  ;;  %v10750_v49 = vpop.f32.mrb[157].mxu0  ;;  %v9154_v4 = vrot.slane %v9140_v21, %v22010_v11  ;;  %v21300_v43 = vld [vmem:[%s25830_s9 + $0x5e8] ss:$528 sps:$4 sm:$0xff]  }
0x167a   :  { %v10751_v2 = vpop.f32.mrb[158].mxu0 }
0x167b   :  { %v10789_v7 = vadd.f32 %v24395_v39, %v10749_v44  ;;  %v10752_v41 = vpop.f32.mrb[159].mxu0  ;;  %12947 = vmatmul.mubr.bf16.vlgmr.msra.gmra.mrb[12].mxu1 %v9137_v29  ;;  %v9156_v49 = vcombine.high %v9154_v4, %v9154_v4  ;;  %v21308_v39 = vld [vmem:[%s25830_s9 + $0x1dc] ss:$528 sps:$4 sm:$0xff]   ;;  %v21303_v29 = vld [vmem:[%s25830_s9 + $0xf0] ss:$528 sps:$4 sm:$0xff]   ;;  %v24775_v2 = vpop.f32.mrb[192].mxu1 }
0x167c   :  { %12995 = vmatpush1.bf16.xpose.msra.mxu1 %v21294_v23  ;;  %13026 = vmatprep.mubr.bf16.mxu1 %v9187_v24  ;;  %v24758_v23 = vrot.slane %v9147_v53, %v22010_v11  ;;  %v21311_v24 = vld [vmem:[%s25830_s9 + $0x514] ss:$528 sps:$4 sm:$0xff]   ;;  %v11510_v41 = vpop.f32.mrb[193].mxu1 }
0x167d   :  { %12996 = vmatprep.subr.bf16.mxu1 %v21302_v45  ;;  %v24764_v21 = vrot.slane %v9156_v49, %v22010_v11  ;;  %v21306_v45 = vld [vmem:[%s25830_s9 + $0x1d8] ss:$528 sps:$4 sm:$0xff]  }
0x167e   :  { %11837 = vmatpush1.bf16.xpose.msra.mxu0 %v21297_v9  ;;  %v9185_v44 = vcombine.high %v24758_v23, %v24758_v23  ;;  %v21319_v41 = vld [vmem:[%s25830_s9 + $0x1e8] ss:$528 sps:$4 sm:$0xff]  }
0x167f   :  { %11914 = vmatprep.subr.bf16.mxu0 %v21305_v14  ;;  %v9188_v13 = vcombine.high %v24764_v21, %v24764_v21 }
0x1684   :  { %12997 = vmatpush1.bf16.xpose.msra.mxu1 %v21300_v43  ;;  %v11511_v43 = vpop.f32.mrb[194].mxu1 }
0x1685   :  { %11867 = vmatmul.mubr.bf16.vlgmr.msra.gmra.mrb[212].mxu0 %v24187_v12  ;;  %13074 = vmatprep.subr.bf16.mxu1 %v21308_v39 }
0x1686   :  { %11915 = vmatpush1.bf16.xpose.msra.mxu0 %v21303_v29  ;;  %11946 = vmatprep.mubr.bf16.mxu0 %v24190_v17  ;;  %v21314_v17 = vld [vmem:[%s25830_s9 + $0x5fc] ss:$528 sps:$4 sm:$0xff]   ;;  %v11512_v29 = vpop.f32.mrb[195].mxu1 }
0x1687   :  { %11916 = vmatprep.subr.bf16.mxu0 %v21311_v24  ;;  %v9196_v24 = vrot.slane %v8152_v6, %v22010_v11  ;;  %v24818_v43 = vpop.f32.mrb[196].mxu1 }
0x1688   :  { %v10828_v53 = vpop.f32.mrb[160].mxu0 }
0x1689   :  { %v10829_v9 = vadd.f32 %v10828_v53, %v10789_v7  ;;  %v10830_v12 = vpop.f32.mrb[161].mxu0  ;;  %v21317_v7 = vld [vmem:[%s25830_s9 + $0x104] ss:$528 sps:$4 sm:$0xff]   ;;  %v21312_v53 = vld [vmem:[%s25830_s9 + $0x5f8] ss:$528 sps:$4 sm:$0xff]  }
0x168a   :  { %v10831_v14 = vpop.f32.mrb[162].mxu0  ;;  %v9204_v12 = vcombine.high %v9196_v24, %v9196_v24 }
0x168b   :  { %v10869_v49 = vadd.f32 %v24434_v25, %v10829_v9  ;;  %v10832_v39 = vpop.f32.mrb[163].mxu0  ;;  %13027 = vmatmul.mubr.bf16.vlgmr.msra.gmra.mrb[16].mxu1 %v9185_v44  ;;  %v21321_v25 = vld [vmem:[%s25830_s9 + $0x1ec] ss:$528 sps:$4 sm:$0xff]   ;;  %v21315_v44 = vld [vmem:[%s25830_s9 + $0x100] ss:$528 sps:$4 sm:$0xff]  }
0x168c   :  { %13075 = vmatpush1.bf16.xpose.msra.mxu1 %v21306_v45  ;;  %13106 = vmatprep.mubr.bf16.mxu1 %v9188_v13  ;;  %v24801_v45 = vrot.slane %v9154_v4, %v22010_v11  ;;  %v21324_v13 = vld [vmem:[%s25830_s9 + $0x524] ss:$528 sps:$4 sm:$0xff]   ;;  %v24807_v9 = vrot.slane %v9204_v12, %v22010_v11 }
0x168d   :  { %13076 = vmatprep.subr.bf16.mxu1 %v21314_v17 }
0x168e   :  { %11917 = vmatpush1.bf16.xpose.msra.mxu0 %v21309_v0  ;;  %v9186_v17 = vcombine.high %v24801_v45, %v24801_v45  ;;  %v9236_v14 = vcombine.high %v24807_v9, %v24807_v9  ;;  %v9189_v0 = vcombine.high %v8152_v6, %v8152_v6  ;;  %v21330_v6 = vld [vmem:[%s25830_s9 + $0x114] ss:$528 sps:$4 sm:$0xff]  }
0x168f   :  { %11994 = vmatprep.subr.bf16.mxu0 %v21317_v7  ;;  %v11590_v7 = vpop.f32.mrb[197].mxu1 }
0x1690   :  { %v11591_v12 = vpop.f32.mrb[198].mxu1 }
0x1694   :  { %13077 = vmatpush1.bf16.xpose.msra.mxu1 %v21312_v53  ;;  %v21322_v53 = vld [vmem:[%s25830_s9 + $0x520] ss:$528 sps:$4 sm:$0xff]  }
0x1695   :  { %11947 = vmatmul.mubr.bf16.vlgmr.msra.gmra.mrb[216].mxu0 %v24227_v40  ;;  %13154 = vmatprep.subr.bf16.mxu1 %v21321_v25 }
0x1696   :  { %11995 = vmatpush1.bf16.xpose.msra.mxu0 %v21315_v44  ;;  %12026 = vmatprep.mubr.bf16.mxu0 %v24230_v46  ;;  %v21327_v46 = vld [vmem:[%s25830_s9 + $0x60c] ss:$528 sps:$4 sm:$0xff]  }
0x1697   :  { %11996 = vmatprep.subr.bf16.mxu0 %v21324_v13  ;;  %v9203_v13 = vrot.slane %v9189_v0, %v22010_v11 }
0x1698   :  { %v10908_v4 = vpop.f32.mrb[164].mxu0 }
0x1699   :  { %v10909_v40 = vadd.f32 %v10908_v4, %v10869_v49  ;;  %v10910_v39 = vpop.f32.mrb[165].mxu0  ;;  %v11592_v49 = vpop.f32.mrb[199].mxu1  ;;  %v21325_v4 = vld [vmem:[%s25830_s9 + $0x608] ss:$528 sps:$4 sm:$0xff]  }
0x169a   :  { %v10911_v29 = vpop.f32.mrb[166].mxu0  ;;  %v9205_v39 = vcombine.high %v9203_v13, %v9203_v13 }
0x169b   :  { %v10949_v25 = vadd.f32 %v24476_v10, %v10909_v40  ;;  %v10912_v44 = vpop.f32.mrb[167].mxu0  ;;  %13107 = vmatmul.mubr.bf16.vlgmr.msra.gmra.mrb[4].mxu1 %v9186_v17  ;;  %v21333_v10 = vld [vmem:[%s25830_s9 + $0x1fc] ss:$528 sps:$4 sm:$0xff]   ;;  %v21328_v17 = vld [vmem:[%s25830_s9 + $0x110] ss:$528 sps:$4 sm:$0xff]   ;;  %v24858_v29 = vpop.f32.mrb[200].mxu1 }
0x169c   :  { %13155 = vmatpush1.bf16.xpose.msra.mxu1 %v21319_v41  ;;  %13186 = vmatprep.mubr.bf16.mxu1 %v9236_v14  ;;  %v24841_v41 = vrot.slane %v9196_v24, %v22010_v11  ;;  %v21336_v14 = vld [vmem:[%s25830_s9 + $0x534] ss:$528 sps:$4 sm:$0xff]   ;;  %v24847_v0 = vrot.slane %v9205_v39, %v22010_v11  ;;  %v11670_v12 = vpop.f32.mrb[201].mxu1 }
0x169d   :  { %13156 = vmatprep.subr.bf16.mxu1 %v21327_v46  ;;  %v21331_v46 = vld [vmem:[%s25830_s9 + $0x1f8] ss:$528 sps:$4 sm:$0xff]   ;;  %v11671_v49 = vpop.f32.mrb[202].mxu1 }
0x169e   :  { %11997 = vmatpush1.bf16.xpose.msra.mxu0 %v21322_v53  ;;  %v9234_v40 = vcombine.high %v24841_v41, %v24841_v41  ;;  %v9237_v7 = vcombine.high %v24847_v0, %v24847_v0  ;;  %v13362_v49 = vld [vmem:[%s25855_s12] sm:$0xff] }
0x169f   :  { %12074 = vmatprep.subr.bf16.mxu0 %v21330_v6  ;;  %v21334_v6 = vld [vmem:[%s25830_s9 + $0x530] ss:$528 sps:$4 sm:$0xff]  }
0x16a4   :  { %13157 = vmatpush1.bf16.xpose.msra.mxu1 %v21325_v4 }
0x16a5   :  { %12027 = vmatmul.mubr.bf16.vlgmr.msra.gmra.mrb[220].mxu0 %v24264_v5  ;;  %13234 = vmatprep.subr.bf16.mxu1 %v21333_v10  ;;  %v11672_v10 = vpop.f32.mrb[203].mxu1 }
0x16a6   :  { %12075 = vmatpush1.bf16.xpose.msra.mxu0 %v21328_v17  ;;  %12106 = vmatprep.mubr.bf16.mxu0 %v24267_v18  ;;  %v21339_v18 = vld [vmem:[%s25830_s9 + $0x61c] ss:$528 sps:$4 sm:$0xff]   ;;  %v19531_v17 = vld.sshfl [vmem:[%s25854_s30 + $0x80] sm:$0x33 pattern:$0x75316420] }
0x16a7   :  { %12076 = vmatprep.subr.bf16.mxu0 %v21336_v14  ;;  %v9245_v14 = vcombine.high %v19531_v17, %v19531_v17  ;;  %v21347_v10 = vld [vmem:[%s25830_s9 + $0x540] ss:$528 sps:$4 sm:$0xff]  }
0x16a8   :  { %v10988_v24 = vpop.f32.mrb[168].mxu0 }
0x16a9   :  { %v10989_v53 = vadd.f32 %v10988_v24, %v10949_v25  ;;  %v10990_v5 = vpop.f32.mrb[169].mxu0  ;;  %v21342_v25 = vld [vmem:[%s25830_s9 + $0x124] ss:$528 sps:$4 sm:$0xff]   ;;  %v21340_v24 = vld [vmem:[%s25830_s9 + $0x120] ss:$528 sps:$4 sm:$0xff]  }
0x16aa   :  { %v10991_v44 = vpop.f32.mrb[170].mxu0 }
0x16ab   :  { %v11029_v4 = vadd.f32 %v24515_v20, %v10989_v53  ;;  %v10992_v39 = vpop.f32.mrb[171].mxu0  ;;  %13187 = vmatmul.mubr.bf16.vlgmr.msra.gmra.mrb[20].mxu1 %v9234_v40  ;;  %v21337_v20 = vld [vmem:[%s25830_s9 + $0x618] ss:$528 sps:$4 sm:$0xff]   ;;  %v21346_v40 = vld [vmem:[%s25830_s9 + $0x20c] ss:$528 sps:$4 sm:$0xff]   ;;  %v24889_v53 = vrot.slane %v9245_v14, %v22010_v11  ;;  %v24900_v44 = vpop.f32.mrb[204].mxu1 }
0x16ac   :  { %13235 = vmatpush1.bf16.xpose.msra.mxu1 %v21331_v46  ;;  %13266 = vmatprep.mubr.bf16.mxu1 %v9237_v7  ;;  %v24883_v46 = vrot.slane %v9203_v13, %v22010_v11  ;;  %v21349_v7 = vld [vmem:[%s25830_s9 + $0x544] ss:$528 sps:$4 sm:$0xff]   ;;  %v11750_v39 = vpop.f32.mrb[205].mxu1 }
0x16ad   :  { %13236 = vmatprep.subr.bf16.mxu1 %v21339_v18  ;;  %v21344_v18 = vld [vmem:[%s25830_s9 + $0x208] ss:$528 sps:$4 sm:$0xff]   ;;  %v9261_v12 = vcombine.high %v24889_v53, %v24889_v53 }
0x16ae   :  { %12077 = vmatpush1.bf16.xpose.msra.mxu0 %v21334_v6  ;;  %v9235_v5 = vcombine.high %v24883_v46, %v24883_v46  ;;  %v21356_v39 = vld [vmem:[#allocation2 + $0x8] ss:$528 sps:$4 sm:$0xff]  }
0x16af   :  { %12154 = vmatprep.subr.bf16.mxu0 %v21342_v25 }
0x16b4   :  { %13237 = vmatpush1.bf16.xpose.msra.mxu1 %v21337_v20  ;;  %v11751_v20 = vpop.f32.mrb[206].mxu1 }
0x16b5   :  { %12107 = vmatmul.mubr.bf16.vlgmr.msra.gmra.mrb[224].mxu0 %v24304_v37  ;;  %13314 = vmatprep.subr.bf16.mxu1 %v21346_v40 }
0x16b6   :  { %12155 = vmatpush1.bf16.xpose.msra.mxu0 %v21340_v24  ;;  %12186 = vmatprep.mubr.bf16.mxu0 %v24307_v47  ;;  %v21352_v47 = vld [vmem:[%s25830_s9 + $0x62c] ss:$528 sps:$4 sm:$0xff]   ;;  %v11752_v24 = vpop.f32.mrb[207].mxu1 }
0x16b7   :  { %12156 = vmatprep.subr.bf16.mxu0 %v21349_v7  ;;  %v13686_v7 = vrot.slane %v13362_v49, %v22010_v11  ;;  %v24937_v20 = vpop.f32.mrb[208].mxu1  ;;  %v21364_v24 = vld [vmem:[#allocation2 + $0x42c] ss:$528 sps:$4 sm:$0xff]  }
0x16b8   :  { %v11068_v13 = vpop.f32.mrb[172].mxu0 }
0x16b9   :  { %v11069_v6 = vadd.f32 %v11068_v13, %v11029_v4  ;;  %v11070_v37 = vpop.f32.mrb[173].mxu0  ;;  %v21355_v4 = vld [vmem:[%s25830_s9 + $0x134] ss:$528 sps:$4 sm:$0xff]   ;;  %v21350_v13 = vld [vmem:[%s25830_s9 + $0x628] ss:$528 sps:$4 sm:$0xff]  }
0x16ba   :  { %v11071_v25 = vpop.f32.mrb[174].mxu0  ;;  %v13694_v37 = vcombine.high %v13686_v7, %v13686_v7 }
0x16bb   :  { %v11109_v14 = vadd.f32 %v24557_v30, %v11069_v6  ;;  %v11072_v40 = vpop.f32.mrb[175].mxu0  ;;  %13267 = vmatmul.mubr.bf16.vlgmr.msra.gmra.mrb[24].mxu1 %v9235_v5  ;;  %v21358_v30 = vld [vmem:[#allocation2 + $0xc] ss:$528 sps:$4 sm:$0xff]   ;;  %v21353_v5 = vld [vmem:[%s25830_s9 + $0x130] ss:$528 sps:$4 sm:$0xff]   ;;  %v24923_v6 = vrot.slane %v19531_v17, %v22010_v11 }
0x16bc   :  { %13315 = vmatpush1.bf16.xpose.msra.mxu1 %v21344_v18  ;;  %13346 = vmatprep.mubr.bf16.mxu1 %v9261_v12  ;;  %v21361_v18 = vld [vmem:[%s25830_s9 + $0x554] ss:$528 sps:$4 sm:$0xff]   ;;  %v24929_v12 = vrot.slane %v13694_v37, %v22010_v11 }
0x16bd   :  { %13316 = vmatprep.subr.bf16.mxu1 %v21352_v47  ;;  %v9260_v47 = vcombine.high %v24923_v6, %v24923_v6 }
0x16be   :  { %12157 = vmatpush1.bf16.xpose.msra.mxu0 %v21347_v10  ;;  %v13726_v25 = vcombine.high %v24929_v12, %v24929_v12  ;;  %v13679_v10 = vcombine.high %v13362_v49, %v13362_v49  ;;  %v21367_v49 = vld [vmem:[%s25830_s9 + $0x144] ss:$528 sps:$4 sm:$0xff]  }
0x16bf   :  { %12234 = vmatprep.subr.bf16.mxu0 %v21355_v4 }
0x16c4   :  { %13317 = vmatpush1.bf16.xpose.msra.mxu1 %v21350_v13 }
0x16c5   :  { %12187 = vmatmul.mubr.bf16.vlgmr.msra.gmra.mrb[228].mxu0 %v24341_v58  ;;  %15979 = vmatprep.subr.bf16.mxu1 %v21358_v30  ;;  %v11830_v58 = vpop.f32.mrb[209].mxu1 }
0x16c6   :  { %12235 = vmatpush1.bf16.xpose.msra.mxu0 %v21353_v5  ;;  %12266 = vmatprep.mubr.bf16.mxu0 %v24344_v19  ;;  %v21359_v19 = vld [vmem:[%s25830_s9 + $0x550] ss:$528 sps:$4 sm:$0xff]   ;;  %v11831_v37 = vpop.f32.mrb[210].mxu1  ;;  %v21370_v58 = vld [vmem:[#allocation2 + $0x1c] ss:$528 sps:$4 sm:$0xff]  }
0x16c7   :  { %12236 = vmatprep.subr.bf16.mxu0 %v21361_v18  ;;  %v11832_v18 = vpop.f32.mrb[211].mxu1 }
0x16c8   :  { %v11148_v17 = vpop.f32.mrb[176].mxu0  ;;  %v21371_v18 = vld [vmem:[%s25830_s9 + $0x560] ss:$528 sps:$4 sm:$0xff]  }
0x16c9   :  { %v11149_v40 = vadd.f32 %v11148_v17, %v11109_v14  ;;  %v11150_v4 = vpop.f32.mrb[177].mxu0  ;;  %v13693_v14 = vrot.slane %v13679_v10, %v22010_v11  ;;  %v21362_v17 = vld [vmem:[#allocation2 + $0x428] ss:$528 sps:$4 sm:$0xff]  }
0x16ca   :  { %v11151_v13 = vpop.f32.mrb[178].mxu0 }
0x16cb   :  { %v11189_v30 = vadd.f32 %v24596_v59, %v11149_v40  ;;  %v11152_v5 = vpop.f32.mrb[179].mxu0  ;;  %13347 = vmatmul.mubr.bf16.vlgmr.msra.gmra.mrb[28].mxu1 %v9260_v47  ;;  %v13695_v4 = vcombine.high %v13693_v14, %v13693_v14  ;;  %v21365_v59 = vld [vmem:[%s25830_s9 + $0x140] ss:$528 sps:$4 sm:$0xff]   ;;  %v24951_v47 = vrot.slane %v13686_v7, %v22010_v11  ;;  %v21368_v40 = vld [vmem:[#allocation2 + $0x18] ss:$528 sps:$4 sm:$0xff]   ;;  %v24965_v13 = vpop.f32.mrb[212].mxu1 }
0x16cc   :  { %15980 = vmatpush1.bf16.xpose.msra.mxu1 %v21356_v39  ;;  %16011 = vmatprep.mubr.bf16.mxu1 %v13726_v25  ;;  %v21373_v39 = vld [vmem:[%s25830_s9 + $0x564] ss:$528 sps:$4 sm:$0xff]   ;;  %v21376_v5 = vld [vmem:[#allocation2 + $0x43c] ss:$528 sps:$4 sm:$0xff]  }
0x16cd   :  { %15981 = vmatprep.subr.bf16.mxu1 %v21364_v24  ;;  %v24957_v25 = vrot.slane %v13695_v4, %v22010_v11  ;;  %v13724_v10 = vcombine.high %v24951_v47, %v24951_v47 }
0x16ce   :  { %12237 = vmatpush1.bf16.xpose.msra.mxu0 %v21359_v19 }
0x16cf   :  { %12314 = vmatprep.subr.bf16.mxu0 %v21367_v49  ;;  %v13727_v24 = vcombine.high %v24957_v25, %v24957_v25  ;;  %v11910_v49 = vpop.f32.mrb[213].mxu1 }
0x16d0   :  { %v21383_v49 = vld [vmem:[#allocation2 + $0x2c] ss:$528 sps:$4 sm:$0xff]  }
0x16d4   :  { %15982 = vmatpush1.bf16.xpose.msra.mxu1 %v21362_v17  ;;  %v11911_v17 = vpop.f32.mrb[214].mxu1 }
0x16d5   :  { %12267 = vmatmul.mubr.bf16.vlgmr.msra.gmra.mrb[232].mxu0 %v24381_v32  ;;  %16059 = vmatprep.subr.bf16.mxu1 %v21370_v58  ;;  %v13363_v32 = vld [vmem:[%s25855_s12 + $0x8] sm:$0xff] }
0x16d6   :  { %12315 = vmatpush1.bf16.xpose.msra.mxu0 %v21365_v59  ;;  %12346 = vmatprep.mubr.bf16.mxu0 %v24384_v35  ;;  %v11912_v59 = vpop.f32.mrb[215].mxu1 }
0x16d7   :  { %12316 = vmatprep.subr.bf16.mxu0 %v21373_v39  ;;  %v13735_v39 = vrot.slane %v13363_v32, %v22010_v11  ;;  %v24996_v17 = vpop.f32.mrb[216].mxu1  ;;  %v21389_v59 = vld [vmem:[#allocation2 + $0x44c] ss:$528 sps:$4 sm:$0xff]  }
0x16d8   :  { %v11228_v7 = vpop.f32.mrb[180].mxu0 }
0x16d9   :  { %v11229_v19 = vadd.f32 %v11228_v7, %v11189_v30  ;;  %v11230_v37 = vpop.f32.mrb[181].mxu0  ;;  %v21379_v30 = vld [vmem:[%s25830_s9 + $0x154] ss:$528 sps:$4 sm:$0xff]   ;;  %v21374_v7 = vld [vmem:[#allocation2 + $0x438] ss:$528 sps:$4 sm:$0xff]  }
0x16da   :  { %v11231_v35 = vpop.f32.mrb[182].mxu0  ;;  %v13743_v37 = vcombine.high %v13735_v39, %v13735_v39 }
0x16db   :  { %v11269_v4 = vadd.f32 %v24638_v3, %v11229_v19  ;;  %v11232_v58 = vpop.f32.mrb[183].mxu0  ;;  %16012 = vmatmul.mubr.bf16.vlgmr.msra.gmra.mrb[36].mxu1 %v13724_v10  ;;  %v21377_v3 = vld [vmem:[%s25830_s9 + $0x150] ss:$528 sps:$4 sm:$0xff]   ;;  %v24982_v10 = vrot.slane %v13693_v14, %v22010_v11 }
0x16dc   :  { %16060 = vmatpush1.bf16.xpose.msra.mxu1 %v21368_v40  ;;  %16091 = vmatprep.mubr.bf16.mxu1 %v13727_v24  ;;  %v21386_v40 = vld [vmem:[%s25830_s9 + $0x574] ss:$528 sps:$4 sm:$0xff]   ;;  %v24988_v24 = vrot.slane %v13743_v37, %v22010_v11 }
0x16dd   :  { %16061 = vmatprep.subr.bf16.mxu1 %v21376_v5  ;;  %v13725_v19 = vcombine.high %v24982_v10, %v24982_v10  ;;  %v21381_v5 = vld [vmem:[#allocation2 + $0x28] ss:$528 sps:$4 sm:$0xff]  }
0x16de   :  { %12317 = vmatpush1.bf16.xpose.msra.mxu0 %v21371_v18  ;;  %v13775_v35 = vcombine.high %v24988_v24, %v24988_v24  ;;  %v13728_v18 = vcombine.high %v13363_v32, %v13363_v32  ;;  %v21392_v32 = vld [vmem:[%s25830_s9 + $0x164] ss:$528 sps:$4 sm:$0xff]  }
0x16df   :  { %12394 = vmatprep.subr.bf16.mxu0 %v21379_v30 }
0x16e4   :  { %16062 = vmatpush1.bf16.xpose.msra.mxu1 %v21374_v7 }
0x16e5   :  { %12347 = vmatmul.mubr.bf16.vlgmr.msra.gmra.mrb[236].mxu0 %v24420_v26  ;;  %16139 = vmatprep.subr.bf16.mxu1 %v21383_v49  ;;  %v11990_v26 = vpop.f32.mrb[217].mxu1 }
0x16e6   :  { %12395 = vmatpush1.bf16.xpose.msra.mxu0 %v21377_v3  ;;  %12426 = vmatprep.mubr.bf16.mxu0 %v24423_v55  ;;  %v21384_v55 = vld [vmem:[%s25830_s9 + $0x570] ss:$528 sps:$4 sm:$0xff]   ;;  %v11991_v37 = vpop.f32.mrb[218].mxu1  ;;  %v21395_v26 = vld [vmem:[#allocation2 + $0x3c] ss:$528 sps:$4 sm:$0xff]  }
0x16e7   :  { %12396 = vmatprep.subr.bf16.mxu0 %v21386_v40  ;;  %v11992_v40 = vpop.f32.mrb[219].mxu1 }
0x16e8   :  { %v11308_v14 = vpop.f32.mrb[184].mxu0  ;;  %v21396_v40 = vld [vmem:[%s25830_s9 + $0x580] ss:$528 sps:$4 sm:$0xff]  }
0x16e9   :  { %v11309_v58 = vadd.f32 %v11308_v14, %v11269_v4  ;;  %v11310_v30 = vpop.f32.mrb[185].mxu0  ;;  %v13742_v4 = vrot.slane %v13728_v18, %v22010_v11  ;;  %v21387_v14 = vld [vmem:[#allocation2 + $0x448] ss:$528 sps:$4 sm:$0xff]  }
0x16ea   :  { %v11311_v7 = vpop.f32.mrb[186].mxu0 }
0x16eb   :  { %v11349_v49 = vadd.f32 %v24683_v50, %v11309_v58  ;;  %v11312_v3 = vpop.f32.mrb[187].mxu0  ;;  %16092 = vmatmul.mubr.bf16.vlgmr.msra.gmra.mrb[40].mxu1 %v13725_v19  ;;  %v13744_v30 = vcombine.high %v13742_v4, %v13742_v4  ;;  %v21390_v50 = vld [vmem:[%s25830_s9 + $0x160] ss:$528 sps:$4 sm:$0xff]   ;;  %v25010_v19 = vrot.slane %v13735_v39, %v22010_v11  ;;  %v21393_v58 = vld [vmem:[#allocation2 + $0x38] ss:$528 sps:$4 sm:$0xff]   ;;  %v25024_v7 = vpop.f32.mrb[220].mxu1 }
0x16ec   :  { %16140 = vmatpush1.bf16.xpose.msra.mxu1 %v21381_v5  ;;  %16171 = vmatprep.mubr.bf16.mxu1 %v13775_v35  ;;  %v21398_v5 = vld [vmem:[%s25830_s9 + $0x584] ss:$528 sps:$4 sm:$0xff]   ;;  %v21401_v3 = vld [vmem:[#allocation2 + $0x45c] ss:$528 sps:$4 sm:$0xff]  }
0x16ed   :  { %16141 = vmatprep.subr.bf16.mxu1 %v21389_v59  ;;  %v25016_v35 = vrot.slane %v13744_v30, %v22010_v11  ;;  %v13773_v18 = vcombine.high %v25010_v19, %v25010_v19 }
0x16ee   :  { %12397 = vmatpush1.bf16.xpose.msra.mxu0 %v21384_v55 }
0x16ef   :  { %12474 = vmatprep.subr.bf16.mxu0 %v21392_v32  ;;  %v13776_v59 = vcombine.high %v25016_v35, %v25016_v35  ;;  %v12070_v32 = vpop.f32.mrb[221].mxu1 }
0x16f0   :  { %v21408_v32 = vld [vmem:[#allocation2 + $0x4c] ss:$528 sps:$4 sm:$0xff]  }
0x16f4   :  { %16142 = vmatpush1.bf16.xpose.msra.mxu1 %v21387_v14  ;;  %v12071_v14 = vpop.f32.mrb[222].mxu1 }
0x16f5   :  { %12427 = vmatmul.mubr.bf16.vlgmr.msra.gmra.mrb[240].mxu0 %v24462_v51  ;;  %16219 = vmatprep.subr.bf16.mxu1 %v21395_v26  ;;  %v13364_v51 = vld [vmem:[%s25855_s12 + $0x10] sm:$0xff] }
0x16f6   :  { %12475 = vmatpush1.bf16.xpose.msra.mxu0 %v21390_v50  ;;  %12506 = vmatprep.mubr.bf16.mxu0 %v24465_v62  ;;  %v12072_v50 = vpop.f32.mrb[223].mxu1 }
0x16f7   :  { %12476 = vmatprep.subr.bf16.mxu0 %v21398_v5  ;;  %v13784_v5 = vrot.slane %v13364_v51, %v22010_v11  ;;  %v25055_v14 = vpop.f32.mrb[224].mxu1  ;;  %v21414_v50 = vld [vmem:[#allocation2 + $0x46c] ss:$528 sps:$4 sm:$0xff]  }
0x16f8   :  { %v11388_v39 = vpop.f32.mrb[188].mxu0 }
0x16f9   :  { %v11389_v55 = vadd.f32 %v11388_v39, %v11349_v49  ;;  %v11390_v37 = vpop.f32.mrb[189].mxu0  ;;  %v21404_v49 = vld [vmem:[%s25830_s9 + $0x174] ss:$528 sps:$4 sm:$0xff]   ;;  %v21399_v39 = vld [vmem:[#allocation2 + $0x458] ss:$528 sps:$4 sm:$0xff]  }
0x16fa   :  { %v11391_v62 = vpop.f32.mrb[190].mxu0  ;;  %v13792_v37 = vcombine.high %v13784_v5, %v13784_v5 }
0x16fb   :  { %v11429_v30 = vadd.f32 %v24735_v15, %v11389_v55  ;;  %v11392_v26 = vpop.f32.mrb[191].mxu0  ;;  %16172 = vmatmul.mubr.bf16.vlgmr.msra.gmra.mrb[44].mxu1 %v13773_v18  ;;  %v21402_v15 = vld [vmem:[%s25830_s9 + $0x170] ss:$528 sps:$4 sm:$0xff]   ;;  %v25041_v18 = vrot.slane %v13742_v4, %v22010_v11 }
0x16fc   :  { %16220 = vmatpush1.bf16.xpose.msra.mxu1 %v21393_v58  ;;  %16251 = vmatprep.mubr.bf16.mxu1 %v13776_v59  ;;  %v21411_v58 = vld [vmem:[%s25830_s9 + $0x594] ss:$528 sps:$4 sm:$0xff]   ;;  %v25047_v59 = vrot.slane %v13792_v37, %v22010_v11 }
0x16fd   :  { %16221 = vmatprep.subr.bf16.mxu1 %v21401_v3  ;;  %v13774_v55 = vcombine.high %v25041_v18, %v25041_v18  ;;  %v21406_v3 = vld [vmem:[#allocation2 + $0x48] ss:$528 sps:$4 sm:$0xff]  }
0x16fe   :  { %12477 = vmatpush1.bf16.xpose.msra.mxu0 %v21396_v40  ;;  %v13824_v62 = vcombine.high %v25047_v59, %v25047_v59  ;;  %v13777_v40 = vcombine.high %v13364_v51, %v13364_v51  ;;  %v21417_v51 = vld [vmem:[%s25830_s9 + $0x184] ss:$528 sps:$4 sm:$0xff]  }
0x16ff   :  { %12554 = vmatprep.subr.bf16.mxu0 %v21404_v49 }
0x1704   :  { %16222 = vmatpush1.bf16.xpose.msra.mxu1 %v21399_v39 }
0x1705   :  { %12507 = vmatmul.mubr.bf16.vlgmr.msra.gmra.mrb[244].mxu0 %v24501_v31  ;;  %16299 = vmatprep.subr.bf16.mxu1 %v21408_v32  ;;  %v12150_v31 = vpop.f32.mrb[225].mxu1 }
0x1706   :  { %12555 = vmatpush1.bf16.xpose.msra.mxu0 %v21402_v15  ;;  %12586 = vmatprep.mubr.bf16.mxu0 %v24504_v52  ;;  %v21409_v52 = vld [vmem:[%s25830_s9 + $0x590] ss:$528 sps:$4 sm:$0xff]   ;;  %v12151_v37 = vpop.f32.mrb[226].mxu1  ;;  %v21420_v31 = vld [vmem:[#allocation2 + $0x5c] ss:$528 sps:$4 sm:$0xff]  }
0x1707   :  { %12556 = vmatprep.subr.bf16.mxu0 %v21411_v58  ;;  %v12152_v58 = vpop.f32.mrb[227].mxu1 }
0x1708   :  { %v11468_v4 = vpop.f32.mrb[192].mxu0  ;;  %v21421_v58 = vld [vmem:[%s25830_s9 + $0x5a0] ss:$528 sps:$4 sm:$0xff]  }
0x1709   :  { %v11469_v26 = vadd.f32 %v11468_v4, %v11429_v30  ;;  %v11470_v49 = vpop.f32.mrb[193].mxu0  ;;  %v13791_v30 = vrot.slane %v13777_v40, %v22010_v11  ;;  %v21412_v4 = vld [vmem:[#allocation2 + $0x468] ss:$528 sps:$4 sm:$0xff]  }
0x170a   :  { %v11471_v39 = vpop.f32.mrb[194].mxu0 }
0x170b   :  { %v11509_v32 = vadd.f32 %v24775_v2, %v11469_v26  ;;  %v11472_v15 = vpop.f32.mrb[195].mxu0  ;;  %16252 = vmatmul.mubr.bf16.vlgmr.msra.gmra.mrb[32].mxu1 %v13774_v55  ;;  %v13793_v49 = vcombine.high %v13791_v30, %v13791_v30  ;;  %v21415_v2 = vld [vmem:[%s25830_s9 + $0x180] ss:$528 sps:$4 sm:$0xff]   ;;  %v25069_v55 = vrot.slane %v13784_v5, %v22010_v11  ;;  %v21418_v26 = vld [vmem:[#allocation2 + $0x58] ss:$528 sps:$4 sm:$0xff]   ;;  %v25083_v39 = vpop.f32.mrb[228].mxu1 }
0x170c   :  { %16300 = vmatpush1.bf16.xpose.msra.mxu1 %v21406_v3  ;;  %16331 = vmatprep.mubr.bf16.mxu1 %v13824_v62  ;;  %v21423_v3 = vld [vmem:[%s25830_s9 + $0x5a4] ss:$528 sps:$4 sm:$0xff]   ;;  %v21426_v15 = vld [vmem:[#allocation2 + $0x47c] ss:$528 sps:$4 sm:$0xff]  }
0x170d   :  { %16301 = vmatprep.subr.bf16.mxu1 %v21414_v50  ;;  %v25075_v62 = vrot.slane %v13793_v49, %v22010_v11  ;;  %v13822_v40 = vcombine.high %v25069_v55, %v25069_v55 }
0x170e   :  { %12557 = vmatpush1.bf16.xpose.msra.mxu0 %v21409_v52 }
0x170f   :  { %12634 = vmatprep.subr.bf16.mxu0 %v21417_v51  ;;  %v13825_v50 = vcombine.high %v25075_v62, %v25075_v62  ;;  %v12230_v51 = vpop.f32.mrb[229].mxu1 }
0x1710   :  { %v21433_v51 = vld [vmem:[#allocation2 + $0x6c] ss:$528 sps:$4 sm:$0xff]  }
0x1714   :  { %16302 = vmatpush1.bf16.xpose.msra.mxu1 %v21412_v4  ;;  %v12231_v4 = vpop.f32.mrb[230].mxu1 }
0x1715   :  { %12587 = vmatmul.mubr.bf16.vlgmr.msra.gmra.mrb[248].mxu0 %v24543_v27  ;;  %16379 = vmatprep.subr.bf16.mxu1 %v21420_v31  ;;  %v13365_v27 = vld [vmem:[%s25855_s12 + $0x18] sm:$0xff] }
0x1716   :  { %12635 = vmatpush1.bf16.xpose.msra.mxu0 %v21415_v2  ;;  %12666 = vmatprep.mubr.bf16.mxu0 %v24546_v33  ;;  %v12232_v2 = vpop.f32.mrb[231].mxu1 }
0x1717   :  { %12636 = vmatprep.subr.bf16.mxu0 %v21423_v3  ;;  %v13833_v3 = vrot.slane %v13365_v27, %v22010_v11  ;;  %v25114_v4 = vpop.f32.mrb[232].mxu1  ;;  %v21439_v2 = vld [vmem:[#allocation2 + $0x48c] ss:$528 sps:$4 sm:$0xff]  }
0x1718   :  { %v11548_v5 = vpop.f32.mrb[196].mxu0 }
0x1719   :  { %v11549_v52 = vadd.f32 %v11548_v5, %v11509_v32  ;;  %v11550_v37 = vpop.f32.mrb[197].mxu0  ;;  %v21429_v32 = vld [vmem:[%s25830_s9 + $0x194] ss:$528 sps:$4 sm:$0xff]   ;;  %v21424_v5 = vld [vmem:[#allocation2 + $0x478] ss:$528 sps:$4 sm:$0xff]  }
0x171a   :  { %v11551_v33 = vpop.f32.mrb[198].mxu0  ;;  %v13841_v37 = vcombine.high %v13833_v3, %v13833_v3 }
0x171b   :  { %v11589_v49 = vadd.f32 %v24818_v43, %v11549_v52  ;;  %v11552_v31 = vpop.f32.mrb[199].mxu0  ;;  %16332 = vmatmul.mubr.bf16.vlgmr.msra.gmra.mrb[48].mxu1 %v13822_v40  ;;  %v21427_v43 = vld [vmem:[%s25830_s9 + $0x190] ss:$528 sps:$4 sm:$0xff]   ;;  %v25100_v40 = vrot.slane %v13791_v30, %v22010_v11 }
0x171c   :  { %16380 = vmatpush1.bf16.xpose.msra.mxu1 %v21418_v26  ;;  %16411 = vmatprep.mubr.bf16.mxu1 %v13825_v50  ;;  %v21436_v26 = vld [vmem:[%s25830_s9 + $0x5b4] ss:$528 sps:$4 sm:$0xff]   ;;  %v25106_v50 = vrot.slane %v13841_v37, %v22010_v11 }
0x171d   :  { %16381 = vmatprep.subr.bf16.mxu1 %v21426_v15  ;;  %v13823_v52 = vcombine.high %v25100_v40, %v25100_v40  ;;  %v21431_v15 = vld [vmem:[#allocation2 + $0x68] ss:$528 sps:$4 sm:$0xff]  }
0x171e   :  { %12637 = vmatpush1.bf16.xpose.msra.mxu0 %v21421_v58  ;;  %v13873_v33 = vcombine.high %v25106_v50, %v25106_v50  ;;  %v13826_v58 = vcombine.high %v13365_v27, %v13365_v27  ;;  %v21442_v27 = vld [vmem:[%s25830_s9 + $0x1a4] ss:$528 sps:$4 sm:$0xff]  }
0x171f   :  { %12714 = vmatprep.subr.bf16.mxu0 %v21429_v32 }
0x1724   :  { %16382 = vmatpush1.bf16.xpose.msra.mxu1 %v21424_v5 }
0x1725   :  { %12667 = vmatmul.mubr.bf16.vlgmr.msra.gmra.mrb[252].mxu0 %v24582_v48  ;;  %16459 = vmatprep.subr.bf16.mxu1 %v21433_v51  ;;  %v12310_v48 = vpop.f32.mrb[233].mxu1 }
0x1726   :  { %12715 = vmatpush1.bf16.xpose.msra.mxu0 %v21427_v43  ;;  %12746 = vmatprep.mubr.bf16.mxu0 %v24585_v22  ;;  %v21434_v22 = vld [vmem:[%s25830_s9 + $0x5b0] ss:$528 sps:$4 sm:$0xff]   ;;  %v12311_v37 = vpop.f32.mrb[234].mxu1  ;;  %v21445_v48 = vld [vmem:[#allocation2 + $0x7c] ss:$528 sps:$4 sm:$0xff]  }
0x1727   :  { %12716 = vmatprep.subr.bf16.mxu0 %v21436_v26  ;;  %v12312_v26 = vpop.f32.mrb[235].mxu1 }
0x1728   :  { %v11628_v30 = vpop.f32.mrb[200].mxu0  ;;  %v21446_v26 = vld [vmem:[%s25830_s9 + $0x5c0] ss:$528 sps:$4 sm:$0xff]  }
0x1729   :  { %v11629_v31 = vadd.f32 %v11628_v30, %v11589_v49  ;;  %v11630_v32 = vpop.f32.mrb[201].mxu0  ;;  %v13840_v49 = vrot.slane %v13826_v58, %v22010_v11  ;;  %v21437_v30 = vld [vmem:[#allocation2 + $0x488] ss:$528 sps:$4 sm:$0xff]  }
0x172a   :  { %v11631_v5 = vpop.f32.mrb[202].mxu0 }
0x172b   :  { %v11669_v51 = vadd.f32 %v24858_v29, %v11629_v31  ;;  %v11632_v43 = vpop.f32.mrb[203].mxu0  ;;  %16412 = vmatmul.mubr.bf16.vlgmr.msra.gmra.mrb[52].mxu1 %v13823_v52  ;;  %v13842_v32 = vcombine.high %v13840_v49, %v13840_v49  ;;  %v21440_v29 = vld [vmem:[%s25830_s9 + $0x1a0] ss:$528 sps:$4 sm:$0xff]   ;;  %v25128_v52 = vrot.slane %v13833_v3, %v22010_v11  ;;  %v21443_v31 = vld [vmem:[#allocation2 + $0x78] ss:$528 sps:$4 sm:$0xff]   ;;  %v25142_v5 = vpop.f32.mrb[236].mxu1 }
0x172c   :  { %16460 = vmatpush1.bf16.xpose.msra.mxu1 %v21431_v15  ;;  %16491 = vmatprep.mubr.bf16.mxu1 %v13873_v33  ;;  %v21448_v15 = vld [vmem:[%s25830_s9 + $0x5c4] ss:$528 sps:$4 sm:$0xff]   ;;  %v21451_v43 = vld [vmem:[#allocation2 + $0x49c] ss:$528 sps:$4 sm:$0xff]  }
0x172d   :  { %16461 = vmatprep.subr.bf16.mxu1 %v21439_v2  ;;  %v25134_v33 = vrot.slane %v13842_v32, %v22010_v11  ;;  %v13871_v58 = vcombine.high %v25128_v52, %v25128_v52 }
0x172e   :  { %12717 = vmatpush1.bf16.xpose.msra.mxu0 %v21434_v22 }
0x172f   :  { %12794 = vmatprep.subr.bf16.mxu0 %v21442_v27  ;;  %v13874_v2 = vcombine.high %v25134_v33, %v25134_v33  ;;  %v12390_v27 = vpop.f32.mrb[237].mxu1 }
0x1730   :  { %v21458_v27 = vld [vmem:[#allocation2 + $0x8c] ss:$528 sps:$4 sm:$0xff]  }
0x1734   :  { %16462 = vmatpush1.bf16.xpose.msra.mxu1 %v21437_v30  ;;  %v12391_v30 = vpop.f32.mrb[238].mxu1 }
0x1735   :  { %12747 = vmatmul.mubr.bf16.vlgmr.msra.gmra.mrb[0].mxu0 %v24621_v16  ;;  %16539 = vmatprep.subr.bf16.mxu1 %v21445_v48  ;;  %v13366_v16 = vld [vmem:[%s25855_s12 + $0x20] sm:$0xff] }
0x1736   :  { %12795 = vmatpush1.bf16.xpose.msra.mxu0 %v21440_v29  ;;  %12826 = vmatprep.mubr.bf16.mxu0 %v24627_v63  ;;  %v12392_v29 = vpop.f32.mrb[239].mxu1 }
0x1737   :  { %12796 = vmatprep.subr.bf16.mxu0 %v21448_v15  ;;  %v13882_v15 = vrot.slane %v13366_v16, %v22010_v11  ;;  %v25173_v30 = vpop.f32.mrb[240].mxu1  ;;  %v21464_v29 = vld [vmem:[#allocation2 + $0x4ac] ss:$528 sps:$4 sm:$0xff]  }
0x1738   :  { %v11708_v3 = vpop.f32.mrb[204].mxu0 }
0x1739   :  { %v11709_v22 = vadd.f32 %v11708_v3, %v11669_v51  ;;  %v11710_v37 = vpop.f32.mrb[205].mxu0  ;;  %v21454_v51 = vld [vmem:[%s25830_s9 + $0x1b4] ss:$528 sps:$4 sm:$0xff]   ;;  %v21449_v3 = vld [vmem:[#allocation2 + $0x498] ss:$528 sps:$4 sm:$0xff]  }
0x173a   :  { %v11711_v63 = vpop.f32.mrb[206].mxu0  ;;  %v13890_v37 = vcombine.high %v13882_v15, %v13882_v15 }
0x173b   :  { %v11749_v32 = vadd.f32 %v24900_v44, %v11709_v22  ;;  %v11712_v48 = vpop.f32.mrb[207].mxu0  ;;  %16492 = vmatmul.mubr.bf16.vlgmr.msra.gmra.mrb[56].mxu1 %v13871_v58  ;;  %v21452_v44 = vld [vmem:[%s25830_s9 + $0x1b0] ss:$528 sps:$4 sm:$0xff]   ;;  %v25159_v58 = vrot.slane %v13840_v49, %v22010_v11 }
0x173c   :  { %16540 = vmatpush1.bf16.xpose.msra.mxu1 %v21443_v31  ;;  %16571 = vmatprep.mubr.bf16.mxu1 %v13874_v2  ;;  %v21461_v31 = vld [vmem:[%s25830_s9 + $0x5d4] ss:$528 sps:$4 sm:$0xff]   ;;  %v25165_v2 = vrot.slane %v13890_v37, %v22010_v11 }
0x173d   :  { %16541 = vmatprep.subr.bf16.mxu1 %v21451_v43  ;;  %v13872_v22 = vcombine.high %v25159_v58, %v25159_v58  ;;  %v21456_v43 = vld [vmem:[#allocation2 + $0x88] ss:$528 sps:$4 sm:$0xff]  }
0x173e   :  { %12797 = vmatpush1.bf16.xpose.msra.mxu0 %v21446_v26  ;;  %v13922_v63 = vcombine.high %v25165_v2, %v25165_v2  ;;  %v13875_v26 = vcombine.high %v13366_v16, %v13366_v16  ;;  %v21467_v16 = vld [vmem:[%s25830_s9 + $0x1c4] ss:$528 sps:$4 sm:$0xff]  }
0x173f   :  { %12874 = vmatprep.subr.bf16.mxu0 %v21454_v51 }
0x1744   :  { %16542 = vmatpush1.bf16.xpose.msra.mxu1 %v21449_v3 }
0x1745   :  { %12827 = vmatmul.mubr.bf16.vlgmr.msra.gmra.mrb[4].mxu0 %v24660_v38  ;;  %16619 = vmatprep.subr.bf16.mxu1 %v21458_v27  ;;  %v12470_v38 = vpop.f32.mrb[241].mxu1 }
0x1746   :  { %12875 = vmatpush1.bf16.xpose.msra.mxu0 %v21452_v44  ;;  %12906 = vmatprep.mubr.bf16.mxu0 %v24666_v8  ;;  %v21459_v8 = vld [vmem:[%s25830_s9 + $0x5d0] ss:$528 sps:$4 sm:$0xff]   ;;  %v12471_v37 = vpop.f32.mrb[242].mxu1  ;;  %v21470_v38 = vld [vmem:[#allocation2 + $0x9c] ss:$528 sps:$4 sm:$0xff]  }
0x1747   :  { %12876 = vmatprep.subr.bf16.mxu0 %v21461_v31  ;;  %v12472_v31 = vpop.f32.mrb[243].mxu1 }
0x1748   :  { %v11788_v49 = vpop.f32.mrb[208].mxu0  ;;  %v21471_v31 = vld [vmem:[%s25830_s9 + $0x5e0] ss:$528 sps:$4 sm:$0xff]  }
0x1749   :  { %v11789_v48 = vadd.f32 %v11788_v49, %v11749_v32  ;;  %v11790_v51 = vpop.f32.mrb[209].mxu0  ;;  %v13889_v32 = vrot.slane %v13875_v26, %v22010_v11  ;;  %v21462_v49 = vld [vmem:[#allocation2 + $0x4a8] ss:$528 sps:$4 sm:$0xff]  }
0x174a   :  { %v11791_v3 = vpop.f32.mrb[210].mxu0 }
0x174b   :  { %v11829_v27 = vadd.f32 %v24937_v20, %v11789_v48  ;;  %v11792_v44 = vpop.f32.mrb[211].mxu0  ;;  %16572 = vmatmul.mubr.bf16.vlgmr.msra.gmra.mrb[64].mxu1 %v13872_v22  ;;  %v13891_v51 = vcombine.high %v13889_v32, %v13889_v32  ;;  %v21465_v20 = vld [vmem:[%s25830_s9 + $0x1c0] ss:$528 sps:$4 sm:$0xff]   ;;  %v25187_v22 = vrot.slane %v13882_v15, %v22010_v11  ;;  %v21468_v48 = vld [vmem:[#allocation2 + $0x98] ss:$528 sps:$4 sm:$0xff]   ;;  %v25201_v3 = vpop.f32.mrb[244].mxu1 }
0x174c   :  { %16620 = vmatpush1.bf16.xpose.msra.mxu1 %v21456_v43  ;;  %16651 = vmatprep.mubr.bf16.mxu1 %v13922_v63  ;;  %v21473_v43 = vld [vmem:[%s25830_s9 + $0x5e4] ss:$528 sps:$4 sm:$0xff]   ;;  %v21476_v44 = vld [vmem:[#allocation2 + $0x4bc] ss:$528 sps:$4 sm:$0xff]  }
0x174d   :  { %16621 = vmatprep.subr.bf16.mxu1 %v21464_v29  ;;  %v25193_v63 = vrot.slane %v13891_v51, %v22010_v11  ;;  %v13920_v26 = vcombine.high %v25187_v22, %v25187_v22 }
0x174e   :  { %12877 = vmatpush1.bf16.xpose.msra.mxu0 %v21459_v8 }
0x174f   :  { %12954 = vmatprep.subr.bf16.mxu0 %v21467_v16  ;;  %v13923_v29 = vcombine.high %v25193_v63, %v25193_v63  ;;  %v12550_v16 = vpop.f32.mrb[245].mxu1 }
0x1750   :  { %v21483_v16 = vld [vmem:[#allocation2 + $0xac] ss:$528 sps:$4 sm:$0xff]  }
0x1754   :  { %16622 = vmatpush1.bf16.xpose.msra.mxu1 %v21462_v49  ;;  %v12551_v49 = vpop.f32.mrb[246].mxu1 }
0x1755   :  { %12907 = vmatmul.mubr.bf16.vlgmr.msra.gmra.mrb[8].mxu0 %v24718_v34  ;;  %16699 = vmatprep.subr.bf16.mxu1 %v21470_v38  ;;  %v13367_v34 = vld [vmem:[%s25855_s12 + $0x28] sm:$0xff] }
0x1756   :  { %12955 = vmatpush1.bf16.xpose.msra.mxu0 %v21465_v20  ;;  %12986 = vmatprep.mubr.bf16.mxu0 %v24724_v28  ;;  %v12552_v20 = vpop.f32.mrb[247].mxu1 }
0x1757   :  { %12956 = vmatprep.subr.bf16.mxu0 %v21473_v43  ;;  %v13931_v43 = vrot.slane %v13367_v34, %v22010_v11  ;;  %v25232_v49 = vpop.f32.mrb[248].mxu1  ;;  %v21489_v20 = vld [vmem:[#allocation2 + $0x4cc] ss:$528 sps:$4 sm:$0xff]  }
0x1758   :  { %v11868_v15 = vpop.f32.mrb[212].mxu0 }
0x1759   :  { %v11869_v8 = vadd.f32 %v11868_v15, %v11829_v27  ;;  %v11870_v37 = vpop.f32.mrb[213].mxu0  ;;  %v21479_v27 = vld [vmem:[%s25830_s9 + $0x1d4] ss:$528 sps:$4 sm:$0xff]   ;;  %v21474_v15 = vld [vmem:[#allocation2 + $0x4b8] ss:$528 sps:$4 sm:$0xff]  }
0x175a   :  { %v11871_v28 = vpop.f32.mrb[214].mxu0  ;;  %v13939_v37 = vcombine.high %v13931_v43, %v13931_v43 }
0x175b   :  { %v11909_v51 = vadd.f32 %v24965_v13, %v11869_v8  ;;  %v11872_v38 = vpop.f32.mrb[215].mxu0  ;;  %16652 = vmatmul.mubr.bf16.vlgmr.msra.gmra.mrb[68].mxu1 %v13920_v26  ;;  %v21477_v13 = vld [vmem:[%s25830_s9 + $0x1d0] ss:$528 sps:$4 sm:$0xff]   ;;  %v25218_v26 = vrot.slane %v13889_v32, %v22010_v11 }
0x175c   :  { %16700 = vmatpush1.bf16.xpose.msra.mxu1 %v21468_v48  ;;  %16731 = vmatprep.mubr.bf16.mxu1 %v13923_v29  ;;  %v21486_v48 = vld [vmem:[%s25830_s9 + $0x5f4] ss:$528 sps:$4 sm:$0xff]   ;;  %v25224_v29 = vrot.slane %v13939_v37, %v22010_v11 }
0x175d   :  { %16701 = vmatprep.subr.bf16.mxu1 %v21476_v44  ;;  %v13921_v8 = vcombine.high %v25218_v26, %v25218_v26  ;;  %v21481_v44 = vld [vmem:[#allocation2 + $0xa8] ss:$528 sps:$4 sm:$0xff]  }
0x175e   :  { %12957 = vmatpush1.bf16.xpose.msra.mxu0 %v21471_v31  ;;  %v13971_v28 = vcombine.high %v25224_v29, %v25224_v29  ;;  %v13924_v31 = vcombine.high %v13367_v34, %v13367_v34  ;;  %v21492_v34 = vld [vmem:[%s25830_s9 + $0x1e4] ss:$528 sps:$4 sm:$0xff]  }
0x175f   :  { %13034 = vmatprep.subr.bf16.mxu0 %v21479_v27 }
0x1764   :  { %16702 = vmatpush1.bf16.xpose.msra.mxu1 %v21474_v15 }
0x1765   :  { %12987 = vmatmul.mubr.bf16.vlgmr.msra.gmra.mrb[16].mxu0 %v24758_v23  ;;  %16779 = vmatprep.subr.bf16.mxu1 %v21483_v16  ;;  %v12630_v23 = vpop.f32.mrb[249].mxu1 }
0x1766   :  { %13035 = vmatpush1.bf16.xpose.msra.mxu0 %v21477_v13  ;;  %13066 = vmatprep.mubr.bf16.mxu0 %v24764_v21  ;;  %v21484_v21 = vld [vmem:[%s25830_s9 + $0x5f0] ss:$528 sps:$4 sm:$0xff]   ;;  %v12631_v37 = vpop.f32.mrb[250].mxu1  ;;  %v21495_v23 = vld [vmem:[#allocation2 + $0xbc] ss:$528 sps:$4 sm:$0xff]  }
0x1767   :  { %13036 = vmatprep.subr.bf16.mxu0 %v21486_v48  ;;  %v12632_v48 = vpop.f32.mrb[251].mxu1 }
0x1768   :  { %v11948_v32 = vpop.f32.mrb[216].mxu0  ;;  %v21496_v48 = vld [vmem:[%s25830_s9 + $0x600] ss:$528 sps:$4 sm:$0xff]  }
0x1769   :  { %v11949_v38 = vadd.f32 %v11948_v32, %v11909_v51  ;;  %v11950_v27 = vpop.f32.mrb[217].mxu0  ;;  %v13938_v51 = vrot.slane %v13924_v31, %v22010_v11  ;;  %v21487_v32 = vld [vmem:[#allocation2 + $0x4c8] ss:$528 sps:$4 sm:$0xff]  }
0x176a   :  { %v11951_v15 = vpop.f32.mrb[218].mxu0 }
0x176b   :  { %v11989_v16 = vadd.f32 %v24996_v17, %v11949_v38  ;;  %v11952_v13 = vpop.f32.mrb[219].mxu0  ;;  %16732 = vmatmul.mubr.bf16.vlgmr.msra.gmra.mrb[72].mxu1 %v13921_v8  ;;  %v13940_v27 = vcombine.high %v13938_v51, %v13938_v51  ;;  %v21490_v17 = vld [vmem:[%s25830_s9 + $0x1e0] ss:$528 sps:$4 sm:$0xff]   ;;  %v25246_v8 = vrot.slane %v13931_v43, %v22010_v11  ;;  %v21493_v38 = vld [vmem:[#allocation2 + $0xb8] ss:$528 sps:$4 sm:$0xff]   ;;  %v25260_v15 = vpop.f32.mrb[252].mxu1 }
0x176c   :  { %16780 = vmatpush1.bf16.xpose.msra.mxu1 %v21481_v44  ;;  %16811 = vmatprep.mubr.bf16.mxu1 %v13971_v28  ;;  %v21498_v44 = vld [vmem:[%s25830_s9 + $0x604] ss:$528 sps:$4 sm:$0xff]   ;;  %v21501_v13 = vld [vmem:[#allocation2 + $0x4dc] ss:$528 sps:$4 sm:$0xff]  }
0x176d   :  { %16781 = vmatprep.subr.bf16.mxu1 %v21489_v20  ;;  %v25252_v28 = vrot.slane %v13940_v27, %v22010_v11  ;;  %v13969_v31 = vcombine.high %v25246_v8, %v25246_v8 }
0x176e   :  { %13037 = vmatpush1.bf16.xpose.msra.mxu0 %v21484_v21 }
0x176f   :  { %13114 = vmatprep.subr.bf16.mxu0 %v21492_v34  ;;  %v13972_v20 = vcombine.high %v25252_v28, %v25252_v28  ;;  %v12710_v34 = vpop.f32.mrb[253].mxu1 }
0x1770   :  { %v21508_v34 = vld [vmem:[#allocation2 + $0xcc] ss:$528 sps:$4 sm:$0xff]  }
0x1774   :  { %16782 = vmatpush1.bf16.xpose.msra.mxu1 %v21487_v32  ;;  %v12711_v32 = vpop.f32.mrb[254].mxu1 }
0x1775   :  { %13067 = vmatmul.mubr.bf16.vlgmr.msra.gmra.mrb[20].mxu0 %v24801_v45  ;;  %16859 = vmatprep.subr.bf16.mxu1 %v21495_v23  ;;  %v13368_v45 = vld [vmem:[%s25855_s12 + $0x30] sm:$0xff] }
0x1776   :  { %13115 = vmatpush1.bf16.xpose.msra.mxu0 %v21490_v17  ;;  %13146 = vmatprep.mubr.bf16.mxu0 %v24807_v9  ;;  %v12712_v17 = vpop.f32.mrb[255].mxu1 }
0x1777   :  { %13116 = vmatprep.subr.bf16.mxu0 %v21498_v44  ;;  %v13980_v44 = vrot.slane %v13368_v45, %v22010_v11  ;;  %v25291_v32 = vpop.f32.mrb[0].mxu1  ;;  %v21514_v17 = vld [vmem:[#allocation2 + $0x4ec] ss:$528 sps:$4 sm:$0xff]  }
0x1778   :  { %v12028_v43 = vpop.f32.mrb[220].mxu0 }
0x1779   :  { %v12029_v21 = vadd.f32 %v12028_v43, %v11989_v16  ;;  %v12030_v37 = vpop.f32.mrb[221].mxu0  ;;  %v21504_v16 = vld [vmem:[%s25830_s9 + $0x1f4] ss:$528 sps:$4 sm:$0xff]   ;;  %v21499_v43 = vld [vmem:[#allocation2 + $0x4d8] ss:$528 sps:$4 sm:$0xff]  }
0x177a   :  { %v12031_v9 = vpop.f32.mrb[222].mxu0  ;;  %v13988_v37 = vcombine.high %v13980_v44, %v13980_v44 }
0x177b   :  { %v12069_v27 = vadd.f32 %v25024_v7, %v12029_v21  ;;  %v12032_v23 = vpop.f32.mrb[223].mxu0  ;;  %16812 = vmatmul.mubr.bf16.vlgmr.msra.gmra.mrb[60].mxu1 %v13969_v31  ;;  %v21502_v7 = vld [vmem:[%s25830_s9 + $0x1f0] ss:$528 sps:$4 sm:$0xff]   ;;  %v25277_v31 = vrot.slane %v13938_v51, %v22010_v11 }
0x177c   :  { %16860 = vmatpush1.bf16.xpose.msra.mxu1 %v21493_v38  ;;  %16891 = vmatprep.mubr.bf16.mxu1 %v13972_v20  ;;  %v21511_v38 = vld [vmem:[%s25830_s9 + $0x614] ss:$528 sps:$4 sm:$0xff]   ;;  %v25283_v20 = vrot.slane %v13988_v37, %v22010_v11 }
0x177d   :  { %16861 = vmatprep.subr.bf16.mxu1 %v21501_v13  ;;  %v13970_v21 = vcombine.high %v25277_v31, %v25277_v31  ;;  %v21506_v13 = vld [vmem:[#allocation2 + $0xc8] ss:$528 sps:$4 sm:$0xff]  }
0x177e   :  { %13117 = vmatpush1.bf16.xpose.msra.mxu0 %v21496_v48  ;;  %v14020_v9 = vcombine.high %v25283_v20, %v25283_v20  ;;  %v13973_v48 = vcombine.high %v13368_v45, %v13368_v45  ;;  %v21517_v45 = vld [vmem:[%s25830_s9 + $0x204] ss:$528 sps:$4 sm:$0xff]  }
0x177f   :  { %13194 = vmatprep.subr.bf16.mxu0 %v21504_v16 }
0x1784   :  { %16862 = vmatpush1.bf16.xpose.msra.mxu1 %v21499_v43 }
0x1785   :  { %13147 = vmatmul.mubr.bf16.vlgmr.msra.gmra.mrb[24].mxu0 %v24841_v41  ;;  %16939 = vmatprep.subr.bf16.mxu1 %v21508_v34  ;;  %v12790_v41 = vpop.f32.mrb[1].mxu1 }
0x1786   :  { %13195 = vmatpush1.bf16.xpose.msra.mxu0 %v21502_v7  ;;  %13226 = vmatprep.mubr.bf16.mxu0 %v24847_v0  ;;  %v21509_v0 = vld [vmem:[%s25830_s9 + $0x610] ss:$528 sps:$4 sm:$0xff]   ;;  %v12791_v37 = vpop.f32.mrb[2].mxu1  ;;  %v21520_v41 = vld [vmem:[#allocation2 + $0xdc] ss:$528 sps:$4 sm:$0xff]  }
0x1787   :  { %13196 = vmatprep.subr.bf16.mxu0 %v21511_v38  ;;  %v12792_v38 = vpop.f32.mrb[3].mxu1 }
0x1788   :  { %v12108_v51 = vpop.f32.mrb[224].mxu0  ;;  %v21521_v38 = vld [vmem:[%s25830_s9 + $0x620] ss:$528 sps:$4 sm:$0xff]  }
0x1789   :  { %v12109_v23 = vadd.f32 %v12108_v51, %v12069_v27  ;;  %v12110_v16 = vpop.f32.mrb[225].mxu0  ;;  %v13987_v27 = vrot.slane %v13973_v48, %v22010_v11  ;;  %v21512_v51 = vld [vmem:[#allocation2 + $0x4e8] ss:$528 sps:$4 sm:$0xff]  }
0x178a   :  { %v12111_v43 = vpop.f32.mrb[226].mxu0 }
0x178b   :  { %v12149_v34 = vadd.f32 %v25055_v14, %v12109_v23  ;;  %v12112_v7 = vpop.f32.mrb[227].mxu0  ;;  %16892 = vmatmul.mubr.bf16.vlgmr.msra.gmra.mrb[76].mxu1 %v13970_v21  ;;  %v13989_v16 = vcombine.high %v13987_v27, %v13987_v27  ;;  %v21515_v14 = vld [vmem:[%s25830_s9 + $0x200] ss:$528 sps:$4 sm:$0xff]   ;;  %v25305_v21 = vrot.slane %v13980_v44, %v22010_v11  ;;  %v21518_v23 = vld [vmem:[#allocation2 + $0xd8] ss:$528 sps:$4 sm:$0xff]   ;;  %v25319_v43 = vpop.f32.mrb[8].mxu1  ;;  %v25330_v42 = vrot.slane %v13987_v27, %v22010_v11 }
0x178c   :  { %16940 = vmatpush1.bf16.xpose.msra.mxu1 %v21506_v13  ;;  %16971 = vmatprep.mubr.bf16.mxu1 %v14020_v9  ;;  %v21523_v13 = vld [vmem:[%s25830_s9 + $0x624] ss:$528 sps:$4 sm:$0xff]   ;;  %v21526_v7 = vld [vmem:[#allocation2 + $0x4fc] ss:$528 sps:$4 sm:$0xff]  }
0x178d   :  { %16941 = vmatprep.subr.bf16.mxu1 %v21514_v17  ;;  %v25311_v9 = vrot.slane %v13989_v16, %v22010_v11  ;;  %v14018_v48 = vcombine.high %v25305_v21, %v25305_v21 }
0x178e   :  { %13197 = vmatpush1.bf16.xpose.msra.mxu0 %v21509_v0 }
0x178f   :  { %13274 = vmatprep.subr.bf16.mxu0 %v21517_v45  ;;  %v14021_v17 = vcombine.high %v25311_v9, %v25311_v9  ;;  %v12870_v45 = vpop.f32.mrb[9].mxu1 }
0x1790   :  { %v21533_v45 = vld [vmem:[#allocation2 + $0xec] ss:$528 sps:$4 sm:$0xff]  }
0x1794   :  { %16942 = vmatpush1.bf16.xpose.msra.mxu1 %v21512_v51  ;;  %v12871_v51 = vpop.f32.mrb[10].mxu1 }
0x1795   :  { %13227 = vmatmul.mubr.bf16.vlgmr.msra.gmra.mrb[12].mxu0 %v24883_v46  ;;  %17019 = vmatprep.subr.bf16.mxu1 %v21520_v41  ;;  %v13369_v46 = vld [vmem:[%s25855_s12 + $0x38] sm:$0xff]  ;;  %v21536_v51 = vld [vmem:[#allocation2 + $0x424] ss:$528 sps:$4 sm:$0xff]  }
0x1796   :  { %13275 = vmatpush1.bf16.xpose.msra.mxu0 %v21515_v14  ;;  %13306 = vmatprep.mubr.bf16.mxu0 %v24889_v53  ;;  %v21529_v14 = vld [vmem:[#allocation2 + $0x4] ss:$528 sps:$4 sm:$0xff]  }
0x1797   :  { %13276 = vmatprep.subr.bf16.mxu0 %v21523_v13  ;;  %v12872_v13 = vpop.f32.mrb[11].mxu1 }
0x1798   :  { %v12188_v44 = vpop.f32.mrb[228].mxu0 }
0x1799   :  { %v12189_v0 = vadd.f32 %v12188_v44, %v12149_v34  ;;  %v12190_v37 = vpop.f32.mrb[229].mxu0  ;;  %v14029_v34 = vrot.slane %v13369_v46, %v22010_v11  ;;  %v21524_v44 = vld [vmem:[#allocation2 + $0x4f8] ss:$528 sps:$4 sm:$0xff]  }
0x179a   :  { %v12191_v53 = vpop.f32.mrb[230].mxu0 }
0x179b   :  { %v12229_v16 = vadd.f32 %v25083_v39, %v12189_v0  ;;  %v12192_v41 = vpop.f32.mrb[231].mxu0  ;;  %16972 = vmatmul.mubr.bf16.vlgmr.msra.gmra.mrb[80].mxu1 %v14018_v48  ;;  %v14037_v37 = vcombine.high %v14029_v34, %v14029_v34  ;;  %v21527_v53 = vld [vmem:[#allocation2] ss:$528 sps:$4 sm:$0xff]   ;;  %v14019_v48 = vcombine.high %v25330_v42, %v25330_v42  ;;  %v14022_v0 = vcombine.high %v13369_v46, %v13369_v46  ;;  %v21537_v46 = vld [vmem:[#allocation2 + $0x508] ss:$528 sps:$4 sm:$0xff]  }
0x179c   :  { %17020 = vmatpush1.bf16.xpose.msra.mxu1 %v21518_v23  ;;  %17051 = vmatprep.mubr.bf16.mxu1 %v14021_v17  ;;  %v21531_v17 = vld [vmem:[#allocation2 + $0xe8] ss:$528 sps:$4 sm:$0xff]  }
0x179d   :  { %17021 = vmatprep.subr.bf16.mxu1 %v21526_v7  ;;  %v25333_v39 = vrot.slane %v14037_v37, %v22010_v11  ;;  %v25341_v7 = vpop.f32.mrb[12].mxu1  ;;  %v14036_v36 = vrot.slane %v14022_v0, %v22010_v11 }
0x179e   :  { %13277 = vmatpush1.bf16.xpose.msra.mxu0 %v21521_v38 }
0x179f   :  { %15939 = vmatprep.subr.bf16.mxu0 %v21529_v14  ;;  %v14069_v27 = vcombine.high %v25333_v39, %v25333_v39  ;;  %v21539_v14 = vld [vmem:[#allocation2 + $0x50c] ss:$528 sps:$4 sm:$0xff]  }
0x17a4   :  { %17022 = vmatpush1.bf16.xpose.msra.mxu1 %v21524_v44  ;;  %v21534_v44 = vld [vmem:[#allocation2 + $0x420] ss:$528 sps:$4 sm:$0xff]  }
0x17a5   :  { %13307 = vmatmul.mubr.bf16.vlgmr.msra.gmra.mrb[28].mxu0 %v24923_v6  ;;  %17099 = vmatprep.subr.bf16.mxu1 %v21533_v45  ;;  %v12950_v6 = vpop.f32.mrb[13].mxu1 }
0x17a6   :  { %15940 = vmatpush1.bf16.xpose.msra.mxu0 %v21527_v53  ;;  %15971 = vmatprep.mubr.bf16.mxu0 %v24929_v12  ;;  %v12951_v37 = vpop.f32.mrb[14].mxu1  ;;  %v21542_v53 = vld [vmem:[#allocation2 + $0x14] ss:$528 sps:$4 sm:$0xff]   ;;  %v25346_v6 = vrot.slane %v14029_v34, %v22010_v11 }
0x17a7   :  { %15941 = vmatprep.subr.bf16.mxu0 %v21536_v51  ;;  %v12952_v51 = vpop.f32.mrb[15].mxu1 }
0x17a8   :  { %v12268_v23 = vpop.f32.mrb[232].mxu0  ;;  %v25357_v0 = vpop.f32.mrb[16].mxu1 }
0x17a9   :  { %v12269_v38 = vadd.f32 %v12268_v23, %v12229_v16  ;;  %v12270_v41 = vpop.f32.mrb[233].mxu0  ;;  %v14038_v16 = vcombine.high %v14036_v36, %v14036_v36  ;;  %v21545_v23 = vld [vmem:[#allocation2 + $0xfc] ss:$528 sps:$4 sm:$0xff]   ;;  %v13030_v37 = vpop.f32.mrb[17].mxu1 }
0x17aa   :  { %v12271_v13 = vpop.f32.mrb[234].mxu0  ;;  %v21540_v41 = vld [vmem:[#allocation2 + $0x10] ss:$528 sps:$4 sm:$0xff]   ;;  %v25365_v37 = vrot.slane %v14036_v36, %v22010_v11 }
0x17ab   :  { %v12309_v12 = vadd.f32 %v25114_v4, %v12269_v38  ;;  %v12272_v45 = vpop.f32.mrb[235].mxu0  ;;  %17052 = vmatmul.mubr.bf16.vlgmr.msra.gmra.mrb[84].mxu1 %v14019_v48  ;;  %v21548_v13 = vld [vmem:[#allocation2 + $0x434] ss:$528 sps:$4 sm:$0xff]   ;;  %v25349_v4 = vrot.slane %v14038_v16, %v22010_v11  ;;  %v14067_v48 = vcombine.high %v25346_v6, %v25346_v6 }
0x17ac   :  { %17100 = vmatpush1.bf16.xpose.msra.mxu1 %v21531_v17  ;;  %17131 = vmatprep.mubr.bf16.mxu1 %v14069_v27  ;;  %v21543_v27 = vld [vmem:[#allocation2 + $0xf8] ss:$528 sps:$4 sm:$0xff]   ;;  %v21546_v45 = vld [vmem:[#allocation2 + $0x430] ss:$528 sps:$4 sm:$0xff]   ;;  %v21554_v16 = vld [vmem:[#allocation2 + $0x24] ss:$528 sps:$4 sm:$0xff]  }
0x17ad   :  { %17101 = vmatprep.subr.bf16.mxu1 %v21539_v14  ;;  %v14070_v34 = vcombine.high %v25349_v4, %v25349_v4 }
0x17ae   :  { %15942 = vmatpush1.bf16.xpose.msra.mxu0 %v21534_v44  ;;  %v21551_v44 = vld [vmem:[#allocation2 + $0x51c] ss:$528 sps:$4 sm:$0xff]  }
0x17af   :  { %16019 = vmatprep.subr.bf16.mxu0 %v21542_v53  ;;  %v13031_v53 = vpop.f32.mrb[18].mxu1 }
0x17b4   :  { %17102 = vmatpush1.bf16.xpose.msra.mxu1 %v21537_v46 }
0x17b5   :  { %15972 = vmatmul.mubr.bf16.vlgmr.msra.gmra.mrb[32].mxu0 %v24951_v47  ;;  %17179 = vmatprep.subr.bf16.mxu1 %v21545_v23  ;;  %v13370_v47 = vld [vmem:[%s25855_s12 + $0x40] sm:$0xff]  ;;  %v13032_v23 = vpop.f32.mrb[19].mxu1 }
0x17b6   :  { %16020 = vmatpush1.bf16.xpose.msra.mxu0 %v21540_v41  ;;  %16051 = vmatprep.mubr.bf16.mxu0 %v24957_v25  ;;  %v21549_v41 = vld [vmem:[#allocation2 + $0x518] ss:$528 sps:$4 sm:$0xff]   ;;  %v21559_v23 = vld [vmem:[#allocation2 + $0x440] ss:$528 sps:$4 sm:$0xff]  }
0x17b7   :  { %16021 = vmatprep.subr.bf16.mxu0 %v21548_v13 }
0x17b8   :  { %v12348_v17 = vpop.f32.mrb[236].mxu0 }
0x17b9   :  { %v12349_v38 = vadd.f32 %v12348_v17, %v12309_v12  ;;  %v12350_v14 = vpop.f32.mrb[237].mxu0  ;;  %v14078_v12 = vrot.slane %v13370_v47, %v22010_v11  ;;  %v21558_v17 = vld [vmem:[#allocation2 + $0x10c] ss:$528 sps:$4 sm:$0xff]  }
0x17ba   :  { %v12351_v25 = vpop.f32.mrb[238].mxu0  ;;  %v21552_v14 = vld [vmem:[#allocation2 + $0x20] ss:$528 sps:$4 sm:$0xff]  }
0x17bb   :  { %v12389_v51 = vadd.f32 %v25142_v5, %v12349_v38  ;;  %v12352_v46 = vpop.f32.mrb[239].mxu0  ;;  %17132 = vmatmul.mubr.bf16.vlgmr.msra.gmra.mrb[92].mxu1 %v14067_v48  ;;  %v14086_v13 = vcombine.high %v14078_v12, %v14078_v12  ;;  %v21561_v25 = vld [vmem:[#allocation2 + $0x444] ss:$528 sps:$4 sm:$0xff]   ;;  %v14068_v48 = vcombine.high %v25365_v37, %v25365_v37  ;;  %v14071_v38 = vcombine.high %v13370_v47, %v13370_v47  ;;  %v21562_v47 = vld [vmem:[#allocation2 + $0x528] ss:$528 sps:$4 sm:$0xff]  }
0x17bc   :  { %17180 = vmatpush1.bf16.xpose.msra.mxu1 %v21543_v27  ;;  %17211 = vmatprep.mubr.bf16.mxu1 %v14070_v34  ;;  %v21556_v34 = vld [vmem:[#allocation2 + $0x108] ss:$528 sps:$4 sm:$0xff]   ;;  %v21564_v46 = vld [vmem:[#allocation2 + $0x52c] ss:$528 sps:$4 sm:$0xff]  }
0x17bd   :  { %17181 = vmatprep.subr.bf16.mxu1 %v21551_v44  ;;  %v25368_v5 = vrot.slane %v14086_v13, %v22010_v11  ;;  %v25376_v44 = vpop.f32.mrb[4].mxu1 }
0x17be   :  { %16022 = vmatpush1.bf16.xpose.msra.mxu0 %v21546_v45 }
0x17bf   :  { %16099 = vmatprep.subr.bf16.mxu0 %v21554_v16  ;;  %v14118_v36 = vcombine.high %v25368_v5, %v25368_v5 }
0x17c4   :  { %17182 = vmatpush1.bf16.xpose.msra.mxu1 %v21549_v41 }
0x17c5   :  { %16052 = vmatmul.mubr.bf16.vlgmr.msra.gmra.mrb[36].mxu0 %v24982_v10  ;;  %17259 = vmatprep.subr.bf16.mxu1 %v21558_v17  ;;  %v13110_v10 = vpop.f32.mrb[5].mxu1  ;;  %v21567_v17 = vld [vmem:[#allocation2 + $0x34] ss:$528 sps:$4 sm:$0xff]  }
0x17c6   :  { %16100 = vmatpush1.bf16.xpose.msra.mxu0 %v21552_v14  ;;  %16131 = vmatprep.mubr.bf16.mxu0 %v24988_v24  ;;  %v13111_v41 = vpop.f32.mrb[6].mxu1  ;;  %v25381_v10 = vrot.slane %v14078_v12, %v22010_v11 }
0x17c7   :  { %16101 = vmatprep.subr.bf16.mxu0 %v21561_v25  ;;  %v13112_v14 = vpop.f32.mrb[7].mxu1  ;;  %v14085_v25 = vrot.slane %v14071_v38, %v22010_v11 }
0x17c8   :  { %v12428_v27 = vpop.f32.mrb[240].mxu0  ;;  %v25392_v38 = vpop.f32.mrb[20].mxu1 }
0x17c9   :  { %v12429_v45 = vadd.f32 %v12428_v27, %v12389_v51  ;;  %v12430_v53 = vpop.f32.mrb[241].mxu0  ;;  %v14087_v51 = vcombine.high %v14085_v25, %v14085_v25  ;;  %v21570_v27 = vld [vmem:[#allocation2 + $0x11c] ss:$528 sps:$4 sm:$0xff]   ;;  %v13190_v41 = vpop.f32.mrb[21].mxu1 }
0x17ca   :  { %v12431_v16 = vpop.f32.mrb[242].mxu0  ;;  %v21565_v53 = vld [vmem:[#allocation2 + $0x30] ss:$528 sps:$4 sm:$0xff]   ;;  %v25400_v41 = vrot.slane %v14085_v25, %v22010_v11 }
0x17cb   :  { %v12469_v24 = vadd.f32 %v25173_v30, %v12429_v45  ;;  %v12432_v13 = vpop.f32.mrb[243].mxu0  ;;  %17212 = vmatmul.mubr.bf16.vlgmr.msra.gmra.mrb[96].mxu1 %v14068_v48  ;;  %v21573_v16 = vld [vmem:[#allocation2 + $0x454] ss:$528 sps:$4 sm:$0xff]   ;;  %v25384_v30 = vrot.slane %v14087_v51, %v22010_v11  ;;  %v14116_v48 = vcombine.high %v25381_v10, %v25381_v10 }
0x17cc   :  { %17260 = vmatpush1.bf16.xpose.msra.mxu1 %v21556_v34  ;;  %17291 = vmatprep.mubr.bf16.mxu1 %v14118_v36  ;;  %v21568_v36 = vld [vmem:[#allocation2 + $0x118] ss:$528 sps:$4 sm:$0xff]   ;;  %v21571_v13 = vld [vmem:[#allocation2 + $0x450] ss:$528 sps:$4 sm:$0xff]   ;;  %v21579_v51 = vld [vmem:[#allocation2 + $0x44] ss:$528 sps:$4 sm:$0xff]  }
0x17cd   :  { %17261 = vmatprep.subr.bf16.mxu1 %v21564_v46  ;;  %v14119_v12 = vcombine.high %v25384_v30, %v25384_v30 }
0x17ce   :  { %16102 = vmatpush1.bf16.xpose.msra.mxu0 %v21559_v23  ;;  %v21576_v23 = vld [vmem:[#allocation2 + $0x53c] ss:$528 sps:$4 sm:$0xff]  }
0x17cf   :  { %16179 = vmatprep.subr.bf16.mxu0 %v21567_v17  ;;  %v13191_v17 = vpop.f32.mrb[22].mxu1 }
0x17d4   :  { %17262 = vmatpush1.bf16.xpose.msra.mxu1 %v21562_v47 }
0x17d5   :  { %16132 = vmatmul.mubr.bf16.vlgmr.msra.gmra.mrb[44].mxu0 %v25010_v19  ;;  %17339 = vmatprep.subr.bf16.mxu1 %v21570_v27  ;;  %v13371_v19 = vld [vmem:[%s25855_s12 + $0x48] sm:$0xff]  ;;  %v13192_v27 = vpop.f32.mrb[23].mxu1 }
0x17d6   :  { %16180 = vmatpush1.bf16.xpose.msra.mxu0 %v21565_v53  ;;  %16211 = vmatprep.mubr.bf16.mxu0 %v25016_v35  ;;  %v21574_v53 = vld [vmem:[#allocation2 + $0x538] ss:$528 sps:$4 sm:$0xff]   ;;  %v21584_v27 = vld [vmem:[#allocation2 + $0x460] ss:$528 sps:$4 sm:$0xff]  }
0x17d7   :  { %16181 = vmatprep.subr.bf16.mxu0 %v21573_v16 }
0x17d8   :  { %v12508_v34 = vpop.f32.mrb[244].mxu0 }
0x17d9   :  { %v12509_v45 = vadd.f32 %v12508_v34, %v12469_v24  ;;  %v12510_v46 = vpop.f32.mrb[245].mxu0  ;;  %v14127_v24 = vrot.slane %v13371_v19, %v22010_v11  ;;  %v21583_v34 = vld [vmem:[#allocation2 + $0x12c] ss:$528 sps:$4 sm:$0xff]  }
0x17da   :  { %v12511_v35 = vpop.f32.mrb[246].mxu0  ;;  %v21577_v46 = vld [vmem:[#allocation2 + $0x40] ss:$528 sps:$4 sm:$0xff]  }
0x17db   :  { %v12549_v14 = vadd.f32 %v25201_v3, %v12509_v45  ;;  %v12512_v47 = vpop.f32.mrb[247].mxu0  ;;  %17292 = vmatmul.mubr.bf16.vlgmr.msra.gmra.mrb[100].mxu1 %v14116_v48  ;;  %v14135_v16 = vcombine.high %v14127_v24, %v14127_v24  ;;  %v21586_v35 = vld [vmem:[#allocation2 + $0x464] ss:$528 sps:$4 sm:$0xff]   ;;  %v14117_v48 = vcombine.high %v25400_v41, %v25400_v41  ;;  %v14120_v45 = vcombine.high %v13371_v19, %v13371_v19  ;;  %v21587_v19 = vld [vmem:[#allocation2 + $0x548] ss:$528 sps:$4 sm:$0xff]  }
0x17dc   :  { %17340 = vmatpush1.bf16.xpose.msra.mxu1 %v21568_v36  ;;  %17371 = vmatprep.mubr.bf16.mxu1 %v14119_v12  ;;  %v21581_v12 = vld [vmem:[#allocation2 + $0x128] ss:$528 sps:$4 sm:$0xff]   ;;  %v21589_v47 = vld [vmem:[#allocation2 + $0x54c] ss:$528 sps:$4 sm:$0xff]  }
0x17dd   :  { %17341 = vmatprep.subr.bf16.mxu1 %v21576_v23  ;;  %v25403_v3 = vrot.slane %v14135_v16, %v22010_v11  ;;  %v25411_v23 = vpop.f32.mrb[24].mxu1 }
0x17de   :  { %16182 = vmatpush1.bf16.xpose.msra.mxu0 %v21571_v13 }
0x17df   :  { %16259 = vmatprep.subr.bf16.mxu0 %v21579_v51  ;;  %v14167_v25 = vcombine.high %v25403_v3, %v25403_v3 }
0x17e4   :  { %17342 = vmatpush1.bf16.xpose.msra.mxu1 %v21574_v53 }
0x17e5   :  { %16212 = vmatmul.mubr.bf16.vlgmr.msra.gmra.mrb[48].mxu0 %v25041_v18  ;;  %17419 = vmatprep.subr.bf16.mxu1 %v21583_v34  ;;  %v13270_v18 = vpop.f32.mrb[25].mxu1  ;;  %v21592_v34 = vld [vmem:[#allocation2 + $0x54] ss:$528 sps:$4 sm:$0xff]  }
0x17e6   :  { %16260 = vmatpush1.bf16.xpose.msra.mxu0 %v21577_v46  ;;  %16291 = vmatprep.mubr.bf16.mxu0 %v25047_v59  ;;  %v13271_v53 = vpop.f32.mrb[26].mxu1  ;;  %v25416_v18 = vrot.slane %v14127_v24, %v22010_v11 }
0x17e7   :  { %16261 = vmatprep.subr.bf16.mxu0 %v21586_v35  ;;  %v13272_v46 = vpop.f32.mrb[27].mxu1  ;;  %v14134_v35 = vrot.slane %v14120_v45, %v22010_v11 }
0x17e8   :  { %v12588_v36 = vpop.f32.mrb[248].mxu0  ;;  %v25427_v45 = vpop.f32.mrb[28].mxu1 }
0x17e9   :  { %v12589_v13 = vadd.f32 %v12588_v36, %v12549_v14  ;;  %v12590_v17 = vpop.f32.mrb[249].mxu0  ;;  %v14136_v14 = vcombine.high %v14134_v35, %v14134_v35  ;;  %v21595_v36 = vld [vmem:[#allocation2 + $0x13c] ss:$528 sps:$4 sm:$0xff]   ;;  %v13350_v53 = vpop.f32.mrb[29].mxu1 }
0x17ea   :  { %v12591_v51 = vpop.f32.mrb[250].mxu0  ;;  %v21590_v17 = vld [vmem:[#allocation2 + $0x50] ss:$528 sps:$4 sm:$0xff]   ;;  %v25435_v53 = vrot.slane %v14134_v35, %v22010_v11 }
0x17eb   :  { %v12629_v59 = vadd.f32 %v25232_v49, %v12589_v13  ;;  %v12592_v16 = vpop.f32.mrb[251].mxu0  ;;  %17372 = vmatmul.mubr.bf16.vlgmr.msra.gmra.mrb[88].mxu1 %v14117_v48  ;;  %v21598_v51 = vld [vmem:[#allocation2 + $0x474] ss:$528 sps:$4 sm:$0xff]   ;;  %v25419_v49 = vrot.slane %v14136_v14, %v22010_v11  ;;  %v14165_v48 = vcombine.high %v25416_v18, %v25416_v18 }
0x17ec   :  { %17420 = vmatpush1.bf16.xpose.msra.mxu1 %v21581_v12  ;;  %17451 = vmatprep.mubr.bf16.mxu1 %v14167_v25  ;;  %v21593_v25 = vld [vmem:[#allocation2 + $0x138] ss:$528 sps:$4 sm:$0xff]   ;;  %v21596_v16 = vld [vmem:[#allocation2 + $0x470] ss:$528 sps:$4 sm:$0xff]   ;;  %v21604_v14 = vld [vmem:[#allocation2 + $0x64] ss:$528 sps:$4 sm:$0xff]  }
0x17ed   :  { %17421 = vmatprep.subr.bf16.mxu1 %v21589_v47  ;;  %v14168_v24 = vcombine.high %v25419_v49, %v25419_v49 }
0x17ee   :  { %16262 = vmatpush1.bf16.xpose.msra.mxu0 %v21584_v27  ;;  %v21601_v27 = vld [vmem:[#allocation2 + $0x55c] ss:$528 sps:$4 sm:$0xff]  }
0x17ef   :  { %16339 = vmatprep.subr.bf16.mxu0 %v21592_v34  ;;  %v13351_v34 = vpop.f32.mrb[30].mxu1 }
0x17f0   :  { %v21614_v34 = vld [vmem:[#allocation2 + $0x56c] ss:$528 sps:$4 sm:$0xff]  }
0x17f4   :  { %17422 = vmatpush1.bf16.xpose.msra.mxu1 %v21587_v19 }
0x17f5   :  { %16292 = vmatmul.mubr.bf16.vlgmr.msra.gmra.mrb[52].mxu0 %v25069_v55  ;;  %17499 = vmatprep.subr.bf16.mxu1 %v21595_v36  ;;  %v13372_v55 = vld [vmem:[%s25855_s12 + $0x50] sm:$0xff]  ;;  %v13352_v36 = vpop.f32.mrb[31].mxu1 }
0x17f6   :  { %16340 = vmatpush1.bf16.xpose.msra.mxu0 %v21590_v17  ;;  %16371 = vmatprep.mubr.bf16.mxu0 %v25075_v62  ;;  %v21599_v17 = vld [vmem:[#allocation2 + $0x558] ss:$528 sps:$4 sm:$0xff]  }
0x17f7   :  { %16341 = vmatprep.subr.bf16.mxu0 %v21598_v51 }
0x17f8   :  { %v12668_v12 = vpop.f32.mrb[252].mxu0 }
0x17f9   :  { %v12669_v13 = vadd.f32 %v12668_v12, %v12629_v59  ;;  %v12670_v47 = vpop.f32.mrb[253].mxu0  ;;  %v14176_v59 = vrot.slane %v13372_v55, %v22010_v11  ;;  %v21608_v12 = vld [vmem:[#allocation2 + $0x14c] ss:$528 sps:$4 sm:$0xff]  }
0x17fa   :  { %v12671_v62 = vpop.f32.mrb[254].mxu0  ;;  %v21602_v47 = vld [vmem:[#allocation2 + $0x60] ss:$528 sps:$4 sm:$0xff]  }
0x17fb   :  { %v12709_v46 = vadd.f32 %v25260_v15, %v12669_v13  ;;  %v12672_v19 = vpop.f32.mrb[255].mxu0  ;;  %17452 = vmatmul.mubr.bf16.vlgmr.msra.gmra.mrb[104].mxu1 %v14165_v48  ;;  %v14184_v51 = vcombine.high %v14176_v59, %v14176_v59  ;;  %v21611_v62 = vld [vmem:[#allocation2 + $0x484] ss:$528 sps:$4 sm:$0xff]   ;;  %v14166_v48 = vcombine.high %v25435_v53, %v25435_v53  ;;  %v14169_v13 = vcombine.high %v13372_v55, %v13372_v55  ;;  %v21612_v55 = vld [vmem:[#allocation2 + $0x568] ss:$528 sps:$4 sm:$0xff]  }
0x17fc   :  { %17500 = vmatpush1.bf16.xpose.msra.mxu1 %v21593_v25  ;;  %17531 = vmatprep.mubr.bf16.mxu1 %v14168_v24  ;;  %v21606_v24 = vld [vmem:[#allocation2 + $0x148] ss:$528 sps:$4 sm:$0xff]   ;;  %v25446_v19 = vpop.f32.mrb[36].mxu1 }
0x17fd   :  { %17501 = vmatprep.subr.bf16.mxu1 %v21601_v27  ;;  %v25438_v15 = vrot.slane %v14184_v51, %v22010_v11  ;;  %v16015_v36 = vpop.f32.mrb[37].mxu1  ;;  %v21617_v51 = vld [vmem:[#allocation2 + $0x74] ss:$528 sps:$4 sm:$0xff]  }
0x17fe   :  { %16342 = vmatpush1.bf16.xpose.msra.mxu0 %v21596_v16 }
0x17ff   :  { %16419 = vmatprep.subr.bf16.mxu0 %v21604_v14  ;;  %v14216_v35 = vcombine.high %v25438_v15, %v25438_v15  ;;  %v21609_v14 = vld [vmem:[#allocation2 + $0x480] ss:$528 sps:$4 sm:$0xff]  }
0x1804   :  { %17502 = vmatpush1.bf16.xpose.msra.mxu1 %v21599_v17 }
0x1805   :  { %16372 = vmatmul.mubr.bf16.vlgmr.msra.gmra.mrb[40].mxu0 %v25100_v40  ;;  %17579 = vmatprep.subr.bf16.mxu1 %v21608_v12  ;;  %v16016_v12 = vpop.f32.mrb[38].mxu1 }
0x1806   :  { %16420 = vmatpush1.bf16.xpose.msra.mxu0 %v21602_v47  ;;  %16451 = vmatprep.mubr.bf16.mxu0 %v25106_v50  ;;  %v14183_v47 = vrot.slane %v14169_v13, %v22010_v11  ;;  %v21618_v13 = vld [vmem:[#allocation2 + $0x158] ss:$528 sps:$4 sm:$0xff]  }
0x1807   :  { %16421 = vmatprep.subr.bf16.mxu0 %v21611_v62  ;;  %v16017_v62 = vpop.f32.mrb[39].mxu1 }
0x1808   :  { %v12748_v25 = vpop.f32.mrb[0].mxu0  ;;  %v25465_v36 = vpop.f32.mrb[40].mxu1 }
0x1809   :  { %v12749_v27 = vadd.f32 %v12748_v25, %v12709_v46  ;;  %v12750_v16 = vpop.f32.mrb[1].mxu0  ;;  %v14185_v46 = vcombine.high %v14183_v47, %v14183_v47  ;;  %v21620_v25 = vld [vmem:[#allocation2 + $0x15c] ss:$528 sps:$4 sm:$0xff]  }
0x180a   :  { %v12751_v40 = vpop.f32.mrb[2].mxu0  ;;  %v21615_v16 = vld [vmem:[#allocation2 + $0x70] ss:$528 sps:$4 sm:$0xff]  }
0x180b   :  { %v12789_v50 = vadd.f32 %v25291_v32, %v12749_v27  ;;  %v12752_v17 = vpop.f32.mrb[3].mxu0  ;;  %17532 = vmatmul.mubr.bf16.vlgmr.msra.gmra.mrb[108].mxu1 %v14166_v48  ;;  %v25451_v40 = vrot.slane %v14176_v59, %v22010_v11  ;;  %v21623_v32 = vld [vmem:[#allocation2 + $0x494] ss:$528 sps:$4 sm:$0xff]   ;;  %v25454_v48 = vrot.slane %v14185_v46, %v22010_v11 }
0x180c   :  { %17580 = vmatpush1.bf16.xpose.msra.mxu1 %v21606_v24  ;;  %17611 = vmatprep.mubr.bf16.mxu1 %v14216_v35 }
0x180d   :  { %17581 = vmatprep.subr.bf16.mxu1 %v21614_v34  ;;  %v14214_v24 = vcombine.high %v25451_v40, %v25451_v40  ;;  %v14217_v59 = vcombine.high %v25454_v48, %v25454_v48 }
0x180e   :  { %16422 = vmatpush1.bf16.xpose.msra.mxu0 %v21609_v14  ;;  %v21626_v14 = vld [vmem:[#allocation2 + $0x57c] ss:$528 sps:$4 sm:$0xff]  }
0x180f   :  { %16499 = vmatprep.subr.bf16.mxu0 %v21617_v51  ;;  %v16095_v51 = vpop.f32.mrb[41].mxu1 }
0x1810   :  { %v16096_v46 = vpop.f32.mrb[42].mxu1 }
0x1811   :  { %v21634_v46 = vld [vmem:[#allocation2 + $0x4a0] ss:$528 sps:$4 sm:$0xff]  }
0x1814   :  { %17582 = vmatpush1.bf16.xpose.msra.mxu1 %v21612_v55  ;;  %v21629_v55 = vld [vmem:[#allocation2 + $0x84] ss:$528 sps:$4 sm:$0xff]  }
0x1815   :  { %16452 = vmatmul.mubr.bf16.vlgmr.msra.gmra.mrb[56].mxu0 %v25128_v52  ;;  %17659 = vmatprep.subr.bf16.mxu1 %v21620_v25  ;;  %v13373_v52 = vld [vmem:[%s25855_s12 + $0x58] sm:$0xff]  ;;  %v16097_v25 = vpop.f32.mrb[43].mxu1 }
0x1816   :  { %16500 = vmatpush1.bf16.xpose.msra.mxu0 %v21615_v16  ;;  %16531 = vmatprep.mubr.bf16.mxu0 %v25134_v33  ;;  %v21621_v33 = vld [vmem:[#allocation2 + $0x490] ss:$528 sps:$4 sm:$0xff]   ;;  %v21624_v16 = vld [vmem:[#allocation2 + $0x578] ss:$528 sps:$4 sm:$0xff]  }
0x1817   :  { %16501 = vmatprep.subr.bf16.mxu0 %v21623_v32 }
0x1818   :  { %v12828_v35 = vpop.f32.mrb[4].mxu0 }
0x1819   :  { %v12829_v27 = vadd.f32 %v12828_v35, %v12789_v50  ;;  %v12830_v34 = vpop.f32.mrb[5].mxu0  ;;  %v14225_v50 = vrot.slane %v13373_v52, %v22010_v11  ;;  %v21633_v35 = vld [vmem:[#allocation2 + $0x16c] ss:$528 sps:$4 sm:$0xff]  }
0x181a   :  { %v12831_v17 = vpop.f32.mrb[6].mxu0  ;;  %v21627_v34 = vld [vmem:[#allocation2 + $0x80] ss:$528 sps:$4 sm:$0xff]  }
0x181b   :  { %v12869_v12 = vadd.f32 %v25319_v43, %v12829_v27  ;;  %v12832_v62 = vpop.f32.mrb[7].mxu0  ;;  %17612 = vmatmul.mubr.bf16.vlgmr.msra.gmra.mrb[112].mxu1 %v14214_v24  ;;  %v14233_v32 = vcombine.high %v14225_v50, %v14225_v50  ;;  %v25470_v17 = vrot.slane %v14183_v47, %v22010_v11  ;;  %v21636_v43 = vld [vmem:[#allocation2 + $0x4a4] ss:$528 sps:$4 sm:$0xff]   ;;  %v21631_v27 = vld [vmem:[#allocation2 + $0x168] ss:$528 sps:$4 sm:$0xff]  }
0x181c   :  { %17660 = vmatpush1.bf16.xpose.msra.mxu1 %v21618_v13  ;;  %17691 = vmatprep.mubr.bf16.mxu1 %v14217_v59  ;;  %v21639_v62 = vld [vmem:[#allocation2 + $0x58c] ss:$528 sps:$4 sm:$0xff]  }
0x181d   :  { %17661 = vmatprep.subr.bf16.mxu1 %v21626_v14  ;;  %v25473_v24 = vrot.slane %v14233_v32, %v22010_v11  ;;  %v14215_v13 = vcombine.high %v25470_v17, %v25470_v17  ;;  %v14218_v14 = vcombine.high %v13373_v52, %v13373_v52  ;;  %v21642_v32 = vld [vmem:[#allocation2 + $0x94] ss:$528 sps:$4 sm:$0xff]   ;;  %v21637_v52 = vld [vmem:[#allocation2 + $0x588] ss:$528 sps:$4 sm:$0xff]  }
0x181e   :  { %16502 = vmatpush1.bf16.xpose.msra.mxu0 %v21621_v33 }
0x181f   :  { %16579 = vmatprep.subr.bf16.mxu0 %v21629_v55  ;;  %v14265_v47 = vcombine.high %v25473_v24, %v25473_v24  ;;  %v25481_v55 = vpop.f32.mrb[44].mxu1 }
0x1820   :  { %v16175_v25 = vpop.f32.mrb[45].mxu1 }
0x1824   :  { %17662 = vmatpush1.bf16.xpose.msra.mxu1 %v21624_v16 }
0x1825   :  { %16532 = vmatmul.mubr.bf16.vlgmr.msra.gmra.mrb[60].mxu0 %v25159_v58  ;;  %17739 = vmatprep.subr.bf16.mxu1 %v21633_v35  ;;  %v16176_v35 = vpop.f32.mrb[46].mxu1 }
0x1826   :  { %16580 = vmatpush1.bf16.xpose.msra.mxu0 %v21627_v34  ;;  %16611 = vmatprep.mubr.bf16.mxu0 %v25165_v2  ;;  %v14232_v34 = vrot.slane %v14218_v14, %v22010_v11  ;;  %v21643_v14 = vld [vmem:[#allocation2 + $0x178] ss:$528 sps:$4 sm:$0xff]  }
0x1827   :  { %16581 = vmatprep.subr.bf16.mxu0 %v21636_v43  ;;  %v16177_v43 = vpop.f32.mrb[47].mxu1 }
0x1828   :  { %v12908_v59 = vpop.f32.mrb[8].mxu0  ;;  %v25500_v25 = vpop.f32.mrb[32].mxu1 }
0x1829   :  { %v12909_v33 = vadd.f32 %v12908_v59, %v12869_v12  ;;  %v12910_v51 = vpop.f32.mrb[9].mxu0  ;;  %v14234_v12 = vcombine.high %v14232_v34, %v14232_v34  ;;  %v21645_v59 = vld [vmem:[#allocation2 + $0x17c] ss:$528 sps:$4 sm:$0xff]  }
0x182a   :  { %v12911_v58 = vpop.f32.mrb[10].mxu0  ;;  %v21640_v51 = vld [vmem:[#allocation2 + $0x90] ss:$528 sps:$4 sm:$0xff]  }
0x182b   :  { %v12949_v2 = vadd.f32 %v25341_v7, %v12909_v33  ;;  %v12912_v16 = vpop.f32.mrb[11].mxu0  ;;  %17692 = vmatmul.mubr.bf16.vlgmr.msra.gmra.mrb[120].mxu1 %v14215_v13  ;;  %v25486_v58 = vrot.slane %v14225_v50, %v22010_v11  ;;  %v21648_v7 = vld [vmem:[#allocation2 + $0x4b4] ss:$528 sps:$4 sm:$0xff]   ;;  %v25489_v13 = vrot.slane %v14234_v12, %v22010_v11 }
0x182c   :  { %17740 = vmatpush1.bf16.xpose.msra.mxu1 %v21631_v27  ;;  %17771 = vmatprep.mubr.bf16.mxu1 %v14265_v47 }
0x182d   :  { %17741 = vmatprep.subr.bf16.mxu1 %v21639_v62  ;;  %v14263_v27 = vcombine.high %v25486_v58, %v25486_v58  ;;  %v14266_v50 = vcombine.high %v25489_v13, %v25489_v13 }
0x182e   :  { %16582 = vmatpush1.bf16.xpose.msra.mxu0 %v21634_v46  ;;  %v21651_v46 = vld [vmem:[#allocation2 + $0x59c] ss:$528 sps:$4 sm:$0xff]  }
0x182f   :  { %16659 = vmatprep.subr.bf16.mxu0 %v21642_v32  ;;  %v16255_v32 = vpop.f32.mrb[33].mxu1 }
0x1830   :  { %v16256_v12 = vpop.f32.mrb[34].mxu1 }
0x1831   :  { %v21659_v12 = vld [vmem:[#allocation2 + $0x4c0] ss:$528 sps:$4 sm:$0xff]  }
0x1834   :  { %17742 = vmatpush1.bf16.xpose.msra.mxu1 %v21637_v52  ;;  %v21654_v52 = vld [vmem:[#allocation2 + $0xa4] ss:$528 sps:$4 sm:$0xff]  }
0x1835   :  { %16612 = vmatmul.mubr.bf16.vlgmr.msra.gmra.mrb[64].mxu0 %v25187_v22  ;;  %17819 = vmatprep.subr.bf16.mxu1 %v21645_v59  ;;  %v13374_v22 = vld [vmem:[%s25855_s12 + $0x60] sm:$0xff]  ;;  %v16257_v59 = vpop.f32.mrb[35].mxu1 }
0x1836   :  { %16660 = vmatpush1.bf16.xpose.msra.mxu0 %v21640_v51  ;;  %16691 = vmatprep.mubr.bf16.mxu0 %v25193_v63  ;;  %v21646_v63 = vld [vmem:[#allocation2 + $0x4b0] ss:$528 sps:$4 sm:$0xff]   ;;  %v21649_v51 = vld [vmem:[#allocation2 + $0x598] ss:$528 sps:$4 sm:$0xff]  }
0x1837   :  { %16661 = vmatprep.subr.bf16.mxu0 %v21648_v7 }
0x1838   :  { %v12988_v47 = vpop.f32.mrb[16].mxu0 }
0x1839   :  { %v12989_v33 = vadd.f32 %v12988_v47, %v12949_v2  ;;  %v12990_v62 = vpop.f32.mrb[17].mxu0  ;;  %v14274_v2 = vrot.slane %v13374_v22, %v22010_v11  ;;  %v21658_v47 = vld [vmem:[#allocation2 + $0x18c] ss:$528 sps:$4 sm:$0xff]  }
0x183a   :  { %v12991_v16 = vpop.f32.mrb[18].mxu0  ;;  %v21652_v62 = vld [vmem:[#allocation2 + $0xa0] ss:$528 sps:$4 sm:$0xff]  }
0x183b   :  { %v13029_v35 = vadd.f32 %v25357_v0, %v12989_v33  ;;  %v12992_v43 = vpop.f32.mrb[19].mxu0  ;;  %17772 = vmatmul.mubr.bf16.vlgmr.msra.gmra.mrb[124].mxu1 %v14263_v27  ;;  %v14282_v7 = vcombine.high %v14274_v2, %v14274_v2  ;;  %v25505_v16 = vrot.slane %v14232_v34, %v22010_v11  ;;  %v21661_v0 = vld [vmem:[#allocation2 + $0x4c4] ss:$528 sps:$4 sm:$0xff]   ;;  %v21656_v33 = vld [vmem:[#allocation2 + $0x188] ss:$528 sps:$4 sm:$0xff]  }
0x183c   :  { %17820 = vmatpush1.bf16.xpose.msra.mxu1 %v21643_v14  ;;  %17851 = vmatprep.mubr.bf16.mxu1 %v14266_v50  ;;  %v21664_v43 = vld [vmem:[#allocation2 + $0x5ac] ss:$528 sps:$4 sm:$0xff]  }
0x183d   :  { %17821 = vmatprep.subr.bf16.mxu1 %v21651_v46  ;;  %v25508_v27 = vrot.slane %v14282_v7, %v22010_v11  ;;  %v14264_v14 = vcombine.high %v25505_v16, %v25505_v16  ;;  %v14267_v46 = vcombine.high %v13374_v22, %v13374_v22  ;;  %v21667_v7 = vld [vmem:[#allocation2 + $0xb4] ss:$528 sps:$4 sm:$0xff]   ;;  %v21662_v22 = vld [vmem:[#allocation2 + $0x5a8] ss:$528 sps:$4 sm:$0xff]  }
0x183e   :  { %16662 = vmatpush1.bf16.xpose.msra.mxu0 %v21646_v63 }
0x183f   :  { %16739 = vmatprep.subr.bf16.mxu0 %v21654_v52  ;;  %v14314_v34 = vcombine.high %v25508_v27, %v25508_v27  ;;  %v25516_v52 = vpop.f32.mrb[48].mxu1 }
0x1840   :  { %v16335_v59 = vpop.f32.mrb[49].mxu1 }
0x1844   :  { %17822 = vmatpush1.bf16.xpose.msra.mxu1 %v21649_v51 }
0x1845   :  { %16692 = vmatmul.mubr.bf16.vlgmr.msra.gmra.mrb[72].mxu0 %v25218_v26  ;;  %17899 = vmatprep.subr.bf16.mxu1 %v21658_v47  ;;  %v16336_v47 = vpop.f32.mrb[50].mxu1 }
0x1846   :  { %16740 = vmatpush1.bf16.xpose.msra.mxu0 %v21652_v62  ;;  %16771 = vmatprep.mubr.bf16.mxu0 %v25224_v29  ;;  %v14281_v62 = vrot.slane %v14267_v46, %v22010_v11  ;;  %v21668_v46 = vld [vmem:[#allocation2 + $0x198] ss:$528 sps:$4 sm:$0xff]  }
0x1847   :  { %16741 = vmatprep.subr.bf16.mxu0 %v21661_v0  ;;  %v16337_v0 = vpop.f32.mrb[51].mxu1 }
0x1848   :  { %v13068_v50 = vpop.f32.mrb[20].mxu0  ;;  %v25535_v59 = vpop.f32.mrb[52].mxu1 }
0x1849   :  { %v13069_v63 = vadd.f32 %v13068_v50, %v13029_v35  ;;  %v13070_v32 = vpop.f32.mrb[21].mxu0  ;;  %v14283_v35 = vcombine.high %v14281_v62, %v14281_v62  ;;  %v21670_v50 = vld [vmem:[#allocation2 + $0x19c] ss:$528 sps:$4 sm:$0xff]  }
0x184a   :  { %v13071_v26 = vpop.f32.mrb[22].mxu0  ;;  %v21665_v32 = vld [vmem:[#allocation2 + $0xb0] ss:$528 sps:$4 sm:$0xff]  }
0x184b   :  { %v13109_v29 = vadd.f32 %v25376_v44, %v13069_v63  ;;  %v13072_v51 = vpop.f32.mrb[23].mxu0  ;;  %17852 = vmatmul.mubr.bf16.vlgmr.msra.gmra.mrb[128].mxu1 %v14264_v14  ;;  %v25521_v26 = vrot.slane %v14274_v2, %v22010_v11  ;;  %v21673_v44 = vld [vmem:[#allocation2 + $0x4d4] ss:$528 sps:$4 sm:$0xff]   ;;  %v25524_v14 = vrot.slane %v14283_v35, %v22010_v11 }
0x184c   :  { %17900 = vmatpush1.bf16.xpose.msra.mxu1 %v21656_v33  ;;  %17931 = vmatprep.mubr.bf16.mxu1 %v14314_v34 }
0x184d   :  { %17901 = vmatprep.subr.bf16.mxu1 %v21664_v43  ;;  %v14312_v33 = vcombine.high %v25521_v26, %v25521_v26  ;;  %v14315_v2 = vcombine.high %v25524_v14, %v25524_v14 }
0x184e   :  { %16742 = vmatpush1.bf16.xpose.msra.mxu0 %v21659_v12  ;;  %v21676_v12 = vld [vmem:[#allocation2 + $0x5bc] ss:$528 sps:$4 sm:$0xff]  }
0x184f   :  { %16819 = vmatprep.subr.bf16.mxu0 %v21667_v7  ;;  %v16415_v7 = vpop.f32.mrb[53].mxu1 }
0x1850   :  { %v16416_v35 = vpop.f32.mrb[54].mxu1 }
0x1851   :  { %v21684_v35 = vld [vmem:[#allocation2 + $0x4e0] ss:$528 sps:$4 sm:$0xff]  }
0x1854   :  { %17902 = vmatpush1.bf16.xpose.msra.mxu1 %v21662_v22  ;;  %v21679_v22 = vld [vmem:[#allocation2 + $0xc4] ss:$528 sps:$4 sm:$0xff]  }
0x1855   :  { %16772 = vmatmul.mubr.bf16.vlgmr.msra.gmra.mrb[76].mxu0 %v25246_v8  ;;  %17979 = vmatprep.subr.bf16.mxu1 %v21670_v50  ;;  %v13375_v8 = vld [vmem:[%s25855_s12 + $0x68] sm:$0xff]  ;;  %v16417_v50 = vpop.f32.mrb[55].mxu1 }
0x1856   :  { %16820 = vmatpush1.bf16.xpose.msra.mxu0 %v21665_v32  ;;  %16851 = vmatprep.mubr.bf16.mxu0 %v25252_v28  ;;  %v21671_v28 = vld [vmem:[#allocation2 + $0x4d0] ss:$528 sps:$4 sm:$0xff]   ;;  %v21674_v32 = vld [vmem:[#allocation2 + $0x5b8] ss:$528 sps:$4 sm:$0xff]  }
0x1857   :  { %16821 = vmatprep.subr.bf16.mxu0 %v21673_v44 }
0x1858   :  { %v13148_v34 = vpop.f32.mrb[24].mxu0 }
0x1859   :  { %v13149_v63 = vadd.f32 %v13148_v34, %v13109_v29  ;;  %v13150_v43 = vpop.f32.mrb[25].mxu0  ;;  %v14323_v29 = vrot.slane %v13375_v8, %v22010_v11  ;;  %v21683_v34 = vld [vmem:[#allocation2 + $0x1ac] ss:$528 sps:$4 sm:$0xff]  }
0x185a   :  { %v13151_v51 = vpop.f32.mrb[26].mxu0  ;;  %v21677_v43 = vld [vmem:[#allocation2 + $0xc0] ss:$528 sps:$4 sm:$0xff]  }
0x185b   :  { %v13189_v47 = vadd.f32 %v25392_v38, %v13149_v63  ;;  %v13152_v0 = vpop.f32.mrb[27].mxu0  ;;  %17932 = vmatmul.mubr.bf16.vlgmr.msra.gmra.mrb[116].mxu1 %v14312_v33  ;;  %v14331_v44 = vcombine.high %v14323_v29, %v14323_v29  ;;  %v25540_v51 = vrot.slane %v14281_v62, %v22010_v11  ;;  %v21686_v38 = vld [vmem:[#allocation2 + $0x4e4] ss:$528 sps:$4 sm:$0xff]   ;;  %v21681_v63 = vld [vmem:[#allocation2 + $0x1a8] ss:$528 sps:$4 sm:$0xff]  }
0x185c   :  { %17980 = vmatpush1.bf16.xpose.msra.mxu1 %v21668_v46  ;;  %18011 = vmatprep.mubr.bf16.mxu1 %v14315_v2  ;;  %v21689_v0 = vld [vmem:[#allocation2 + $0x5cc] ss:$528 sps:$4 sm:$0xff]  }
0x185d   :  { %17981 = vmatprep.subr.bf16.mxu1 %v21676_v12  ;;  %v25543_v33 = vrot.slane %v14331_v44, %v22010_v11  ;;  %v14313_v46 = vcombine.high %v25540_v51, %v25540_v51  ;;  %v14316_v12 = vcombine.high %v13375_v8, %v13375_v8  ;;  %v21692_v44 = vld [vmem:[#allocation2 + $0xd4] ss:$528 sps:$4 sm:$0xff]   ;;  %v21687_v8 = vld [vmem:[#allocation2 + $0x5c8] ss:$528 sps:$4 sm:$0xff]  }
0x185e   :  { %16822 = vmatpush1.bf16.xpose.msra.mxu0 %v21671_v28 }
0x185f   :  { %16899 = vmatprep.subr.bf16.mxu0 %v21679_v22  ;;  %v14363_v62 = vcombine.high %v25543_v33, %v25543_v33  ;;  %v25551_v22 = vpop.f32.mrb[56].mxu1 }
0x1860   :  { %v16495_v50 = vpop.f32.mrb[57].mxu1 }
0x1864   :  { %17982 = vmatpush1.bf16.xpose.msra.mxu1 %v21674_v32 }
0x1865   :  { %16852 = vmatmul.mubr.bf16.vlgmr.msra.gmra.mrb[80].mxu0 %v25277_v31  ;;  %18059 = vmatprep.subr.bf16.mxu1 %v21683_v34  ;;  %v16496_v34 = vpop.f32.mrb[58].mxu1 }
0x1866   :  { %16900 = vmatpush1.bf16.xpose.msra.mxu0 %v21677_v43  ;;  %16931 = vmatprep.mubr.bf16.mxu0 %v25283_v20  ;;  %v14330_v43 = vrot.slane %v14316_v12, %v22010_v11  ;;  %v21693_v12 = vld [vmem:[#allocation2 + $0x1b8] ss:$528 sps:$4 sm:$0xff]  }
0x1867   :  { %16901 = vmatprep.subr.bf16.mxu0 %v21686_v38  ;;  %v16497_v38 = vpop.f32.mrb[59].mxu1 }
0x1868   :  { %v13228_v2 = vpop.f32.mrb[12].mxu0  ;;  %v25573_v50 = vpop.f32.mrb[64].mxu1 }
0x1869   :  { %v13229_v28 = vadd.f32 %v13228_v2, %v13189_v47  ;;  %v13230_v7 = vpop.f32.mrb[13].mxu0  ;;  %v14332_v47 = vcombine.high %v14330_v43, %v14330_v43  ;;  %v21695_v2 = vld [vmem:[#allocation2 + $0x1bc] ss:$528 sps:$4 sm:$0xff]   ;;  %v16575_v34 = vpop.f32.mrb[65].mxu1 }
0x186a   :  { %v13231_v31 = vpop.f32.mrb[14].mxu0  ;;  %v21690_v7 = vld [vmem:[#allocation2 + $0xd0] ss:$528 sps:$4 sm:$0xff]  }
0x186b   :  { %v13269_v20 = vadd.f32 %v25411_v23, %v13229_v28  ;;  %v13232_v32 = vpop.f32.mrb[15].mxu0  ;;  %18012 = vmatmul.mubr.bf16.vlgmr.msra.gmra.mrb[132].mxu1 %v14313_v46  ;;  %v25556_v31 = vrot.slane %v14323_v29, %v22010_v11  ;;  %v21698_v23 = vld [vmem:[#allocation2 + $0x4f4] ss:$528 sps:$4 sm:$0xff]   ;;  %v25559_v46 = vrot.slane %v14332_v47, %v22010_v11  ;;  %v13643_v29 = vld [vmem:[%s25834_s13] sm:$0x7] }
0x186c   :  { %18060 = vmatpush1.bf16.xpose.msra.mxu1 %v21681_v63  ;;  %18091 = vmatprep.mubr.bf16.mxu1 %v14363_v62  ;;  %v21704_v47 = vld [vmem:[#allocation2 + $0xe4] ss:$528 sps:$4 sm:$0xff]   ;;  %v21702_v34 = vld [vmem:[#allocation2 + $0xe0] ss:$528 sps:$4 sm:$0xff]  }
0x186d   :  { %18061 = vmatprep.subr.bf16.mxu1 %v21689_v0  ;;  %v14361_v63 = vcombine.high %v25556_v31, %v25556_v31  ;;  %v14364_v28 = vcombine.high %v25559_v46, %v25559_v46 }
0x186e   :  { %16902 = vmatpush1.bf16.xpose.msra.mxu0 %v21684_v35 }
0x186f   :  { %16979 = vmatprep.subr.bf16.mxu0 %v21692_v44  ;;  %v21696_v44 = vld [vmem:[#allocation2 + $0x4f0] ss:$528 sps:$4 sm:$0xff]  }
0x1874   :  { %18062 = vmatpush1.bf16.xpose.msra.mxu1 %v21687_v8 }
0x1875   :  { %16932 = vmatmul.mubr.bf16.vlgmr.msra.gmra.mrb[68].mxu0 %v25305_v21  ;;  %18139 = vmatprep.subr.bf16.mxu1 %v21695_v2  ;;  %v21701_v21 = vld [vmem:[#allocation2 + $0x5dc] ss:$528 sps:$4 sm:$0xff]   ;;  %v13648_v2 = vrot.slane %v13643_v29, %v22094_v56 }
0x1876   :  { %16980 = vmatpush1.bf16.xpose.msra.mxu0 %v21690_v7  ;;  %17011 = vmatprep.mubr.bf16.mxu0 %v25311_v9  ;;  %v13376_v9 = vld [vmem:[%s25855_s12 + $0x70] sm:$0xff]  ;;  %v16576_v7 = vpop.f32.mrb[66].mxu1  ;;  %v21708_v56 = vld [vmem:[#allocation2 + $0x1cc] ss:$528 sps:$4 sm:$0xff]  }
0x1877   :  { %16981 = vmatprep.subr.bf16.mxu0 %v21698_v23  ;;  %v14372_v23 = vrot.slane %v13376_v9, %v22010_v11  ;;  %v21709_v7 = vld [vmem:[#allocation2 + $0x500] ss:$528 sps:$4 sm:$0xff]  }
0x1878   :  { %v13308_v62 = vpop.f32.mrb[28].mxu0 }
0x1879   :  { %v13309_v0 = vadd.f32 %v13308_v62, %v13269_v20  ;;  %v13310_v35 = vpop.f32.mrb[29].mxu0  ;;  %v13653_v20 = vrot.slane %v13643_v29, %v22097_v57  ;;  %v16577_v62 = vpop.f32.mrb[67].mxu1 }
0x187a   :  { %v13311_v32 = vpop.f32.mrb[30].mxu0  ;;  %v13649_v35 = vmul.f32 %v13648_v2, %v22088_v54  ;;  %v21714_v2 = vld [vmem:[#allocation2 + $0x5ec] ss:$528 sps:$4 sm:$0xff]  }
0x187b   :  { %v25576_v38 = vadd.f32 %v25427_v45, %v13309_v0  ;;  %v13312_v8 = vpop.f32.mrb[31].mxu0  ;;  %18092 = vmatmul.mubr.bf16.vlgmr.msra.gmra.mrb[136].mxu1 %v14361_v63  ;;  %v13654_v45 = vmul.f32 %v13653_v20, %v22104_v61  ;;  %v13659_v63 = vrot.slane %v13643_v29, %v22102_v60  ;;  %v21699_v0 = vld [vmem:[#allocation2 + $0x5d8] ss:$528 sps:$4 sm:$0xff]   ;;  %v14380_v32 = vcombine.high %v14372_v23, %v14372_v23  ;;  %v25597_v20 = vpop.f32.mrb[68].mxu1 }
0x187c   :  { %18140 = vmatpush1.bf16.xpose.msra.mxu1 %v21693_v12  ;;  %18171 = vmatprep.mubr.bf16.mxu1 %v14364_v28  ;;  %v25586_v28 = vrot.slane %v14330_v43, %v22010_v11  ;;  %v21711_v8 = vld [vmem:[#allocation2 + $0x504] ss:$528 sps:$4 sm:$0xff]   ;;  %v14365_v29 = vcombine.high %v13376_v9, %v13376_v9  ;;  %v16655_v62 = vpop.f32.mrb[69].mxu1  ;;  %v21712_v9 = vld [vmem:[#allocation2 + $0x5e8] ss:$528 sps:$4 sm:$0xff]  }
0x187d   :  { %18141 = vmatprep.subr.bf16.mxu1 %v21701_v21  ;;  %v13655_v57 = vadd.f32 %v13654_v45, %v13649_v35  ;;  %v13660_v12 = vmul.f32 %v13659_v63, %v22109_v1  ;;  %v25589_v21 = vrot.slane %v14380_v32, %v22010_v11  ;;  %v21706_v1 = vld [vmem:[#allocation2 + $0x1c8] ss:$528 sps:$4 sm:$0xff]   ;;  %v21717_v45 = vld [vmem:[#allocation2 + $0xf4] ss:$528 sps:$4 sm:$0xff]   ;;  %v16656_v63 = vpop.f32.mrb[70].mxu1 }
0x187e   :  { %16982 = vmatpush1.bf16.xpose.msra.mxu0 %v21696_v44  ;;  %v14362_v60 = vcombine.high %v25586_v28, %v25586_v28  ;;  %v16657_v32 = vpop.f32.mrb[71].mxu1  ;;  %v21729_v62 = vld [vmem:[#allocation2 + $0x104] ss:$528 sps:$4 sm:$0xff]   ;;  %v21724_v63 = vld [vmem:[#allocation2 + $0x5f8] ss:$528 sps:$4 sm:$0xff]  }
0x187f   :  { %17059 = vmatprep.subr.bf16.mxu0 %v21704_v47  ;;  %v13661_v54 = vadd.f32 %v13660_v12, %v13655_v57  ;;  %v14412_v43 = vcombine.high %v25589_v21, %v25589_v21  ;;  %v21715_v57 = vld [vmem:[#allocation2 + $0xf0] ss:$528 sps:$4 sm:$0xff]   ;;  %v25602_v12 = vrot.slane %v14372_v23, %v22010_v11 }
0x1884   :  { %18142 = vmatpush1.bf16.xpose.msra.mxu1 %v21699_v0  ;;  %v14379_v0 = vrot.slane %v14365_v29, %v22010_v11  ;;  %v21726_v29 = vld [vmem:[#allocation2 + $0x5fc] ss:$528 sps:$4 sm:$0xff]  }
0x1885   :  { %17012 = vmatmul.mubr.bf16.vlgmr.msra.gmra.mrb[84].mxu0 %v25330_v42  ;;  %18219 = vmatprep.subr.bf16.mxu1 %v21708_v56 }
0x1886   :  { %17060 = vmatpush1.bf16.xpose.msra.mxu0 %v21702_v34  ;;  %17091 = vmatprep.mubr.bf16.mxu0 %v25333_v39  ;;  %v14381_v56 = vcombine.high %v14379_v0, %v14379_v0  ;;  %v21720_v34 = vld [vmem:[#allocation2 + $0x1dc] ss:$528 sps:$4 sm:$0xff]  }
0x1887   :  { %17061 = vmatprep.subr.bf16.mxu0 %v21711_v8 }
0x1888   :  { %v15973_v61 = vpop.f32.mrb[32].mxu0  ;;  %v25605_v8 = vrot.slane %v14381_v56, %v22010_v11  ;;  %v21727_v56 = vld [vmem:[#allocation2 + $0x100] ss:$528 sps:$4 sm:$0xff]  }
0x1889   :  { %v15974_v44 = vadd.f32 %v15973_v61, %v13661_v54  ;;  %v15975_v47 = vpop.f32.mrb[33].mxu0  ;;  %v14410_v54 = vcombine.high %v25602_v12, %v25602_v12  ;;  %v21718_v61 = vld [vmem:[#allocation2 + $0x1d8] ss:$528 sps:$4 sm:$0xff]  }
0x188a   :  { %v15976_v42 = vpop.f32.mrb[34].mxu0  ;;  %v14413_v23 = vcombine.high %v25605_v8, %v25605_v8 }
0x188b   :  { %v16014_v39 = vadd.f32 %v25446_v19, %v15974_v44  ;;  %v15977_v35 = vpop.f32.mrb[35].mxu0  ;;  %18172 = vmatmul.mubr.bf16.vlgmr.msra.gmra.mrb[140].mxu1 %v14362_v60  ;;  %v21723_v19 = vld [vmem:[#allocation2 + $0x514] ss:$528 sps:$4 sm:$0xff]   ;;  %v25616_v44 = vpop.f32.mrb[72].mxu1 }
0x188c   :  { %18220 = vmatpush1.bf16.xpose.msra.mxu1 %v21706_v1  ;;  %18251 = vmatprep.mubr.bf16.mxu1 %v14412_v43 }
0x188d   :  { %18221 = vmatprep.subr.bf16.mxu1 %v21714_v2  ;;  %v16735_v2 = vpop.f32.mrb[73].mxu1 }
0x188e   :  { %17062 = vmatpush1.bf16.xpose.msra.mxu0 %v21709_v7  ;;  %v16736_v35 = vpop.f32.mrb[74].mxu1 }
0x188f   :  { %17139 = vmatprep.subr.bf16.mxu0 %v21717_v45  ;;  %v16737_v45 = vpop.f32.mrb[75].mxu1 }
0x1894   :  { %18222 = vmatpush1.bf16.xpose.msra.mxu1 %v21712_v9  ;;  %v21733_v9 = vld [vmem:[#allocation2 + $0x1ec] ss:$528 sps:$4 sm:$0xff]  }
0x1895   :  { %17092 = vmatmul.mubr.bf16.vlgmr.msra.gmra.mrb[88].mxu0 %v25346_v6  ;;  %18299 = vmatprep.subr.bf16.mxu1 %v21720_v34  ;;  %v13377_v6 = vld [vmem:[%s25855_s12 + $0x78] sm:$0xff]  ;;  %v25621_v34 = vrot.slane %v14379_v0, %v22010_v11 }
0x1896   :  { %17140 = vmatpush1.bf16.xpose.msra.mxu0 %v21715_v57  ;;  %17171 = vmatprep.mubr.bf16.mxu0 %v25349_v4  ;;  %v21721_v4 = vld [vmem:[#allocation2 + $0x510] ss:$528 sps:$4 sm:$0xff]  }
0x1897   :  { %17141 = vmatprep.subr.bf16.mxu0 %v21723_v19  ;;  %v14411_v19 = vcombine.high %v25621_v34, %v25621_v34 }
0x1898   :  { %v16053_v60 = vpop.f32.mrb[36].mxu0 }
0x1899   :  { %v16054_v1 = vadd.f32 %v16053_v60, %v16014_v39  ;;  %v16055_v43 = vpop.f32.mrb[37].mxu0  ;;  %v14421_v39 = vrot.slane %v13377_v6, %v22010_v11  ;;  %v21731_v60 = vld [vmem:[#allocation2 + $0x1e8] ss:$528 sps:$4 sm:$0xff]  }
0x189a   :  { %v16056_v47 = vpop.f32.mrb[38].mxu0  ;;  %v21739_v43 = vld [vmem:[#allocation2 + $0x60c] ss:$528 sps:$4 sm:$0xff]  }
0x189b   :  { %v16094_v42 = vadd.f32 %v25465_v36, %v16054_v1  ;;  %v16057_v7 = vpop.f32.mrb[39].mxu0  ;;  %18252 = vmatmul.mubr.bf16.vlgmr.msra.gmra.mrb[144].mxu1 %v14410_v54  ;;  %v14429_v32 = vcombine.high %v14421_v39, %v14421_v39  ;;  %v21736_v36 = vld [vmem:[#allocation2 + $0x524] ss:$528 sps:$4 sm:$0xff]   ;;  %v21734_v47 = vld [vmem:[#allocation2 + $0x520] ss:$528 sps:$4 sm:$0xff]  }
0x189c   :  { %18300 = vmatpush1.bf16.xpose.msra.mxu1 %v21718_v61  ;;  %18331 = vmatprep.mubr.bf16.mxu1 %v14413_v23  ;;  %v14414_v61 = vcombine.high %v13377_v6, %v13377_v6  ;;  %v21742_v7 = vld [vmem:[#allocation2 + $0x114] ss:$528 sps:$4 sm:$0xff]   ;;  %v21737_v6 = vld [vmem:[#allocation2 + $0x608] ss:$528 sps:$4 sm:$0xff]  }
0x189d   :  { %18301 = vmatprep.subr.bf16.mxu1 %v21726_v29  ;;  %v25624_v57 = vrot.slane %v14429_v32, %v22010_v11  ;;  %v25632_v29 = vpop.f32.mrb[60].mxu1  ;;  %v21740_v32 = vld [vmem:[#allocation2 + $0x110] ss:$528 sps:$4 sm:$0xff]  }
0x189e   :  { %17142 = vmatpush1.bf16.xpose.msra.mxu0 %v21721_v4  ;;  %v16815_v4 = vpop.f32.mrb[61].mxu1  ;;  %v14428_v35 = vrot.slane %v14414_v61, %v22010_v11  ;;  %v21751_v61 = vld [vmem:[#allocation2 + $0x61c] ss:$528 sps:$4 sm:$0xff]  }
0x189f   :  { %17219 = vmatprep.subr.bf16.mxu0 %v21729_v62  ;;  %v14461_v0 = vcombine.high %v25624_v57, %v25624_v57  ;;  %v16816_v62 = vpop.f32.mrb[62].mxu1 }
0x18a0   :  { %v16817_v45 = vpop.f32.mrb[63].mxu1 }
0x18a1   :  { %v21758_v45 = vld [vmem:[#allocation2 + $0x20c] ss:$528 sps:$4 sm:$0xff]  }
0x18a4   :  { %18302 = vmatpush1.bf16.xpose.msra.mxu1 %v21724_v63  ;;  %v21745_v63 = vld [vmem:[#allocation2 + $0x1fc] ss:$528 sps:$4 sm:$0xff]  }
0x18a5   :  { %17172 = vmatmul.mubr.bf16.vlgmr.msra.gmra.mrb[92].mxu0 %v25365_v37  ;;  %18379 = vmatprep.subr.bf16.mxu1 %v21733_v9  ;;  %v25637_v9 = vrot.slane %v14421_v39, %v22010_v11 }
0x18a6   :  { %17220 = vmatpush1.bf16.xpose.msra.mxu0 %v21727_v56  ;;  %17251 = vmatprep.mubr.bf16.mxu0 %v25368_v5 }
0x18a7   :  { %17221 = vmatprep.subr.bf16.mxu0 %v21736_v36  ;;  %v14459_v36 = vcombine.high %v25637_v9, %v25637_v9 }
0x18a8   :  { %v16133_v54 = vpop.f32.mrb[44].mxu0 }
0x18a9   :  { %v16134_v23 = vadd.f32 %v16133_v54, %v16094_v42  ;;  %v16135_v1 = vpop.f32.mrb[45].mxu0  ;;  %v14430_v42 = vcombine.high %v14428_v35, %v14428_v35  ;;  %v21743_v54 = vld [vmem:[#allocation2 + $0x1f8] ss:$528 sps:$4 sm:$0xff]  }
0x18aa   :  { %v16136_v37 = vpop.f32.mrb[46].mxu0 }
0x18ab   :  { %v16174_v5 = vadd.f32 %v25481_v55, %v16134_v23  ;;  %v16137_v2 = vpop.f32.mrb[47].mxu0  ;;  %18332 = vmatmul.mubr.bf16.vlgmr.msra.gmra.mrb[148].mxu1 %v14411_v19  ;;  %v21748_v55 = vld [vmem:[#allocation2 + $0x534] ss:$528 sps:$4 sm:$0xff]   ;;  %v25640_v56 = vrot.slane %v14430_v42, %v22010_v11  ;;  %v25648_v23 = vpop.f32.mrb[76].mxu1 }
0x18ac   :  { %18380 = vmatpush1.bf16.xpose.msra.mxu1 %v21731_v60  ;;  %18411 = vmatprep.mubr.bf16.mxu1 %v14461_v0  ;;  %v21761_v42 = vld [vmem:[#allocation2 + $0x544] ss:$528 sps:$4 sm:$0xff]  }
0x18ad   :  { %18381 = vmatprep.subr.bf16.mxu1 %v21739_v43  ;;  %v14462_v39 = vcombine.high %v25640_v56, %v25640_v56  ;;  %v16895_v43 = vpop.f32.mrb[77].mxu1 }
0x18ae   :  { %17222 = vmatpush1.bf16.xpose.msra.mxu0 %v21734_v47  ;;  %v21754_v47 = vld [vmem:[#allocation2 + $0x124] ss:$528 sps:$4 sm:$0xff]   ;;  %v16896_v4 = vpop.f32.mrb[78].mxu1 }
0x18af   :  { %17299 = vmatprep.subr.bf16.mxu0 %v21742_v7  ;;  %v16897_v2 = vpop.f32.mrb[79].mxu1  ;;  %v21749_v7 = vld [vmem:[#allocation2 + $0x618] ss:$528 sps:$4 sm:$0xff]  }
0x18b0   :  { %v21770_v2 = vld [vmem:[#allocation2 + $0x554] ss:$528 sps:$4 sm:$0xff]  }
0x18b4   :  { %18382 = vmatpush1.bf16.xpose.msra.mxu1 %v21737_v6  ;;  %v21752_v6 = vld [vmem:[#allocation2 + $0x120] ss:$528 sps:$4 sm:$0xff]  }
0x18b5   :  { %17252 = vmatmul.mubr.bf16.vlgmr.msra.gmra.mrb[100].mxu0 %v25381_v10  ;;  %18459 = vmatprep.subr.bf16.mxu1 %v21745_v63  ;;  %v21746_v10 = vld [vmem:[#allocation2 + $0x530] ss:$528 sps:$4 sm:$0xff]  }
0x18b6   :  { %17300 = vmatpush1.bf16.xpose.msra.mxu0 %v21740_v32  ;;  %17331 = vmatprep.mubr.bf16.mxu0 %v25384_v30 }
0x18b7   :  { %17301 = vmatprep.subr.bf16.mxu0 %v21748_v55 }
0x18b8   :  { %v16213_v19 = vpop.f32.mrb[48].mxu0 }
0x18b9   :  { %v16214_v60 = vadd.f32 %v16213_v19, %v16174_v5  ;;  %v16215_v0 = vpop.f32.mrb[49].mxu0  ;;  %v19797_v5 = vld.sshfl [vmem:[%s25855_s12 + $0x80] sm:$0x33 pattern:$0x75316420] }
0x18ba   :  { %v16216_v1 = vpop.f32.mrb[50].mxu0  ;;  %v14470_v62 = vcombine.high %v19797_v5, %v19797_v5  ;;  %v25670_v4 = vrot.slane %v19797_v5, %v22010_v11 }
0x18bb   :  { %v16254_v37 = vadd.f32 %v25500_v25, %v16214_v60  ;;  %v16217_v30 = vpop.f32.mrb[51].mxu0  ;;  %18412 = vmatmul.mubr.bf16.vlgmr.msra.gmra.mrb[152].mxu1 %v14459_v36  ;;  %v25655_v25 = vrot.slane %v14428_v35, %v22010_v11  ;;  %v21756_v36 = vld [vmem:[#allocation2 + $0x208] ss:$528 sps:$4 sm:$0xff]   ;;  %v25666_v60 = vpop.f32.mrb[80].mxu1 }
0x18bc   :  { %18460 = vmatpush1.bf16.xpose.msra.mxu1 %v21743_v54  ;;  %18491 = vmatprep.mubr.bf16.mxu1 %v14462_v39  ;;  %v25658_v63 = vrot.slane %v14470_v62, %v22010_v11  ;;  %v21764_v39 = vld [vmem:[#allocation2 + $0x62c] ss:$528 sps:$4 sm:$0xff]   ;;  %v14485_v11 = vcombine.high %v25670_v4, %v25670_v4 }
0x18bd   :  { %18461 = vmatprep.subr.bf16.mxu1 %v21751_v61  ;;  %v14460_v32 = vcombine.high %v25655_v25, %v25655_v25  ;;  %v16975_v61 = vpop.f32.mrb[81].mxu1  ;;  %v18588_v62 = vld [vmem:[%s25836_s15 + $0x8] sm:$0xff] }
0x18be   :  { %17302 = vmatpush1.bf16.xpose.msra.mxu0 %v21746_v10  ;;  %v14486_v35 = vcombine.high %v25658_v63, %v25658_v63  ;;  %v21767_v10 = vld [vmem:[#allocation2 + $0x134] ss:$528 sps:$4 sm:$0xff]   ;;  %v16976_v43 = vpop.f32.mrb[82].mxu1 }
0x18bf   :  { %17379 = vmatprep.subr.bf16.mxu0 %v21754_v47  ;;  %v16977_v30 = vpop.f32.mrb[83].mxu1  ;;  %v21765_v47 = vld [vmem:[#allocation2 + $0x130] ss:$528 sps:$4 sm:$0xff]  }
0x18c0   :  { %v21771_v30 = vld [vmem:[#allocation2 + $0x140] ss:$528 sps:$4 sm:$0xff]  }
0x18c4   :  { %18462 = vmatpush1.bf16.xpose.msra.mxu1 %v21749_v7  ;;  %v18587_v7 = vld [vmem:[%s25836_s15] sm:$0xff] }
0x18c5   :  { %17332 = vmatmul.mubr.bf16.vlgmr.msra.gmra.mrb[104].mxu0 %v25400_v41  ;;  %18539 = vmatprep.subr.bf16.mxu1 %v21758_v45  ;;  %v21759_v41 = vld [vmem:[#allocation2 + $0x540] ss:$528 sps:$4 sm:$0xff]   ;;  %v20589_v45 = vpack.c.bf16 %v18588_v62, %v18587_v7 }
0x18c6   :  { %17380 = vmatpush1.bf16.xpose.msra.mxu0 %v21752_v6  ;;  %17411 = vmatprep.mubr.bf16.mxu0 %v25403_v3  ;;  %v21774_v62 = vld [vmem:[#allocation2 + $0x560] ss:$528 sps:$4 sm:$0xff]  }
0x18c7   :  { %17381 = vmatprep.subr.bf16.mxu0 %v21761_v42  ;;  %v18589_v42 = vld [vmem:[%s25836_s15 + $0x10] sm:$0xff] }
0x18c8   :  { %v16293_v55 = vpop.f32.mrb[52].mxu0 }
0x18c9   :  { %v16294_v19 = vadd.f32 %v16293_v55, %v16254_v37  ;;  %v16295_v54 = vpop.f32.mrb[53].mxu0  ;;  %v21762_v37 = vld [vmem:[#allocation2 + $0x628] ss:$528 sps:$4 sm:$0xff]   ;;  %v25689_v55 = vpop.f32.mrb[84].mxu1 }
0x18ca   :  { %v16296_v0 = vpop.f32.mrb[54].mxu0 }
0x18cb   :  { %v16334_v1 = vadd.f32 %v25516_v52, %v16294_v19  ;;  %v16297_v3 = vpop.f32.mrb[55].mxu0  ;;  %18492 = vmatmul.mubr.bf16.vlgmr.msra.gmra.mrb[156].mxu1 %v14460_v32  ;;  %v25856_v52 = vmov 0.0|0.0   ;;  %v18590_v32 = vld [vmem:[%s25836_s15 + $0x18] sm:$0xff]  ;;  %v17055_v19 = vpop.f32.mrb[85].mxu1  ;;  %v21773_v0 = vld [vmem:[#allocation2 + $0x144] ss:$528 sps:$4 sm:$0xff]  }
0x18cc   :  { %18540 = vmatpush1.bf16.xpose.msra.mxu1 %v21756_v36  ;;  %18571 = vmatprep.mubr.bf16.mxu1 %v14486_v35  ;;  %v21768_v35 = vld [vmem:[#allocation2 + $0x550] ss:$528 sps:$4 sm:$0xff]   ;;  %v20592_v61 = vpack.c.bf16 %v18590_v32, %v18589_v42  ;;  %v21782_v19 = vld [vmem:[#allocation2 + $0x574] ss:$528 sps:$4 sm:$0xff]  }
0x18cd   :  { %18541 = vmatprep.subr.bf16.mxu1 %v21764_v39 }
0x18ce   :  { %17382 = vmatpush1.bf16.xpose.msra.mxu0 %v21759_v41  ;;  %v17056_v41 = vpop.f32.mrb[86].mxu1 }
0x18cf   :  { %17459 = vmatprep.subr.bf16.mxu0 %v21767_v10  ;;  %v17057_v3 = vpop.f32.mrb[87].mxu1 }
0x18d4   :  { %18542 = vmatpush1.bf16.xpose.msra.mxu1 %v21762_v37 }
0x18d5   :  { %17412 = vmatmul.mubr.bf16.vlgmr.msra.gmra.mrb[108].mxu0 %v25416_v18  ;;  %20588 = vmatprep.subr.bf16.mxu1 %v25856_v52 }
0x18d6   :  { %17460 = vmatpush1.bf16.xpose.msra.mxu0 %v21765_v47  ;;  %17491 = vmatprep.mubr.bf16.mxu0 %v25419_v49  ;;  %v19796_v49 = vld [vmem:[%s25832_s11] ss:$0 sm:$0xff] }
0x18d7   :  { %17461 = vmatprep.subr.bf16.mxu0 %v21770_v2  ;;  %v13360_v10 = vadd.f32 %v19796_v49, %v25576_v38  ;;  %v25702_v38 = vpop.f32.mrb[92].mxu1 }
0x18d8   :  { %v16373_v5 = vpop.f32.mrb[40].mxu0 }
0x18d9   :  { %v16374_v18 = vadd.f32 %v16373_v5, %v16334_v1  ;;  %v16375_v6 = vpop.f32.mrb[41].mxu0  ;;  %v25857_v1 = vmov 0.0   ;;  %v13361_v43 = vmax.f32 %v13360_v10, 0.0 }
0x18da   :  { %v16376_v36 = vpop.f32.mrb[42].mxu0 }
0x18db   :  { %v16414_v54 = vadd.f32 %v25535_v59, %v16374_v18  ;;  %v16377_v39 = vpop.f32.mrb[43].mxu0  ;;  %18572 = vmatmul.mubr.bf16.vlgmr.msra.gmra.mrb[160].mxu1 %v14485_v11  ;;  %v21776_v59 = vld [vmem:[#allocation2 + $0x564] ss:$528 sps:$4 sm:$0xff]   ;;  %v17135_v11 = vpop.f32.mrb[93].mxu1  ;;  %v21777_v36 = vld [vmem:[#allocation2 + $0x150] ss:$528 sps:$4 sm:$0xff]  }
0x18dc   :  { %20590 = vmatpush3.bf16.msra.mxu1 %v20589_v45  ;;  %20447 = vmatprep.mubr.msk.f32.mxu1 %vm21881_vm0, %v25857_v1  ;;  %v21779_v18 = vld [vmem:[#allocation2 + $0x154] ss:$528 sps:$4 sm:$0xff]   ;;  %v17136_v6 = vpop.f32.mrb[94].mxu1 }
0x18dd   :  { %20591 = vmatprep.subr.bf16.mxu1 %v25856_v52  ;;  %v17137_v42 = vpop.f32.mrb[95].mxu1 }
0x18de   :  { %17462 = vmatpush1.bf16.xpose.msra.mxu0 %v21768_v35 }
0x18df   :  { %17539 = vmatprep.subr.bf16.mxu0 %v21773_v0 }
0x18e0   :  { %20593 = vmatpush3.bf16.msra.mxu1 %v20592_v61 }
0x18e3   :  { %20448 = vmatmul.mubr.msk.f32.vlgmr.msra.gmra.mrb[164].mxu1 %vm375_vm1, %v13361_v43 }
0x18e5   :  { %17492 = vmatmul.mubr.bf16.vlgmr.msra.gmra.mrb[96].mxu0 %v25435_v53  ;;  %v25705_v53 = vpop.f32.mrb[96].mxu1 }
0x18e6   :  { %17540 = vmatpush1.bf16.xpose.msra.mxu0 %v21771_v30  ;;  %17571 = vmatprep.mubr.bf16.mxu0 %v25438_v15  ;;  %v17215_v15 = vpop.f32.mrb[97].mxu1 }
0x18e7   :  { %17541 = vmatprep.subr.bf16.mxu0 %v21776_v59  ;;  %v17216_v32 = vpop.f32.mrb[98].mxu1  ;;  %v21788_v15 = vld [vmem:[#allocation2 + $0x584] ss:$528 sps:$4 sm:$0xff]  }
0x18e8   :  { %v16453_v37 = vpop.f32.mrb[56].mxu0  ;;  %v17217_v49 = vpop.f32.mrb[99].mxu1 }
0x18e9   :  { %v16454_v47 = vadd.f32 %v16453_v37, %v16414_v54  ;;  %v16455_v2 = vpop.f32.mrb[57].mxu0  ;;  %v25707_v35 = vpop.f32.mrb[100].mxu1  ;;  %v21780_v37 = vld [vmem:[#allocation2 + $0x570] ss:$528 sps:$4 sm:$0xff]  }
0x18ea   :  { %v16456_v7 = vpop.f32.mrb[58].mxu0  ;;  %v17295_v54 = vpop.f32.mrb[101].mxu1 }
0x18eb   :  { %v16494_v5 = vadd.f32 %v25551_v22, %v16454_v47  ;;  %v16457_v45 = vpop.f32.mrb[59].mxu0  ;;  %v17296_v39 = vpop.f32.mrb[102].mxu1  ;;  %v21785_v7 = vld [vmem:[#allocation2 + $0x164] ss:$528 sps:$4 sm:$0xff]  }
0x18ec   :  { %v17297_v22 = vpop.f32.mrb[103].mxu1 }
0x18ed   :  { %v25711_v0 = vpop.f32.mrb[88].mxu1 }
0x18ee   :  { %17542 = vmatpush1.bf16.xpose.msra.mxu0 %v21774_v62  ;;  %v17375_v41 = vpop.f32.mrb[89].mxu1 }
0x18ef   :  { %17619 = vmatprep.subr.bf16.mxu0 %v21779_v18  ;;  %v17376_v3 = vpop.f32.mrb[90].mxu1 }
0x18f0   :  { %v17377_v30 = vpop.f32.mrb[91].mxu1 }
0x18f5   :  { %17572 = vmatmul.mubr.bf16.vlgmr.msra.gmra.mrb[112].mxu0 %v25451_v40  ;;  %v25714_v40 = vpop.f32.mrb[104].mxu1 }
0x18f6   :  { %17620 = vmatpush1.bf16.xpose.msra.mxu0 %v21777_v36  ;;  %17651 = vmatprep.mubr.bf16.mxu0 %v25454_v48  ;;  %v17455_v62 = vpop.f32.mrb[105].mxu1 }
0x18f7   :  { %17621 = vmatprep.subr.bf16.mxu0 %v21782_v19  ;;  %v17456_v11 = vpop.f32.mrb[106].mxu1  ;;  %v21789_v62 = vld [vmem:[#allocation2 + $0x170] ss:$528 sps:$4 sm:$0xff]  }
0x18f8   :  { %v16533_v61 = vpop.f32.mrb[60].mxu0  ;;  %v17457_v48 = vpop.f32.mrb[107].mxu1  ;;  %v21794_v11 = vld [vmem:[#allocation2 + $0x594] ss:$528 sps:$4 sm:$0xff]  }
0x18f9   :  { %v16534_v10 = vadd.f32 %v16533_v61, %v16494_v5  ;;  %v16535_v43 = vpop.f32.mrb[61].mxu0  ;;  %v25716_v45 = vpop.f32.mrb[108].mxu1  ;;  %v21783_v5 = vld [vmem:[#allocation2 + $0x160] ss:$528 sps:$4 sm:$0xff]  }
0x18fa   :  { %v16536_v59 = vpop.f32.mrb[62].mxu0  ;;  %v17535_v18 = vpop.f32.mrb[109].mxu1 }
0x18fb   :  { %v16574_v47 = vadd.f32 %v25573_v50, %v16534_v10  ;;  %v16537_v2 = vpop.f32.mrb[63].mxu0  ;;  %v17536_v6 = vpop.f32.mrb[110].mxu1  ;;  %v21786_v10 = vld [vmem:[#allocation2 + $0x580] ss:$528 sps:$4 sm:$0xff]  }
0x18fc   :  { %v17537_v42 = vpop.f32.mrb[111].mxu1  ;;  %v21792_v6 = vld [vmem:[#allocation2 + $0x590] ss:$528 sps:$4 sm:$0xff]  }
0x18fd   :  { %v25718_v32 = vpop.f32.mrb[112].mxu1 }
0x18fe   :  { %17622 = vmatpush1.bf16.xpose.msra.mxu0 %v21780_v37  ;;  %v17615_v49 = vpop.f32.mrb[113].mxu1 }
0x18ff   :  { %17699 = vmatprep.subr.bf16.mxu0 %v21785_v7  ;;  %v17616_v50 = vpop.f32.mrb[114].mxu1 }
0x1900   :  { %v17617_v36 = vpop.f32.mrb[115].mxu1 }
0x1901   :  { %v25722_v19 = vpop.f32.mrb[120].mxu1 }
0x1902   :  { %v17695_v39 = vpop.f32.mrb[121].mxu1 }
0x1903   :  { %v17696_v61 = vpop.f32.mrb[122].mxu1  ;;  %v21800_v39 = vld [vmem:[#allocation2 + $0x5a4] ss:$528 sps:$4 sm:$0xff]  }
0x1904   :  { %v17697_v43 = vpop.f32.mrb[123].mxu1  ;;  %v21798_v61 = vld [vmem:[#allocation2 + $0x5a0] ss:$528 sps:$4 sm:$0xff]  }
0x1905   :  { %17652 = vmatmul.mubr.bf16.vlgmr.msra.gmra.mrb[116].mxu0 %v25470_v17  ;;  %v21791_v17 = vld [vmem:[#allocation2 + $0x174] ss:$528 sps:$4 sm:$0xff]  }
0x1906   :  { %17700 = vmatpush1.bf16.xpose.msra.mxu0 %v21783_v5  ;;  %17731 = vmatprep.mubr.bf16.mxu0 %v25473_v24  ;;  %v21803_v43 = vld [vmem:[#allocation2 + $0x194] ss:$528 sps:$4 sm:$0xff]  }
0x1907   :  { %17701 = vmatprep.subr.bf16.mxu0 %v21788_v15  ;;  %v21797_v15 = vld [vmem:[#allocation2 + $0x184] ss:$528 sps:$4 sm:$0xff]  }
0x1908   :  { %v16613_v54 = vpop.f32.mrb[64].mxu0 }
0x1909   :  { %v16614_v22 = vadd.f32 %v16613_v54, %v16574_v47  ;;  %v16615_v41 = vpop.f32.mrb[65].mxu0  ;;  %v21795_v54 = vld [vmem:[#allocation2 + $0x180] ss:$528 sps:$4 sm:$0xff]  }
0x190a   :  { %v16616_v3 = vpop.f32.mrb[66].mxu0 }
0x190b   :  { %v16654_v30 = vadd.f32 %v25597_v20, %v16614_v22  ;;  %v16617_v59 = vpop.f32.mrb[67].mxu0 }
0x190e   :  { %17702 = vmatpush1.bf16.xpose.msra.mxu0 %v21786_v10  ;;  %v25725_v37 = vpop.f32.mrb[124].mxu1 }
0x190f   :  { %17779 = vmatprep.subr.bf16.mxu0 %v21791_v17  ;;  %v17775_v24 = vpop.f32.mrb[125].mxu1 }
0x1910   :  { %v17776_v2 = vpop.f32.mrb[126].mxu1  ;;  %v21801_v24 = vld [vmem:[#allocation2 + $0x190] ss:$528 sps:$4 sm:$0xff]  }
0x1911   :  { %v17777_v7 = vpop.f32.mrb[127].mxu1  ;;  %v21806_v2 = vld [vmem:[#allocation2 + $0x5b4] ss:$528 sps:$4 sm:$0xff]  }
0x1915   :  { %17732 = vmatmul.mubr.bf16.vlgmr.msra.gmra.mrb[120].mxu0 %v25486_v58 }
0x1916   :  { %17780 = vmatpush1.bf16.xpose.msra.mxu0 %v21789_v62  ;;  %17811 = vmatprep.mubr.bf16.mxu0 %v25489_v13 }
0x1917   :  { %17781 = vmatprep.subr.bf16.mxu0 %v21794_v11  ;;  %v21804_v11 = vld [vmem:[#allocation2 + $0x5b0] ss:$528 sps:$4 sm:$0xff]  }
0x1918   :  { %v16693_v47 = vpop.f32.mrb[72].mxu0 }
0x1919   :  { %v16694_v48 = vadd.f32 %v16693_v47, %v16654_v30  ;;  %v16695_v20 = vpop.f32.mrb[73].mxu0 }
0x191a   :  { %v16696_v18 = vpop.f32.mrb[74].mxu0  ;;  %v21809_v20 = vld [vmem:[#allocation2 + $0x1a4] ss:$528 sps:$4 sm:$0xff]  }
0x191b   :  { %v16734_v5 = vadd.f32 %v25616_v44, %v16694_v48  ;;  %v16697_v42 = vpop.f32.mrb[75].mxu0 }
0x191c   :  { %v21807_v42 = vld [vmem:[#allocation2 + $0x1a0] ss:$528 sps:$4 sm:$0xff]  }
0x191e   :  { %17782 = vmatpush1.bf16.xpose.msra.mxu0 %v21792_v6  ;;  %v25730_v49 = vpop.f32.mrb[128].mxu1 }
0x191f   :  { %17859 = vmatprep.subr.bf16.mxu0 %v21797_v15  ;;  %v17855_v50 = vpop.f32.mrb[129].mxu1  ;;  %v21812_v15 = vld [vmem:[#allocation2 + $0x5c4] ss:$528 sps:$4 sm:$0xff]  }
0x1920   :  { %v17856_v36 = vpop.f32.mrb[130].mxu1 }
0x1921   :  { %v17857_v58 = vpop.f32.mrb[131].mxu1 }
0x1922   :  { %v21810_v58 = vld [vmem:[#allocation2 + $0x5c0] ss:$528 sps:$4 sm:$0xff]  }
0x1925   :  { %17812 = vmatmul.mubr.bf16.vlgmr.msra.gmra.mrb[128].mxu0 %v25505_v16 }
0x1926   :  { %17860 = vmatpush1.bf16.xpose.msra.mxu0 %v21795_v54  ;;  %17891 = vmatprep.mubr.bf16.mxu0 %v25508_v27 }
0x1927   :  { %17861 = vmatprep.subr.bf16.mxu0 %v21800_v39 }
0x1928   :  { %v16773_v13 = vpop.f32.mrb[76].mxu0 }
0x1929   :  { %v16774_v22 = vadd.f32 %v16773_v13, %v16734_v5  ;;  %v16775_v44 = vpop.f32.mrb[77].mxu0  ;;  %v21815_v13 = vld [vmem:[#allocation2 + $0x1b4] ss:$528 sps:$4 sm:$0xff]  }
0x192a   :  { %v16776_v41 = vpop.f32.mrb[78].mxu0 }
0x192b   :  { %v16814_v3 = vadd.f32 %v25632_v29, %v16774_v22  ;;  %v16777_v10 = vpop.f32.mrb[79].mxu0 }
0x192e   :  { %17862 = vmatpush1.bf16.xpose.msra.mxu0 %v21798_v61  ;;  %v25735_v30 = vpop.f32.mrb[116].mxu1  ;;  %v21813_v61 = vld [vmem:[#allocation2 + $0x1b0] ss:$528 sps:$4 sm:$0xff]  }
0x192f   :  { %17939 = vmatprep.subr.bf16.mxu0 %v21803_v43  ;;  %v17935_v59 = vpop.f32.mrb[117].mxu1 }
0x1930   :  { %v17936_v17 = vpop.f32.mrb[118].mxu1  ;;  %v21816_v59 = vld [vmem:[#allocation2 + $0x5d0] ss:$528 sps:$4 sm:$0xff]  }
0x1931   :  { %v17937_v16 = vpop.f32.mrb[119].mxu1 }
0x1935   :  { %17892 = vmatmul.mubr.bf16.vlgmr.msra.gmra.mrb[132].mxu0 %v25521_v26 }
0x1936   :  { %17940 = vmatpush1.bf16.xpose.msra.mxu0 %v21801_v24  ;;  %17971 = vmatprep.mubr.bf16.mxu0 %v25524_v14  ;;  %v21821_v24 = vld [vmem:[#allocation2 + $0x1c4] ss:$528 sps:$4 sm:$0xff]  }
0x1937   :  { %17941 = vmatprep.subr.bf16.mxu0 %v21806_v2 }
0x1938   :  { %v16853_v27 = vpop.f32.mrb[80].mxu0 }
0x1939   :  { %v16854_v7 = vadd.f32 %v16853_v27, %v16814_v3  ;;  %v16855_v29 = vpop.f32.mrb[81].mxu0  ;;  %v21818_v3 = vld [vmem:[#allocation2 + $0x5d4] ss:$528 sps:$4 sm:$0xff]  }
0x193a   :  { %v16856_v62 = vpop.f32.mrb[82].mxu0  ;;  %v21819_v29 = vld [vmem:[#allocation2 + $0x1c0] ss:$528 sps:$4 sm:$0xff]  }
0x193b   :  { %v16894_v47 = vadd.f32 %v25648_v23, %v16854_v7  ;;  %v16857_v48 = vpop.f32.mrb[83].mxu0  ;;  %v21824_v62 = vld [vmem:[#allocation2 + $0x5e4] ss:$528 sps:$4 sm:$0xff]  }
0x193c   :  { %v21822_v48 = vld [vmem:[#allocation2 + $0x5e0] ss:$528 sps:$4 sm:$0xff]  }
0x193e   :  { %17942 = vmatpush1.bf16.xpose.msra.mxu0 %v21804_v11  ;;  %v25740_v18 = vpop.f32.mrb[132].mxu1 }
0x193f   :  { %18019 = vmatprep.subr.bf16.mxu0 %v21809_v20  ;;  %v18015_v6 = vpop.f32.mrb[133].mxu1 }
0x1940   :  { %v18016_v5 = vpop.f32.mrb[134].mxu1 }
0x1941   :  { %v18017_v26 = vpop.f32.mrb[135].mxu1  ;;  %v21827_v5 = vld [vmem:[#allocation2 + $0x1d4] ss:$528 sps:$4 sm:$0xff]  }
0x1945   :  { %17972 = vmatmul.mubr.bf16.vlgmr.msra.gmra.mrb[136].mxu0 %v25540_v51 }
0x1946   :  { %18020 = vmatpush1.bf16.xpose.msra.mxu0 %v21807_v42  ;;  %18051 = vmatprep.mubr.bf16.mxu0 %v25543_v33 }
0x1947   :  { %18021 = vmatprep.subr.bf16.mxu0 %v21812_v15 }
0x1948   :  { %v16933_v14 = vpop.f32.mrb[68].mxu0 }
0x1949   :  { %v16934_v50 = vadd.f32 %v16933_v14, %v16894_v47  ;;  %v16935_v23 = vpop.f32.mrb[69].mxu0  ;;  %v21825_v14 = vld [vmem:[#allocation2 + $0x1d0] ss:$528 sps:$4 sm:$0xff]  }
0x194a   :  { %v16936_v36 = vpop.f32.mrb[70].mxu0 }
0x194b   :  { %v16974_v54 = vadd.f32 %v25666_v60, %v16934_v50  ;;  %v16937_v39 = vpop.f32.mrb[71].mxu0  ;;  %v21830_v50 = vld [vmem:[#allocation2 + $0x5f4] ss:$528 sps:$4 sm:$0xff]  }
0x194c   :  { %v21833_v39 = vld [vmem:[#allocation2 + $0x1e4] ss:$528 sps:$4 sm:$0xff]  }
0x194e   :  { %18022 = vmatpush1.bf16.xpose.msra.mxu0 %v21810_v58  ;;  %v25745_v22 = vpop.f32.mrb[136].mxu1  ;;  %v21828_v58 = vld [vmem:[#allocation2 + $0x5f0] ss:$528 sps:$4 sm:$0xff]  }
0x194f   :  { %18099 = vmatprep.subr.bf16.mxu0 %v21815_v13  ;;  %v18095_v44 = vpop.f32.mrb[137].mxu1 }
0x1950   :  { %v18096_v41 = vpop.f32.mrb[138].mxu1 }
0x1951   :  { %v18097_v51 = vpop.f32.mrb[139].mxu1 }
0x1955   :  { %18052 = vmatmul.mubr.bf16.vlgmr.msra.gmra.mrb[124].mxu0 %v25556_v31 }
0x1956   :  { %18100 = vmatpush1.bf16.xpose.msra.mxu0 %v21813_v61  ;;  %18131 = vmatprep.mubr.bf16.mxu0 %v25559_v46  ;;  %v21831_v61 = vld [vmem:[#allocation2 + $0x1e0] ss:$528 sps:$4 sm:$0xff]  }
0x1957   :  { %18101 = vmatprep.subr.bf16.mxu0 %v21818_v3  ;;  %v21836_v3 = vld [vmem:[#allocation2 + $0x604] ss:$528 sps:$4 sm:$0xff]  }
0x1958   :  { %v17013_v33 = vpop.f32.mrb[84].mxu0 }
0x1959   :  { %v17014_v10 = vadd.f32 %v17013_v33, %v16974_v54  ;;  %v17015_v60 = vpop.f32.mrb[85].mxu0 }
0x195a   :  { %v17016_v43 = vpop.f32.mrb[86].mxu0 }
0x195b   :  { %v17054_v17 = vadd.f32 %v25689_v55, %v17014_v10  ;;  %v17017_v16 = vpop.f32.mrb[87].mxu0 }
0x195e   :  { %18102 = vmatpush1.bf16.xpose.msra.mxu0 %v21816_v59  ;;  %v25750_v2 = vpop.f32.mrb[140].mxu1  ;;  %v21839_v59 = vld [vmem:[#allocation2 + $0x1f4] ss:$528 sps:$4 sm:$0xff]  }
0x195f   :  { %18179 = vmatprep.subr.bf16.mxu0 %v21821_v24  ;;  %v18175_v27 = vpop.f32.mrb[141].mxu1 }
0x1960   :  { %v18176_v7 = vpop.f32.mrb[142].mxu1 }
0x1961   :  { %v18177_v31 = vpop.f32.mrb[143].mxu1  ;;  %v21837_v7 = vld [vmem:[#allocation2 + $0x1f0] ss:$528 sps:$4 sm:$0xff]  }
0x1962   :  { %v21842_v31 = vld [vmem:[#allocation2 + $0x614] ss:$528 sps:$4 sm:$0xff]  }
0x1965   :  { %18132 = vmatmul.mubr.bf16.vlgmr.msra.gmra.mrb[140].mxu0 %v25586_v28 }
0x1966   :  { %18180 = vmatpush1.bf16.xpose.msra.mxu0 %v21819_v29  ;;  %18211 = vmatprep.mubr.bf16.mxu0 %v25589_v21 }
0x1967   :  { %18181 = vmatprep.subr.bf16.mxu0 %v21824_v62 }
0x1968   :  { %v17093_v46 = vpop.f32.mrb[88].mxu0 }
0x1969   :  { %v17094_v11 = vadd.f32 %v17093_v46, %v17054_v17  ;;  %v17095_v55 = vpop.f32.mrb[89].mxu0 }
0x196a   :  { %v17096_v47 = vpop.f32.mrb[90].mxu0  ;;  %v21845_v55 = vld [vmem:[#allocation2 + $0x204] ss:$528 sps:$4 sm:$0xff]  }
0x196b   :  { %v17134_v20 = vadd.f32 %v25702_v38, %v17094_v11  ;;  %v17097_v6 = vpop.f32.mrb[91].mxu0 }
0x196e   :  { %18182 = vmatpush1.bf16.xpose.msra.mxu0 %v21822_v48  ;;  %v25755_v26 = vpop.f32.mrb[144].mxu1 }
0x196f   :  { %18259 = vmatprep.subr.bf16.mxu0 %v21827_v5  ;;  %v18255_v42 = vpop.f32.mrb[145].mxu1  ;;  %v21843_v5 = vld [vmem:[#allocation2 + $0x200] ss:$528 sps:$4 sm:$0xff]  }
0x1970   :  { %v18256_v15 = vpop.f32.mrb[146].mxu1  ;;  %v21848_v42 = vld [vmem:[#allocation2 + $0x624] ss:$528 sps:$4 sm:$0xff]  }
0x1971   :  { %v18257_v28 = vpop.f32.mrb[147].mxu1 }
0x1975   :  { %18212 = vmatmul.mubr.bf16.vlgmr.msra.gmra.mrb[144].mxu0 %v25602_v12 }
0x1976   :  { %18260 = vmatpush1.bf16.xpose.msra.mxu0 %v21825_v14  ;;  %18291 = vmatprep.mubr.bf16.mxu0 %v25605_v8 }
0x1977   :  { %18261 = vmatprep.subr.bf16.mxu0 %v21830_v50 }
0x1978   :  { %v17173_v21 = vpop.f32.mrb[92].mxu0 }
0x1979   :  { %v17174_v23 = vadd.f32 %v17173_v21, %v17134_v20  ;;  %v17175_v38 = vpop.f32.mrb[93].mxu0 }
0x197a   :  { %v17176_v36 = vpop.f32.mrb[94].mxu0 }
0x197b   :  { %v17177_v54 = vpop.f32.mrb[95].mxu0  ;;  %v17214_v13 = vadd.f32 %v25705_v53, %v17174_v23  ;;  %v21834_v53 = vld [vmem:[#allocation2 + $0x600] ss:$528 sps:$4 sm:$0xff]  }
0x197e   :  { %18262 = vmatpush1.bf16.xpose.msra.mxu0 %v21828_v58  ;;  %v25760_v44 = vpop.f32.mrb[148].mxu1 }
0x197f   :  { %18339 = vmatprep.subr.bf16.mxu0 %v21833_v39  ;;  %v18335_v41 = vpop.f32.mrb[149].mxu1 }
0x1980   :  { %v18336_v51 = vpop.f32.mrb[150].mxu1 }
0x1981   :  { %v18337_v12 = vpop.f32.mrb[151].mxu1 }
0x1985   :  { %18292 = vmatmul.mubr.bf16.vlgmr.msra.gmra.mrb[148].mxu0 %v25621_v34 }
0x1986   :  { %18340 = vmatpush1.bf16.xpose.msra.mxu0 %v21831_v61  ;;  %18371 = vmatprep.mubr.bf16.mxu0 %v25624_v57 }
0x1987   :  { %18341 = vmatprep.subr.bf16.mxu0 %v21836_v3 }
0x1988   :  { %v17253_v8 = vpop.f32.mrb[100].mxu0 }
0x1989   :  { %v17254_v33 = vadd.f32 %v17253_v8, %v17214_v13  ;;  %v17255_v10 = vpop.f32.mrb[101].mxu0 }
0x198a   :  { %v17256_v60 = vpop.f32.mrb[102].mxu0 }
0x198b   :  { %v17257_v43 = vpop.f32.mrb[103].mxu0  ;;  %v17294_v17 = vadd.f32 %v25707_v35, %v17254_v33  ;;  %v21840_v35 = vld [vmem:[#allocation2 + $0x610] ss:$528 sps:$4 sm:$0xff]  }
0x198e   :  { %18342 = vmatpush1.bf16.xpose.msra.mxu0 %v21834_v53  ;;  %v25765_v16 = vpop.f32.mrb[152].mxu1 }
0x198f   :  { %18419 = vmatprep.subr.bf16.mxu0 %v21839_v59  ;;  %v18415_v24 = vpop.f32.mrb[153].mxu1 }
0x1990   :  { %v18416_v27 = vpop.f32.mrb[154].mxu1 }
0x1991   :  { %v18417_v34 = vpop.f32.mrb[155].mxu1 }
0x1995   :  { %18372 = vmatmul.mubr.bf16.vlgmr.msra.gmra.mrb[152].mxu0 %v25637_v9 }
0x1996   :  { %18420 = vmatpush1.bf16.xpose.msra.mxu0 %v21837_v7  ;;  %18451 = vmatprep.mubr.bf16.mxu0 %v25640_v56 }
0x1997   :  { %18421 = vmatprep.subr.bf16.mxu0 %v21842_v31 }
0x1998   :  { %v17333_v57 = vpop.f32.mrb[104].mxu0 }
0x1999   :  { %v17334_v29 = vadd.f32 %v17333_v57, %v17294_v17  ;;  %v17335_v62 = vpop.f32.mrb[105].mxu0 }
0x199a   :  { %v17336_v46 = vpop.f32.mrb[106].mxu0 }
0x199b   :  { %v17337_v11 = vpop.f32.mrb[107].mxu0  ;;  %v17374_v47 = vadd.f32 %v25711_v0, %v17334_v29  ;;  %v21846_v0 = vld [vmem:[#allocation2 + $0x620] ss:$528 sps:$4 sm:$0xff]  }
0x199c   :  { %v18591_v11 = vld [vmem:[%s25837_s16] sm:$0xff] }
0x199e   :  { %18422 = vmatpush1.bf16.xpose.msra.mxu0 %v21840_v35  ;;  %v25770_v48 = vpop.f32.mrb[156].mxu1 }
0x199f   :  { %18499 = vmatprep.subr.bf16.mxu0 %v21845_v55  ;;  %v18495_v20 = vpop.f32.mrb[157].mxu1 }
0x19a0   :  { %v18496_v6 = vpop.f32.mrb[158].mxu1 }
0x19a1   :  { %v18497_v9 = vpop.f32.mrb[159].mxu1 }
0x19a5   :  { %18452 = vmatmul.mubr.bf16.vlgmr.msra.gmra.mrb[156].mxu0 %v25655_v25 }
0x19a6   :  { %18500 = vmatpush1.bf16.xpose.msra.mxu0 %v21843_v5  ;;  %18531 = vmatprep.mubr.bf16.mxu0 %v25658_v63  ;;  %v18594_v5 = vld [vmem:[%s25837_s16 + $0x18] sm:$0xff] }
0x19a7   :  { %18501 = vmatprep.subr.bf16.mxu0 %v21848_v42 }
0x19a8   :  { %v17413_v56 = vpop.f32.mrb[108].mxu0 }
0x19a9   :  { %v17414_v15 = vadd.f32 %v17413_v56, %v17374_v47  ;;  %v17415_v28 = vpop.f32.mrb[109].mxu0 }
0x19aa   :  { %v17416_v14 = vpop.f32.mrb[110].mxu0 }
0x19ab   :  { %v17417_v50 = vpop.f32.mrb[111].mxu0  ;;  %v17454_v21 = vadd.f32 %v25714_v40, %v17414_v15 }
0x19ae   :  { %18502 = vmatpush1.bf16.xpose.msra.mxu0 %v21846_v0  ;;  %v25775_v23 = vpop.f32.mrb[160].mxu1 }
0x19af   :  { %v18575_v38 = vpop.f32.mrb[161].mxu1  ;;  %20582 = vmatprep.subr.bf16.mxu0 %v25856_v52 }
0x19b0   :  { %v18576_v36 = vpop.f32.mrb[162].mxu1 }
0x19b1   :  { %v18577_v25 = vpop.f32.mrb[163].mxu1 }
0x19b5   :  { %18532 = vmatmul.mubr.bf16.vlgmr.msra.gmra.mrb[160].mxu0 %v25670_v4 }
0x19b6   :  { %v25779_v63 = vpop.f32.mrb[164].mxu1  ;;  %20436 = vmatprep.mubr.msk.f32.mxu0 %vm21881_vm0, %v25857_v1 }
0x19b7   :  { %v20449_v58 = vpop.f32.mrb[165].mxu1 }
0x19b8   :  { %v17493_v54 = vpop.f32.mrb[96].mxu0 }
0x19b9   :  { %v17494_v39 = vadd.f32 %v17493_v54, %v17454_v21  ;;  %v17495_v13 = vpop.f32.mrb[97].mxu0 }
0x19ba   :  { %v17496_v40 = vpop.f32.mrb[98].mxu0 }
0x19bb   :  { %v17497_v41 = vpop.f32.mrb[99].mxu0  ;;  %v17534_v51 = vadd.f32 %v25716_v45, %v17494_v39 }
0x19c8   :  { %v17573_v12 = vpop.f32.mrb[112].mxu0 }
0x19c9   :  { %v17574_v61 = vadd.f32 %v17573_v12, %v17534_v51  ;;  %v17575_v3 = vpop.f32.mrb[113].mxu0 }
0x19ca   :  { %v17576_v8 = vpop.f32.mrb[114].mxu0 }
0x19cb   :  { %v17577_v33 = vpop.f32.mrb[115].mxu0  ;;  %v17614_v4 = vadd.f32 %v25718_v32, %v17574_v61 }
0x19d8   :  { %v17653_v10 = vpop.f32.mrb[116].mxu0 }
0x19d9   :  { %v17654_v60 = vadd.f32 %v17653_v10, %v17614_v4  ;;  %v17655_v53 = vpop.f32.mrb[117].mxu0 }
0x19da   :  { %v17656_v43 = vpop.f32.mrb[118].mxu0 }
0x19db   :  { %v17657_v1 = vpop.f32.mrb[119].mxu0  ;;  %v17694_v59 = vadd.f32 %v25722_v19, %v17654_v60  ;;  %v18592_v19 = vld [vmem:[%s25837_s16 + $0x8] sm:$0xff] }
0x19dc   :  { %v20583_v20 = vpack.c.bf16 %v18592_v19, %v18591_v11 }
0x19de   :  { %20584 = vmatpush3.bf16.msra.mxu0 %v20583_v20 }
0x19df   :  { %20585 = vmatprep.subr.bf16.mxu0 %v25856_v52 }
0x19e8   :  { %v17733_v17 = vpop.f32.mrb[120].mxu0 }
0x19e9   :  { %v17734_v24 = vadd.f32 %v17733_v17, %v17694_v59  ;;  %v17735_v27 = vpop.f32.mrb[121].mxu0 }
0x19ea   :  { %v17736_v34 = vpop.f32.mrb[122].mxu0 }
0x19eb   :  { %v17737_v7 = vpop.f32.mrb[123].mxu0  ;;  %v17774_v45 = vadd.f32 %v25725_v37, %v17734_v24 }
0x19f8   :  { %v17813_v31 = vpop.f32.mrb[128].mxu0 }
0x19f9   :  { %v17814_v57 = vadd.f32 %v17813_v31, %v17774_v45  ;;  %v17815_v29 = vpop.f32.mrb[129].mxu0 }
0x19fa   :  { %v17816_v62 = vpop.f32.mrb[130].mxu0 }
0x19fb   :  { %v17817_v46 = vpop.f32.mrb[131].mxu0  ;;  %v17854_v32 = vadd.f32 %v25730_v49, %v17814_v57  ;;  %v18593_v49 = vld [vmem:[%s25837_s16 + $0x10] sm:$0xff] }
0x19fc   :  { %v20586_v42 = vpack.c.bf16 %v18594_v5, %v18593_v49 }
0x19fe   :  { %20587 = vmatpush3.bf16.msra.mxu0 %v20586_v42 }
0x1a08   :  { %v17893_v35 = vpop.f32.mrb[132].mxu0 }
0x1a09   :  { %v17894_v55 = vadd.f32 %v17893_v35, %v17854_v32  ;;  %v17895_v47 = vpop.f32.mrb[133].mxu0 }
0x1a0a   :  { %v17896_v37 = vpop.f32.mrb[134].mxu0 }
0x1a0b   :  { %v17897_v6 = vpop.f32.mrb[135].mxu0  ;;  %v17934_v9 = vadd.f32 %v25735_v30, %v17894_v55 }
0x1a18   :  { %v17973_v56 = vpop.f32.mrb[136].mxu0 }
0x1a19   :  { %v17974_v15 = vadd.f32 %v17973_v56, %v17934_v9  ;;  %v17975_v28 = vpop.f32.mrb[137].mxu0 }
0x1a1a   :  { %v17976_v14 = vpop.f32.mrb[138].mxu0 }
0x1a1b   :  { %v17977_v0 = vpop.f32.mrb[139].mxu0  ;;  %v18014_v30 = vadd.f32 %v25740_v18, %v17974_v15 }
0x1a28   :  { %v18053_v50 = vpop.f32.mrb[124].mxu0 }
0x1a29   :  { %v18054_v21 = vadd.f32 %v18053_v50, %v18014_v30  ;;  %v18055_v52 = vpop.f32.mrb[125].mxu0 }
0x1a2a   :  { %v18056_v38 = vpop.f32.mrb[126].mxu0 }
0x1a2b   :  { %v18057_v36 = vpop.f32.mrb[127].mxu0  ;;  %v18094_v25 = vadd.f32 %v25745_v22, %v18054_v21 }
0x1a38   :  { %v18133_v58 = vpop.f32.mrb[140].mxu0 }
0x1a39   :  { %v18134_v54 = vadd.f32 %v18133_v58, %v18094_v25  ;;  %v18135_v39 = vpop.f32.mrb[141].mxu0 }
0x1a3a   :  { %v18136_v13 = vpop.f32.mrb[142].mxu0 }
0x1a3b   :  { %v18137_v40 = vpop.f32.mrb[143].mxu0  ;;  %v18174_v41 = vadd.f32 %v25750_v2, %v18134_v54 }
0x1a48   :  { %v18213_v51 = vpop.f32.mrb[144].mxu0 }
0x1a49   :  { %v18214_v12 = vadd.f32 %v18213_v51, %v18174_v41  ;;  %v18215_v61 = vpop.f32.mrb[145].mxu0 }
0x1a4a   :  { %v18216_v3 = vpop.f32.mrb[146].mxu0 }
0x1a4b   :  { %v18217_v8 = vpop.f32.mrb[147].mxu0  ;;  %v18254_v18 = vadd.f32 %v25755_v26, %v18214_v12 }
0x1a58   :  { %v18293_v33 = vpop.f32.mrb[148].mxu0 }
0x1a59   :  { %v18294_v4 = vadd.f32 %v18293_v33, %v18254_v18  ;;  %v18295_v10 = vpop.f32.mrb[149].mxu0 }
0x1a5a   :  { %v18296_v60 = vpop.f32.mrb[150].mxu0 }
0x1a5b   :  { %v18297_v53 = vpop.f32.mrb[151].mxu0  ;;  %v18334_v22 = vadd.f32 %v25760_v44, %v18294_v4  ;;  %v20062_v44 = vld [vmem:[%s25835_s14] ss:$0 sm:$0xff] }
0x1a68   :  { %v18373_v43 = vpop.f32.mrb[152].mxu0 }
0x1a69   :  { %v18374_v1 = vadd.f32 %v18373_v43, %v18334_v22  ;;  %v18375_v59 = vpop.f32.mrb[153].mxu0 }
0x1a6a   :  { %v18376_v17 = vpop.f32.mrb[154].mxu0 }
0x1a6b   :  { %v18377_v24 = vpop.f32.mrb[155].mxu0  ;;  %v18414_v2 = vadd.f32 %v25765_v16, %v18374_v1 }
0x1a78   :  { %v18453_v27 = vpop.f32.mrb[156].mxu0 }
0x1a79   :  { %v18454_v34 = vadd.f32 %v18453_v27, %v18414_v2  ;;  %v18455_v7 = vpop.f32.mrb[157].mxu0 }
0x1a7a   :  { %v18456_v45 = vpop.f32.mrb[158].mxu0 }
0x1a7b   :  { %v18457_v31 = vpop.f32.mrb[159].mxu0  ;;  %v18494_v26 = vadd.f32 %v25770_v48, %v18454_v34  ;;  %v20065_v48 = vld [vmem:[%s25838_s17] ss:$0 sm:$0xff] }
0x1a88   :  { %v18533_v57 = vpop.f32.mrb[160].mxu0 }
0x1a89   :  { %v18534_v29 = vadd.f32 %v18533_v57, %v18494_v26  ;;  %v18535_v62 = vpop.f32.mrb[161].mxu0 }
0x1a8a   :  { %v18536_v46 = vpop.f32.mrb[162].mxu0 }
0x1a8b   :  { %v18574_v32 = vadd.f32 %v25775_v23, %v18534_v29  ;;  %v18537_v35 = vpop.f32.mrb[163].mxu0 }
0x1a8d   :  { %v18585_v11 = vadd.f32 %v20062_v44, %v18574_v32 }
0x1a8f   :  { %v18586_v16 = vmax.f32 %v18585_v11, 0.0 }
0x1a91   :  { %20437 = vmatmul.mubr.msk.f32.vlgmr.msra.gmra.mrb[164].mxu0 %vm375_vm1, %v18586_v16 }
0x1b64   :  { %v18664_v19 = vpop.f32.mrb[164].mxu0 }
0x1b65   :  { %v18738_v55 = vadd.f32 %v25779_v63, %v18664_v19  ;;  %v20438_v47 = vpop.f32.mrb[165].mxu0 }
0x1b67   :  { %v18748_v20 = vadd.f32 %v20065_v48, %v18738_v55 }
0x1b69   :  { %18750 = vst.msk [vmem:[%s25840_s19] sm:$0x3] %vm18749_vm3, %v18748_v20 }
0x1b6a   :  { %18759 = vsyncpa [#allocation3], 1 }

</bundles_post_ra>
